<compile_context>
chip_gen: v7x
topology: tpu7x:2x2x1
jax: 0.10.0
libtpu: 0.0.40
codegen_flags: <defaults>
</compile_context>

<pallas_src>
import math
from functools import partial

import jax
import jax.numpy as jnp
from jax.experimental import pallas as pl
from jax.experimental.pallas import tpu as pltpu

# ----------------------------- configuration ------------------------------
VOCAB = 50      # shared source / target vocabulary
HIDDEN = 32     # model dimension
HEADS = 4
DH = HIDDEN // HEADS
FF = 64         # feed-forward inner dimension
N_LAYERS = 2
MAX_LEN = 32
PAD_IDX = 0
NEG_INF = -1e9
EPS = 1e-5
VOCAB_PAD = 128                 # lane-dense logits output (multiple of 128)
SCALE = 1.0 / math.sqrt(DH)


# ----------------------------- in-kernel helpers ---------------------------
def _layer_norm(x, g, b):
    mu = jnp.mean(x, axis=-1, keepdims=True)
    var = jnp.mean((x - mu) ** 2, axis=-1, keepdims=True)
    return (x - mu) * jax.lax.rsqrt(var + EPS) * g + b


def _ffn(x, w1, b1, w2, b2):
    h = jnp.maximum(jnp.dot(x, w1, preferred_element_type=jnp.float32) + b1, 0.0)
    return jnp.dot(h, w2, preferred_element_type=jnp.float32) + b2


def _mha(xq, xkv, wqkv, bqkv, wo, bo, key_bias, causal, batch, lq, lk,
         scr_ref, attn_out_ref=None):
    """Multi-head attention fully inside the kernel.

    xq: (B*lq, D) values, xkv: (B*lk, D) values.
    wqkv: (D, 3D) fused QKV projection, bqkv: (1, 3D).
    key_bias: (B, lk) additive pad bias (0 / -1e9); causal: (lq, lk) or None.
    Output projection Wo is folded into the per-head accumulation.
    Writes the projected attention output into scr_ref and returns its value.
    attn_out_ref (optional, shape (B*H, lq, lk)) receives the softmax probs.
    """
    q = jnp.dot(xq, wqkv[:, :HIDDEN],
                preferred_element_type=jnp.float32) + bqkv[:, :HIDDEN]
    k = jnp.dot(xkv, wqkv[:, HIDDEN:2 * HIDDEN],
                preferred_element_type=jnp.float32) + bqkv[:, HIDDEN:2 * HIDDEN]
    v = jnp.dot(xkv, wqkv[:, 2 * HIDDEN:],
                preferred_element_type=jnp.float32) + bqkv[:, 2 * HIDDEN:]

    for b in range(batch):
        mask_b = jnp.broadcast_to(key_bias[b:b + 1, :], (lq, lk))
        if causal is not None:
            mask_b = mask_b + causal
        acc = jnp.zeros((lq, HIDDEN), jnp.float32)
        for h in range(HEADS):
            qs = q[b * lq:(b + 1) * lq, h * DH:(h + 1) * DH]
            ks = k[b * lk:(b + 1) * lk, h * DH:(h + 1) * DH]
            vs = v[b * lk:(b + 1) * lk, h * DH:(h + 1) * DH]
            s = jnp.dot(qs, ks.T, preferred_element_type=jnp.float32) * SCALE + mask_b
            s = s - jnp.max(s, axis=-1, keepdims=True)
            e = jnp.exp(s)
            p = e / jnp.sum(e, axis=-1, keepdims=True)
            if attn_out_ref is not None:
                attn_out_ref[b * HEADS + h, :, :] = p
            o = jnp.dot(p, vs, preferred_element_type=jnp.float32)
            acc = acc + jnp.dot(o, wo[h * DH:(h + 1) * DH, :],
                                preferred_element_type=jnp.float32)
        scr_ref[b * lq:(b + 1) * lq, :] = acc + bo
    return scr_ref[...]


# ----------------------------- Pallas kernels ------------------------------
def _encoder_kernel(x_ref, src_bias_ref,
                    wqkv_ref, bqkv_ref, wo_ref, bo_ref,
                    ln1g_ref, ln1b_ref, w1_ref, b1_ref, w2_ref, b2_ref,
                    ln2g_ref, ln2b_ref,
                    out_ref, scr, *, batch, src_len):
    x = x_ref[...]                                  # (B*Ls, D)
    src_bias = src_bias_ref[...]                    # (B, Ls)
    for l in range(N_LAYERS):
        attn = _mha(x, x, wqkv_ref[l], bqkv_ref[l], wo_ref[l], bo_ref[l],
                    src_bias, None, batch, src_len, src_len, scr)
        x = _layer_norm(x + attn, ln1g_ref[l], ln1b_ref[l])
        x = _layer_norm(x + _ffn(x, w1_ref[l], b1_ref[l], w2_ref[l], b2_ref[l]),
                        ln2g_ref[l], ln2b_ref[l])
    out_ref[...] = x


def _decoder_kernel(x_ref, enc_ref, tgt_bias_ref, src_bias_ref,
                    s_wqkv_ref, s_bqkv_ref, s_wo_ref, s_bo_ref,
                    c_wqkv_ref, c_bqkv_ref, c_wo_ref, c_bo_ref,
                    ln1g_ref, ln1b_ref, ln2g_ref, ln2b_ref, ln3g_ref, ln3b_ref,
                    w1_ref, b1_ref, w2_ref, b2_ref,
                    wout_ref, bout_ref,
                    logits_ref, attn_ref, scr, *, batch, src_len, tgt_len):
    x = x_ref[...]                                  # (B*Lt, D)
    enc = enc_ref[...]                              # (B*Ls, D)
    tgt_bias = tgt_bias_ref[...]                    # (B, Lt)
    src_bias = src_bias_ref[...]                    # (B, Ls)

    # causal additive mask built in-kernel (no HBM traffic for masks)
    row = jax.lax.broadcasted_iota(jnp.int32, (tgt_len, tgt_len), 0)
    col = jax.lax.broadcasted_iota(jnp.int32, (tgt_len, tgt_len), 1)
    causal = jnp.where(col <= row, 0.0, NEG_INF).astype(jnp.float32)

    for l in range(N_LAYERS):
        self_attn = _mha(x, x, s_wqkv_ref[l], s_bqkv_ref[l], s_wo_ref[l],
                         s_bo_ref[l], tgt_bias, causal, batch, tgt_len, tgt_len,
                         scr)
        x = _layer_norm(x + self_attn, ln1g_ref[l], ln1b_ref[l])

        # only the last layer's cross-attention map is returned by the module
        want_map = (l == N_LAYERS - 1)
        cross = _mha(x, enc, c_wqkv_ref[l], c_bqkv_ref[l], c_wo_ref[l],
                     c_bo_ref[l], src_bias, None, batch, tgt_len, src_len,
                     scr, attn_ref if want_map else None)
        x = _layer_norm(x + cross, ln2g_ref[l], ln2b_ref[l])

        x = _layer_norm(x + _ffn(x, w1_ref[l], b1_ref[l], w2_ref[l], b2_ref[l]),
                        ln3g_ref[l], ln3b_ref[l])

    # lane-dense (128-wide) vocab projection fused into the same kernel
    logits_ref[...] = (jnp.dot(x, wout_ref[...],
                               preferred_element_type=jnp.float32)
                       + bout_ref[...])


# ----------------------------- forward wrapper -----------------------------
def transformer_fwd(params, source, target):
    B, Ls = source.shape
    Lt = target.shape[1]

    # embedding gather + positional encoding (glue; trivial gather)
    x_src = (params["tok_emb"][source] * math.sqrt(HIDDEN)
             + params["pos_enc"][:Ls][None]).reshape(B * Ls, HIDDEN)
    x_tgt = (params["tok_emb"][target] * math.sqrt(HIDDEN)
             + params["pos_enc"][:Lt][None]).reshape(B * Lt, HIDDEN)

    # compact rank-1 additive pad biases; full masks are built inside kernels
    src_bias = jnp.where(source != PAD_IDX, 0.0, NEG_INF).astype(jnp.float32)
    tgt_bias = jnp.where(target != PAD_IDX, 0.0, NEG_INF).astype(jnp.float32)

    e = params["encoder"]
    enc_out = pl.pallas_call(
        partial(_encoder_kernel, batch=B, src_len=Ls),
        out_shape=jax.ShapeDtypeStruct((B * Ls, HIDDEN), jnp.float32),
        scratch_shapes=[pltpu.VMEM((B * Ls, HIDDEN), jnp.float32)],
    )(x_src, src_bias,
      e["wqkv"], e["bqkv"], e["wo"], e["bo"],
      e["ln1_g"], e["ln1_b"], e["w1"], e["b1"], e["w2"], e["b2"],
      e["ln2_g"], e["ln2_b"])

    d = params["decoder"]
    w_out = jnp.pad(params["w_out"], ((0, 0), (0, VOCAB_PAD - VOCAB)))
    b_out = jnp.pad(params["b_out"], ((0, 0), (0, VOCAB_PAD - VOCAB)))
    logits_pad, attn_flat = pl.pallas_call(
        partial(_decoder_kernel, batch=B, src_len=Ls, tgt_len=Lt),
        out_shape=[
            jax.ShapeDtypeStruct((B * Lt, VOCAB_PAD), jnp.float32),
            jax.ShapeDtypeStruct((B * HEADS, Lt, Ls), jnp.float32),
        ],
        scratch_shapes=[pltpu.VMEM((B * Lt, HIDDEN), jnp.float32)],
    )(x_tgt, enc_out, tgt_bias, src_bias,
      d["self_wqkv"], d["self_bqkv"], d["self_wo"], d["self_bo"],
      d["cross_wqkv"], d["cross_bqkv"], d["cross_wo"], d["cross_bo"],
      d["ln1_g"], d["ln1_b"], d["ln2_g"], d["ln2_b"], d["ln3_g"], d["ln3_b"],
      d["w1"], d["b1"], d["w2"], d["b2"],
      w_out, b_out)

    output = logits_pad[:, :VOCAB].reshape(B, Lt, VOCAB)
    attn_map = attn_flat.reshape(B, HEADS, Lt, Ls)
    return output, attn_map


# ----------------------------- parameter init ------------------------------
def _dense(key, din, dout, std=0.02):
    return (jax.random.normal(key, (din, dout), jnp.float32) * std,
            jnp.zeros((1, dout), jnp.float32))


def _mha_weights(key):
    ks = jax.random.split(key, 4)
    wq, bq = _dense(ks[0], HIDDEN, HIDDEN)
    wk, bk = _dense(ks[1], HIDDEN, HIDDEN)
    wv, bv = _dense(ks[2], HIDDEN, HIDDEN)
    wo, bo = _dense(ks[3], HIDDEN, HIDDEN)
    # fused (D, 3D) QKV weight / bias
    return (jnp.concatenate([wq, wk, wv], axis=1),
            jnp.concatenate([bq, bk, bv], axis=1), wo, bo)


def _sinusoidal_pos_enc(max_len, d):
    pos = jnp.arange(max_len, dtype=jnp.float32)[:, None]
    i = jnp.arange(d, dtype=jnp.float32)[None, :]
    angle = pos / jnp.power(10000.0, (2.0 * jnp.floor(i / 2.0)) / d)
    return jnp.where(jnp.arange(d)[None, :] % 2 == 0, jnp.sin(angle), jnp.cos(angle))


def _ones():
    return jnp.ones((1, HIDDEN), jnp.float32)


def _zeros():
    return jnp.zeros((1, HIDDEN), jnp.float32)


def init_params(key):
    keys = jax.random.split(key, 2 + 2 * N_LAYERS)
    params = {
        "tok_emb": jax.random.normal(keys[0], (VOCAB, HIDDEN), jnp.float32) * 0.02,
        "pos_enc": _sinusoidal_pos_enc(MAX_LEN, HIDDEN),
    }
    params["w_out"], params["b_out"] = _dense(keys[1], HIDDEN, VOCAB)

    enc_names = ["wqkv", "bqkv", "wo", "bo", "w1", "b1", "w2", "b2",
                 "ln1_g", "ln1_b", "ln2_g", "ln2_b"]
    enc = {n: [] for n in enc_names}
    for l in range(N_LAYERS):
        k = jax.random.split(keys[2 + l], 3)
        wqkv, bqkv, wo, bo = _mha_weights(k[0])
        w1, b1 = _dense(k[1], HIDDEN, FF)
        w2, b2 = _dense(k[2], FF, HIDDEN)
        vals = [wqkv, bqkv, wo, bo, w1, b1, w2, b2,
                _ones(), _zeros(), _ones(), _zeros()]
        for n, v in zip(enc_names, vals):
            enc[n].append(v)
    params["encoder"] = {n: jnp.stack(v, 0) for n, v in enc.items()}

    dec_names = ["self_wqkv", "self_bqkv", "self_wo", "self_bo",
                 "cross_wqkv", "cross_bqkv", "cross_wo", "cross_bo",
                 "w1", "b1", "w2", "b2",
                 "ln1_g", "ln1_b", "ln2_g", "ln2_b", "ln3_g", "ln3_b"]
    dec = {n: [] for n in dec_names}
    for l in range(N_LAYERS):
        k = jax.random.split(keys[2 + N_LAYERS + l], 4)
        s_wqkv, s_bqkv, s_wo, s_bo = _mha_weights(k[0])
        c_wqkv, c_bqkv, c_wo, c_bo = _mha_weights(k[1])
        w1, b1 = _dense(k[2], HIDDEN, FF)
        w2, b2 = _dense(k[3], FF, HIDDEN)
        vals = [s_wqkv, s_bqkv, s_wo, s_bo, c_wqkv, c_bqkv, c_wo, c_bo,
                w1, b1, w2, b2,
                _ones(), _zeros(), _ones(), _zeros(), _ones(), _zeros()]
        for n, v in zip(dec_names, vals):
            dec[n].append(v)
    params["decoder"] = {n: jnp.stack(v, 0) for n, v in dec.items()}
    return params


# ----------------------------- main ----------------------------------------
if __name__ == "__main__":
    key = jax.random.PRNGKey(0)
    k_p, k_s, k_t = jax.random.split(key, 3)

    params = init_params(k_p)

    B, L_SRC, L_TGT = 2, 8, 8
    source = jax.random.randint(k_s, (B, L_SRC), 1, VOCAB, dtype=jnp.int32)
    target = jax.random.randint(k_t, (B, L_TGT), 1, VOCAB, dtype=jnp.int32)
    # introduce a pad token to exercise the padding masks
    source = source.at[1, -1].set(PAD_IDX)

    fwd = jax.jit(transformer_fwd)
    output, attn_map = fwd(params, source, target)
    jax.block_until_ready((output, attn_map))

    assert output.shape == (B, L_TGT, VOCAB)
    assert attn_map.shape == (B, HEADS, L_TGT, L_SRC)
    assert bool(jnp.all(jnp.isfinite(output)))
    # attention rows should sum to ~1
    assert bool(jnp.allclose(attn_map.sum(-1), 1.0, atol=1e-4))

    print("KERNEL_OK")
</pallas_src>

<mosaic_0001>
module attributes {stable_mosaic.version = 11 : i64} {
  func.func @_encoder_kernel(%arg0: memref<16x32xf32, #tpu.memory_space<vmem>>, %arg1: memref<2x8xf32, #tpu.memory_space<vmem>>, %arg2: memref<2x32x96xf32, #tpu.memory_space<vmem>>, %arg3: memref<2x1x96xf32, #tpu.memory_space<vmem>>, %arg4: memref<2x32x32xf32, #tpu.memory_space<vmem>>, %arg5: memref<2x1x32xf32, #tpu.memory_space<vmem>>, %arg6: memref<2x1x32xf32, #tpu.memory_space<vmem>>, %arg7: memref<2x1x32xf32, #tpu.memory_space<vmem>>, %arg8: memref<2x32x64xf32, #tpu.memory_space<vmem>>, %arg9: memref<2x1x64xf32, #tpu.memory_space<vmem>>, %arg10: memref<2x64x32xf32, #tpu.memory_space<vmem>>, %arg11: memref<2x1x32xf32, #tpu.memory_space<vmem>>, %arg12: memref<2x1x32xf32, #tpu.memory_space<vmem>>, %arg13: memref<2x1x32xf32, #tpu.memory_space<vmem>>, %arg14: memref<16x32xf32, #tpu.memory_space<vmem>>, %arg15: memref<16x32xf32, #tpu.memory_space<vmem>>) attributes {dimension_semantics = [], scalar_prefetch = 0 : i64, scratch_operands = 1 : i64, tpu.core_type = #tpu.core_type<tc>} {
    %c0 = arith.constant 0 : index
    %c0_0 = arith.constant 0 : index
    %0 = vector.load %arg0[%c0, %c0_0] : memref<16x32xf32, #tpu.memory_space<vmem>>, vector<16x32xf32>
    %c0_1 = arith.constant 0 : index
    %c0_2 = arith.constant 0 : index
    %1 = vector.load %arg1[%c0_1, %c0_2] : memref<2x8xf32, #tpu.memory_space<vmem>>, vector<2x8xf32>
    %c0_3 = arith.constant 0 : index
    %c0_4 = arith.constant 0 : index
    %c0_5 = arith.constant 0 : index
    %2 = vector.load %arg2[%c0_3, %c0_4, %c0_5] : memref<2x32x96xf32, #tpu.memory_space<vmem>>, vector<1x32x96xf32>
    %3 = vector.shape_cast %2 : vector<1x32x96xf32> to vector<32x96xf32>
    %c0_6 = arith.constant 0 : index
    %c0_7 = arith.constant 0 : index
    %c0_8 = arith.constant 0 : index
    %4 = vector.load %arg3[%c0_6, %c0_7, %c0_8] : memref<2x1x96xf32, #tpu.memory_space<vmem>>, vector<1x1x96xf32>
    %5 = vector.shape_cast %4 : vector<1x1x96xf32> to vector<1x96xf32>
    %c0_9 = arith.constant 0 : index
    %c0_10 = arith.constant 0 : index
    %c0_11 = arith.constant 0 : index
    %6 = vector.load %arg4[%c0_9, %c0_10, %c0_11] : memref<2x32x32xf32, #tpu.memory_space<vmem>>, vector<1x32x32xf32>
    %7 = vector.shape_cast %6 : vector<1x32x32xf32> to vector<32x32xf32>
    %c0_12 = arith.constant 0 : index
    %c0_13 = arith.constant 0 : index
    %c0_14 = arith.constant 0 : index
    %8 = vector.load %arg5[%c0_12, %c0_13, %c0_14] : memref<2x1x32xf32, #tpu.memory_space<vmem>>, vector<1x1x32xf32>
    %9 = vector.shape_cast %8 : vector<1x1x32xf32> to vector<1x32xf32>
    %10 = vector.extract_strided_slice %3 {offsets = [0, 0], sizes = [32, 32], strides = [1, 1]} : vector<32x96xf32> to vector<32x32xf32>
    %cst = arith.constant dense<0.000000e+00> : vector<16x32xf32>
    %11 = tpu.matmul %0, %10, %cst {dimension_numbers = #tpu.dot_dimension_numbers<[1], [0], [0], [1], [0, 0, 1, 1], [], []>} : vector<16x32xf32>, vector<32x32xf32>, vector<16x32xf32> -> vector<16x32xf32>
    %12 = vector.extract_strided_slice %5 {offsets = [0, 0], sizes = [1, 32], strides = [1, 1]} : vector<1x96xf32> to vector<1x32xf32>
    %13 = vector.broadcast %12 : vector<1x32xf32> to vector<16x32xf32>
    %14 = arith.addf %11, %13 : vector<16x32xf32>
    %15 = vector.extract_strided_slice %3 {offsets = [0, 32], sizes = [32, 32], strides = [1, 1]} : vector<32x96xf32> to vector<32x32xf32>
    %cst_15 = arith.constant dense<0.000000e+00> : vector<16x32xf32>
    %16 = tpu.matmul %0, %15, %cst_15 {dimension_numbers = #tpu.dot_dimension_numbers<[1], [0], [0], [1], [0, 0, 1, 1], [], []>} : vector<16x32xf32>, vector<32x32xf32>, vector<16x32xf32> -> vector<16x32xf32>
    %17 = vector.extract_strided_slice %5 {offsets = [0, 32], sizes = [1, 32], strides = [1, 1]} : vector<1x96xf32> to vector<1x32xf32>
    %18 = vector.broadcast %17 : vector<1x32xf32> to vector<16x32xf32>
    %19 = arith.addf %16, %18 : vector<16x32xf32>
    %20 = vector.extract_strided_slice %3 {offsets = [0, 64], sizes = [32, 32], strides = [1, 1]} : vector<32x96xf32> to vector<32x32xf32>
    %cst_16 = arith.constant dense<0.000000e+00> : vector<16x32xf32>
    %21 = tpu.matmul %0, %20, %cst_16 {dimension_numbers = #tpu.dot_dimension_numbers<[1], [0], [0], [1], [0, 0, 1, 1], [], []>} : vector<16x32xf32>, vector<32x32xf32>, vector<16x32xf32> -> vector<16x32xf32>
    %22 = vector.extract_strided_slice %5 {offsets = [0, 64], sizes = [1, 32], strides = [1, 1]} : vector<1x96xf32> to vector<1x32xf32>
    %23 = vector.broadcast %22 : vector<1x32xf32> to vector<16x32xf32>
    %24 = arith.addf %21, %23 : vector<16x32xf32>
    %25 = vector.extract_strided_slice %1 {offsets = [0, 0], sizes = [1, 8], strides = [1, 1]} : vector<2x8xf32> to vector<1x8xf32>
    %26 = vector.shape_cast %25 : vector<1x8xf32> to vector<1x8xf32>
    %27 = vector.broadcast %26 : vector<1x8xf32> to vector<8x8xf32>
    %cst_17 = arith.constant 0.000000e+00 : f32
    %28 = vector.broadcast %cst_17 : f32 to vector<8x32xf32>
    %29 = vector.extract_strided_slice %14 {offsets = [0, 0], sizes = [8, 8], strides = [1, 1]} : vector<16x32xf32> to vector<8x8xf32>
    %30 = vector.extract_strided_slice %19 {offsets = [0, 0], sizes = [8, 8], strides = [1, 1]} : vector<16x32xf32> to vector<8x8xf32>
    %31 = vector.extract_strided_slice %24 {offsets = [0, 0], sizes = [8, 8], strides = [1, 1]} : vector<16x32xf32> to vector<8x8xf32>
    %32 = tpu.transpose %30, [1, 0] : vector<8x8xf32> -> vector<8x8xf32>
    %cst_18 = arith.constant dense<0.000000e+00> : vector<8x8xf32>
    %33 = tpu.matmul %29, %32, %cst_18 {dimension_numbers = #tpu.dot_dimension_numbers<[1], [0], [0], [1], [0, 0, 1, 1], [], []>} : vector<8x8xf32>, vector<8x8xf32>, vector<8x8xf32> -> vector<8x8xf32>
    %cst_19 = arith.constant 0.353553385 : f32
    %34 = vector.broadcast %cst_19 : f32 to vector<8x8xf32>
    %35 = arith.mulf %33, %34 : vector<8x8xf32>
    %36 = arith.addf %35, %27 : vector<8x8xf32>
    %cst_20 = arith.constant dense<0xFF800000> : vector<8xf32>
    %37 = vector.multi_reduction <maximumf>, %36, %cst_20 [1] : vector<8x8xf32> to vector<8xf32>
    %38 = vector.shape_cast %37 : vector<8xf32> to vector<8x1xf32>
    %39 = vector.broadcast %38 : vector<8x1xf32> to vector<8x8xf32>
    %40 = arith.subf %36, %39 : vector<8x8xf32>
    %41 = math.exp %40 : vector<8x8xf32>
    %cst_21 = arith.constant dense<0.000000e+00> : vector<8xf32>
    %42 = vector.multi_reduction <add>, %41, %cst_21 [1] : vector<8x8xf32> to vector<8xf32>
    %43 = vector.shape_cast %42 : vector<8xf32> to vector<8x1xf32>
    %44 = vector.broadcast %43 : vector<8x1xf32> to vector<8x8xf32>
    %45 = arith.divf %41, %44 : vector<8x8xf32>
    %cst_22 = arith.constant dense<0.000000e+00> : vector<8x8xf32>
    %46 = tpu.matmul %45, %31, %cst_22 {dimension_numbers = #tpu.dot_dimension_numbers<[1], [0], [0], [1], [0, 0, 1, 1], [], []>} : vector<8x8xf32>, vector<8x8xf32>, vector<8x8xf32> -> vector<8x8xf32>
    %47 = vector.extract_strided_slice %7 {offsets = [0, 0], sizes = [8, 32], strides = [1, 1]} : vector<32x32xf32> to vector<8x32xf32>
    %cst_23 = arith.constant dense<0.000000e+00> : vector<8x32xf32>
    %48 = tpu.matmul %46, %47, %cst_23 {dimension_numbers = #tpu.dot_dimension_numbers<[1], [0], [0], [1], [0, 0, 1, 1], [], []>} : vector<8x8xf32>, vector<8x32xf32>, vector<8x32xf32> -> vector<8x32xf32>
    %49 = arith.addf %28, %48 : vector<8x32xf32>
    %50 = vector.extract_strided_slice %14 {offsets = [0, 8], sizes = [8, 8], strides = [1, 1]} : vector<16x32xf32> to vector<8x8xf32>
    %51 = vector.extract_strided_slice %19 {offsets = [0, 8], sizes = [8, 8], strides = [1, 1]} : vector<16x32xf32> to vector<8x8xf32>
    %52 = vector.extract_strided_slice %24 {offsets = [0, 8], sizes = [8, 8], strides = [1, 1]} : vector<16x32xf32> to vector<8x8xf32>
    %53 = tpu.transpose %51, [1, 0] : vector<8x8xf32> -> vector<8x8xf32>
    %cst_24 = arith.constant dense<0.000000e+00> : vector<8x8xf32>
    %54 = tpu.matmul %50, %53, %cst_24 {dimension_numbers = #tpu.dot_dimension_numbers<[1], [0], [0], [1], [0, 0, 1, 1], [], []>} : vector<8x8xf32>, vector<8x8xf32>, vector<8x8xf32> -> vector<8x8xf32>
    %cst_25 = arith.constant 0.353553385 : f32
    %55 = vector.broadcast %cst_25 : f32 to vector<8x8xf32>
    %56 = arith.mulf %54, %55 : vector<8x8xf32>
    %57 = arith.addf %56, %27 : vector<8x8xf32>
    %cst_26 = arith.constant dense<0xFF800000> : vector<8xf32>
    %58 = vector.multi_reduction <maximumf>, %57, %cst_26 [1] : vector<8x8xf32> to vector<8xf32>
    %59 = vector.shape_cast %58 : vector<8xf32> to vector<8x1xf32>
    %60 = vector.broadcast %59 : vector<8x1xf32> to vector<8x8xf32>
    %61 = arith.subf %57, %60 : vector<8x8xf32>
    %62 = math.exp %61 : vector<8x8xf32>
    %cst_27 = arith.constant dense<0.000000e+00> : vector<8xf32>
    %63 = vector.multi_reduction <add>, %62, %cst_27 [1] : vector<8x8xf32> to vector<8xf32>
    %64 = vector.shape_cast %63 : vector<8xf32> to vector<8x1xf32>
    %65 = vector.broadcast %64 : vector<8x1xf32> to vector<8x8xf32>
    %66 = arith.divf %62, %65 : vector<8x8xf32>
    %cst_28 = arith.constant dense<0.000000e+00> : vector<8x8xf32>
    %67 = tpu.matmul %66, %52, %cst_28 {dimension_numbers = #tpu.dot_dimension_numbers<[1], [0], [0], [1], [0, 0, 1, 1], [], []>} : vector<8x8xf32>, vector<8x8xf32>, vector<8x8xf32> -> vector<8x8xf32>
    %68 = vector.extract_strided_slice %7 {offsets = [8, 0], sizes = [8, 32], strides = [1, 1]} : vector<32x32xf32> to vector<8x32xf32>
    %cst_29 = arith.constant dense<0.000000e+00> : vector<8x32xf32>
    %69 = tpu.matmul %67, %68, %cst_29 {dimension_numbers = #tpu.dot_dimension_numbers<[1], [0], [0], [1], [0, 0, 1, 1], [], []>} : vector<8x8xf32>, vector<8x32xf32>, vector<8x32xf32> -> vector<8x32xf32>
    %70 = arith.addf %49, %69 : vector<8x32xf32>
    %71 = vector.extract_strided_slice %14 {offsets = [0, 16], sizes = [8, 8], strides = [1, 1]} : vector<16x32xf32> to vector<8x8xf32>
    %72 = vector.extract_strided_slice %19 {offsets = [0, 16], sizes = [8, 8], strides = [1, 1]} : vector<16x32xf32> to vector<8x8xf32>
    %73 = vector.extract_strided_slice %24 {offsets = [0, 16], sizes = [8, 8], strides = [1, 1]} : vector<16x32xf32> to vector<8x8xf32>
    %74 = tpu.transpose %72, [1, 0] : vector<8x8xf32> -> vector<8x8xf32>
    %cst_30 = arith.constant dense<0.000000e+00> : vector<8x8xf32>
    %75 = tpu.matmul %71, %74, %cst_30 {dimension_numbers = #tpu.dot_dimension_numbers<[1], [0], [0], [1], [0, 0, 1, 1], [], []>} : vector<8x8xf32>, vector<8x8xf32>, vector<8x8xf32> -> vector<8x8xf32>
    %cst_31 = arith.constant 0.353553385 : f32
    %76 = vector.broadcast %cst_31 : f32 to vector<8x8xf32>
    %77 = arith.mulf %75, %76 : vector<8x8xf32>
    %78 = arith.addf %77, %27 : vector<8x8xf32>
    %cst_32 = arith.constant dense<0xFF800000> : vector<8xf32>
    %79 = vector.multi_reduction <maximumf>, %78, %cst_32 [1] : vector<8x8xf32> to vector<8xf32>
    %80 = vector.shape_cast %79 : vector<8xf32> to vector<8x1xf32>
    %81 = vector.broadcast %80 : vector<8x1xf32> to vector<8x8xf32>
    %82 = arith.subf %78, %81 : vector<8x8xf32>
    %83 = math.exp %82 : vector<8x8xf32>
    %cst_33 = arith.constant dense<0.000000e+00> : vector<8xf32>
    %84 = vector.multi_reduction <add>, %83, %cst_33 [1] : vector<8x8xf32> to vector<8xf32>
    %85 = vector.shape_cast %84 : vector<8xf32> to vector<8x1xf32>
    %86 = vector.broadcast %85 : vector<8x1xf32> to vector<8x8xf32>
    %87 = arith.divf %83, %86 : vector<8x8xf32>
    %cst_34 = arith.constant dense<0.000000e+00> : vector<8x8xf32>
    %88 = tpu.matmul %87, %73, %cst_34 {dimension_numbers = #tpu.dot_dimension_numbers<[1], [0], [0], [1], [0, 0, 1, 1], [], []>} : vector<8x8xf32>, vector<8x8xf32>, vector<8x8xf32> -> vector<8x8xf32>
    %89 = vector.extract_strided_slice %7 {offsets = [16, 0], sizes = [8, 32], strides = [1, 1]} : vector<32x32xf32> to vector<8x32xf32>
    %cst_35 = arith.constant dense<0.000000e+00> : vector<8x32xf32>
    %90 = tpu.matmul %88, %89, %cst_35 {dimension_numbers = #tpu.dot_dimension_numbers<[1], [0], [0], [1], [0, 0, 1, 1], [], []>} : vector<8x8xf32>, vector<8x32xf32>, vector<8x32xf32> -> vector<8x32xf32>
    %91 = arith.addf %70, %90 : vector<8x32xf32>
    %92 = vector.extract_strided_slice %14 {offsets = [0, 24], sizes = [8, 8], strides = [1, 1]} : vector<16x32xf32> to vector<8x8xf32>
    %93 = vector.extract_strided_slice %19 {offsets = [0, 24], sizes = [8, 8], strides = [1, 1]} : vector<16x32xf32> to vector<8x8xf32>
    %94 = vector.extract_strided_slice %24 {offsets = [0, 24], sizes = [8, 8], strides = [1, 1]} : vector<16x32xf32> to vector<8x8xf32>
    %95 = tpu.transpose %93, [1, 0] : vector<8x8xf32> -> vector<8x8xf32>
    %cst_36 = arith.constant dense<0.000000e+00> : vector<8x8xf32>
    %96 = tpu.matmul %92, %95, %cst_36 {dimension_numbers = #tpu.dot_dimension_numbers<[1], [0], [0], [1], [0, 0, 1, 1], [], []>} : vector<8x8xf32>, vector<8x8xf32>, vector<8x8xf32> -> vector<8x8xf32>
    %cst_37 = arith.constant 0.353553385 : f32
    %97 = vector.broadcast %cst_37 : f32 to vector<8x8xf32>
    %98 = arith.mulf %96, %97 : vector<8x8xf32>
    %99 = arith.addf %98, %27 : vector<8x8xf32>
    %cst_38 = arith.constant dense<0xFF800000> : vector<8xf32>
    %100 = vector.multi_reduction <maximumf>, %99, %cst_38 [1] : vector<8x8xf32> to vector<8xf32>
    %101 = vector.shape_cast %100 : vector<8xf32> to vector<8x1xf32>
    %102 = vector.broadcast %101 : vector<8x1xf32> to vector<8x8xf32>
    %103 = arith.subf %99, %102 : vector<8x8xf32>
    %104 = math.exp %103 : vector<8x8xf32>
    %cst_39 = arith.constant dense<0.000000e+00> : vector<8xf32>
    %105 = vector.multi_reduction <add>, %104, %cst_39 [1] : vector<8x8xf32> to vector<8xf32>
    %106 = vector.shape_cast %105 : vector<8xf32> to vector<8x1xf32>
    %107 = vector.broadcast %106 : vector<8x1xf32> to vector<8x8xf32>
    %108 = arith.divf %104, %107 : vector<8x8xf32>
    %cst_40 = arith.constant dense<0.000000e+00> : vector<8x8xf32>
    %109 = tpu.matmul %108, %94, %cst_40 {dimension_numbers = #tpu.dot_dimension_numbers<[1], [0], [0], [1], [0, 0, 1, 1], [], []>} : vector<8x8xf32>, vector<8x8xf32>, vector<8x8xf32> -> vector<8x8xf32>
    %110 = vector.extract_strided_slice %7 {offsets = [24, 0], sizes = [8, 32], strides = [1, 1]} : vector<32x32xf32> to vector<8x32xf32>
    %cst_41 = arith.constant dense<0.000000e+00> : vector<8x32xf32>
    %111 = tpu.matmul %109, %110, %cst_41 {dimension_numbers = #tpu.dot_dimension_numbers<[1], [0], [0], [1], [0, 0, 1, 1], [], []>} : vector<8x8xf32>, vector<8x32xf32>, vector<8x32xf32> -> vector<8x32xf32>
    %112 = arith.addf %91, %111 : vector<8x32xf32>
    %113 = vector.broadcast %9 : vector<1x32xf32> to vector<8x32xf32>
    %114 = arith.addf %112, %113 : vector<8x32xf32>
    %c0_42 = arith.constant 0 : index
    %c0_43 = arith.constant 0 : index
    %115 = vector.load %arg15[%c0_42, %c0_43] : memref<16x32xf32, #tpu.memory_space<vmem>>, vector<8x32xf32>
    tpu.vector_store %arg15[%c0_42, %c0_43], %114 {strides = array<i32>} : memref<16x32xf32, #tpu.memory_space<vmem>>, vector<8x32xf32>,
    %116 = vector.extract_strided_slice %1 {offsets = [1, 0], sizes = [1, 8], strides = [1, 1]} : vector<2x8xf32> to vector<1x8xf32>
    %117 = vector.shape_cast %116 : vector<1x8xf32> to vector<1x8xf32>
    %118 = vector.broadcast %117 : vector<1x8xf32> to vector<8x8xf32>
    %cst_44 = arith.constant 0.000000e+00 : f32
    %119 = vector.broadcast %cst_44 : f32 to vector<8x32xf32>
    %120 = vector.extract_strided_slice %14 {offsets = [8, 0], sizes = [8, 8], strides = [1, 1]} : vector<16x32xf32> to vector<8x8xf32>
    %121 = vector.extract_strided_slice %19 {offsets = [8, 0], sizes = [8, 8], strides = [1, 1]} : vector<16x32xf32> to vector<8x8xf32>
    %122 = vector.extract_strided_slice %24 {offsets = [8, 0], sizes = [8, 8], strides = [1, 1]} : vector<16x32xf32> to vector<8x8xf32>
    %123 = tpu.transpose %121, [1, 0] : vector<8x8xf32> -> vector<8x8xf32>
    %cst_45 = arith.constant dense<0.000000e+00> : vector<8x8xf32>
    %124 = tpu.matmul %120, %123, %cst_45 {dimension_numbers = #tpu.dot_dimension_numbers<[1], [0], [0], [1], [0, 0, 1, 1], [], []>} : vector<8x8xf32>, vector<8x8xf32>, vector<8x8xf32> -> vector<8x8xf32>
    %cst_46 = arith.constant 0.353553385 : f32
    %125 = vector.broadcast %cst_46 : f32 to vector<8x8xf32>
    %126 = arith.mulf %124, %125 : vector<8x8xf32>
    %127 = arith.addf %126, %118 : vector<8x8xf32>
    %cst_47 = arith.constant dense<0xFF800000> : vector<8xf32>
    %128 = vector.multi_reduction <maximumf>, %127, %cst_47 [1] : vector<8x8xf32> to vector<8xf32>
    %129 = vector.shape_cast %128 : vector<8xf32> to vector<8x1xf32>
    %130 = vector.broadcast %129 : vector<8x1xf32> to vector<8x8xf32>
    %131 = arith.subf %127, %130 : vector<8x8xf32>
    %132 = math.exp %131 : vector<8x8xf32>
    %cst_48 = arith.constant dense<0.000000e+00> : vector<8xf32>
    %133 = vector.multi_reduction <add>, %132, %cst_48 [1] : vector<8x8xf32> to vector<8xf32>
    %134 = vector.shape_cast %133 : vector<8xf32> to vector<8x1xf32>
    %135 = vector.broadcast %134 : vector<8x1xf32> to vector<8x8xf32>
    %136 = arith.divf %132, %135 : vector<8x8xf32>
    %cst_49 = arith.constant dense<0.000000e+00> : vector<8x8xf32>
    %137 = tpu.matmul %136, %122, %cst_49 {dimension_numbers = #tpu.dot_dimension_numbers<[1], [0], [0], [1], [0, 0, 1, 1], [], []>} : vector<8x8xf32>, vector<8x8xf32>, vector<8x8xf32> -> vector<8x8xf32>
    %138 = vector.extract_strided_slice %7 {offsets = [0, 0], sizes = [8, 32], strides = [1, 1]} : vector<32x32xf32> to vector<8x32xf32>
    %cst_50 = arith.constant dense<0.000000e+00> : vector<8x32xf32>
    %139 = tpu.matmul %137, %138, %cst_50 {dimension_numbers = #tpu.dot_dimension_numbers<[1], [0], [0], [1], [0, 0, 1, 1], [], []>} : vector<8x8xf32>, vector<8x32xf32>, vector<8x32xf32> -> vector<8x32xf32>
    %140 = arith.addf %119, %139 : vector<8x32xf32>
    %141 = vector.extract_strided_slice %14 {offsets = [8, 8], sizes = [8, 8], strides = [1, 1]} : vector<16x32xf32> to vector<8x8xf32>
    %142 = vector.extract_strided_slice %19 {offsets = [8, 8], sizes = [8, 8], strides = [1, 1]} : vector<16x32xf32> to vector<8x8xf32>
    %143 = vector.extract_strided_slice %24 {offsets = [8, 8], sizes = [8, 8], strides = [1, 1]} : vector<16x32xf32> to vector<8x8xf32>
    %144 = tpu.transpose %142, [1, 0] : vector<8x8xf32> -> vector<8x8xf32>
    %cst_51 = arith.constant dense<0.000000e+00> : vector<8x8xf32>
    %145 = tpu.matmul %141, %144, %cst_51 {dimension_numbers = #tpu.dot_dimension_numbers<[1], [0], [0], [1], [0, 0, 1, 1], [], []>} : vector<8x8xf32>, vector<8x8xf32>, vector<8x8xf32> -> vector<8x8xf32>
    %cst_52 = arith.constant 0.353553385 : f32
    %146 = vector.broadcast %cst_52 : f32 to vector<8x8xf32>
    %147 = arith.mulf %145, %146 : vector<8x8xf32>
    %148 = arith.addf %147, %118 : vector<8x8xf32>
    %cst_53 = arith.constant dense<0xFF800000> : vector<8xf32>
    %149 = vector.multi_reduction <maximumf>, %148, %cst_53 [1] : vector<8x8xf32> to vector<8xf32>
    %150 = vector.shape_cast %149 : vector<8xf32> to vector<8x1xf32>
    %151 = vector.broadcast %150 : vector<8x1xf32> to vector<8x8xf32>
    %152 = arith.subf %148, %151 : vector<8x8xf32>
    %153 = math.exp %152 : vector<8x8xf32>
    %cst_54 = arith.constant dense<0.000000e+00> : vector<8xf32>
    %154 = vector.multi_reduction <add>, %153, %cst_54 [1] : vector<8x8xf32> to vector<8xf32>
    %155 = vector.shape_cast %154 : vector<8xf32> to vector<8x1xf32>
    %156 = vector.broadcast %155 : vector<8x1xf32> to vector<8x8xf32>
    %157 = arith.divf %153, %156 : vector<8x8xf32>
    %cst_55 = arith.constant dense<0.000000e+00> : vector<8x8xf32>
    %158 = tpu.matmul %157, %143, %cst_55 {dimension_numbers = #tpu.dot_dimension_numbers<[1], [0], [0], [1], [0, 0, 1, 1], [], []>} : vector<8x8xf32>, vector<8x8xf32>, vector<8x8xf32> -> vector<8x8xf32>
    %159 = vector.extract_strided_slice %7 {offsets = [8, 0], sizes = [8, 32], strides = [1, 1]} : vector<32x32xf32> to vector<8x32xf32>
    %cst_56 = arith.constant dense<0.000000e+00> : vector<8x32xf32>
    %160 = tpu.matmul %158, %159, %cst_56 {dimension_numbers = #tpu.dot_dimension_numbers<[1], [0], [0], [1], [0, 0, 1, 1], [], []>} : vector<8x8xf32>, vector<8x32xf32>, vector<8x32xf32> -> vector<8x32xf32>
    %161 = arith.addf %140, %160 : vector<8x32xf32>
    %162 = vector.extract_strided_slice %14 {offsets = [8, 16], sizes = [8, 8], strides = [1, 1]} : vector<16x32xf32> to vector<8x8xf32>
    %163 = vector.extract_strided_slice %19 {offsets = [8, 16], sizes = [8, 8], strides = [1, 1]} : vector<16x32xf32> to vector<8x8xf32>
    %164 = vector.extract_strided_slice %24 {offsets = [8, 16], sizes = [8, 8], strides = [1, 1]} : vector<16x32xf32> to vector<8x8xf32>
    %165 = tpu.transpose %163, [1, 0] : vector<8x8xf32> -> vector<8x8xf32>
    %cst_57 = arith.constant dense<0.000000e+00> : vector<8x8xf32>
    %166 = tpu.matmul %162, %165, %cst_57 {dimension_numbers = #tpu.dot_dimension_numbers<[1], [0], [0], [1], [0, 0, 1, 1], [], []>} : vector<8x8xf32>, vector<8x8xf32>, vector<8x8xf32> -> vector<8x8xf32>
    %cst_58 = arith.constant 0.353553385 : f32
    %167 = vector.broadcast %cst_58 : f32 to vector<8x8xf32>
    %168 = arith.mulf %166, %167 : vector<8x8xf32>
    %169 = arith.addf %168, %118 : vector<8x8xf32>
    %cst_59 = arith.constant dense<0xFF800000> : vector<8xf32>
    %170 = vector.multi_reduction <maximumf>, %169, %cst_59 [1] : vector<8x8xf32> to vector<8xf32>
    %171 = vector.shape_cast %170 : vector<8xf32> to vector<8x1xf32>
    %172 = vector.broadcast %171 : vector<8x1xf32> to vector<8x8xf32>
    %173 = arith.subf %169, %172 : vector<8x8xf32>
    %174 = math.exp %173 : vector<8x8xf32>
    %cst_60 = arith.constant dense<0.000000e+00> : vector<8xf32>
    %175 = vector.multi_reduction <add>, %174, %cst_60 [1] : vector<8x8xf32> to vector<8xf32>
    %176 = vector.shape_cast %175 : vector<8xf32> to vector<8x1xf32>
    %177 = vector.broadcast %176 : vector<8x1xf32> to vector<8x8xf32>
    %178 = arith.divf %174, %177 : vector<8x8xf32>
    %cst_61 = arith.constant dense<0.000000e+00> : vector<8x8xf32>
    %179 = tpu.matmul %178, %164, %cst_61 {dimension_numbers = #tpu.dot_dimension_numbers<[1], [0], [0], [1], [0, 0, 1, 1], [], []>} : vector<8x8xf32>, vector<8x8xf32>, vector<8x8xf32> -> vector<8x8xf32>
    %180 = vector.extract_strided_slice %7 {offsets = [16, 0], sizes = [8, 32], strides = [1, 1]} : vector<32x32xf32> to vector<8x32xf32>
    %cst_62 = arith.constant dense<0.000000e+00> : vector<8x32xf32>
    %181 = tpu.matmul %179, %180, %cst_62 {dimension_numbers = #tpu.dot_dimension_numbers<[1], [0], [0], [1], [0, 0, 1, 1], [], []>} : vector<8x8xf32>, vector<8x32xf32>, vector<8x32xf32> -> vector<8x32xf32>
    %182 = arith.addf %161, %181 : vector<8x32xf32>
    %183 = vector.extract_strided_slice %14 {offsets = [8, 24], sizes = [8, 8], strides = [1, 1]} : vector<16x32xf32> to vector<8x8xf32>
    %184 = vector.extract_strided_slice %19 {offsets = [8, 24], sizes = [8, 8], strides = [1, 1]} : vector<16x32xf32> to vector<8x8xf32>
    %185 = vector.extract_strided_slice %24 {offsets = [8, 24], sizes = [8, 8], strides = [1, 1]} : vector<16x32xf32> to vector<8x8xf32>
    %186 = tpu.transpose %184, [1, 0] : vector<8x8xf32> -> vector<8x8xf32>
    %cst_63 = arith.constant dense<0.000000e+00> : vector<8x8xf32>
    %187 = tpu.matmul %183, %186, %cst_63 {dimension_numbers = #tpu.dot_dimension_numbers<[1], [0], [0], [1], [0, 0, 1, 1], [], []>} : vector<8x8xf32>, vector<8x8xf32>, vector<8x8xf32> -> vector<8x8xf32>
    %cst_64 = arith.constant 0.353553385 : f32
    %188 = vector.broadcast %cst_64 : f32 to vector<8x8xf32>
    %189 = arith.mulf %187, %188 : vector<8x8xf32>
    %190 = arith.addf %189, %118 : vector<8x8xf32>
    %cst_65 = arith.constant dense<0xFF800000> : vector<8xf32>
    %191 = vector.multi_reduction <maximumf>, %190, %cst_65 [1] : vector<8x8xf32> to vector<8xf32>
    %192 = vector.shape_cast %191 : vector<8xf32> to vector<8x1xf32>
    %193 = vector.broadcast %192 : vector<8x1xf32> to vector<8x8xf32>
    %194 = arith.subf %190, %193 : vector<8x8xf32>
    %195 = math.exp %194 : vector<8x8xf32>
    %cst_66 = arith.constant dense<0.000000e+00> : vector<8xf32>
    %196 = vector.multi_reduction <add>, %195, %cst_66 [1] : vector<8x8xf32> to vector<8xf32>
    %197 = vector.shape_cast %196 : vector<8xf32> to vector<8x1xf32>
    %198 = vector.broadcast %197 : vector<8x1xf32> to vector<8x8xf32>
    %199 = arith.divf %195, %198 : vector<8x8xf32>
    %cst_67 = arith.constant dense<0.000000e+00> : vector<8x8xf32>
    %200 = tpu.matmul %199, %185, %cst_67 {dimension_numbers = #tpu.dot_dimension_numbers<[1], [0], [0], [1], [0, 0, 1, 1], [], []>} : vector<8x8xf32>, vector<8x8xf32>, vector<8x8xf32> -> vector<8x8xf32>
    %201 = vector.extract_strided_slice %7 {offsets = [24, 0], sizes = [8, 32], strides = [1, 1]} : vector<32x32xf32> to vector<8x32xf32>
    %cst_68 = arith.constant dense<0.000000e+00> : vector<8x32xf32>
    %202 = tpu.matmul %200, %201, %cst_68 {dimension_numbers = #tpu.dot_dimension_numbers<[1], [0], [0], [1], [0, 0, 1, 1], [], []>} : vector<8x8xf32>, vector<8x32xf32>, vector<8x32xf32> -> vector<8x32xf32>
    %203 = arith.addf %182, %202 : vector<8x32xf32>
    %204 = vector.broadcast %9 : vector<1x32xf32> to vector<8x32xf32>
    %205 = arith.addf %203, %204 : vector<8x32xf32>
    %c8 = arith.constant 8 : index
    %c0_69 = arith.constant 0 : index
    %206 = vector.load %arg15[%c8, %c0_69] : memref<16x32xf32, #tpu.memory_space<vmem>>, vector<8x32xf32>
    tpu.vector_store %arg15[%c8, %c0_69], %205 {strides = array<i32>} : memref<16x32xf32, #tpu.memory_space<vmem>>, vector<8x32xf32>,
    %c0_70 = arith.constant 0 : index
    %c0_71 = arith.constant 0 : index
    %207 = vector.load %arg15[%c0_70, %c0_71] : memref<16x32xf32, #tpu.memory_space<vmem>>, vector<16x32xf32>
    %208 = arith.addf %0, %207 : vector<16x32xf32>
    %c0_72 = arith.constant 0 : index
    %c0_73 = arith.constant 0 : index
    %c0_74 = arith.constant 0 : index
    %209 = vector.load %arg6[%c0_72, %c0_73, %c0_74] : memref<2x1x32xf32, #tpu.memory_space<vmem>>, vector<1x1x32xf32>
    %210 = vector.shape_cast %209 : vector<1x1x32xf32> to vector<1x32xf32>
    %c0_75 = arith.constant 0 : index
    %c0_76 = arith.constant 0 : index
    %c0_77 = arith.constant 0 : index
    %211 = vector.load %arg7[%c0_75, %c0_76, %c0_77] : memref<2x1x32xf32, #tpu.memory_space<vmem>>, vector<1x1x32xf32>
    %212 = vector.shape_cast %211 : vector<1x1x32xf32> to vector<1x32xf32>
    %cst_78 = arith.constant dense<0.000000e+00> : vector<16xf32>
    %213 = vector.multi_reduction <add>, %208, %cst_78 [1] : vector<16x32xf32> to vector<16xf32>
    %214 = vector.shape_cast %213 : vector<16xf32> to vector<16x1xf32>
    %cst_79 = arith.constant 3.200000e+01 : f32
    %215 = vector.broadcast %cst_79 : f32 to vector<16x1xf32>
    %216 = arith.divf %214, %215 : vector<16x1xf32>
    %217 = vector.broadcast %216 : vector<16x1xf32> to vector<16x32xf32>
    %218 = arith.subf %208, %217 : vector<16x32xf32>
    %219 = arith.mulf %218, %218 : vector<16x32xf32>
    %cst_80 = arith.constant dense<0.000000e+00> : vector<16xf32>
    %220 = vector.multi_reduction <add>, %219, %cst_80 [1] : vector<16x32xf32> to vector<16xf32>
    %221 = vector.shape_cast %220 : vector<16xf32> to vector<16x1xf32>
    %cst_81 = arith.constant 3.200000e+01 : f32
    %222 = vector.broadcast %cst_81 : f32 to vector<16x1xf32>
    %223 = arith.divf %221, %222 : vector<16x1xf32>
    %224 = vector.broadcast %216 : vector<16x1xf32> to vector<16x32xf32>
    %225 = arith.subf %208, %224 : vector<16x32xf32>
    %cst_82 = arith.constant 9.99999974E-6 : f32
    %226 = vector.broadcast %cst_82 : f32 to vector<16x1xf32>
    %227 = arith.addf %223, %226 : vector<16x1xf32>
    %228 = math.rsqrt %227 : vector<16x1xf32>
    %229 = vector.broadcast %228 : vector<16x1xf32> to vector<16x32xf32>
    %230 = arith.mulf %225, %229 : vector<16x32xf32>
    %231 = vector.broadcast %210 : vector<1x32xf32> to vector<16x32xf32>
    %232 = arith.mulf %230, %231 : vector<16x32xf32>
    %233 = vector.broadcast %212 : vector<1x32xf32> to vector<16x32xf32>
    %234 = arith.addf %232, %233 : vector<16x32xf32>
    %c0_83 = arith.constant 0 : index
    %c0_84 = arith.constant 0 : index
    %c0_85 = arith.constant 0 : index
    %235 = vector.load %arg8[%c0_83, %c0_84, %c0_85] : memref<2x32x64xf32, #tpu.memory_space<vmem>>, vector<1x32x64xf32>
    %236 = vector.shape_cast %235 : vector<1x32x64xf32> to vector<32x64xf32>
    %c0_86 = arith.constant 0 : index
    %c0_87 = arith.constant 0 : index
    %c0_88 = arith.constant 0 : index
    %237 = vector.load %arg9[%c0_86, %c0_87, %c0_88] : memref<2x1x64xf32, #tpu.memory_space<vmem>>, vector<1x1x64xf32>
    %238 = vector.shape_cast %237 : vector<1x1x64xf32> to vector<1x64xf32>
    %c0_89 = arith.constant 0 : index
    %c0_90 = arith.constant 0 : index
    %c0_91 = arith.constant 0 : index
    %239 = vector.load %arg10[%c0_89, %c0_90, %c0_91] : memref<2x64x32xf32, #tpu.memory_space<vmem>>, vector<1x64x32xf32>
    %240 = vector.shape_cast %239 : vector<1x64x32xf32> to vector<64x32xf32>
    %c0_92 = arith.constant 0 : index
    %c0_93 = arith.constant 0 : index
    %c0_94 = arith.constant 0 : index
    %241 = vector.load %arg11[%c0_92, %c0_93, %c0_94] : memref<2x1x32xf32, #tpu.memory_space<vmem>>, vector<1x1x32xf32>
    %242 = vector.shape_cast %241 : vector<1x1x32xf32> to vector<1x32xf32>
    %cst_95 = arith.constant dense<0.000000e+00> : vector<16x64xf32>
    %243 = tpu.matmul %234, %236, %cst_95 {dimension_numbers = #tpu.dot_dimension_numbers<[1], [0], [0], [1], [0, 0, 1, 1], [], []>} : vector<16x32xf32>, vector<32x64xf32>, vector<16x64xf32> -> vector<16x64xf32>
    %244 = vector.broadcast %238 : vector<1x64xf32> to vector<16x64xf32>
    %245 = arith.addf %243, %244 : vector<16x64xf32>
    %cst_96 = arith.constant 0.000000e+00 : f32
    %246 = vector.broadcast %cst_96 : f32 to vector<16x64xf32>
    %247 = arith.maximumf %245, %246 : vector<16x64xf32>
    %cst_97 = arith.constant dense<0.000000e+00> : vector<16x32xf32>
    %248 = tpu.matmul %247, %240, %cst_97 {dimension_numbers = #tpu.dot_dimension_numbers<[1], [0], [0], [1], [0, 0, 1, 1], [], []>} : vector<16x64xf32>, vector<64x32xf32>, vector<16x32xf32> -> vector<16x32xf32>
    %249 = vector.broadcast %242 : vector<1x32xf32> to vector<16x32xf32>
    %250 = arith.addf %248, %249 : vector<16x32xf32>
    %251 = arith.addf %234, %250 : vector<16x32xf32>
    %c0_98 = arith.constant 0 : index
    %c0_99 = arith.constant 0 : index
    %c0_100 = arith.constant 0 : index
    %252 = vector.load %arg12[%c0_98, %c0_99, %c0_100] : memref<2x1x32xf32, #tpu.memory_space<vmem>>, vector<1x1x32xf32>
    %253 = vector.shape_cast %252 : vector<1x1x32xf32> to vector<1x32xf32>
    %c0_101 = arith.constant 0 : index
    %c0_102 = arith.constant 0 : index
    %c0_103 = arith.constant 0 : index
    %254 = vector.load %arg13[%c0_101, %c0_102, %c0_103] : memref<2x1x32xf32, #tpu.memory_space<vmem>>, vector<1x1x32xf32>
    %255 = vector.shape_cast %254 : vector<1x1x32xf32> to vector<1x32xf32>
    %cst_104 = arith.constant dense<0.000000e+00> : vector<16xf32>
    %256 = vector.multi_reduction <add>, %251, %cst_104 [1] : vector<16x32xf32> to vector<16xf32>
    %257 = vector.shape_cast %256 : vector<16xf32> to vector<16x1xf32>
    %cst_105 = arith.constant 3.200000e+01 : f32
    %258 = vector.broadcast %cst_105 : f32 to vector<16x1xf32>
    %259 = arith.divf %257, %258 : vector<16x1xf32>
    %260 = vector.broadcast %259 : vector<16x1xf32> to vector<16x32xf32>
    %261 = arith.subf %251, %260 : vector<16x32xf32>
    %262 = arith.mulf %261, %261 : vector<16x32xf32>
    %cst_106 = arith.constant dense<0.000000e+00> : vector<16xf32>
    %263 = vector.multi_reduction <add>, %262, %cst_106 [1] : vector<16x32xf32> to vector<16xf32>
    %264 = vector.shape_cast %263 : vector<16xf32> to vector<16x1xf32>
    %cst_107 = arith.constant 3.200000e+01 : f32
    %265 = vector.broadcast %cst_107 : f32 to vector<16x1xf32>
    %266 = arith.divf %264, %265 : vector<16x1xf32>
    %267 = vector.broadcast %259 : vector<16x1xf32> to vector<16x32xf32>
    %268 = arith.subf %251, %267 : vector<16x32xf32>
    %cst_108 = arith.constant 9.99999974E-6 : f32
    %269 = vector.broadcast %cst_108 : f32 to vector<16x1xf32>
    %270 = arith.addf %266, %269 : vector<16x1xf32>
    %271 = math.rsqrt %270 : vector<16x1xf32>
    %272 = vector.broadcast %271 : vector<16x1xf32> to vector<16x32xf32>
    %273 = arith.mulf %268, %272 : vector<16x32xf32>
    %274 = vector.broadcast %253 : vector<1x32xf32> to vector<16x32xf32>
    %275 = arith.mulf %273, %274 : vector<16x32xf32>
    %276 = vector.broadcast %255 : vector<1x32xf32> to vector<16x32xf32>
    %277 = arith.addf %275, %276 : vector<16x32xf32>
    %c1 = arith.constant 1 : index
    %c0_109 = arith.constant 0 : index
    %c0_110 = arith.constant 0 : index
    %278 = vector.load %arg2[%c1, %c0_109, %c0_110] : memref<2x32x96xf32, #tpu.memory_space<vmem>>, vector<1x32x96xf32>
    %279 = vector.shape_cast %278 : vector<1x32x96xf32> to vector<32x96xf32>
    %c1_111 = arith.constant 1 : index
    %c0_112 = arith.constant 0 : index
    %c0_113 = arith.constant 0 : index
    %280 = vector.load %arg3[%c1_111, %c0_112, %c0_113] : memref<2x1x96xf32, #tpu.memory_space<vmem>>, vector<1x1x96xf32>
    %281 = vector.shape_cast %280 : vector<1x1x96xf32> to vector<1x96xf32>
    %c1_114 = arith.constant 1 : index
    %c0_115 = arith.constant 0 : index
    %c0_116 = arith.constant 0 : index
    %282 = vector.load %arg4[%c1_114, %c0_115, %c0_116] : memref<2x32x32xf32, #tpu.memory_space<vmem>>, vector<1x32x32xf32>
    %283 = vector.shape_cast %282 : vector<1x32x32xf32> to vector<32x32xf32>
    %c1_117 = arith.constant 1 : index
    %c0_118 = arith.constant 0 : index
    %c0_119 = arith.constant 0 : index
    %284 = vector.load %arg5[%c1_117, %c0_118, %c0_119] : memref<2x1x32xf32, #tpu.memory_space<vmem>>, vector<1x1x32xf32>
    %285 = vector.shape_cast %284 : vector<1x1x32xf32> to vector<1x32xf32>
    %286 = vector.extract_strided_slice %279 {offsets = [0, 0], sizes = [32, 32], strides = [1, 1]} : vector<32x96xf32> to vector<32x32xf32>
    %cst_120 = arith.constant dense<0.000000e+00> : vector<16x32xf32>
    %287 = tpu.matmul %277, %286, %cst_120 {dimension_numbers = #tpu.dot_dimension_numbers<[1], [0], [0], [1], [0, 0, 1, 1], [], []>} : vector<16x32xf32>, vector<32x32xf32>, vector<16x32xf32> -> vector<16x32xf32>
    %288 = vector.extract_strided_slice %281 {offsets = [0, 0], sizes = [1, 32], strides = [1, 1]} : vector<1x96xf32> to vector<1x32xf32>
    %289 = vector.broadcast %288 : vector<1x32xf32> to vector<16x32xf32>
    %290 = arith.addf %287, %289 : vector<16x32xf32>
    %291 = vector.extract_strided_slice %279 {offsets = [0, 32], sizes = [32, 32], strides = [1, 1]} : vector<32x96xf32> to vector<32x32xf32>
    %cst_121 = arith.constant dense<0.000000e+00> : vector<16x32xf32>
    %292 = tpu.matmul %277, %291, %cst_121 {dimension_numbers = #tpu.dot_dimension_numbers<[1], [0], [0], [1], [0, 0, 1, 1], [], []>} : vector<16x32xf32>, vector<32x32xf32>, vector<16x32xf32> -> vector<16x32xf32>
    %293 = vector.extract_strided_slice %281 {offsets = [0, 32], sizes = [1, 32], strides = [1, 1]} : vector<1x96xf32> to vector<1x32xf32>
    %294 = vector.broadcast %293 : vector<1x32xf32> to vector<16x32xf32>
    %295 = arith.addf %292, %294 : vector<16x32xf32>
    %296 = vector.extract_strided_slice %279 {offsets = [0, 64], sizes = [32, 32], strides = [1, 1]} : vector<32x96xf32> to vector<32x32xf32>
    %cst_122 = arith.constant dense<0.000000e+00> : vector<16x32xf32>
    %297 = tpu.matmul %277, %296, %cst_122 {dimension_numbers = #tpu.dot_dimension_numbers<[1], [0], [0], [1], [0, 0, 1, 1], [], []>} : vector<16x32xf32>, vector<32x32xf32>, vector<16x32xf32> -> vector<16x32xf32>
    %298 = vector.extract_strided_slice %281 {offsets = [0, 64], sizes = [1, 32], strides = [1, 1]} : vector<1x96xf32> to vector<1x32xf32>
    %299 = vector.broadcast %298 : vector<1x32xf32> to vector<16x32xf32>
    %300 = arith.addf %297, %299 : vector<16x32xf32>
    %301 = vector.extract_strided_slice %1 {offsets = [0, 0], sizes = [1, 8], strides = [1, 1]} : vector<2x8xf32> to vector<1x8xf32>
    %302 = vector.shape_cast %301 : vector<1x8xf32> to vector<1x8xf32>
    %303 = vector.broadcast %302 : vector<1x8xf32> to vector<8x8xf32>
    %cst_123 = arith.constant 0.000000e+00 : f32
    %304 = vector.broadcast %cst_123 : f32 to vector<8x32xf32>
    %305 = vector.extract_strided_slice %290 {offsets = [0, 0], sizes = [8, 8], strides = [1, 1]} : vector<16x32xf32> to vector<8x8xf32>
    %306 = vector.extract_strided_slice %295 {offsets = [0, 0], sizes = [8, 8], strides = [1, 1]} : vector<16x32xf32> to vector<8x8xf32>
    %307 = vector.extract_strided_slice %300 {offsets = [0, 0], sizes = [8, 8], strides = [1, 1]} : vector<16x32xf32> to vector<8x8xf32>
    %308 = tpu.transpose %306, [1, 0] : vector<8x8xf32> -> vector<8x8xf32>
    %cst_124 = arith.constant dense<0.000000e+00> : vector<8x8xf32>
    %309 = tpu.matmul %305, %308, %cst_124 {dimension_numbers = #tpu.dot_dimension_numbers<[1], [0], [0], [1], [0, 0, 1, 1], [], []>} : vector<8x8xf32>, vector<8x8xf32>, vector<8x8xf32> -> vector<8x8xf32>
    %cst_125 = arith.constant 0.353553385 : f32
    %310 = vector.broadcast %cst_125 : f32 to vector<8x8xf32>
    %311 = arith.mulf %309, %310 : vector<8x8xf32>
    %312 = arith.addf %311, %303 : vector<8x8xf32>
    %cst_126 = arith.constant dense<0xFF800000> : vector<8xf32>
    %313 = vector.multi_reduction <maximumf>, %312, %cst_126 [1] : vector<8x8xf32> to vector<8xf32>
    %314 = vector.shape_cast %313 : vector<8xf32> to vector<8x1xf32>
    %315 = vector.broadcast %314 : vector<8x1xf32> to vector<8x8xf32>
    %316 = arith.subf %312, %315 : vector<8x8xf32>
    %317 = math.exp %316 : vector<8x8xf32>
    %cst_127 = arith.constant dense<0.000000e+00> : vector<8xf32>
    %318 = vector.multi_reduction <add>, %317, %cst_127 [1] : vector<8x8xf32> to vector<8xf32>
    %319 = vector.shape_cast %318 : vector<8xf32> to vector<8x1xf32>
    %320 = vector.broadcast %319 : vector<8x1xf32> to vector<8x8xf32>
    %321 = arith.divf %317, %320 : vector<8x8xf32>
    %cst_128 = arith.constant dense<0.000000e+00> : vector<8x8xf32>
    %322 = tpu.matmul %321, %307, %cst_128 {dimension_numbers = #tpu.dot_dimension_numbers<[1], [0], [0], [1], [0, 0, 1, 1], [], []>} : vector<8x8xf32>, vector<8x8xf32>, vector<8x8xf32> -> vector<8x8xf32>
    %323 = vector.extract_strided_slice %283 {offsets = [0, 0], sizes = [8, 32], strides = [1, 1]} : vector<32x32xf32> to vector<8x32xf32>
    %cst_129 = arith.constant dense<0.000000e+00> : vector<8x32xf32>
    %324 = tpu.matmul %322, %323, %cst_129 {dimension_numbers = #tpu.dot_dimension_numbers<[1], [0], [0], [1], [0, 0, 1, 1], [], []>} : vector<8x8xf32>, vector<8x32xf32>, vector<8x32xf32> -> vector<8x32xf32>
    %325 = arith.addf %304, %324 : vector<8x32xf32>
    %326 = vector.extract_strided_slice %290 {offsets = [0, 8], sizes = [8, 8], strides = [1, 1]} : vector<16x32xf32> to vector<8x8xf32>
    %327 = vector.extract_strided_slice %295 {offsets = [0, 8], sizes = [8, 8], strides = [1, 1]} : vector<16x32xf32> to vector<8x8xf32>
    %328 = vector.extract_strided_slice %300 {offsets = [0, 8], sizes = [8, 8], strides = [1, 1]} : vector<16x32xf32> to vector<8x8xf32>
    %329 = tpu.transpose %327, [1, 0] : vector<8x8xf32> -> vector<8x8xf32>
    %cst_130 = arith.constant dense<0.000000e+00> : vector<8x8xf32>
    %330 = tpu.matmul %326, %329, %cst_130 {dimension_numbers = #tpu.dot_dimension_numbers<[1], [0], [0], [1], [0, 0, 1, 1], [], []>} : vector<8x8xf32>, vector<8x8xf32>, vector<8x8xf32> -> vector<8x8xf32>
    %cst_131 = arith.constant 0.353553385 : f32
    %331 = vector.broadcast %cst_131 : f32 to vector<8x8xf32>
    %332 = arith.mulf %330, %331 : vector<8x8xf32>
    %333 = arith.addf %332, %303 : vector<8x8xf32>
    %cst_132 = arith.constant dense<0xFF800000> : vector<8xf32>
    %334 = vector.multi_reduction <maximumf>, %333, %cst_132 [1] : vector<8x8xf32> to vector<8xf32>
    %335 = vector.shape_cast %334 : vector<8xf32> to vector<8x1xf32>
    %336 = vector.broadcast %335 : vector<8x1xf32> to vector<8x8xf32>
    %337 = arith.subf %333, %336 : vector<8x8xf32>
    %338 = math.exp %337 : vector<8x8xf32>
    %cst_133 = arith.constant dense<0.000000e+00> : vector<8xf32>
    %339 = vector.multi_reduction <add>, %338, %cst_133 [1] : vector<8x8xf32> to vector<8xf32>
    %340 = vector.shape_cast %339 : vector<8xf32> to vector<8x1xf32>
    %341 = vector.broadcast %340 : vector<8x1xf32> to vector<8x8xf32>
    %342 = arith.divf %338, %341 : vector<8x8xf32>
    %cst_134 = arith.constant dense<0.000000e+00> : vector<8x8xf32>
    %343 = tpu.matmul %342, %328, %cst_134 {dimension_numbers = #tpu.dot_dimension_numbers<[1], [0], [0], [1], [0, 0, 1, 1], [], []>} : vector<8x8xf32>, vector<8x8xf32>, vector<8x8xf32> -> vector<8x8xf32>
    %344 = vector.extract_strided_slice %283 {offsets = [8, 0], sizes = [8, 32], strides = [1, 1]} : vector<32x32xf32> to vector<8x32xf32>
    %cst_135 = arith.constant dense<0.000000e+00> : vector<8x32xf32>
    %345 = tpu.matmul %343, %344, %cst_135 {dimension_numbers = #tpu.dot_dimension_numbers<[1], [0], [0], [1], [0, 0, 1, 1], [], []>} : vector<8x8xf32>, vector<8x32xf32>, vector<8x32xf32> -> vector<8x32xf32>
    %346 = arith.addf %325, %345 : vector<8x32xf32>
    %347 = vector.extract_strided_slice %290 {offsets = [0, 16], sizes = [8, 8], strides = [1, 1]} : vector<16x32xf32> to vector<8x8xf32>
    %348 = vector.extract_strided_slice %295 {offsets = [0, 16], sizes = [8, 8], strides = [1, 1]} : vector<16x32xf32> to vector<8x8xf32>
    %349 = vector.extract_strided_slice %300 {offsets = [0, 16], sizes = [8, 8], strides = [1, 1]} : vector<16x32xf32> to vector<8x8xf32>
    %350 = tpu.transpose %348, [1, 0] : vector<8x8xf32> -> vector<8x8xf32>
    %cst_136 = arith.constant dense<0.000000e+00> : vector<8x8xf32>
    %351 = tpu.matmul %347, %350, %cst_136 {dimension_numbers = #tpu.dot_dimension_numbers<[1], [0], [0], [1], [0, 0, 1, 1], [], []>} : vector<8x8xf32>, vector<8x8xf32>, vector<8x8xf32> -> vector<8x8xf32>
    %cst_137 = arith.constant 0.353553385 : f32
    %352 = vector.broadcast %cst_137 : f32 to vector<8x8xf32>
    %353 = arith.mulf %351, %352 : vector<8x8xf32>
    %354 = arith.addf %353, %303 : vector<8x8xf32>
    %cst_138 = arith.constant dense<0xFF800000> : vector<8xf32>
    %355 = vector.multi_reduction <maximumf>, %354, %cst_138 [1] : vector<8x8xf32> to vector<8xf32>
    %356 = vector.shape_cast %355 : vector<8xf32> to vector<8x1xf32>
    %357 = vector.broadcast %356 : vector<8x1xf32> to vector<8x8xf32>
    %358 = arith.subf %354, %357 : vector<8x8xf32>
    %359 = math.exp %358 : vector<8x8xf32>
    %cst_139 = arith.constant dense<0.000000e+00> : vector<8xf32>
    %360 = vector.multi_reduction <add>, %359, %cst_139 [1] : vector<8x8xf32> to vector<8xf32>
    %361 = vector.shape_cast %360 : vector<8xf32> to vector<8x1xf32>
    %362 = vector.broadcast %361 : vector<8x1xf32> to vector<8x8xf32>
    %363 = arith.divf %359, %362 : vector<8x8xf32>
    %cst_140 = arith.constant dense<0.000000e+00> : vector<8x8xf32>
    %364 = tpu.matmul %363, %349, %cst_140 {dimension_numbers = #tpu.dot_dimension_numbers<[1], [0], [0], [1], [0, 0, 1, 1], [], []>} : vector<8x8xf32>, vector<8x8xf32>, vector<8x8xf32> -> vector<8x8xf32>
    %365 = vector.extract_strided_slice %283 {offsets = [16, 0], sizes = [8, 32], strides = [1, 1]} : vector<32x32xf32> to vector<8x32xf32>
    %cst_141 = arith.constant dense<0.000000e+00> : vector<8x32xf32>
    %366 = tpu.matmul %364, %365, %cst_141 {dimension_numbers = #tpu.dot_dimension_numbers<[1], [0], [0], [1], [0, 0, 1, 1], [], []>} : vector<8x8xf32>, vector<8x32xf32>, vector<8x32xf32> -> vector<8x32xf32>
    %367 = arith.addf %346, %366 : vector<8x32xf32>
    %368 = vector.extract_strided_slice %290 {offsets = [0, 24], sizes = [8, 8], strides = [1, 1]} : vector<16x32xf32> to vector<8x8xf32>
    %369 = vector.extract_strided_slice %295 {offsets = [0, 24], sizes = [8, 8], strides = [1, 1]} : vector<16x32xf32> to vector<8x8xf32>
    %370 = vector.extract_strided_slice %300 {offsets = [0, 24], sizes = [8, 8], strides = [1, 1]} : vector<16x32xf32> to vector<8x8xf32>
    %371 = tpu.transpose %369, [1, 0] : vector<8x8xf32> -> vector<8x8xf32>
    %cst_142 = arith.constant dense<0.000000e+00> : vector<8x8xf32>
    %372 = tpu.matmul %368, %371, %cst_142 {dimension_numbers = #tpu.dot_dimension_numbers<[1], [0], [0], [1], [0, 0, 1, 1], [], []>} : vector<8x8xf32>, vector<8x8xf32>, vector<8x8xf32> -> vector<8x8xf32>
    %cst_143 = arith.constant 0.353553385 : f32
    %373 = vector.broadcast %cst_143 : f32 to vector<8x8xf32>
    %374 = arith.mulf %372, %373 : vector<8x8xf32>
    %375 = arith.addf %374, %303 : vector<8x8xf32>
    %cst_144 = arith.constant dense<0xFF800000> : vector<8xf32>
    %376 = vector.multi_reduction <maximumf>, %375, %cst_144 [1] : vector<8x8xf32> to vector<8xf32>
    %377 = vector.shape_cast %376 : vector<8xf32> to vector<8x1xf32>
    %378 = vector.broadcast %377 : vector<8x1xf32> to vector<8x8xf32>
    %379 = arith.subf %375, %378 : vector<8x8xf32>
    %380 = math.exp %379 : vector<8x8xf32>
    %cst_145 = arith.constant dense<0.000000e+00> : vector<8xf32>
    %381 = vector.multi_reduction <add>, %380, %cst_145 [1] : vector<8x8xf32> to vector<8xf32>
    %382 = vector.shape_cast %381 : vector<8xf32> to vector<8x1xf32>
    %383 = vector.broadcast %382 : vector<8x1xf32> to vector<8x8xf32>
    %384 = arith.divf %380, %383 : vector<8x8xf32>
    %cst_146 = arith.constant dense<0.000000e+00> : vector<8x8xf32>
    %385 = tpu.matmul %384, %370, %cst_146 {dimension_numbers = #tpu.dot_dimension_numbers<[1], [0], [0], [1], [0, 0, 1, 1], [], []>} : vector<8x8xf32>, vector<8x8xf32>, vector<8x8xf32> -> vector<8x8xf32>
    %386 = vector.extract_strided_slice %283 {offsets = [24, 0], sizes = [8, 32], strides = [1, 1]} : vector<32x32xf32> to vector<8x32xf32>
    %cst_147 = arith.constant dense<0.000000e+00> : vector<8x32xf32>
    %387 = tpu.matmul %385, %386, %cst_147 {dimension_numbers = #tpu.dot_dimension_numbers<[1], [0], [0], [1], [0, 0, 1, 1], [], []>} : vector<8x8xf32>, vector<8x32xf32>, vector<8x32xf32> -> vector<8x32xf32>
    %388 = arith.addf %367, %387 : vector<8x32xf32>
    %389 = vector.broadcast %285 : vector<1x32xf32> to vector<8x32xf32>
    %390 = arith.addf %388, %389 : vector<8x32xf32>
    %c0_148 = arith.constant 0 : index
    %c0_149 = arith.constant 0 : index
    %391 = vector.load %arg15[%c0_148, %c0_149] : memref<16x32xf32, #tpu.memory_space<vmem>>, vector<8x32xf32>
    tpu.vector_store %arg15[%c0_148, %c0_149], %390 {strides = array<i32>} : memref<16x32xf32, #tpu.memory_space<vmem>>, vector<8x32xf32>,
    %392 = vector.extract_strided_slice %1 {offsets = [1, 0], sizes = [1, 8], strides = [1, 1]} : vector<2x8xf32> to vector<1x8xf32>
    %393 = vector.shape_cast %392 : vector<1x8xf32> to vector<1x8xf32>
    %394 = vector.broadcast %393 : vector<1x8xf32> to vector<8x8xf32>
    %cst_150 = arith.constant 0.000000e+00 : f32
    %395 = vector.broadcast %cst_150 : f32 to vector<8x32xf32>
    %396 = vector.extract_strided_slice %290 {offsets = [8, 0], sizes = [8, 8], strides = [1, 1]} : vector<16x32xf32> to vector<8x8xf32>
    %397 = vector.extract_strided_slice %295 {offsets = [8, 0], sizes = [8, 8], strides = [1, 1]} : vector<16x32xf32> to vector<8x8xf32>
    %398 = vector.extract_strided_slice %300 {offsets = [8, 0], sizes = [8, 8], strides = [1, 1]} : vector<16x32xf32> to vector<8x8xf32>
    %399 = tpu.transpose %397, [1, 0] : vector<8x8xf32> -> vector<8x8xf32>
    %cst_151 = arith.constant dense<0.000000e+00> : vector<8x8xf32>
    %400 = tpu.matmul %396, %399, %cst_151 {dimension_numbers = #tpu.dot_dimension_numbers<[1], [0], [0], [1], [0, 0, 1, 1], [], []>} : vector<8x8xf32>, vector<8x8xf32>, vector<8x8xf32> -> vector<8x8xf32>
    %cst_152 = arith.constant 0.353553385 : f32
    %401 = vector.broadcast %cst_152 : f32 to vector<8x8xf32>
    %402 = arith.mulf %400, %401 : vector<8x8xf32>
    %403 = arith.addf %402, %394 : vector<8x8xf32>
    %cst_153 = arith.constant dense<0xFF800000> : vector<8xf32>
    %404 = vector.multi_reduction <maximumf>, %403, %cst_153 [1] : vector<8x8xf32> to vector<8xf32>
    %405 = vector.shape_cast %404 : vector<8xf32> to vector<8x1xf32>
    %406 = vector.broadcast %405 : vector<8x1xf32> to vector<8x8xf32>
    %407 = arith.subf %403, %406 : vector<8x8xf32>
    %408 = math.exp %407 : vector<8x8xf32>
    %cst_154 = arith.constant dense<0.000000e+00> : vector<8xf32>
    %409 = vector.multi_reduction <add>, %408, %cst_154 [1] : vector<8x8xf32> to vector<8xf32>
    %410 = vector.shape_cast %409 : vector<8xf32> to vector<8x1xf32>
    %411 = vector.broadcast %410 : vector<8x1xf32> to vector<8x8xf32>
    %412 = arith.divf %408, %411 : vector<8x8xf32>
    %cst_155 = arith.constant dense<0.000000e+00> : vector<8x8xf32>
    %413 = tpu.matmul %412, %398, %cst_155 {dimension_numbers = #tpu.dot_dimension_numbers<[1], [0], [0], [1], [0, 0, 1, 1], [], []>} : vector<8x8xf32>, vector<8x8xf32>, vector<8x8xf32> -> vector<8x8xf32>
    %414 = vector.extract_strided_slice %283 {offsets = [0, 0], sizes = [8, 32], strides = [1, 1]} : vector<32x32xf32> to vector<8x32xf32>
    %cst_156 = arith.constant dense<0.000000e+00> : vector<8x32xf32>
    %415 = tpu.matmul %413, %414, %cst_156 {dimension_numbers = #tpu.dot_dimension_numbers<[1], [0], [0], [1], [0, 0, 1, 1], [], []>} : vector<8x8xf32>, vector<8x32xf32>, vector<8x32xf32> -> vector<8x32xf32>
    %416 = arith.addf %395, %415 : vector<8x32xf32>
    %417 = vector.extract_strided_slice %290 {offsets = [8, 8], sizes = [8, 8], strides = [1, 1]} : vector<16x32xf32> to vector<8x8xf32>
    %418 = vector.extract_strided_slice %295 {offsets = [8, 8], sizes = [8, 8], strides = [1, 1]} : vector<16x32xf32> to vector<8x8xf32>
    %419 = vector.extract_strided_slice %300 {offsets = [8, 8], sizes = [8, 8], strides = [1, 1]} : vector<16x32xf32> to vector<8x8xf32>
    %420 = tpu.transpose %418, [1, 0] : vector<8x8xf32> -> vector<8x8xf32>
    %cst_157 = arith.constant dense<0.000000e+00> : vector<8x8xf32>
    %421 = tpu.matmul %417, %420, %cst_157 {dimension_numbers = #tpu.dot_dimension_numbers<[1], [0], [0], [1], [0, 0, 1, 1], [], []>} : vector<8x8xf32>, vector<8x8xf32>, vector<8x8xf32> -> vector<8x8xf32>
    %cst_158 = arith.constant 0.353553385 : f32
    %422 = vector.broadcast %cst_158 : f32 to vector<8x8xf32>
    %423 = arith.mulf %421, %422 : vector<8x8xf32>
    %424 = arith.addf %423, %394 : vector<8x8xf32>
    %cst_159 = arith.constant dense<0xFF800000> : vector<8xf32>
    %425 = vector.multi_reduction <maximumf>, %424, %cst_159 [1] : vector<8x8xf32> to vector<8xf32>
    %426 = vector.shape_cast %425 : vector<8xf32> to vector<8x1xf32>
    %427 = vector.broadcast %426 : vector<8x1xf32> to vector<8x8xf32>
    %428 = arith.subf %424, %427 : vector<8x8xf32>
    %429 = math.exp %428 : vector<8x8xf32>
    %cst_160 = arith.constant dense<0.000000e+00> : vector<8xf32>
    %430 = vector.multi_reduction <add>, %429, %cst_160 [1] : vector<8x8xf32> to vector<8xf32>
    %431 = vector.shape_cast %430 : vector<8xf32> to vector<8x1xf32>
    %432 = vector.broadcast %431 : vector<8x1xf32> to vector<8x8xf32>
    %433 = arith.divf %429, %432 : vector<8x8xf32>
    %cst_161 = arith.constant dense<0.000000e+00> : vector<8x8xf32>
    %434 = tpu.matmul %433, %419, %cst_161 {dimension_numbers = #tpu.dot_dimension_numbers<[1], [0], [0], [1], [0, 0, 1, 1], [], []>} : vector<8x8xf32>, vector<8x8xf32>, vector<8x8xf32> -> vector<8x8xf32>
    %435 = vector.extract_strided_slice %283 {offsets = [8, 0], sizes = [8, 32], strides = [1, 1]} : vector<32x32xf32> to vector<8x32xf32>
    %cst_162 = arith.constant dense<0.000000e+00> : vector<8x32xf32>
    %436 = tpu.matmul %434, %435, %cst_162 {dimension_numbers = #tpu.dot_dimension_numbers<[1], [0], [0], [1], [0, 0, 1, 1], [], []>} : vector<8x8xf32>, vector<8x32xf32>, vector<8x32xf32> -> vector<8x32xf32>
    %437 = arith.addf %416, %436 : vector<8x32xf32>
    %438 = vector.extract_strided_slice %290 {offsets = [8, 16], sizes = [8, 8], strides = [1, 1]} : vector<16x32xf32> to vector<8x8xf32>
    %439 = vector.extract_strided_slice %295 {offsets = [8, 16], sizes = [8, 8], strides = [1, 1]} : vector<16x32xf32> to vector<8x8xf32>
    %440 = vector.extract_strided_slice %300 {offsets = [8, 16], sizes = [8, 8], strides = [1, 1]} : vector<16x32xf32> to vector<8x8xf32>
    %441 = tpu.transpose %439, [1, 0] : vector<8x8xf32> -> vector<8x8xf32>
    %cst_163 = arith.constant dense<0.000000e+00> : vector<8x8xf32>
    %442 = tpu.matmul %438, %441, %cst_163 {dimension_numbers = #tpu.dot_dimension_numbers<[1], [0], [0], [1], [0, 0, 1, 1], [], []>} : vector<8x8xf32>, vector<8x8xf32>, vector<8x8xf32> -> vector<8x8xf32>
    %cst_164 = arith.constant 0.353553385 : f32
    %443 = vector.broadcast %cst_164 : f32 to vector<8x8xf32>
    %444 = arith.mulf %442, %443 : vector<8x8xf32>
    %445 = arith.addf %444, %394 : vector<8x8xf32>
    %cst_165 = arith.constant dense<0xFF800000> : vector<8xf32>
    %446 = vector.multi_reduction <maximumf>, %445, %cst_165 [1] : vector<8x8xf32> to vector<8xf32>
    %447 = vector.shape_cast %446 : vector<8xf32> to vector<8x1xf32>
    %448 = vector.broadcast %447 : vector<8x1xf32> to vector<8x8xf32>
    %449 = arith.subf %445, %448 : vector<8x8xf32>
    %450 = math.exp %449 : vector<8x8xf32>
    %cst_166 = arith.constant dense<0.000000e+00> : vector<8xf32>
    %451 = vector.multi_reduction <add>, %450, %cst_166 [1] : vector<8x8xf32> to vector<8xf32>
    %452 = vector.shape_cast %451 : vector<8xf32> to vector<8x1xf32>
    %453 = vector.broadcast %452 : vector<8x1xf32> to vector<8x8xf32>
    %454 = arith.divf %450, %453 : vector<8x8xf32>
    %cst_167 = arith.constant dense<0.000000e+00> : vector<8x8xf32>
    %455 = tpu.matmul %454, %440, %cst_167 {dimension_numbers = #tpu.dot_dimension_numbers<[1], [0], [0], [1], [0, 0, 1, 1], [], []>} : vector<8x8xf32>, vector<8x8xf32>, vector<8x8xf32> -> vector<8x8xf32>
    %456 = vector.extract_strided_slice %283 {offsets = [16, 0], sizes = [8, 32], strides = [1, 1]} : vector<32x32xf32> to vector<8x32xf32>
    %cst_168 = arith.constant dense<0.000000e+00> : vector<8x32xf32>
    %457 = tpu.matmul %455, %456, %cst_168 {dimension_numbers = #tpu.dot_dimension_numbers<[1], [0], [0], [1], [0, 0, 1, 1], [], []>} : vector<8x8xf32>, vector<8x32xf32>, vector<8x32xf32> -> vector<8x32xf32>
    %458 = arith.addf %437, %457 : vector<8x32xf32>
    %459 = vector.extract_strided_slice %290 {offsets = [8, 24], sizes = [8, 8], strides = [1, 1]} : vector<16x32xf32> to vector<8x8xf32>
    %460 = vector.extract_strided_slice %295 {offsets = [8, 24], sizes = [8, 8], strides = [1, 1]} : vector<16x32xf32> to vector<8x8xf32>
    %461 = vector.extract_strided_slice %300 {offsets = [8, 24], sizes = [8, 8], strides = [1, 1]} : vector<16x32xf32> to vector<8x8xf32>
    %462 = tpu.transpose %460, [1, 0] : vector<8x8xf32> -> vector<8x8xf32>
    %cst_169 = arith.constant dense<0.000000e+00> : vector<8x8xf32>
    %463 = tpu.matmul %459, %462, %cst_169 {dimension_numbers = #tpu.dot_dimension_numbers<[1], [0], [0], [1], [0, 0, 1, 1], [], []>} : vector<8x8xf32>, vector<8x8xf32>, vector<8x8xf32> -> vector<8x8xf32>
    %cst_170 = arith.constant 0.353553385 : f32
    %464 = vector.broadcast %cst_170 : f32 to vector<8x8xf32>
    %465 = arith.mulf %463, %464 : vector<8x8xf32>
    %466 = arith.addf %465, %394 : vector<8x8xf32>
    %cst_171 = arith.constant dense<0xFF800000> : vector<8xf32>
    %467 = vector.multi_reduction <maximumf>, %466, %cst_171 [1] : vector<8x8xf32> to vector<8xf32>
    %468 = vector.shape_cast %467 : vector<8xf32> to vector<8x1xf32>
    %469 = vector.broadcast %468 : vector<8x1xf32> to vector<8x8xf32>
    %470 = arith.subf %466, %469 : vector<8x8xf32>
    %471 = math.exp %470 : vector<8x8xf32>
    %cst_172 = arith.constant dense<0.000000e+00> : vector<8xf32>
    %472 = vector.multi_reduction <add>, %471, %cst_172 [1] : vector<8x8xf32> to vector<8xf32>
    %473 = vector.shape_cast %472 : vector<8xf32> to vector<8x1xf32>
    %474 = vector.broadcast %473 : vector<8x1xf32> to vector<8x8xf32>
    %475 = arith.divf %471, %474 : vector<8x8xf32>
    %cst_173 = arith.constant dense<0.000000e+00> : vector<8x8xf32>
    %476 = tpu.matmul %475, %461, %cst_173 {dimension_numbers = #tpu.dot_dimension_numbers<[1], [0], [0], [1], [0, 0, 1, 1], [], []>} : vector<8x8xf32>, vector<8x8xf32>, vector<8x8xf32> -> vector<8x8xf32>
    %477 = vector.extract_strided_slice %283 {offsets = [24, 0], sizes = [8, 32], strides = [1, 1]} : vector<32x32xf32> to vector<8x32xf32>
    %cst_174 = arith.constant dense<0.000000e+00> : vector<8x32xf32>
    %478 = tpu.matmul %476, %477, %cst_174 {dimension_numbers = #tpu.dot_dimension_numbers<[1], [0], [0], [1], [0, 0, 1, 1], [], []>} : vector<8x8xf32>, vector<8x32xf32>, vector<8x32xf32> -> vector<8x32xf32>
    %479 = arith.addf %458, %478 : vector<8x32xf32>
    %480 = vector.broadcast %285 : vector<1x32xf32> to vector<8x32xf32>
    %481 = arith.addf %479, %480 : vector<8x32xf32>
    %c8_175 = arith.constant 8 : index
    %c0_176 = arith.constant 0 : index
    %482 = vector.load %arg15[%c8_175, %c0_176] : memref<16x32xf32, #tpu.memory_space<vmem>>, vector<8x32xf32>
    tpu.vector_store %arg15[%c8_175, %c0_176], %481 {strides = array<i32>} : memref<16x32xf32, #tpu.memory_space<vmem>>, vector<8x32xf32>,
    %c0_177 = arith.constant 0 : index
    %c0_178 = arith.constant 0 : index
    %483 = vector.load %arg15[%c0_177, %c0_178] : memref<16x32xf32, #tpu.memory_space<vmem>>, vector<16x32xf32>
    %484 = arith.addf %277, %483 : vector<16x32xf32>
    %c1_179 = arith.constant 1 : index
    %c0_180 = arith.constant 0 : index
    %c0_181 = arith.constant 0 : index
    %485 = vector.load %arg6[%c1_179, %c0_180, %c0_181] : memref<2x1x32xf32, #tpu.memory_space<vmem>>, vector<1x1x32xf32>
    %486 = vector.shape_cast %485 : vector<1x1x32xf32> to vector<1x32xf32>
    %c1_182 = arith.constant 1 : index
    %c0_183 = arith.constant 0 : index
    %c0_184 = arith.constant 0 : index
    %487 = vector.load %arg7[%c1_182, %c0_183, %c0_184] : memref<2x1x32xf32, #tpu.memory_space<vmem>>, vector<1x1x32xf32>
    %488 = vector.shape_cast %487 : vector<1x1x32xf32> to vector<1x32xf32>
    %cst_185 = arith.constant dense<0.000000e+00> : vector<16xf32>
    %489 = vector.multi_reduction <add>, %484, %cst_185 [1] : vector<16x32xf32> to vector<16xf32>
    %490 = vector.shape_cast %489 : vector<16xf32> to vector<16x1xf32>
    %cst_186 = arith.constant 3.200000e+01 : f32
    %491 = vector.broadcast %cst_186 : f32 to vector<16x1xf32>
    %492 = arith.divf %490, %491 : vector<16x1xf32>
    %493 = vector.broadcast %492 : vector<16x1xf32> to vector<16x32xf32>
    %494 = arith.subf %484, %493 : vector<16x32xf32>
    %495 = arith.mulf %494, %494 : vector<16x32xf32>
    %cst_187 = arith.constant dense<0.000000e+00> : vector<16xf32>
    %496 = vector.multi_reduction <add>, %495, %cst_187 [1] : vector<16x32xf32> to vector<16xf32>
    %497 = vector.shape_cast %496 : vector<16xf32> to vector<16x1xf32>
    %cst_188 = arith.constant 3.200000e+01 : f32
    %498 = vector.broadcast %cst_188 : f32 to vector<16x1xf32>
    %499 = arith.divf %497, %498 : vector<16x1xf32>
    %500 = vector.broadcast %492 : vector<16x1xf32> to vector<16x32xf32>
    %501 = arith.subf %484, %500 : vector<16x32xf32>
    %cst_189 = arith.constant 9.99999974E-6 : f32
    %502 = vector.broadcast %cst_189 : f32 to vector<16x1xf32>
    %503 = arith.addf %499, %502 : vector<16x1xf32>
    %504 = math.rsqrt %503 : vector<16x1xf32>
    %505 = vector.broadcast %504 : vector<16x1xf32> to vector<16x32xf32>
    %506 = arith.mulf %501, %505 : vector<16x32xf32>
    %507 = vector.broadcast %486 : vector<1x32xf32> to vector<16x32xf32>
    %508 = arith.mulf %506, %507 : vector<16x32xf32>
    %509 = vector.broadcast %488 : vector<1x32xf32> to vector<16x32xf32>
    %510 = arith.addf %508, %509 : vector<16x32xf32>
    %c1_190 = arith.constant 1 : index
    %c0_191 = arith.constant 0 : index
    %c0_192 = arith.constant 0 : index
    %511 = vector.load %arg8[%c1_190, %c0_191, %c0_192] : memref<2x32x64xf32, #tpu.memory_space<vmem>>, vector<1x32x64xf32>
    %512 = vector.shape_cast %511 : vector<1x32x64xf32> to vector<32x64xf32>
    %c1_193 = arith.constant 1 : index
    %c0_194 = arith.constant 0 : index
    %c0_195 = arith.constant 0 : index
    %513 = vector.load %arg9[%c1_193, %c0_194, %c0_195] : memref<2x1x64xf32, #tpu.memory_space<vmem>>, vector<1x1x64xf32>
    %514 = vector.shape_cast %513 : vector<1x1x64xf32> to vector<1x64xf32>
    %c1_196 = arith.constant 1 : index
    %c0_197 = arith.constant 0 : index
    %c0_198 = arith.constant 0 : index
    %515 = vector.load %arg10[%c1_196, %c0_197, %c0_198] : memref<2x64x32xf32, #tpu.memory_space<vmem>>, vector<1x64x32xf32>
    %516 = vector.shape_cast %515 : vector<1x64x32xf32> to vector<64x32xf32>
    %c1_199 = arith.constant 1 : index
    %c0_200 = arith.constant 0 : index
    %c0_201 = arith.constant 0 : index
    %517 = vector.load %arg11[%c1_199, %c0_200, %c0_201] : memref<2x1x32xf32, #tpu.memory_space<vmem>>, vector<1x1x32xf32>
    %518 = vector.shape_cast %517 : vector<1x1x32xf32> to vector<1x32xf32>
    %cst_202 = arith.constant dense<0.000000e+00> : vector<16x64xf32>
    %519 = tpu.matmul %510, %512, %cst_202 {dimension_numbers = #tpu.dot_dimension_numbers<[1], [0], [0], [1], [0, 0, 1, 1], [], []>} : vector<16x32xf32>, vector<32x64xf32>, vector<16x64xf32> -> vector<16x64xf32>
    %520 = vector.broadcast %514 : vector<1x64xf32> to vector<16x64xf32>
    %521 = arith.addf %519, %520 : vector<16x64xf32>
    %cst_203 = arith.constant 0.000000e+00 : f32
    %522 = vector.broadcast %cst_203 : f32 to vector<16x64xf32>
    %523 = arith.maximumf %521, %522 : vector<16x64xf32>
    %cst_204 = arith.constant dense<0.000000e+00> : vector<16x32xf32>
    %524 = tpu.matmul %523, %516, %cst_204 {dimension_numbers = #tpu.dot_dimension_numbers<[1], [0], [0], [1], [0, 0, 1, 1], [], []>} : vector<16x64xf32>, vector<64x32xf32>, vector<16x32xf32> -> vector<16x32xf32>
    %525 = vector.broadcast %518 : vector<1x32xf32> to vector<16x32xf32>
    %526 = arith.addf %524, %525 : vector<16x32xf32>
    %527 = arith.addf %510, %526 : vector<16x32xf32>
    %c1_205 = arith.constant 1 : index
    %c0_206 = arith.constant 0 : index
    %c0_207 = arith.constant 0 : index
    %528 = vector.load %arg12[%c1_205, %c0_206, %c0_207] : memref<2x1x32xf32, #tpu.memory_space<vmem>>, vector<1x1x32xf32>
    %529 = vector.shape_cast %528 : vector<1x1x32xf32> to vector<1x32xf32>
    %c1_208 = arith.constant 1 : index
    %c0_209 = arith.constant 0 : index
    %c0_210 = arith.constant 0 : index
    %530 = vector.load %arg13[%c1_208, %c0_209, %c0_210] : memref<2x1x32xf32, #tpu.memory_space<vmem>>, vector<1x1x32xf32>
    %531 = vector.shape_cast %530 : vector<1x1x32xf32> to vector<1x32xf32>
    %cst_211 = arith.constant dense<0.000000e+00> : vector<16xf32>
    %532 = vector.multi_reduction <add>, %527, %cst_211 [1] : vector<16x32xf32> to vector<16xf32>
    %533 = vector.shape_cast %532 : vector<16xf32> to vector<16x1xf32>
    %cst_212 = arith.constant 3.200000e+01 : f32
    %534 = vector.broadcast %cst_212 : f32 to vector<16x1xf32>
    %535 = arith.divf %533, %534 : vector<16x1xf32>
    %536 = vector.broadcast %535 : vector<16x1xf32> to vector<16x32xf32>
    %537 = arith.subf %527, %536 : vector<16x32xf32>
    %538 = arith.mulf %537, %537 : vector<16x32xf32>
    %cst_213 = arith.constant dense<0.000000e+00> : vector<16xf32>
    %539 = vector.multi_reduction <add>, %538, %cst_213 [1] : vector<16x32xf32> to vector<16xf32>
    %540 = vector.shape_cast %539 : vector<16xf32> to vector<16x1xf32>
    %cst_214 = arith.constant 3.200000e+01 : f32
    %541 = vector.broadcast %cst_214 : f32 to vector<16x1xf32>
    %542 = arith.divf %540, %541 : vector<16x1xf32>
    %543 = vector.broadcast %535 : vector<16x1xf32> to vector<16x32xf32>
    %544 = arith.subf %527, %543 : vector<16x32xf32>
    %cst_215 = arith.constant 9.99999974E-6 : f32
    %545 = vector.broadcast %cst_215 : f32 to vector<16x1xf32>
    %546 = arith.addf %542, %545 : vector<16x1xf32>
    %547 = math.rsqrt %546 : vector<16x1xf32>
    %548 = vector.broadcast %547 : vector<16x1xf32> to vector<16x32xf32>
    %549 = arith.mulf %544, %548 : vector<16x32xf32>
    %550 = vector.broadcast %529 : vector<1x32xf32> to vector<16x32xf32>
    %551 = arith.mulf %549, %550 : vector<16x32xf32>
    %552 = vector.broadcast %531 : vector<1x32xf32> to vector<16x32xf32>
    %553 = arith.addf %551, %552 : vector<16x32xf32>
    %c0_216 = arith.constant 0 : index
    %c0_217 = arith.constant 0 : index
    %554 = vector.load %arg14[%c0_216, %c0_217] : memref<16x32xf32, #tpu.memory_space<vmem>>, vector<16x32xf32>
    tpu.vector_store %arg14[%c0_216, %c0_217], %553 {strides = array<i32>} : memref<16x32xf32, #tpu.memory_space<vmem>>, vector<16x32xf32>,
    return
  }
}

module attributes {stable_mosaic.version = 11 : i64} {
  func.func @_decoder_kernel(%arg0: memref<16x32xf32, #tpu.memory_space<vmem>>, %arg1: memref<16x32xf32, #tpu.memory_space<vmem>>, %arg2: memref<2x8xf32, #tpu.memory_space<vmem>>, %arg3: memref<2x8xf32, #tpu.memory_space<vmem>>, %arg4: memref<2x32x96xf32, #tpu.memory_space<vmem>>, %arg5: memref<2x1x96xf32, #tpu.memory_space<vmem>>, %arg6: memref<2x32x32xf32, #tpu.memory_space<vmem>>, %arg7: memref<2x1x32xf32, #tpu.memory_space<vmem>>, %arg8: memref<2x32x96xf32, #tpu.memory_space<vmem>>, %arg9: memref<2x1x96xf32, #tpu.memory_space<vmem>>, %arg10: memref<2x32x32xf32, #tpu.memory_space<vmem>>, %arg11: memref<2x1x32xf32, #tpu.memory_space<vmem>>, %arg12: memref<2x1x32xf32, #tpu.memory_space<vmem>>, %arg13: memref<2x1x32xf32, #tpu.memory_space<vmem>>, %arg14: memref<2x1x32xf32, #tpu.memory_space<vmem>>, %arg15: memref<2x1x32xf32, #tpu.memory_space<vmem>>, %arg16: memref<2x1x32xf32, #tpu.memory_space<vmem>>, %arg17: memref<2x1x32xf32, #tpu.memory_space<vmem>>, %arg18: memref<2x32x64xf32, #tpu.memory_space<vmem>>, %arg19: memref<2x1x64xf32, #tpu.memory_space<vmem>>, %arg20: memref<2x64x32xf32, #tpu.memory_space<vmem>>, %arg21: memref<2x1x32xf32, #tpu.memory_space<vmem>>, %arg22: memref<32x128xf32, #tpu.memory_space<vmem>>, %arg23: memref<1x128xf32, #tpu.memory_space<vmem>>, %arg24: memref<16x128xf32, #tpu.memory_space<vmem>>, %arg25: memref<8x8x8xf32, #tpu.memory_space<vmem>>, %arg26: memref<16x32xf32, #tpu.memory_space<vmem>>) attributes {dimension_semantics = [], scalar_prefetch = 0 : i64, scratch_operands = 1 : i64, tpu.core_type = #tpu.core_type<tc>} {
    %c0 = arith.constant 0 : index
    %c0_0 = arith.constant 0 : index
    %0 = vector.load %arg0[%c0, %c0_0] : memref<16x32xf32, #tpu.memory_space<vmem>>, vector<16x32xf32>
    %c0_1 = arith.constant 0 : index
    %c0_2 = arith.constant 0 : index
    %1 = vector.load %arg1[%c0_1, %c0_2] : memref<16x32xf32, #tpu.memory_space<vmem>>, vector<16x32xf32>
    %c0_3 = arith.constant 0 : index
    %c0_4 = arith.constant 0 : index
    %2 = vector.load %arg2[%c0_3, %c0_4] : memref<2x8xf32, #tpu.memory_space<vmem>>, vector<2x8xf32>
    %c0_5 = arith.constant 0 : index
    %c0_6 = arith.constant 0 : index
    %3 = vector.load %arg3[%c0_5, %c0_6] : memref<2x8xf32, #tpu.memory_space<vmem>>, vector<2x8xf32>
    %4 = tpu.iota {dimensions = array<i32: 0>} : vector<8x8xi32>
    %5 = tpu.iota {dimensions = array<i32: 1>} : vector<8x8xi32>
    %6 = arith.cmpi sle, %5, %4 : vector<8x8xi32>
    %cst = arith.constant 0.000000e+00 : f32
    %cst_7 = arith.constant -1.000000e+09 : f32
    %7 = vector.broadcast %cst : f32 to vector<8x8xf32>
    %8 = vector.broadcast %cst_7 : f32 to vector<8x8xf32>
    %9 = arith.select %6, %7, %8 : vector<8x8xi1>, vector<8x8xf32>
    %c0_8 = arith.constant 0 : index
    %c0_9 = arith.constant 0 : index
    %c0_10 = arith.constant 0 : index
    %10 = vector.load %arg4[%c0_8, %c0_9, %c0_10] : memref<2x32x96xf32, #tpu.memory_space<vmem>>, vector<1x32x96xf32>
    %11 = vector.shape_cast %10 : vector<1x32x96xf32> to vector<32x96xf32>
    %c0_11 = arith.constant 0 : index
    %c0_12 = arith.constant 0 : index
    %c0_13 = arith.constant 0 : index
    %12 = vector.load %arg5[%c0_11, %c0_12, %c0_13] : memref<2x1x96xf32, #tpu.memory_space<vmem>>, vector<1x1x96xf32>
    %13 = vector.shape_cast %12 : vector<1x1x96xf32> to vector<1x96xf32>
    %c0_14 = arith.constant 0 : index
    %c0_15 = arith.constant 0 : index
    %c0_16 = arith.constant 0 : index
    %14 = vector.load %arg6[%c0_14, %c0_15, %c0_16] : memref<2x32x32xf32, #tpu.memory_space<vmem>>, vector<1x32x32xf32>
    %15 = vector.shape_cast %14 : vector<1x32x32xf32> to vector<32x32xf32>
    %c0_17 = arith.constant 0 : index
    %c0_18 = arith.constant 0 : index
    %c0_19 = arith.constant 0 : index
    %16 = vector.load %arg7[%c0_17, %c0_18, %c0_19] : memref<2x1x32xf32, #tpu.memory_space<vmem>>, vector<1x1x32xf32>
    %17 = vector.shape_cast %16 : vector<1x1x32xf32> to vector<1x32xf32>
    %18 = vector.extract_strided_slice %11 {offsets = [0, 0], sizes = [32, 32], strides = [1, 1]} : vector<32x96xf32> to vector<32x32xf32>
    %cst_20 = arith.constant dense<0.000000e+00> : vector<16x32xf32>
    %19 = tpu.matmul %0, %18, %cst_20 {dimension_numbers = #tpu.dot_dimension_numbers<[1], [0], [0], [1], [0, 0, 1, 1], [], []>} : vector<16x32xf32>, vector<32x32xf32>, vector<16x32xf32> -> vector<16x32xf32>
    %20 = vector.extract_strided_slice %13 {offsets = [0, 0], sizes = [1, 32], strides = [1, 1]} : vector<1x96xf32> to vector<1x32xf32>
    %21 = vector.broadcast %20 : vector<1x32xf32> to vector<16x32xf32>
    %22 = arith.addf %19, %21 : vector<16x32xf32>
    %23 = vector.extract_strided_slice %11 {offsets = [0, 32], sizes = [32, 32], strides = [1, 1]} : vector<32x96xf32> to vector<32x32xf32>
    %cst_21 = arith.constant dense<0.000000e+00> : vector<16x32xf32>
    %24 = tpu.matmul %0, %23, %cst_21 {dimension_numbers = #tpu.dot_dimension_numbers<[1], [0], [0], [1], [0, 0, 1, 1], [], []>} : vector<16x32xf32>, vector<32x32xf32>, vector<16x32xf32> -> vector<16x32xf32>
    %25 = vector.extract_strided_slice %13 {offsets = [0, 32], sizes = [1, 32], strides = [1, 1]} : vector<1x96xf32> to vector<1x32xf32>
    %26 = vector.broadcast %25 : vector<1x32xf32> to vector<16x32xf32>
    %27 = arith.addf %24, %26 : vector<16x32xf32>
    %28 = vector.extract_strided_slice %11 {offsets = [0, 64], sizes = [32, 32], strides = [1, 1]} : vector<32x96xf32> to vector<32x32xf32>
    %cst_22 = arith.constant dense<0.000000e+00> : vector<16x32xf32>
    %29 = tpu.matmul %0, %28, %cst_22 {dimension_numbers = #tpu.dot_dimension_numbers<[1], [0], [0], [1], [0, 0, 1, 1], [], []>} : vector<16x32xf32>, vector<32x32xf32>, vector<16x32xf32> -> vector<16x32xf32>
    %30 = vector.extract_strided_slice %13 {offsets = [0, 64], sizes = [1, 32], strides = [1, 1]} : vector<1x96xf32> to vector<1x32xf32>
    %31 = vector.broadcast %30 : vector<1x32xf32> to vector<16x32xf32>
    %32 = arith.addf %29, %31 : vector<16x32xf32>
    %33 = vector.extract_strided_slice %2 {offsets = [0, 0], sizes = [1, 8], strides = [1, 1]} : vector<2x8xf32> to vector<1x8xf32>
    %34 = vector.shape_cast %33 : vector<1x8xf32> to vector<1x8xf32>
    %35 = vector.broadcast %34 : vector<1x8xf32> to vector<8x8xf32>
    %36 = arith.addf %35, %9 : vector<8x8xf32>
    %cst_23 = arith.constant 0.000000e+00 : f32
    %37 = vector.broadcast %cst_23 : f32 to vector<8x32xf32>
    %38 = vector.extract_strided_slice %22 {offsets = [0, 0], sizes = [8, 8], strides = [1, 1]} : vector<16x32xf32> to vector<8x8xf32>
    %39 = vector.extract_strided_slice %27 {offsets = [0, 0], sizes = [8, 8], strides = [1, 1]} : vector<16x32xf32> to vector<8x8xf32>
    %40 = vector.extract_strided_slice %32 {offsets = [0, 0], sizes = [8, 8], strides = [1, 1]} : vector<16x32xf32> to vector<8x8xf32>
    %41 = tpu.transpose %39, [1, 0] : vector<8x8xf32> -> vector<8x8xf32>
    %cst_24 = arith.constant dense<0.000000e+00> : vector<8x8xf32>
    %42 = tpu.matmul %38, %41, %cst_24 {dimension_numbers = #tpu.dot_dimension_numbers<[1], [0], [0], [1], [0, 0, 1, 1], [], []>} : vector<8x8xf32>, vector<8x8xf32>, vector<8x8xf32> -> vector<8x8xf32>
    %cst_25 = arith.constant 0.353553385 : f32
    %43 = vector.broadcast %cst_25 : f32 to vector<8x8xf32>
    %44 = arith.mulf %42, %43 : vector<8x8xf32>
    %45 = arith.addf %44, %36 : vector<8x8xf32>
    %cst_26 = arith.constant dense<0xFF800000> : vector<8xf32>
    %46 = vector.multi_reduction <maximumf>, %45, %cst_26 [1] : vector<8x8xf32> to vector<8xf32>
    %47 = vector.shape_cast %46 : vector<8xf32> to vector<8x1xf32>
    %48 = vector.broadcast %47 : vector<8x1xf32> to vector<8x8xf32>
    %49 = arith.subf %45, %48 : vector<8x8xf32>
    %50 = math.exp %49 : vector<8x8xf32>
    %cst_27 = arith.constant dense<0.000000e+00> : vector<8xf32>
    %51 = vector.multi_reduction <add>, %50, %cst_27 [1] : vector<8x8xf32> to vector<8xf32>
    %52 = vector.shape_cast %51 : vector<8xf32> to vector<8x1xf32>
    %53 = vector.broadcast %52 : vector<8x1xf32> to vector<8x8xf32>
    %54 = arith.divf %50, %53 : vector<8x8xf32>
    %cst_28 = arith.constant dense<0.000000e+00> : vector<8x8xf32>
    %55 = tpu.matmul %54, %40, %cst_28 {dimension_numbers = #tpu.dot_dimension_numbers<[1], [0], [0], [1], [0, 0, 1, 1], [], []>} : vector<8x8xf32>, vector<8x8xf32>, vector<8x8xf32> -> vector<8x8xf32>
    %56 = vector.extract_strided_slice %15 {offsets = [0, 0], sizes = [8, 32], strides = [1, 1]} : vector<32x32xf32> to vector<8x32xf32>
    %cst_29 = arith.constant dense<0.000000e+00> : vector<8x32xf32>
    %57 = tpu.matmul %55, %56, %cst_29 {dimension_numbers = #tpu.dot_dimension_numbers<[1], [0], [0], [1], [0, 0, 1, 1], [], []>} : vector<8x8xf32>, vector<8x32xf32>, vector<8x32xf32> -> vector<8x32xf32>
    %58 = arith.addf %37, %57 : vector<8x32xf32>
    %59 = vector.extract_strided_slice %22 {offsets = [0, 8], sizes = [8, 8], strides = [1, 1]} : vector<16x32xf32> to vector<8x8xf32>
    %60 = vector.extract_strided_slice %27 {offsets = [0, 8], sizes = [8, 8], strides = [1, 1]} : vector<16x32xf32> to vector<8x8xf32>
    %61 = vector.extract_strided_slice %32 {offsets = [0, 8], sizes = [8, 8], strides = [1, 1]} : vector<16x32xf32> to vector<8x8xf32>
    %62 = tpu.transpose %60, [1, 0] : vector<8x8xf32> -> vector<8x8xf32>
    %cst_30 = arith.constant dense<0.000000e+00> : vector<8x8xf32>
    %63 = tpu.matmul %59, %62, %cst_30 {dimension_numbers = #tpu.dot_dimension_numbers<[1], [0], [0], [1], [0, 0, 1, 1], [], []>} : vector<8x8xf32>, vector<8x8xf32>, vector<8x8xf32> -> vector<8x8xf32>
    %cst_31 = arith.constant 0.353553385 : f32
    %64 = vector.broadcast %cst_31 : f32 to vector<8x8xf32>
    %65 = arith.mulf %63, %64 : vector<8x8xf32>
    %66 = arith.addf %65, %36 : vector<8x8xf32>
    %cst_32 = arith.constant dense<0xFF800000> : vector<8xf32>
    %67 = vector.multi_reduction <maximumf>, %66, %cst_32 [1] : vector<8x8xf32> to vector<8xf32>
    %68 = vector.shape_cast %67 : vector<8xf32> to vector<8x1xf32>
    %69 = vector.broadcast %68 : vector<8x1xf32> to vector<8x8xf32>
    %70 = arith.subf %66, %69 : vector<8x8xf32>
    %71 = math.exp %70 : vector<8x8xf32>
    %cst_33 = arith.constant dense<0.000000e+00> : vector<8xf32>
    %72 = vector.multi_reduction <add>, %71, %cst_33 [1] : vector<8x8xf32> to vector<8xf32>
    %73 = vector.shape_cast %72 : vector<8xf32> to vector<8x1xf32>
    %74 = vector.broadcast %73 : vector<8x1xf32> to vector<8x8xf32>
    %75 = arith.divf %71, %74 : vector<8x8xf32>
    %cst_34 = arith.constant dense<0.000000e+00> : vector<8x8xf32>
    %76 = tpu.matmul %75, %61, %cst_34 {dimension_numbers = #tpu.dot_dimension_numbers<[1], [0], [0], [1], [0, 0, 1, 1], [], []>} : vector<8x8xf32>, vector<8x8xf32>, vector<8x8xf32> -> vector<8x8xf32>
    %77 = vector.extract_strided_slice %15 {offsets = [8, 0], sizes = [8, 32], strides = [1, 1]} : vector<32x32xf32> to vector<8x32xf32>
    %cst_35 = arith.constant dense<0.000000e+00> : vector<8x32xf32>
    %78 = tpu.matmul %76, %77, %cst_35 {dimension_numbers = #tpu.dot_dimension_numbers<[1], [0], [0], [1], [0, 0, 1, 1], [], []>} : vector<8x8xf32>, vector<8x32xf32>, vector<8x32xf32> -> vector<8x32xf32>
    %79 = arith.addf %58, %78 : vector<8x32xf32>
    %80 = vector.extract_strided_slice %22 {offsets = [0, 16], sizes = [8, 8], strides = [1, 1]} : vector<16x32xf32> to vector<8x8xf32>
    %81 = vector.extract_strided_slice %27 {offsets = [0, 16], sizes = [8, 8], strides = [1, 1]} : vector<16x32xf32> to vector<8x8xf32>
    %82 = vector.extract_strided_slice %32 {offsets = [0, 16], sizes = [8, 8], strides = [1, 1]} : vector<16x32xf32> to vector<8x8xf32>
    %83 = tpu.transpose %81, [1, 0] : vector<8x8xf32> -> vector<8x8xf32>
    %cst_36 = arith.constant dense<0.000000e+00> : vector<8x8xf32>
    %84 = tpu.matmul %80, %83, %cst_36 {dimension_numbers = #tpu.dot_dimension_numbers<[1], [0], [0], [1], [0, 0, 1, 1], [], []>} : vector<8x8xf32>, vector<8x8xf32>, vector<8x8xf32> -> vector<8x8xf32>
    %cst_37 = arith.constant 0.353553385 : f32
    %85 = vector.broadcast %cst_37 : f32 to vector<8x8xf32>
    %86 = arith.mulf %84, %85 : vector<8x8xf32>
    %87 = arith.addf %86, %36 : vector<8x8xf32>
    %cst_38 = arith.constant dense<0xFF800000> : vector<8xf32>
    %88 = vector.multi_reduction <maximumf>, %87, %cst_38 [1] : vector<8x8xf32> to vector<8xf32>
    %89 = vector.shape_cast %88 : vector<8xf32> to vector<8x1xf32>
    %90 = vector.broadcast %89 : vector<8x1xf32> to vector<8x8xf32>
    %91 = arith.subf %87, %90 : vector<8x8xf32>
    %92 = math.exp %91 : vector<8x8xf32>
    %cst_39 = arith.constant dense<0.000000e+00> : vector<8xf32>
    %93 = vector.multi_reduction <add>, %92, %cst_39 [1] : vector<8x8xf32> to vector<8xf32>
    %94 = vector.shape_cast %93 : vector<8xf32> to vector<8x1xf32>
    %95 = vector.broadcast %94 : vector<8x1xf32> to vector<8x8xf32>
    %96 = arith.divf %92, %95 : vector<8x8xf32>
    %cst_40 = arith.constant dense<0.000000e+00> : vector<8x8xf32>
    %97 = tpu.matmul %96, %82, %cst_40 {dimension_numbers = #tpu.dot_dimension_numbers<[1], [0], [0], [1], [0, 0, 1, 1], [], []>} : vector<8x8xf32>, vector<8x8xf32>, vector<8x8xf32> -> vector<8x8xf32>
    %98 = vector.extract_strided_slice %15 {offsets = [16, 0], sizes = [8, 32], strides = [1, 1]} : vector<32x32xf32> to vector<8x32xf32>
    %cst_41 = arith.constant dense<0.000000e+00> : vector<8x32xf32>
    %99 = tpu.matmul %97, %98, %cst_41 {dimension_numbers = #tpu.dot_dimension_numbers<[1], [0], [0], [1], [0, 0, 1, 1], [], []>} : vector<8x8xf32>, vector<8x32xf32>, vector<8x32xf32> -> vector<8x32xf32>
    %100 = arith.addf %79, %99 : vector<8x32xf32>
    %101 = vector.extract_strided_slice %22 {offsets = [0, 24], sizes = [8, 8], strides = [1, 1]} : vector<16x32xf32> to vector<8x8xf32>
    %102 = vector.extract_strided_slice %27 {offsets = [0, 24], sizes = [8, 8], strides = [1, 1]} : vector<16x32xf32> to vector<8x8xf32>
    %103 = vector.extract_strided_slice %32 {offsets = [0, 24], sizes = [8, 8], strides = [1, 1]} : vector<16x32xf32> to vector<8x8xf32>
    %104 = tpu.transpose %102, [1, 0] : vector<8x8xf32> -> vector<8x8xf32>
    %cst_42 = arith.constant dense<0.000000e+00> : vector<8x8xf32>
    %105 = tpu.matmul %101, %104, %cst_42 {dimension_numbers = #tpu.dot_dimension_numbers<[1], [0], [0], [1], [0, 0, 1, 1], [], []>} : vector<8x8xf32>, vector<8x8xf32>, vector<8x8xf32> -> vector<8x8xf32>
    %cst_43 = arith.constant 0.353553385 : f32
    %106 = vector.broadcast %cst_43 : f32 to vector<8x8xf32>
    %107 = arith.mulf %105, %106 : vector<8x8xf32>
    %108 = arith.addf %107, %36 : vector<8x8xf32>
    %cst_44 = arith.constant dense<0xFF800000> : vector<8xf32>
    %109 = vector.multi_reduction <maximumf>, %108, %cst_44 [1] : vector<8x8xf32> to vector<8xf32>
    %110 = vector.shape_cast %109 : vector<8xf32> to vector<8x1xf32>
    %111 = vector.broadcast %110 : vector<8x1xf32> to vector<8x8xf32>
    %112 = arith.subf %108, %111 : vector<8x8xf32>
    %113 = math.exp %112 : vector<8x8xf32>
    %cst_45 = arith.constant dense<0.000000e+00> : vector<8xf32>
    %114 = vector.multi_reduction <add>, %113, %cst_45 [1] : vector<8x8xf32> to vector<8xf32>
    %115 = vector.shape_cast %114 : vector<8xf32> to vector<8x1xf32>
    %116 = vector.broadcast %115 : vector<8x1xf32> to vector<8x8xf32>
    %117 = arith.divf %113, %116 : vector<8x8xf32>
    %cst_46 = arith.constant dense<0.000000e+00> : vector<8x8xf32>
    %118 = tpu.matmul %117, %103, %cst_46 {dimension_numbers = #tpu.dot_dimension_numbers<[1], [0], [0], [1], [0, 0, 1, 1], [], []>} : vector<8x8xf32>, vector<8x8xf32>, vector<8x8xf32> -> vector<8x8xf32>
    %119 = vector.extract_strided_slice %15 {offsets = [24, 0], sizes = [8, 32], strides = [1, 1]} : vector<32x32xf32> to vector<8x32xf32>
    %cst_47 = arith.constant dense<0.000000e+00> : vector<8x32xf32>
    %120 = tpu.matmul %118, %119, %cst_47 {dimension_numbers = #tpu.dot_dimension_numbers<[1], [0], [0], [1], [0, 0, 1, 1], [], []>} : vector<8x8xf32>, vector<8x32xf32>, vector<8x32xf32> -> vector<8x32xf32>
    %121 = arith.addf %100, %120 : vector<8x32xf32>
    %122 = vector.broadcast %17 : vector<1x32xf32> to vector<8x32xf32>
    %123 = arith.addf %121, %122 : vector<8x32xf32>
    %c0_48 = arith.constant 0 : index
    %c0_49 = arith.constant 0 : index
    %124 = vector.load %arg26[%c0_48, %c0_49] : memref<16x32xf32, #tpu.memory_space<vmem>>, vector<8x32xf32>
    tpu.vector_store %arg26[%c0_48, %c0_49], %123 {strides = array<i32>} : memref<16x32xf32, #tpu.memory_space<vmem>>, vector<8x32xf32>,
    %125 = vector.extract_strided_slice %2 {offsets = [1, 0], sizes = [1, 8], strides = [1, 1]} : vector<2x8xf32> to vector<1x8xf32>
    %126 = vector.shape_cast %125 : vector<1x8xf32> to vector<1x8xf32>
    %127 = vector.broadcast %126 : vector<1x8xf32> to vector<8x8xf32>
    %128 = arith.addf %127, %9 : vector<8x8xf32>
    %cst_50 = arith.constant 0.000000e+00 : f32
    %129 = vector.broadcast %cst_50 : f32 to vector<8x32xf32>
    %130 = vector.extract_strided_slice %22 {offsets = [8, 0], sizes = [8, 8], strides = [1, 1]} : vector<16x32xf32> to vector<8x8xf32>
    %131 = vector.extract_strided_slice %27 {offsets = [8, 0], sizes = [8, 8], strides = [1, 1]} : vector<16x32xf32> to vector<8x8xf32>
    %132 = vector.extract_strided_slice %32 {offsets = [8, 0], sizes = [8, 8], strides = [1, 1]} : vector<16x32xf32> to vector<8x8xf32>
    %133 = tpu.transpose %131, [1, 0] : vector<8x8xf32> -> vector<8x8xf32>
    %cst_51 = arith.constant dense<0.000000e+00> : vector<8x8xf32>
    %134 = tpu.matmul %130, %133, %cst_51 {dimension_numbers = #tpu.dot_dimension_numbers<[1], [0], [0], [1], [0, 0, 1, 1], [], []>} : vector<8x8xf32>, vector<8x8xf32>, vector<8x8xf32> -> vector<8x8xf32>
    %cst_52 = arith.constant 0.353553385 : f32
    %135 = vector.broadcast %cst_52 : f32 to vector<8x8xf32>
    %136 = arith.mulf %134, %135 : vector<8x8xf32>
    %137 = arith.addf %136, %128 : vector<8x8xf32>
    %cst_53 = arith.constant dense<0xFF800000> : vector<8xf32>
    %138 = vector.multi_reduction <maximumf>, %137, %cst_53 [1] : vector<8x8xf32> to vector<8xf32>
    %139 = vector.shape_cast %138 : vector<8xf32> to vector<8x1xf32>
    %140 = vector.broadcast %139 : vector<8x1xf32> to vector<8x8xf32>
    %141 = arith.subf %137, %140 : vector<8x8xf32>
    %142 = math.exp %141 : vector<8x8xf32>
    %cst_54 = arith.constant dense<0.000000e+00> : vector<8xf32>
    %143 = vector.multi_reduction <add>, %142, %cst_54 [1] : vector<8x8xf32> to vector<8xf32>
    %144 = vector.shape_cast %143 : vector<8xf32> to vector<8x1xf32>
    %145 = vector.broadcast %144 : vector<8x1xf32> to vector<8x8xf32>
    %146 = arith.divf %142, %145 : vector<8x8xf32>
    %cst_55 = arith.constant dense<0.000000e+00> : vector<8x8xf32>
    %147 = tpu.matmul %146, %132, %cst_55 {dimension_numbers = #tpu.dot_dimension_numbers<[1], [0], [0], [1], [0, 0, 1, 1], [], []>} : vector<8x8xf32>, vector<8x8xf32>, vector<8x8xf32> -> vector<8x8xf32>
    %148 = vector.extract_strided_slice %15 {offsets = [0, 0], sizes = [8, 32], strides = [1, 1]} : vector<32x32xf32> to vector<8x32xf32>
    %cst_56 = arith.constant dense<0.000000e+00> : vector<8x32xf32>
    %149 = tpu.matmul %147, %148, %cst_56 {dimension_numbers = #tpu.dot_dimension_numbers<[1], [0], [0], [1], [0, 0, 1, 1], [], []>} : vector<8x8xf32>, vector<8x32xf32>, vector<8x32xf32> -> vector<8x32xf32>
    %150 = arith.addf %129, %149 : vector<8x32xf32>
    %151 = vector.extract_strided_slice %22 {offsets = [8, 8], sizes = [8, 8], strides = [1, 1]} : vector<16x32xf32> to vector<8x8xf32>
    %152 = vector.extract_strided_slice %27 {offsets = [8, 8], sizes = [8, 8], strides = [1, 1]} : vector<16x32xf32> to vector<8x8xf32>
    %153 = vector.extract_strided_slice %32 {offsets = [8, 8], sizes = [8, 8], strides = [1, 1]} : vector<16x32xf32> to vector<8x8xf32>
    %154 = tpu.transpose %152, [1, 0] : vector<8x8xf32> -> vector<8x8xf32>
    %cst_57 = arith.constant dense<0.000000e+00> : vector<8x8xf32>
    %155 = tpu.matmul %151, %154, %cst_57 {dimension_numbers = #tpu.dot_dimension_numbers<[1], [0], [0], [1], [0, 0, 1, 1], [], []>} : vector<8x8xf32>, vector<8x8xf32>, vector<8x8xf32> -> vector<8x8xf32>
    %cst_58 = arith.constant 0.353553385 : f32
    %156 = vector.broadcast %cst_58 : f32 to vector<8x8xf32>
    %157 = arith.mulf %155, %156 : vector<8x8xf32>
    %158 = arith.addf %157, %128 : vector<8x8xf32>
    %cst_59 = arith.constant dense<0xFF800000> : vector<8xf32>
    %159 = vector.multi_reduction <maximumf>, %158, %cst_59 [1] : vector<8x8xf32> to vector<8xf32>
    %160 = vector.shape_cast %159 : vector<8xf32> to vector<8x1xf32>
    %161 = vector.broadcast %160 : vector<8x1xf32> to vector<8x8xf32>
    %162 = arith.subf %158, %161 : vector<8x8xf32>
    %163 = math.exp %162 : vector<8x8xf32>
    %cst_60 = arith.constant dense<0.000000e+00> : vector<8xf32>
    %164 = vector.multi_reduction <add>, %163, %cst_60 [1] : vector<8x8xf32> to vector<8xf32>
    %165 = vector.shape_cast %164 : vector<8xf32> to vector<8x1xf32>
    %166 = vector.broadcast %165 : vector<8x1xf32> to vector<8x8xf32>
    %167 = arith.divf %163, %166 : vector<8x8xf32>
    %cst_61 = arith.constant dense<0.000000e+00> : vector<8x8xf32>
    %168 = tpu.matmul %167, %153, %cst_61 {dimension_numbers = #tpu.dot_dimension_numbers<[1], [0], [0], [1], [0, 0, 1, 1], [], []>} : vector<8x8xf32>, vector<8x8xf32>, vector<8x8xf32> -> vector<8x8xf32>
    %169 = vector.extract_strided_slice %15 {offsets = [8, 0], sizes = [8, 32], strides = [1, 1]} : vector<32x32xf32> to vector<8x32xf32>
    %cst_62 = arith.constant dense<0.000000e+00> : vector<8x32xf32>
    %170 = tpu.matmul %168, %169, %cst_62 {dimension_numbers = #tpu.dot_dimension_numbers<[1], [0], [0], [1], [0, 0, 1, 1], [], []>} : vector<8x8xf32>, vector<8x32xf32>, vector<8x32xf32> -> vector<8x32xf32>
    %171 = arith.addf %150, %170 : vector<8x32xf32>
    %172 = vector.extract_strided_slice %22 {offsets = [8, 16], sizes = [8, 8], strides = [1, 1]} : vector<16x32xf32> to vector<8x8xf32>
    %173 = vector.extract_strided_slice %27 {offsets = [8, 16], sizes = [8, 8], strides = [1, 1]} : vector<16x32xf32> to vector<8x8xf32>
    %174 = vector.extract_strided_slice %32 {offsets = [8, 16], sizes = [8, 8], strides = [1, 1]} : vector<16x32xf32> to vector<8x8xf32>
    %175 = tpu.transpose %173, [1, 0] : vector<8x8xf32> -> vector<8x8xf32>
    %cst_63 = arith.constant dense<0.000000e+00> : vector<8x8xf32>
    %176 = tpu.matmul %172, %175, %cst_63 {dimension_numbers = #tpu.dot_dimension_numbers<[1], [0], [0], [1], [0, 0, 1, 1], [], []>} : vector<8x8xf32>, vector<8x8xf32>, vector<8x8xf32> -> vector<8x8xf32>
    %cst_64 = arith.constant 0.353553385 : f32
    %177 = vector.broadcast %cst_64 : f32 to vector<8x8xf32>
    %178 = arith.mulf %176, %177 : vector<8x8xf32>
    %179 = arith.addf %178, %128 : vector<8x8xf32>
    %cst_65 = arith.constant dense<0xFF800000> : vector<8xf32>
    %180 = vector.multi_reduction <maximumf>, %179, %cst_65 [1] : vector<8x8xf32> to vector<8xf32>
    %181 = vector.shape_cast %180 : vector<8xf32> to vector<8x1xf32>
    %182 = vector.broadcast %181 : vector<8x1xf32> to vector<8x8xf32>
    %183 = arith.subf %179, %182 : vector<8x8xf32>
    %184 = math.exp %183 : vector<8x8xf32>
    %cst_66 = arith.constant dense<0.000000e+00> : vector<8xf32>
    %185 = vector.multi_reduction <add>, %184, %cst_66 [1] : vector<8x8xf32> to vector<8xf32>
    %186 = vector.shape_cast %185 : vector<8xf32> to vector<8x1xf32>
    %187 = vector.broadcast %186 : vector<8x1xf32> to vector<8x8xf32>
    %188 = arith.divf %184, %187 : vector<8x8xf32>
    %cst_67 = arith.constant dense<0.000000e+00> : vector<8x8xf32>
    %189 = tpu.matmul %188, %174, %cst_67 {dimension_numbers = #tpu.dot_dimension_numbers<[1], [0], [0], [1], [0, 0, 1, 1], [], []>} : vector<8x8xf32>, vector<8x8xf32>, vector<8x8xf32> -> vector<8x8xf32>
    %190 = vector.extract_strided_slice %15 {offsets = [16, 0], sizes = [8, 32], strides = [1, 1]} : vector<32x32xf32> to vector<8x32xf32>
    %cst_68 = arith.constant dense<0.000000e+00> : vector<8x32xf32>
    %191 = tpu.matmul %189, %190, %cst_68 {dimension_numbers = #tpu.dot_dimension_numbers<[1], [0], [0], [1], [0, 0, 1, 1], [], []>} : vector<8x8xf32>, vector<8x32xf32>, vector<8x32xf32> -> vector<8x32xf32>
    %192 = arith.addf %171, %191 : vector<8x32xf32>
    %193 = vector.extract_strided_slice %22 {offsets = [8, 24], sizes = [8, 8], strides = [1, 1]} : vector<16x32xf32> to vector<8x8xf32>
    %194 = vector.extract_strided_slice %27 {offsets = [8, 24], sizes = [8, 8], strides = [1, 1]} : vector<16x32xf32> to vector<8x8xf32>
    %195 = vector.extract_strided_slice %32 {offsets = [8, 24], sizes = [8, 8], strides = [1, 1]} : vector<16x32xf32> to vector<8x8xf32>
    %196 = tpu.transpose %194, [1, 0] : vector<8x8xf32> -> vector<8x8xf32>
    %cst_69 = arith.constant dense<0.000000e+00> : vector<8x8xf32>
    %197 = tpu.matmul %193, %196, %cst_69 {dimension_numbers = #tpu.dot_dimension_numbers<[1], [0], [0], [1], [0, 0, 1, 1], [], []>} : vector<8x8xf32>, vector<8x8xf32>, vector<8x8xf32> -> vector<8x8xf32>
    %cst_70 = arith.constant 0.353553385 : f32
    %198 = vector.broadcast %cst_70 : f32 to vector<8x8xf32>
    %199 = arith.mulf %197, %198 : vector<8x8xf32>
    %200 = arith.addf %199, %128 : vector<8x8xf32>
    %cst_71 = arith.constant dense<0xFF800000> : vector<8xf32>
    %201 = vector.multi_reduction <maximumf>, %200, %cst_71 [1] : vector<8x8xf32> to vector<8xf32>
    %202 = vector.shape_cast %201 : vector<8xf32> to vector<8x1xf32>
    %203 = vector.broadcast %202 : vector<8x1xf32> to vector<8x8xf32>
    %204 = arith.subf %200, %203 : vector<8x8xf32>
    %205 = math.exp %204 : vector<8x8xf32>
    %cst_72 = arith.constant dense<0.000000e+00> : vector<8xf32>
    %206 = vector.multi_reduction <add>, %205, %cst_72 [1] : vector<8x8xf32> to vector<8xf32>
    %207 = vector.shape_cast %206 : vector<8xf32> to vector<8x1xf32>
    %208 = vector.broadcast %207 : vector<8x1xf32> to vector<8x8xf32>
    %209 = arith.divf %205, %208 : vector<8x8xf32>
    %cst_73 = arith.constant dense<0.000000e+00> : vector<8x8xf32>
    %210 = tpu.matmul %209, %195, %cst_73 {dimension_numbers = #tpu.dot_dimension_numbers<[1], [0], [0], [1], [0, 0, 1, 1], [], []>} : vector<8x8xf32>, vector<8x8xf32>, vector<8x8xf32> -> vector<8x8xf32>
    %211 = vector.extract_strided_slice %15 {offsets = [24, 0], sizes = [8, 32], strides = [1, 1]} : vector<32x32xf32> to vector<8x32xf32>
    %cst_74 = arith.constant dense<0.000000e+00> : vector<8x32xf32>
    %212 = tpu.matmul %210, %211, %cst_74 {dimension_numbers = #tpu.dot_dimension_numbers<[1], [0], [0], [1], [0, 0, 1, 1], [], []>} : vector<8x8xf32>, vector<8x32xf32>, vector<8x32xf32> -> vector<8x32xf32>
    %213 = arith.addf %192, %212 : vector<8x32xf32>
    %214 = vector.broadcast %17 : vector<1x32xf32> to vector<8x32xf32>
    %215 = arith.addf %213, %214 : vector<8x32xf32>
    %c8 = arith.constant 8 : index
    %c0_75 = arith.constant 0 : index
    %216 = vector.load %arg26[%c8, %c0_75] : memref<16x32xf32, #tpu.memory_space<vmem>>, vector<8x32xf32>
    tpu.vector_store %arg26[%c8, %c0_75], %215 {strides = array<i32>} : memref<16x32xf32, #tpu.memory_space<vmem>>, vector<8x32xf32>,
    %c0_76 = arith.constant 0 : index
    %c0_77 = arith.constant 0 : index
    %217 = vector.load %arg26[%c0_76, %c0_77] : memref<16x32xf32, #tpu.memory_space<vmem>>, vector<16x32xf32>
    %218 = arith.addf %0, %217 : vector<16x32xf32>
    %c0_78 = arith.constant 0 : index
    %c0_79 = arith.constant 0 : index
    %c0_80 = arith.constant 0 : index
    %219 = vector.load %arg12[%c0_78, %c0_79, %c0_80] : memref<2x1x32xf32, #tpu.memory_space<vmem>>, vector<1x1x32xf32>
    %220 = vector.shape_cast %219 : vector<1x1x32xf32> to vector<1x32xf32>
    %c0_81 = arith.constant 0 : index
    %c0_82 = arith.constant 0 : index
    %c0_83 = arith.constant 0 : index
    %221 = vector.load %arg13[%c0_81, %c0_82, %c0_83] : memref<2x1x32xf32, #tpu.memory_space<vmem>>, vector<1x1x32xf32>
    %222 = vector.shape_cast %221 : vector<1x1x32xf32> to vector<1x32xf32>
    %cst_84 = arith.constant dense<0.000000e+00> : vector<16xf32>
    %223 = vector.multi_reduction <add>, %218, %cst_84 [1] : vector<16x32xf32> to vector<16xf32>
    %224 = vector.shape_cast %223 : vector<16xf32> to vector<16x1xf32>
    %cst_85 = arith.constant 3.200000e+01 : f32
    %225 = vector.broadcast %cst_85 : f32 to vector<16x1xf32>
    %226 = arith.divf %224, %225 : vector<16x1xf32>
    %227 = vector.broadcast %226 : vector<16x1xf32> to vector<16x32xf32>
    %228 = arith.subf %218, %227 : vector<16x32xf32>
    %229 = arith.mulf %228, %228 : vector<16x32xf32>
    %cst_86 = arith.constant dense<0.000000e+00> : vector<16xf32>
    %230 = vector.multi_reduction <add>, %229, %cst_86 [1] : vector<16x32xf32> to vector<16xf32>
    %231 = vector.shape_cast %230 : vector<16xf32> to vector<16x1xf32>
    %cst_87 = arith.constant 3.200000e+01 : f32
    %232 = vector.broadcast %cst_87 : f32 to vector<16x1xf32>
    %233 = arith.divf %231, %232 : vector<16x1xf32>
    %234 = vector.broadcast %226 : vector<16x1xf32> to vector<16x32xf32>
    %235 = arith.subf %218, %234 : vector<16x32xf32>
    %cst_88 = arith.constant 9.99999974E-6 : f32
    %236 = vector.broadcast %cst_88 : f32 to vector<16x1xf32>
    %237 = arith.addf %233, %236 : vector<16x1xf32>
    %238 = math.rsqrt %237 : vector<16x1xf32>
    %239 = vector.broadcast %238 : vector<16x1xf32> to vector<16x32xf32>
    %240 = arith.mulf %235, %239 : vector<16x32xf32>
    %241 = vector.broadcast %220 : vector<1x32xf32> to vector<16x32xf32>
    %242 = arith.mulf %240, %241 : vector<16x32xf32>
    %243 = vector.broadcast %222 : vector<1x32xf32> to vector<16x32xf32>
    %244 = arith.addf %242, %243 : vector<16x32xf32>
    %c0_89 = arith.constant 0 : index
    %c0_90 = arith.constant 0 : index
    %c0_91 = arith.constant 0 : index
    %245 = vector.load %arg8[%c0_89, %c0_90, %c0_91] : memref<2x32x96xf32, #tpu.memory_space<vmem>>, vector<1x32x96xf32>
    %246 = vector.shape_cast %245 : vector<1x32x96xf32> to vector<32x96xf32>
    %c0_92 = arith.constant 0 : index
    %c0_93 = arith.constant 0 : index
    %c0_94 = arith.constant 0 : index
    %247 = vector.load %arg9[%c0_92, %c0_93, %c0_94] : memref<2x1x96xf32, #tpu.memory_space<vmem>>, vector<1x1x96xf32>
    %248 = vector.shape_cast %247 : vector<1x1x96xf32> to vector<1x96xf32>
    %c0_95 = arith.constant 0 : index
    %c0_96 = arith.constant 0 : index
    %c0_97 = arith.constant 0 : index
    %249 = vector.load %arg10[%c0_95, %c0_96, %c0_97] : memref<2x32x32xf32, #tpu.memory_space<vmem>>, vector<1x32x32xf32>
    %250 = vector.shape_cast %249 : vector<1x32x32xf32> to vector<32x32xf32>
    %c0_98 = arith.constant 0 : index
    %c0_99 = arith.constant 0 : index
    %c0_100 = arith.constant 0 : index
    %251 = vector.load %arg11[%c0_98, %c0_99, %c0_100] : memref<2x1x32xf32, #tpu.memory_space<vmem>>, vector<1x1x32xf32>
    %252 = vector.shape_cast %251 : vector<1x1x32xf32> to vector<1x32xf32>
    %253 = vector.extract_strided_slice %246 {offsets = [0, 0], sizes = [32, 32], strides = [1, 1]} : vector<32x96xf32> to vector<32x32xf32>
    %cst_101 = arith.constant dense<0.000000e+00> : vector<16x32xf32>
    %254 = tpu.matmul %244, %253, %cst_101 {dimension_numbers = #tpu.dot_dimension_numbers<[1], [0], [0], [1], [0, 0, 1, 1], [], []>} : vector<16x32xf32>, vector<32x32xf32>, vector<16x32xf32> -> vector<16x32xf32>
    %255 = vector.extract_strided_slice %248 {offsets = [0, 0], sizes = [1, 32], strides = [1, 1]} : vector<1x96xf32> to vector<1x32xf32>
    %256 = vector.broadcast %255 : vector<1x32xf32> to vector<16x32xf32>
    %257 = arith.addf %254, %256 : vector<16x32xf32>
    %258 = vector.extract_strided_slice %246 {offsets = [0, 32], sizes = [32, 32], strides = [1, 1]} : vector<32x96xf32> to vector<32x32xf32>
    %cst_102 = arith.constant dense<0.000000e+00> : vector<16x32xf32>
    %259 = tpu.matmul %1, %258, %cst_102 {dimension_numbers = #tpu.dot_dimension_numbers<[1], [0], [0], [1], [0, 0, 1, 1], [], []>} : vector<16x32xf32>, vector<32x32xf32>, vector<16x32xf32> -> vector<16x32xf32>
    %260 = vector.extract_strided_slice %248 {offsets = [0, 32], sizes = [1, 32], strides = [1, 1]} : vector<1x96xf32> to vector<1x32xf32>
    %261 = vector.broadcast %260 : vector<1x32xf32> to vector<16x32xf32>
    %262 = arith.addf %259, %261 : vector<16x32xf32>
    %263 = vector.extract_strided_slice %246 {offsets = [0, 64], sizes = [32, 32], strides = [1, 1]} : vector<32x96xf32> to vector<32x32xf32>
    %cst_103 = arith.constant dense<0.000000e+00> : vector<16x32xf32>
    %264 = tpu.matmul %1, %263, %cst_103 {dimension_numbers = #tpu.dot_dimension_numbers<[1], [0], [0], [1], [0, 0, 1, 1], [], []>} : vector<16x32xf32>, vector<32x32xf32>, vector<16x32xf32> -> vector<16x32xf32>
    %265 = vector.extract_strided_slice %248 {offsets = [0, 64], sizes = [1, 32], strides = [1, 1]} : vector<1x96xf32> to vector<1x32xf32>
    %266 = vector.broadcast %265 : vector<1x32xf32> to vector<16x32xf32>
    %267 = arith.addf %264, %266 : vector<16x32xf32>
    %268 = vector.extract_strided_slice %3 {offsets = [0, 0], sizes = [1, 8], strides = [1, 1]} : vector<2x8xf32> to vector<1x8xf32>
    %269 = vector.shape_cast %268 : vector<1x8xf32> to vector<1x8xf32>
    %270 = vector.broadcast %269 : vector<1x8xf32> to vector<8x8xf32>
    %cst_104 = arith.constant 0.000000e+00 : f32
    %271 = vector.broadcast %cst_104 : f32 to vector<8x32xf32>
    %272 = vector.extract_strided_slice %257 {offsets = [0, 0], sizes = [8, 8], strides = [1, 1]} : vector<16x32xf32> to vector<8x8xf32>
    %273 = vector.extract_strided_slice %262 {offsets = [0, 0], sizes = [8, 8], strides = [1, 1]} : vector<16x32xf32> to vector<8x8xf32>
    %274 = vector.extract_strided_slice %267 {offsets = [0, 0], sizes = [8, 8], strides = [1, 1]} : vector<16x32xf32> to vector<8x8xf32>
    %275 = tpu.transpose %273, [1, 0] : vector<8x8xf32> -> vector<8x8xf32>
    %cst_105 = arith.constant dense<0.000000e+00> : vector<8x8xf32>
    %276 = tpu.matmul %272, %275, %cst_105 {dimension_numbers = #tpu.dot_dimension_numbers<[1], [0], [0], [1], [0, 0, 1, 1], [], []>} : vector<8x8xf32>, vector<8x8xf32>, vector<8x8xf32> -> vector<8x8xf32>
    %cst_106 = arith.constant 0.353553385 : f32
    %277 = vector.broadcast %cst_106 : f32 to vector<8x8xf32>
    %278 = arith.mulf %276, %277 : vector<8x8xf32>
    %279 = arith.addf %278, %270 : vector<8x8xf32>
    %cst_107 = arith.constant dense<0xFF800000> : vector<8xf32>
    %280 = vector.multi_reduction <maximumf>, %279, %cst_107 [1] : vector<8x8xf32> to vector<8xf32>
    %281 = vector.shape_cast %280 : vector<8xf32> to vector<8x1xf32>
    %282 = vector.broadcast %281 : vector<8x1xf32> to vector<8x8xf32>
    %283 = arith.subf %279, %282 : vector<8x8xf32>
    %284 = math.exp %283 : vector<8x8xf32>
    %cst_108 = arith.constant dense<0.000000e+00> : vector<8xf32>
    %285 = vector.multi_reduction <add>, %284, %cst_108 [1] : vector<8x8xf32> to vector<8xf32>
    %286 = vector.shape_cast %285 : vector<8xf32> to vector<8x1xf32>
    %287 = vector.broadcast %286 : vector<8x1xf32> to vector<8x8xf32>
    %288 = arith.divf %284, %287 : vector<8x8xf32>
    %cst_109 = arith.constant dense<0.000000e+00> : vector<8x8xf32>
    %289 = tpu.matmul %288, %274, %cst_109 {dimension_numbers = #tpu.dot_dimension_numbers<[1], [0], [0], [1], [0, 0, 1, 1], [], []>} : vector<8x8xf32>, vector<8x8xf32>, vector<8x8xf32> -> vector<8x8xf32>
    %290 = vector.extract_strided_slice %250 {offsets = [0, 0], sizes = [8, 32], strides = [1, 1]} : vector<32x32xf32> to vector<8x32xf32>
    %cst_110 = arith.constant dense<0.000000e+00> : vector<8x32xf32>
    %291 = tpu.matmul %289, %290, %cst_110 {dimension_numbers = #tpu.dot_dimension_numbers<[1], [0], [0], [1], [0, 0, 1, 1], [], []>} : vector<8x8xf32>, vector<8x32xf32>, vector<8x32xf32> -> vector<8x32xf32>
    %292 = arith.addf %271, %291 : vector<8x32xf32>
    %293 = vector.extract_strided_slice %257 {offsets = [0, 8], sizes = [8, 8], strides = [1, 1]} : vector<16x32xf32> to vector<8x8xf32>
    %294 = vector.extract_strided_slice %262 {offsets = [0, 8], sizes = [8, 8], strides = [1, 1]} : vector<16x32xf32> to vector<8x8xf32>
    %295 = vector.extract_strided_slice %267 {offsets = [0, 8], sizes = [8, 8], strides = [1, 1]} : vector<16x32xf32> to vector<8x8xf32>
    %296 = tpu.transpose %294, [1, 0] : vector<8x8xf32> -> vector<8x8xf32>
    %cst_111 = arith.constant dense<0.000000e+00> : vector<8x8xf32>
    %297 = tpu.matmul %293, %296, %cst_111 {dimension_numbers = #tpu.dot_dimension_numbers<[1], [0], [0], [1], [0, 0, 1, 1], [], []>} : vector<8x8xf32>, vector<8x8xf32>, vector<8x8xf32> -> vector<8x8xf32>
    %cst_112 = arith.constant 0.353553385 : f32
    %298 = vector.broadcast %cst_112 : f32 to vector<8x8xf32>
    %299 = arith.mulf %297, %298 : vector<8x8xf32>
    %300 = arith.addf %299, %270 : vector<8x8xf32>
    %cst_113 = arith.constant dense<0xFF800000> : vector<8xf32>
    %301 = vector.multi_reduction <maximumf>, %300, %cst_113 [1] : vector<8x8xf32> to vector<8xf32>
    %302 = vector.shape_cast %301 : vector<8xf32> to vector<8x1xf32>
    %303 = vector.broadcast %302 : vector<8x1xf32> to vector<8x8xf32>
    %304 = arith.subf %300, %303 : vector<8x8xf32>
    %305 = math.exp %304 : vector<8x8xf32>
    %cst_114 = arith.constant dense<0.000000e+00> : vector<8xf32>
    %306 = vector.multi_reduction <add>, %305, %cst_114 [1] : vector<8x8xf32> to vector<8xf32>
    %307 = vector.shape_cast %306 : vector<8xf32> to vector<8x1xf32>
    %308 = vector.broadcast %307 : vector<8x1xf32> to vector<8x8xf32>
    %309 = arith.divf %305, %308 : vector<8x8xf32>
    %cst_115 = arith.constant dense<0.000000e+00> : vector<8x8xf32>
    %310 = tpu.matmul %309, %295, %cst_115 {dimension_numbers = #tpu.dot_dimension_numbers<[1], [0], [0], [1], [0, 0, 1, 1], [], []>} : vector<8x8xf32>, vector<8x8xf32>, vector<8x8xf32> -> vector<8x8xf32>
    %311 = vector.extract_strided_slice %250 {offsets = [8, 0], sizes = [8, 32], strides = [1, 1]} : vector<32x32xf32> to vector<8x32xf32>
    %cst_116 = arith.constant dense<0.000000e+00> : vector<8x32xf32>
    %312 = tpu.matmul %310, %311, %cst_116 {dimension_numbers = #tpu.dot_dimension_numbers<[1], [0], [0], [1], [0, 0, 1, 1], [], []>} : vector<8x8xf32>, vector<8x32xf32>, vector<8x32xf32> -> vector<8x32xf32>
    %313 = arith.addf %292, %312 : vector<8x32xf32>
    %314 = vector.extract_strided_slice %257 {offsets = [0, 16], sizes = [8, 8], strides = [1, 1]} : vector<16x32xf32> to vector<8x8xf32>
    %315 = vector.extract_strided_slice %262 {offsets = [0, 16], sizes = [8, 8], strides = [1, 1]} : vector<16x32xf32> to vector<8x8xf32>
    %316 = vector.extract_strided_slice %267 {offsets = [0, 16], sizes = [8, 8], strides = [1, 1]} : vector<16x32xf32> to vector<8x8xf32>
    %317 = tpu.transpose %315, [1, 0] : vector<8x8xf32> -> vector<8x8xf32>
    %cst_117 = arith.constant dense<0.000000e+00> : vector<8x8xf32>
    %318 = tpu.matmul %314, %317, %cst_117 {dimension_numbers = #tpu.dot_dimension_numbers<[1], [0], [0], [1], [0, 0, 1, 1], [], []>} : vector<8x8xf32>, vector<8x8xf32>, vector<8x8xf32> -> vector<8x8xf32>
    %cst_118 = arith.constant 0.353553385 : f32
    %319 = vector.broadcast %cst_118 : f32 to vector<8x8xf32>
    %320 = arith.mulf %318, %319 : vector<8x8xf32>
    %321 = arith.addf %320, %270 : vector<8x8xf32>
    %cst_119 = arith.constant dense<0xFF800000> : vector<8xf32>
    %322 = vector.multi_reduction <maximumf>, %321, %cst_119 [1] : vector<8x8xf32> to vector<8xf32>
    %323 = vector.shape_cast %322 : vector<8xf32> to vector<8x1xf32>
    %324 = vector.broadcast %323 : vector<8x1xf32> to vector<8x8xf32>
    %325 = arith.subf %321, %324 : vector<8x8xf32>
    %326 = math.exp %325 : vector<8x8xf32>
    %cst_120 = arith.constant dense<0.000000e+00> : vector<8xf32>
    %327 = vector.multi_reduction <add>, %326, %cst_120 [1] : vector<8x8xf32> to vector<8xf32>
    %328 = vector.shape_cast %327 : vector<8xf32> to vector<8x1xf32>
    %329 = vector.broadcast %328 : vector<8x1xf32> to vector<8x8xf32>
    %330 = arith.divf %326, %329 : vector<8x8xf32>
    %cst_121 = arith.constant dense<0.000000e+00> : vector<8x8xf32>
    %331 = tpu.matmul %330, %316, %cst_121 {dimension_numbers = #tpu.dot_dimension_numbers<[1], [0], [0], [1], [0, 0, 1, 1], [], []>} : vector<8x8xf32>, vector<8x8xf32>, vector<8x8xf32> -> vector<8x8xf32>
    %332 = vector.extract_strided_slice %250 {offsets = [16, 0], sizes = [8, 32], strides = [1, 1]} : vector<32x32xf32> to vector<8x32xf32>
    %cst_122 = arith.constant dense<0.000000e+00> : vector<8x32xf32>
    %333 = tpu.matmul %331, %332, %cst_122 {dimension_numbers = #tpu.dot_dimension_numbers<[1], [0], [0], [1], [0, 0, 1, 1], [], []>} : vector<8x8xf32>, vector<8x32xf32>, vector<8x32xf32> -> vector<8x32xf32>
    %334 = arith.addf %313, %333 : vector<8x32xf32>
    %335 = vector.extract_strided_slice %257 {offsets = [0, 24], sizes = [8, 8], strides = [1, 1]} : vector<16x32xf32> to vector<8x8xf32>
    %336 = vector.extract_strided_slice %262 {offsets = [0, 24], sizes = [8, 8], strides = [1, 1]} : vector<16x32xf32> to vector<8x8xf32>
    %337 = vector.extract_strided_slice %267 {offsets = [0, 24], sizes = [8, 8], strides = [1, 1]} : vector<16x32xf32> to vector<8x8xf32>
    %338 = tpu.transpose %336, [1, 0] : vector<8x8xf32> -> vector<8x8xf32>
    %cst_123 = arith.constant dense<0.000000e+00> : vector<8x8xf32>
    %339 = tpu.matmul %335, %338, %cst_123 {dimension_numbers = #tpu.dot_dimension_numbers<[1], [0], [0], [1], [0, 0, 1, 1], [], []>} : vector<8x8xf32>, vector<8x8xf32>, vector<8x8xf32> -> vector<8x8xf32>
    %cst_124 = arith.constant 0.353553385 : f32
    %340 = vector.broadcast %cst_124 : f32 to vector<8x8xf32>
    %341 = arith.mulf %339, %340 : vector<8x8xf32>
    %342 = arith.addf %341, %270 : vector<8x8xf32>
    %cst_125 = arith.constant dense<0xFF800000> : vector<8xf32>
    %343 = vector.multi_reduction <maximumf>, %342, %cst_125 [1] : vector<8x8xf32> to vector<8xf32>
    %344 = vector.shape_cast %343 : vector<8xf32> to vector<8x1xf32>
    %345 = vector.broadcast %344 : vector<8x1xf32> to vector<8x8xf32>
    %346 = arith.subf %342, %345 : vector<8x8xf32>
    %347 = math.exp %346 : vector<8x8xf32>
    %cst_126 = arith.constant dense<0.000000e+00> : vector<8xf32>
    %348 = vector.multi_reduction <add>, %347, %cst_126 [1] : vector<8x8xf32> to vector<8xf32>
    %349 = vector.shape_cast %348 : vector<8xf32> to vector<8x1xf32>
    %350 = vector.broadcast %349 : vector<8x1xf32> to vector<8x8xf32>
    %351 = arith.divf %347, %350 : vector<8x8xf32>
    %cst_127 = arith.constant dense<0.000000e+00> : vector<8x8xf32>
    %352 = tpu.matmul %351, %337, %cst_127 {dimension_numbers = #tpu.dot_dimension_numbers<[1], [0], [0], [1], [0, 0, 1, 1], [], []>} : vector<8x8xf32>, vector<8x8xf32>, vector<8x8xf32> -> vector<8x8xf32>
    %353 = vector.extract_strided_slice %250 {offsets = [24, 0], sizes = [8, 32], strides = [1, 1]} : vector<32x32xf32> to vector<8x32xf32>
    %cst_128 = arith.constant dense<0.000000e+00> : vector<8x32xf32>
    %354 = tpu.matmul %352, %353, %cst_128 {dimension_numbers = #tpu.dot_dimension_numbers<[1], [0], [0], [1], [0, 0, 1, 1], [], []>} : vector<8x8xf32>, vector<8x32xf32>, vector<8x32xf32> -> vector<8x32xf32>
    %355 = arith.addf %334, %354 : vector<8x32xf32>
    %356 = vector.broadcast %252 : vector<1x32xf32> to vector<8x32xf32>
    %357 = arith.addf %355, %356 : vector<8x32xf32>
    %c0_129 = arith.constant 0 : index
    %c0_130 = arith.constant 0 : index
    %358 = vector.load %arg26[%c0_129, %c0_130] : memref<16x32xf32, #tpu.memory_space<vmem>>, vector<8x32xf32>
    tpu.vector_store %arg26[%c0_129, %c0_130], %357 {strides = array<i32>} : memref<16x32xf32, #tpu.memory_space<vmem>>, vector<8x32xf32>,
    %359 = vector.extract_strided_slice %3 {offsets = [1, 0], sizes = [1, 8], strides = [1, 1]} : vector<2x8xf32> to vector<1x8xf32>
    %360 = vector.shape_cast %359 : vector<1x8xf32> to vector<1x8xf32>
    %361 = vector.broadcast %360 : vector<1x8xf32> to vector<8x8xf32>
    %cst_131 = arith.constant 0.000000e+00 : f32
    %362 = vector.broadcast %cst_131 : f32 to vector<8x32xf32>
    %363 = vector.extract_strided_slice %257 {offsets = [8, 0], sizes = [8, 8], strides = [1, 1]} : vector<16x32xf32> to vector<8x8xf32>
    %364 = vector.extract_strided_slice %262 {offsets = [8, 0], sizes = [8, 8], strides = [1, 1]} : vector<16x32xf32> to vector<8x8xf32>
    %365 = vector.extract_strided_slice %267 {offsets = [8, 0], sizes = [8, 8], strides = [1, 1]} : vector<16x32xf32> to vector<8x8xf32>
    %366 = tpu.transpose %364, [1, 0] : vector<8x8xf32> -> vector<8x8xf32>
    %cst_132 = arith.constant dense<0.000000e+00> : vector<8x8xf32>
    %367 = tpu.matmul %363, %366, %cst_132 {dimension_numbers = #tpu.dot_dimension_numbers<[1], [0], [0], [1], [0, 0, 1, 1], [], []>} : vector<8x8xf32>, vector<8x8xf32>, vector<8x8xf32> -> vector<8x8xf32>
    %cst_133 = arith.constant 0.353553385 : f32
    %368 = vector.broadcast %cst_133 : f32 to vector<8x8xf32>
    %369 = arith.mulf %367, %368 : vector<8x8xf32>
    %370 = arith.addf %369, %361 : vector<8x8xf32>
    %cst_134 = arith.constant dense<0xFF800000> : vector<8xf32>
    %371 = vector.multi_reduction <maximumf>, %370, %cst_134 [1] : vector<8x8xf32> to vector<8xf32>
    %372 = vector.shape_cast %371 : vector<8xf32> to vector<8x1xf32>
    %373 = vector.broadcast %372 : vector<8x1xf32> to vector<8x8xf32>
    %374 = arith.subf %370, %373 : vector<8x8xf32>
    %375 = math.exp %374 : vector<8x8xf32>
    %cst_135 = arith.constant dense<0.000000e+00> : vector<8xf32>
    %376 = vector.multi_reduction <add>, %375, %cst_135 [1] : vector<8x8xf32> to vector<8xf32>
    %377 = vector.shape_cast %376 : vector<8xf32> to vector<8x1xf32>
    %378 = vector.broadcast %377 : vector<8x1xf32> to vector<8x8xf32>
    %379 = arith.divf %375, %378 : vector<8x8xf32>
    %cst_136 = arith.constant dense<0.000000e+00> : vector<8x8xf32>
    %380 = tpu.matmul %379, %365, %cst_136 {dimension_numbers = #tpu.dot_dimension_numbers<[1], [0], [0], [1], [0, 0, 1, 1], [], []>} : vector<8x8xf32>, vector<8x8xf32>, vector<8x8xf32> -> vector<8x8xf32>
    %381 = vector.extract_strided_slice %250 {offsets = [0, 0], sizes = [8, 32], strides = [1, 1]} : vector<32x32xf32> to vector<8x32xf32>
    %cst_137 = arith.constant dense<0.000000e+00> : vector<8x32xf32>
    %382 = tpu.matmul %380, %381, %cst_137 {dimension_numbers = #tpu.dot_dimension_numbers<[1], [0], [0], [1], [0, 0, 1, 1], [], []>} : vector<8x8xf32>, vector<8x32xf32>, vector<8x32xf32> -> vector<8x32xf32>
    %383 = arith.addf %362, %382 : vector<8x32xf32>
    %384 = vector.extract_strided_slice %257 {offsets = [8, 8], sizes = [8, 8], strides = [1, 1]} : vector<16x32xf32> to vector<8x8xf32>
    %385 = vector.extract_strided_slice %262 {offsets = [8, 8], sizes = [8, 8], strides = [1, 1]} : vector<16x32xf32> to vector<8x8xf32>
    %386 = vector.extract_strided_slice %267 {offsets = [8, 8], sizes = [8, 8], strides = [1, 1]} : vector<16x32xf32> to vector<8x8xf32>
    %387 = tpu.transpose %385, [1, 0] : vector<8x8xf32> -> vector<8x8xf32>
    %cst_138 = arith.constant dense<0.000000e+00> : vector<8x8xf32>
    %388 = tpu.matmul %384, %387, %cst_138 {dimension_numbers = #tpu.dot_dimension_numbers<[1], [0], [0], [1], [0, 0, 1, 1], [], []>} : vector<8x8xf32>, vector<8x8xf32>, vector<8x8xf32> -> vector<8x8xf32>
    %cst_139 = arith.constant 0.353553385 : f32
    %389 = vector.broadcast %cst_139 : f32 to vector<8x8xf32>
    %390 = arith.mulf %388, %389 : vector<8x8xf32>
    %391 = arith.addf %390, %361 : vector<8x8xf32>
    %cst_140 = arith.constant dense<0xFF800000> : vector<8xf32>
    %392 = vector.multi_reduction <maximumf>, %391, %cst_140 [1] : vector<8x8xf32> to vector<8xf32>
    %393 = vector.shape_cast %392 : vector<8xf32> to vector<8x1xf32>
    %394 = vector.broadcast %393 : vector<8x1xf32> to vector<8x8xf32>
    %395 = arith.subf %391, %394 : vector<8x8xf32>
    %396 = math.exp %395 : vector<8x8xf32>
    %cst_141 = arith.constant dense<0.000000e+00> : vector<8xf32>
    %397 = vector.multi_reduction <add>, %396, %cst_141 [1] : vector<8x8xf32> to vector<8xf32>
    %398 = vector.shape_cast %397 : vector<8xf32> to vector<8x1xf32>
    %399 = vector.broadcast %398 : vector<8x1xf32> to vector<8x8xf32>
    %400 = arith.divf %396, %399 : vector<8x8xf32>
    %cst_142 = arith.constant dense<0.000000e+00> : vector<8x8xf32>
    %401 = tpu.matmul %400, %386, %cst_142 {dimension_numbers = #tpu.dot_dimension_numbers<[1], [0], [0], [1], [0, 0, 1, 1], [], []>} : vector<8x8xf32>, vector<8x8xf32>, vector<8x8xf32> -> vector<8x8xf32>
    %402 = vector.extract_strided_slice %250 {offsets = [8, 0], sizes = [8, 32], strides = [1, 1]} : vector<32x32xf32> to vector<8x32xf32>
    %cst_143 = arith.constant dense<0.000000e+00> : vector<8x32xf32>
    %403 = tpu.matmul %401, %402, %cst_143 {dimension_numbers = #tpu.dot_dimension_numbers<[1], [0], [0], [1], [0, 0, 1, 1], [], []>} : vector<8x8xf32>, vector<8x32xf32>, vector<8x32xf32> -> vector<8x32xf32>
    %404 = arith.addf %383, %403 : vector<8x32xf32>
    %405 = vector.extract_strided_slice %257 {offsets = [8, 16], sizes = [8, 8], strides = [1, 1]} : vector<16x32xf32> to vector<8x8xf32>
    %406 = vector.extract_strided_slice %262 {offsets = [8, 16], sizes = [8, 8], strides = [1, 1]} : vector<16x32xf32> to vector<8x8xf32>
    %407 = vector.extract_strided_slice %267 {offsets = [8, 16], sizes = [8, 8], strides = [1, 1]} : vector<16x32xf32> to vector<8x8xf32>
    %408 = tpu.transpose %406, [1, 0] : vector<8x8xf32> -> vector<8x8xf32>
    %cst_144 = arith.constant dense<0.000000e+00> : vector<8x8xf32>
    %409 = tpu.matmul %405, %408, %cst_144 {dimension_numbers = #tpu.dot_dimension_numbers<[1], [0], [0], [1], [0, 0, 1, 1], [], []>} : vector<8x8xf32>, vector<8x8xf32>, vector<8x8xf32> -> vector<8x8xf32>
    %cst_145 = arith.constant 0.353553385 : f32
    %410 = vector.broadcast %cst_145 : f32 to vector<8x8xf32>
    %411 = arith.mulf %409, %410 : vector<8x8xf32>
    %412 = arith.addf %411, %361 : vector<8x8xf32>
    %cst_146 = arith.constant dense<0xFF800000> : vector<8xf32>
    %413 = vector.multi_reduction <maximumf>, %412, %cst_146 [1] : vector<8x8xf32> to vector<8xf32>
    %414 = vector.shape_cast %413 : vector<8xf32> to vector<8x1xf32>
    %415 = vector.broadcast %414 : vector<8x1xf32> to vector<8x8xf32>
    %416 = arith.subf %412, %415 : vector<8x8xf32>
    %417 = math.exp %416 : vector<8x8xf32>
    %cst_147 = arith.constant dense<0.000000e+00> : vector<8xf32>
    %418 = vector.multi_reduction <add>, %417, %cst_147 [1] : vector<8x8xf32> to vector<8xf32>
    %419 = vector.shape_cast %418 : vector<8xf32> to vector<8x1xf32>
    %420 = vector.broadcast %419 : vector<8x1xf32> to vector<8x8xf32>
    %421 = arith.divf %417, %420 : vector<8x8xf32>
    %cst_148 = arith.constant dense<0.000000e+00> : vector<8x8xf32>
    %422 = tpu.matmul %421, %407, %cst_148 {dimension_numbers = #tpu.dot_dimension_numbers<[1], [0], [0], [1], [0, 0, 1, 1], [], []>} : vector<8x8xf32>, vector<8x8xf32>, vector<8x8xf32> -> vector<8x8xf32>
    %423 = vector.extract_strided_slice %250 {offsets = [16, 0], sizes = [8, 32], strides = [1, 1]} : vector<32x32xf32> to vector<8x32xf32>
    %cst_149 = arith.constant dense<0.000000e+00> : vector<8x32xf32>
    %424 = tpu.matmul %422, %423, %cst_149 {dimension_numbers = #tpu.dot_dimension_numbers<[1], [0], [0], [1], [0, 0, 1, 1], [], []>} : vector<8x8xf32>, vector<8x32xf32>, vector<8x32xf32> -> vector<8x32xf32>
    %425 = arith.addf %404, %424 : vector<8x32xf32>
    %426 = vector.extract_strided_slice %257 {offsets = [8, 24], sizes = [8, 8], strides = [1, 1]} : vector<16x32xf32> to vector<8x8xf32>
    %427 = vector.extract_strided_slice %262 {offsets = [8, 24], sizes = [8, 8], strides = [1, 1]} : vector<16x32xf32> to vector<8x8xf32>
    %428 = vector.extract_strided_slice %267 {offsets = [8, 24], sizes = [8, 8], strides = [1, 1]} : vector<16x32xf32> to vector<8x8xf32>
    %429 = tpu.transpose %427, [1, 0] : vector<8x8xf32> -> vector<8x8xf32>
    %cst_150 = arith.constant dense<0.000000e+00> : vector<8x8xf32>
    %430 = tpu.matmul %426, %429, %cst_150 {dimension_numbers = #tpu.dot_dimension_numbers<[1], [0], [0], [1], [0, 0, 1, 1], [], []>} : vector<8x8xf32>, vector<8x8xf32>, vector<8x8xf32> -> vector<8x8xf32>
    %cst_151 = arith.constant 0.353553385 : f32
    %431 = vector.broadcast %cst_151 : f32 to vector<8x8xf32>
    %432 = arith.mulf %430, %431 : vector<8x8xf32>
    %433 = arith.addf %432, %361 : vector<8x8xf32>
    %cst_152 = arith.constant dense<0xFF800000> : vector<8xf32>
    %434 = vector.multi_reduction <maximumf>, %433, %cst_152 [1] : vector<8x8xf32> to vector<8xf32>
    %435 = vector.shape_cast %434 : vector<8xf32> to vector<8x1xf32>
    %436 = vector.broadcast %435 : vector<8x1xf32> to vector<8x8xf32>
    %437 = arith.subf %433, %436 : vector<8x8xf32>
    %438 = math.exp %437 : vector<8x8xf32>
    %cst_153 = arith.constant dense<0.000000e+00> : vector<8xf32>
    %439 = vector.multi_reduction <add>, %438, %cst_153 [1] : vector<8x8xf32> to vector<8xf32>
    %440 = vector.shape_cast %439 : vector<8xf32> to vector<8x1xf32>
    %441 = vector.broadcast %440 : vector<8x1xf32> to vector<8x8xf32>
    %442 = arith.divf %438, %441 : vector<8x8xf32>
    %cst_154 = arith.constant dense<0.000000e+00> : vector<8x8xf32>
    %443 = tpu.matmul %442, %428, %cst_154 {dimension_numbers = #tpu.dot_dimension_numbers<[1], [0], [0], [1], [0, 0, 1, 1], [], []>} : vector<8x8xf32>, vector<8x8xf32>, vector<8x8xf32> -> vector<8x8xf32>
    %444 = vector.extract_strided_slice %250 {offsets = [24, 0], sizes = [8, 32], strides = [1, 1]} : vector<32x32xf32> to vector<8x32xf32>
    %cst_155 = arith.constant dense<0.000000e+00> : vector<8x32xf32>
    %445 = tpu.matmul %443, %444, %cst_155 {dimension_numbers = #tpu.dot_dimension_numbers<[1], [0], [0], [1], [0, 0, 1, 1], [], []>} : vector<8x8xf32>, vector<8x32xf32>, vector<8x32xf32> -> vector<8x32xf32>
    %446 = arith.addf %425, %445 : vector<8x32xf32>
    %447 = vector.broadcast %252 : vector<1x32xf32> to vector<8x32xf32>
    %448 = arith.addf %446, %447 : vector<8x32xf32>
    %c8_156 = arith.constant 8 : index
    %c0_157 = arith.constant 0 : index
    %449 = vector.load %arg26[%c8_156, %c0_157] : memref<16x32xf32, #tpu.memory_space<vmem>>, vector<8x32xf32>
    tpu.vector_store %arg26[%c8_156, %c0_157], %448 {strides = array<i32>} : memref<16x32xf32, #tpu.memory_space<vmem>>, vector<8x32xf32>,
    %c0_158 = arith.constant 0 : index
    %c0_159 = arith.constant 0 : index
    %450 = vector.load %arg26[%c0_158, %c0_159] : memref<16x32xf32, #tpu.memory_space<vmem>>, vector<16x32xf32>
    %451 = arith.addf %244, %450 : vector<16x32xf32>
    %c0_160 = arith.constant 0 : index
    %c0_161 = arith.constant 0 : index
    %c0_162 = arith.constant 0 : index
    %452 = vector.load %arg14[%c0_160, %c0_161, %c0_162] : memref<2x1x32xf32, #tpu.memory_space<vmem>>, vector<1x1x32xf32>
    %453 = vector.shape_cast %452 : vector<1x1x32xf32> to vector<1x32xf32>
    %c0_163 = arith.constant 0 : index
    %c0_164 = arith.constant 0 : index
    %c0_165 = arith.constant 0 : index
    %454 = vector.load %arg15[%c0_163, %c0_164, %c0_165] : memref<2x1x32xf32, #tpu.memory_space<vmem>>, vector<1x1x32xf32>
    %455 = vector.shape_cast %454 : vector<1x1x32xf32> to vector<1x32xf32>
    %cst_166 = arith.constant dense<0.000000e+00> : vector<16xf32>
    %456 = vector.multi_reduction <add>, %451, %cst_166 [1] : vector<16x32xf32> to vector<16xf32>
    %457 = vector.shape_cast %456 : vector<16xf32> to vector<16x1xf32>
    %cst_167 = arith.constant 3.200000e+01 : f32
    %458 = vector.broadcast %cst_167 : f32 to vector<16x1xf32>
    %459 = arith.divf %457, %458 : vector<16x1xf32>
    %460 = vector.broadcast %459 : vector<16x1xf32> to vector<16x32xf32>
    %461 = arith.subf %451, %460 : vector<16x32xf32>
    %462 = arith.mulf %461, %461 : vector<16x32xf32>
    %cst_168 = arith.constant dense<0.000000e+00> : vector<16xf32>
    %463 = vector.multi_reduction <add>, %462, %cst_168 [1] : vector<16x32xf32> to vector<16xf32>
    %464 = vector.shape_cast %463 : vector<16xf32> to vector<16x1xf32>
    %cst_169 = arith.constant 3.200000e+01 : f32
    %465 = vector.broadcast %cst_169 : f32 to vector<16x1xf32>
    %466 = arith.divf %464, %465 : vector<16x1xf32>
    %467 = vector.broadcast %459 : vector<16x1xf32> to vector<16x32xf32>
    %468 = arith.subf %451, %467 : vector<16x32xf32>
    %cst_170 = arith.constant 9.99999974E-6 : f32
    %469 = vector.broadcast %cst_170 : f32 to vector<16x1xf32>
    %470 = arith.addf %466, %469 : vector<16x1xf32>
    %471 = math.rsqrt %470 : vector<16x1xf32>
    %472 = vector.broadcast %471 : vector<16x1xf32> to vector<16x32xf32>
    %473 = arith.mulf %468, %472 : vector<16x32xf32>
    %474 = vector.broadcast %453 : vector<1x32xf32> to vector<16x32xf32>
    %475 = arith.mulf %473, %474 : vector<16x32xf32>
    %476 = vector.broadcast %455 : vector<1x32xf32> to vector<16x32xf32>
    %477 = arith.addf %475, %476 : vector<16x32xf32>
    %c0_171 = arith.constant 0 : index
    %c0_172 = arith.constant 0 : index
    %c0_173 = arith.constant 0 : index
    %478 = vector.load %arg18[%c0_171, %c0_172, %c0_173] : memref<2x32x64xf32, #tpu.memory_space<vmem>>, vector<1x32x64xf32>
    %479 = vector.shape_cast %478 : vector<1x32x64xf32> to vector<32x64xf32>
    %c0_174 = arith.constant 0 : index
    %c0_175 = arith.constant 0 : index
    %c0_176 = arith.constant 0 : index
    %480 = vector.load %arg19[%c0_174, %c0_175, %c0_176] : memref<2x1x64xf32, #tpu.memory_space<vmem>>, vector<1x1x64xf32>
    %481 = vector.shape_cast %480 : vector<1x1x64xf32> to vector<1x64xf32>
    %c0_177 = arith.constant 0 : index
    %c0_178 = arith.constant 0 : index
    %c0_179 = arith.constant 0 : index
    %482 = vector.load %arg20[%c0_177, %c0_178, %c0_179] : memref<2x64x32xf32, #tpu.memory_space<vmem>>, vector<1x64x32xf32>
    %483 = vector.shape_cast %482 : vector<1x64x32xf32> to vector<64x32xf32>
    %c0_180 = arith.constant 0 : index
    %c0_181 = arith.constant 0 : index
    %c0_182 = arith.constant 0 : index
    %484 = vector.load %arg21[%c0_180, %c0_181, %c0_182] : memref<2x1x32xf32, #tpu.memory_space<vmem>>, vector<1x1x32xf32>
    %485 = vector.shape_cast %484 : vector<1x1x32xf32> to vector<1x32xf32>
    %cst_183 = arith.constant dense<0.000000e+00> : vector<16x64xf32>
    %486 = tpu.matmul %477, %479, %cst_183 {dimension_numbers = #tpu.dot_dimension_numbers<[1], [0], [0], [1], [0, 0, 1, 1], [], []>} : vector<16x32xf32>, vector<32x64xf32>, vector<16x64xf32> -> vector<16x64xf32>
    %487 = vector.broadcast %481 : vector<1x64xf32> to vector<16x64xf32>
    %488 = arith.addf %486, %487 : vector<16x64xf32>
    %cst_184 = arith.constant 0.000000e+00 : f32
    %489 = vector.broadcast %cst_184 : f32 to vector<16x64xf32>
    %490 = arith.maximumf %488, %489 : vector<16x64xf32>
    %cst_185 = arith.constant dense<0.000000e+00> : vector<16x32xf32>
    %491 = tpu.matmul %490, %483, %cst_185 {dimension_numbers = #tpu.dot_dimension_numbers<[1], [0], [0], [1], [0, 0, 1, 1], [], []>} : vector<16x64xf32>, vector<64x32xf32>, vector<16x32xf32> -> vector<16x32xf32>
    %492 = vector.broadcast %485 : vector<1x32xf32> to vector<16x32xf32>
    %493 = arith.addf %491, %492 : vector<16x32xf32>
    %494 = arith.addf %477, %493 : vector<16x32xf32>
    %c0_186 = arith.constant 0 : index
    %c0_187 = arith.constant 0 : index
    %c0_188 = arith.constant 0 : index
    %495 = vector.load %arg16[%c0_186, %c0_187, %c0_188] : memref<2x1x32xf32, #tpu.memory_space<vmem>>, vector<1x1x32xf32>
    %496 = vector.shape_cast %495 : vector<1x1x32xf32> to vector<1x32xf32>
    %c0_189 = arith.constant 0 : index
    %c0_190 = arith.constant 0 : index
    %c0_191 = arith.constant 0 : index
    %497 = vector.load %arg17[%c0_189, %c0_190, %c0_191] : memref<2x1x32xf32, #tpu.memory_space<vmem>>, vector<1x1x32xf32>
    %498 = vector.shape_cast %497 : vector<1x1x32xf32> to vector<1x32xf32>
    %cst_192 = arith.constant dense<0.000000e+00> : vector<16xf32>
    %499 = vector.multi_reduction <add>, %494, %cst_192 [1] : vector<16x32xf32> to vector<16xf32>
    %500 = vector.shape_cast %499 : vector<16xf32> to vector<16x1xf32>
    %cst_193 = arith.constant 3.200000e+01 : f32
    %501 = vector.broadcast %cst_193 : f32 to vector<16x1xf32>
    %502 = arith.divf %500, %501 : vector<16x1xf32>
    %503 = vector.broadcast %502 : vector<16x1xf32> to vector<16x32xf32>
    %504 = arith.subf %494, %503 : vector<16x32xf32>
    %505 = arith.mulf %504, %504 : vector<16x32xf32>
    %cst_194 = arith.constant dense<0.000000e+00> : vector<16xf32>
    %506 = vector.multi_reduction <add>, %505, %cst_194 [1] : vector<16x32xf32> to vector<16xf32>
    %507 = vector.shape_cast %506 : vector<16xf32> to vector<16x1xf32>
    %cst_195 = arith.constant 3.200000e+01 : f32
    %508 = vector.broadcast %cst_195 : f32 to vector<16x1xf32>
    %509 = arith.divf %507, %508 : vector<16x1xf32>
    %510 = vector.broadcast %502 : vector<16x1xf32> to vector<16x32xf32>
    %511 = arith.subf %494, %510 : vector<16x32xf32>
    %cst_196 = arith.constant 9.99999974E-6 : f32
    %512 = vector.broadcast %cst_196 : f32 to vector<16x1xf32>
    %513 = arith.addf %509, %512 : vector<16x1xf32>
    %514 = math.rsqrt %513 : vector<16x1xf32>
    %515 = vector.broadcast %514 : vector<16x1xf32> to vector<16x32xf32>
    %516 = arith.mulf %511, %515 : vector<16x32xf32>
    %517 = vector.broadcast %496 : vector<1x32xf32> to vector<16x32xf32>
    %518 = arith.mulf %516, %517 : vector<16x32xf32>
    %519 = vector.broadcast %498 : vector<1x32xf32> to vector<16x32xf32>
    %520 = arith.addf %518, %519 : vector<16x32xf32>
    %c1 = arith.constant 1 : index
    %c0_197 = arith.constant 0 : index
    %c0_198 = arith.constant 0 : index
    %521 = vector.load %arg4[%c1, %c0_197, %c0_198] : memref<2x32x96xf32, #tpu.memory_space<vmem>>, vector<1x32x96xf32>
    %522 = vector.shape_cast %521 : vector<1x32x96xf32> to vector<32x96xf32>
    %c1_199 = arith.constant 1 : index
    %c0_200 = arith.constant 0 : index
    %c0_201 = arith.constant 0 : index
    %523 = vector.load %arg5[%c1_199, %c0_200, %c0_201] : memref<2x1x96xf32, #tpu.memory_space<vmem>>, vector<1x1x96xf32>
    %524 = vector.shape_cast %523 : vector<1x1x96xf32> to vector<1x96xf32>
    %c1_202 = arith.constant 1 : index
    %c0_203 = arith.constant 0 : index
    %c0_204 = arith.constant 0 : index
    %525 = vector.load %arg6[%c1_202, %c0_203, %c0_204] : memref<2x32x32xf32, #tpu.memory_space<vmem>>, vector<1x32x32xf32>
    %526 = vector.shape_cast %525 : vector<1x32x32xf32> to vector<32x32xf32>
    %c1_205 = arith.constant 1 : index
    %c0_206 = arith.constant 0 : index
    %c0_207 = arith.constant 0 : index
    %527 = vector.load %arg7[%c1_205, %c0_206, %c0_207] : memref<2x1x32xf32, #tpu.memory_space<vmem>>, vector<1x1x32xf32>
    %528 = vector.shape_cast %527 : vector<1x1x32xf32> to vector<1x32xf32>
    %529 = vector.extract_strided_slice %522 {offsets = [0, 0], sizes = [32, 32], strides = [1, 1]} : vector<32x96xf32> to vector<32x32xf32>
    %cst_208 = arith.constant dense<0.000000e+00> : vector<16x32xf32>
    %530 = tpu.matmul %520, %529, %cst_208 {dimension_numbers = #tpu.dot_dimension_numbers<[1], [0], [0], [1], [0, 0, 1, 1], [], []>} : vector<16x32xf32>, vector<32x32xf32>, vector<16x32xf32> -> vector<16x32xf32>
    %531 = vector.extract_strided_slice %524 {offsets = [0, 0], sizes = [1, 32], strides = [1, 1]} : vector<1x96xf32> to vector<1x32xf32>
    %532 = vector.broadcast %531 : vector<1x32xf32> to vector<16x32xf32>
    %533 = arith.addf %530, %532 : vector<16x32xf32>
    %534 = vector.extract_strided_slice %522 {offsets = [0, 32], sizes = [32, 32], strides = [1, 1]} : vector<32x96xf32> to vector<32x32xf32>
    %cst_209 = arith.constant dense<0.000000e+00> : vector<16x32xf32>
    %535 = tpu.matmul %520, %534, %cst_209 {dimension_numbers = #tpu.dot_dimension_numbers<[1], [0], [0], [1], [0, 0, 1, 1], [], []>} : vector<16x32xf32>, vector<32x32xf32>, vector<16x32xf32> -> vector<16x32xf32>
    %536 = vector.extract_strided_slice %524 {offsets = [0, 32], sizes = [1, 32], strides = [1, 1]} : vector<1x96xf32> to vector<1x32xf32>
    %537 = vector.broadcast %536 : vector<1x32xf32> to vector<16x32xf32>
    %538 = arith.addf %535, %537 : vector<16x32xf32>
    %539 = vector.extract_strided_slice %522 {offsets = [0, 64], sizes = [32, 32], strides = [1, 1]} : vector<32x96xf32> to vector<32x32xf32>
    %cst_210 = arith.constant dense<0.000000e+00> : vector<16x32xf32>
    %540 = tpu.matmul %520, %539, %cst_210 {dimension_numbers = #tpu.dot_dimension_numbers<[1], [0], [0], [1], [0, 0, 1, 1], [], []>} : vector<16x32xf32>, vector<32x32xf32>, vector<16x32xf32> -> vector<16x32xf32>
    %541 = vector.extract_strided_slice %524 {offsets = [0, 64], sizes = [1, 32], strides = [1, 1]} : vector<1x96xf32> to vector<1x32xf32>
    %542 = vector.broadcast %541 : vector<1x32xf32> to vector<16x32xf32>
    %543 = arith.addf %540, %542 : vector<16x32xf32>
    %544 = vector.extract_strided_slice %2 {offsets = [0, 0], sizes = [1, 8], strides = [1, 1]} : vector<2x8xf32> to vector<1x8xf32>
    %545 = vector.shape_cast %544 : vector<1x8xf32> to vector<1x8xf32>
    %546 = vector.broadcast %545 : vector<1x8xf32> to vector<8x8xf32>
    %547 = arith.addf %546, %9 : vector<8x8xf32>
    %cst_211 = arith.constant 0.000000e+00 : f32
    %548 = vector.broadcast %cst_211 : f32 to vector<8x32xf32>
    %549 = vector.extract_strided_slice %533 {offsets = [0, 0], sizes = [8, 8], strides = [1, 1]} : vector<16x32xf32> to vector<8x8xf32>
    %550 = vector.extract_strided_slice %538 {offsets = [0, 0], sizes = [8, 8], strides = [1, 1]} : vector<16x32xf32> to vector<8x8xf32>
    %551 = vector.extract_strided_slice %543 {offsets = [0, 0], sizes = [8, 8], strides = [1, 1]} : vector<16x32xf32> to vector<8x8xf32>
    %552 = tpu.transpose %550, [1, 0] : vector<8x8xf32> -> vector<8x8xf32>
    %cst_212 = arith.constant dense<0.000000e+00> : vector<8x8xf32>
    %553 = tpu.matmul %549, %552, %cst_212 {dimension_numbers = #tpu.dot_dimension_numbers<[1], [0], [0], [1], [0, 0, 1, 1], [], []>} : vector<8x8xf32>, vector<8x8xf32>, vector<8x8xf32> -> vector<8x8xf32>
    %cst_213 = arith.constant 0.353553385 : f32
    %554 = vector.broadcast %cst_213 : f32 to vector<8x8xf32>
    %555 = arith.mulf %553, %554 : vector<8x8xf32>
    %556 = arith.addf %555, %547 : vector<8x8xf32>
    %cst_214 = arith.constant dense<0xFF800000> : vector<8xf32>
    %557 = vector.multi_reduction <maximumf>, %556, %cst_214 [1] : vector<8x8xf32> to vector<8xf32>
    %558 = vector.shape_cast %557 : vector<8xf32> to vector<8x1xf32>
    %559 = vector.broadcast %558 : vector<8x1xf32> to vector<8x8xf32>
    %560 = arith.subf %556, %559 : vector<8x8xf32>
    %561 = math.exp %560 : vector<8x8xf32>
    %cst_215 = arith.constant dense<0.000000e+00> : vector<8xf32>
    %562 = vector.multi_reduction <add>, %561, %cst_215 [1] : vector<8x8xf32> to vector<8xf32>
    %563 = vector.shape_cast %562 : vector<8xf32> to vector<8x1xf32>
    %564 = vector.broadcast %563 : vector<8x1xf32> to vector<8x8xf32>
    %565 = arith.divf %561, %564 : vector<8x8xf32>
    %cst_216 = arith.constant dense<0.000000e+00> : vector<8x8xf32>
    %566 = tpu.matmul %565, %551, %cst_216 {dimension_numbers = #tpu.dot_dimension_numbers<[1], [0], [0], [1], [0, 0, 1, 1], [], []>} : vector<8x8xf32>, vector<8x8xf32>, vector<8x8xf32> -> vector<8x8xf32>
    %567 = vector.extract_strided_slice %526 {offsets = [0, 0], sizes = [8, 32], strides = [1, 1]} : vector<32x32xf32> to vector<8x32xf32>
    %cst_217 = arith.constant dense<0.000000e+00> : vector<8x32xf32>
    %568 = tpu.matmul %566, %567, %cst_217 {dimension_numbers = #tpu.dot_dimension_numbers<[1], [0], [0], [1], [0, 0, 1, 1], [], []>} : vector<8x8xf32>, vector<8x32xf32>, vector<8x32xf32> -> vector<8x32xf32>
    %569 = arith.addf %548, %568 : vector<8x32xf32>
    %570 = vector.extract_strided_slice %533 {offsets = [0, 8], sizes = [8, 8], strides = [1, 1]} : vector<16x32xf32> to vector<8x8xf32>
    %571 = vector.extract_strided_slice %538 {offsets = [0, 8], sizes = [8, 8], strides = [1, 1]} : vector<16x32xf32> to vector<8x8xf32>
    %572 = vector.extract_strided_slice %543 {offsets = [0, 8], sizes = [8, 8], strides = [1, 1]} : vector<16x32xf32> to vector<8x8xf32>
    %573 = tpu.transpose %571, [1, 0] : vector<8x8xf32> -> vector<8x8xf32>
    %cst_218 = arith.constant dense<0.000000e+00> : vector<8x8xf32>
    %574 = tpu.matmul %570, %573, %cst_218 {dimension_numbers = #tpu.dot_dimension_numbers<[1], [0], [0], [1], [0, 0, 1, 1], [], []>} : vector<8x8xf32>, vector<8x8xf32>, vector<8x8xf32> -> vector<8x8xf32>
    %cst_219 = arith.constant 0.353553385 : f32
    %575 = vector.broadcast %cst_219 : f32 to vector<8x8xf32>
    %576 = arith.mulf %574, %575 : vector<8x8xf32>
    %577 = arith.addf %576, %547 : vector<8x8xf32>
    %cst_220 = arith.constant dense<0xFF800000> : vector<8xf32>
    %578 = vector.multi_reduction <maximumf>, %577, %cst_220 [1] : vector<8x8xf32> to vector<8xf32>
    %579 = vector.shape_cast %578 : vector<8xf32> to vector<8x1xf32>
    %580 = vector.broadcast %579 : vector<8x1xf32> to vector<8x8xf32>
    %581 = arith.subf %577, %580 : vector<8x8xf32>
    %582 = math.exp %581 : vector<8x8xf32>
    %cst_221 = arith.constant dense<0.000000e+00> : vector<8xf32>
    %583 = vector.multi_reduction <add>, %582, %cst_221 [1] : vector<8x8xf32> to vector<8xf32>
    %584 = vector.shape_cast %583 : vector<8xf32> to vector<8x1xf32>
    %585 = vector.broadcast %584 : vector<8x1xf32> to vector<8x8xf32>
    %586 = arith.divf %582, %585 : vector<8x8xf32>
    %cst_222 = arith.constant dense<0.000000e+00> : vector<8x8xf32>
    %587 = tpu.matmul %586, %572, %cst_222 {dimension_numbers = #tpu.dot_dimension_numbers<[1], [0], [0], [1], [0, 0, 1, 1], [], []>} : vector<8x8xf32>, vector<8x8xf32>, vector<8x8xf32> -> vector<8x8xf32>
    %588 = vector.extract_strided_slice %526 {offsets = [8, 0], sizes = [8, 32], strides = [1, 1]} : vector<32x32xf32> to vector<8x32xf32>
    %cst_223 = arith.constant dense<0.000000e+00> : vector<8x32xf32>
    %589 = tpu.matmul %587, %588, %cst_223 {dimension_numbers = #tpu.dot_dimension_numbers<[1], [0], [0], [1], [0, 0, 1, 1], [], []>} : vector<8x8xf32>, vector<8x32xf32>, vector<8x32xf32> -> vector<8x32xf32>
    %590 = arith.addf %569, %589 : vector<8x32xf32>
    %591 = vector.extract_strided_slice %533 {offsets = [0, 16], sizes = [8, 8], strides = [1, 1]} : vector<16x32xf32> to vector<8x8xf32>
    %592 = vector.extract_strided_slice %538 {offsets = [0, 16], sizes = [8, 8], strides = [1, 1]} : vector<16x32xf32> to vector<8x8xf32>
    %593 = vector.extract_strided_slice %543 {offsets = [0, 16], sizes = [8, 8], strides = [1, 1]} : vector<16x32xf32> to vector<8x8xf32>
    %594 = tpu.transpose %592, [1, 0] : vector<8x8xf32> -> vector<8x8xf32>
    %cst_224 = arith.constant dense<0.000000e+00> : vector<8x8xf32>
    %595 = tpu.matmul %591, %594, %cst_224 {dimension_numbers = #tpu.dot_dimension_numbers<[1], [0], [0], [1], [0, 0, 1, 1], [], []>} : vector<8x8xf32>, vector<8x8xf32>, vector<8x8xf32> -> vector<8x8xf32>
    %cst_225 = arith.constant 0.353553385 : f32
    %596 = vector.broadcast %cst_225 : f32 to vector<8x8xf32>
    %597 = arith.mulf %595, %596 : vector<8x8xf32>
    %598 = arith.addf %597, %547 : vector<8x8xf32>
    %cst_226 = arith.constant dense<0xFF800000> : vector<8xf32>
    %599 = vector.multi_reduction <maximumf>, %598, %cst_226 [1] : vector<8x8xf32> to vector<8xf32>
    %600 = vector.shape_cast %599 : vector<8xf32> to vector<8x1xf32>
    %601 = vector.broadcast %600 : vector<8x1xf32> to vector<8x8xf32>
    %602 = arith.subf %598, %601 : vector<8x8xf32>
    %603 = math.exp %602 : vector<8x8xf32>
    %cst_227 = arith.constant dense<0.000000e+00> : vector<8xf32>
    %604 = vector.multi_reduction <add>, %603, %cst_227 [1] : vector<8x8xf32> to vector<8xf32>
    %605 = vector.shape_cast %604 : vector<8xf32> to vector<8x1xf32>
    %606 = vector.broadcast %605 : vector<8x1xf32> to vector<8x8xf32>
    %607 = arith.divf %603, %606 : vector<8x8xf32>
    %cst_228 = arith.constant dense<0.000000e+00> : vector<8x8xf32>
    %608 = tpu.matmul %607, %593, %cst_228 {dimension_numbers = #tpu.dot_dimension_numbers<[1], [0], [0], [1], [0, 0, 1, 1], [], []>} : vector<8x8xf32>, vector<8x8xf32>, vector<8x8xf32> -> vector<8x8xf32>
    %609 = vector.extract_strided_slice %526 {offsets = [16, 0], sizes = [8, 32], strides = [1, 1]} : vector<32x32xf32> to vector<8x32xf32>
    %cst_229 = arith.constant dense<0.000000e+00> : vector<8x32xf32>
    %610 = tpu.matmul %608, %609, %cst_229 {dimension_numbers = #tpu.dot_dimension_numbers<[1], [0], [0], [1], [0, 0, 1, 1], [], []>} : vector<8x8xf32>, vector<8x32xf32>, vector<8x32xf32> -> vector<8x32xf32>
    %611 = arith.addf %590, %610 : vector<8x32xf32>
    %612 = vector.extract_strided_slice %533 {offsets = [0, 24], sizes = [8, 8], strides = [1, 1]} : vector<16x32xf32> to vector<8x8xf32>
    %613 = vector.extract_strided_slice %538 {offsets = [0, 24], sizes = [8, 8], strides = [1, 1]} : vector<16x32xf32> to vector<8x8xf32>
    %614 = vector.extract_strided_slice %543 {offsets = [0, 24], sizes = [8, 8], strides = [1, 1]} : vector<16x32xf32> to vector<8x8xf32>
    %615 = tpu.transpose %613, [1, 0] : vector<8x8xf32> -> vector<8x8xf32>
    %cst_230 = arith.constant dense<0.000000e+00> : vector<8x8xf32>
    %616 = tpu.matmul %612, %615, %cst_230 {dimension_numbers = #tpu.dot_dimension_numbers<[1], [0], [0], [1], [0, 0, 1, 1], [], []>} : vector<8x8xf32>, vector<8x8xf32>, vector<8x8xf32> -> vector<8x8xf32>
    %cst_231 = arith.constant 0.353553385 : f32
    %617 = vector.broadcast %cst_231 : f32 to vector<8x8xf32>
    %618 = arith.mulf %616, %617 : vector<8x8xf32>
    %619 = arith.addf %618, %547 : vector<8x8xf32>
    %cst_232 = arith.constant dense<0xFF800000> : vector<8xf32>
    %620 = vector.multi_reduction <maximumf>, %619, %cst_232 [1] : vector<8x8xf32> to vector<8xf32>
    %621 = vector.shape_cast %620 : vector<8xf32> to vector<8x1xf32>
    %622 = vector.broadcast %621 : vector<8x1xf32> to vector<8x8xf32>
    %623 = arith.subf %619, %622 : vector<8x8xf32>
    %624 = math.exp %623 : vector<8x8xf32>
    %cst_233 = arith.constant dense<0.000000e+00> : vector<8xf32>
    %625 = vector.multi_reduction <add>, %624, %cst_233 [1] : vector<8x8xf32> to vector<8xf32>
    %626 = vector.shape_cast %625 : vector<8xf32> to vector<8x1xf32>
    %627 = vector.broadcast %626 : vector<8x1xf32> to vector<8x8xf32>
    %628 = arith.divf %624, %627 : vector<8x8xf32>
    %cst_234 = arith.constant dense<0.000000e+00> : vector<8x8xf32>
    %629 = tpu.matmul %628, %614, %cst_234 {dimension_numbers = #tpu.dot_dimension_numbers<[1], [0], [0], [1], [0, 0, 1, 1], [], []>} : vector<8x8xf32>, vector<8x8xf32>, vector<8x8xf32> -> vector<8x8xf32>
    %630 = vector.extract_strided_slice %526 {offsets = [24, 0], sizes = [8, 32], strides = [1, 1]} : vector<32x32xf32> to vector<8x32xf32>
    %cst_235 = arith.constant dense<0.000000e+00> : vector<8x32xf32>
    %631 = tpu.matmul %629, %630, %cst_235 {dimension_numbers = #tpu.dot_dimension_numbers<[1], [0], [0], [1], [0, 0, 1, 1], [], []>} : vector<8x8xf32>, vector<8x32xf32>, vector<8x32xf32> -> vector<8x32xf32>
    %632 = arith.addf %611, %631 : vector<8x32xf32>
    %633 = vector.broadcast %528 : vector<1x32xf32> to vector<8x32xf32>
    %634 = arith.addf %632, %633 : vector<8x32xf32>
    %c0_236 = arith.constant 0 : index
    %c0_237 = arith.constant 0 : index
    %635 = vector.load %arg26[%c0_236, %c0_237] : memref<16x32xf32, #tpu.memory_space<vmem>>, vector<8x32xf32>
    tpu.vector_store %arg26[%c0_236, %c0_237], %634 {strides = array<i32>} : memref<16x32xf32, #tpu.memory_space<vmem>>, vector<8x32xf32>,
    %636 = vector.extract_strided_slice %2 {offsets = [1, 0], sizes = [1, 8], strides = [1, 1]} : vector<2x8xf32> to vector<1x8xf32>
    %637 = vector.shape_cast %636 : vector<1x8xf32> to vector<1x8xf32>
    %638 = vector.broadcast %637 : vector<1x8xf32> to vector<8x8xf32>
    %639 = arith.addf %638, %9 : vector<8x8xf32>
    %cst_238 = arith.constant 0.000000e+00 : f32
    %640 = vector.broadcast %cst_238 : f32 to vector<8x32xf32>
    %641 = vector.extract_strided_slice %533 {offsets = [8, 0], sizes = [8, 8], strides = [1, 1]} : vector<16x32xf32> to vector<8x8xf32>
    %642 = vector.extract_strided_slice %538 {offsets = [8, 0], sizes = [8, 8], strides = [1, 1]} : vector<16x32xf32> to vector<8x8xf32>
    %643 = vector.extract_strided_slice %543 {offsets = [8, 0], sizes = [8, 8], strides = [1, 1]} : vector<16x32xf32> to vector<8x8xf32>
    %644 = tpu.transpose %642, [1, 0] : vector<8x8xf32> -> vector<8x8xf32>
    %cst_239 = arith.constant dense<0.000000e+00> : vector<8x8xf32>
    %645 = tpu.matmul %641, %644, %cst_239 {dimension_numbers = #tpu.dot_dimension_numbers<[1], [0], [0], [1], [0, 0, 1, 1], [], []>} : vector<8x8xf32>, vector<8x8xf32>, vector<8x8xf32> -> vector<8x8xf32>
    %cst_240 = arith.constant 0.353553385 : f32
    %646 = vector.broadcast %cst_240 : f32 to vector<8x8xf32>
    %647 = arith.mulf %645, %646 : vector<8x8xf32>
    %648 = arith.addf %647, %639 : vector<8x8xf32>
    %cst_241 = arith.constant dense<0xFF800000> : vector<8xf32>
    %649 = vector.multi_reduction <maximumf>, %648, %cst_241 [1] : vector<8x8xf32> to vector<8xf32>
    %650 = vector.shape_cast %649 : vector<8xf32> to vector<8x1xf32>
    %651 = vector.broadcast %650 : vector<8x1xf32> to vector<8x8xf32>
    %652 = arith.subf %648, %651 : vector<8x8xf32>
    %653 = math.exp %652 : vector<8x8xf32>
    %cst_242 = arith.constant dense<0.000000e+00> : vector<8xf32>
    %654 = vector.multi_reduction <add>, %653, %cst_242 [1] : vector<8x8xf32> to vector<8xf32>
    %655 = vector.shape_cast %654 : vector<8xf32> to vector<8x1xf32>
    %656 = vector.broadcast %655 : vector<8x1xf32> to vector<8x8xf32>
    %657 = arith.divf %653, %656 : vector<8x8xf32>
    %cst_243 = arith.constant dense<0.000000e+00> : vector<8x8xf32>
    %658 = tpu.matmul %657, %643, %cst_243 {dimension_numbers = #tpu.dot_dimension_numbers<[1], [0], [0], [1], [0, 0, 1, 1], [], []>} : vector<8x8xf32>, vector<8x8xf32>, vector<8x8xf32> -> vector<8x8xf32>
    %659 = vector.extract_strided_slice %526 {offsets = [0, 0], sizes = [8, 32], strides = [1, 1]} : vector<32x32xf32> to vector<8x32xf32>
    %cst_244 = arith.constant dense<0.000000e+00> : vector<8x32xf32>
    %660 = tpu.matmul %658, %659, %cst_244 {dimension_numbers = #tpu.dot_dimension_numbers<[1], [0], [0], [1], [0, 0, 1, 1], [], []>} : vector<8x8xf32>, vector<8x32xf32>, vector<8x32xf32> -> vector<8x32xf32>
    %661 = arith.addf %640, %660 : vector<8x32xf32>
    %662 = vector.extract_strided_slice %533 {offsets = [8, 8], sizes = [8, 8], strides = [1, 1]} : vector<16x32xf32> to vector<8x8xf32>
    %663 = vector.extract_strided_slice %538 {offsets = [8, 8], sizes = [8, 8], strides = [1, 1]} : vector<16x32xf32> to vector<8x8xf32>
    %664 = vector.extract_strided_slice %543 {offsets = [8, 8], sizes = [8, 8], strides = [1, 1]} : vector<16x32xf32> to vector<8x8xf32>
    %665 = tpu.transpose %663, [1, 0] : vector<8x8xf32> -> vector<8x8xf32>
    %cst_245 = arith.constant dense<0.000000e+00> : vector<8x8xf32>
    %666 = tpu.matmul %662, %665, %cst_245 {dimension_numbers = #tpu.dot_dimension_numbers<[1], [0], [0], [1], [0, 0, 1, 1], [], []>} : vector<8x8xf32>, vector<8x8xf32>, vector<8x8xf32> -> vector<8x8xf32>
    %cst_246 = arith.constant 0.353553385 : f32
    %667 = vector.broadcast %cst_246 : f32 to vector<8x8xf32>
    %668 = arith.mulf %666, %667 : vector<8x8xf32>
    %669 = arith.addf %668, %639 : vector<8x8xf32>
    %cst_247 = arith.constant dense<0xFF800000> : vector<8xf32>
    %670 = vector.multi_reduction <maximumf>, %669, %cst_247 [1] : vector<8x8xf32> to vector<8xf32>
    %671 = vector.shape_cast %670 : vector<8xf32> to vector<8x1xf32>
    %672 = vector.broadcast %671 : vector<8x1xf32> to vector<8x8xf32>
    %673 = arith.subf %669, %672 : vector<8x8xf32>
    %674 = math.exp %673 : vector<8x8xf32>
    %cst_248 = arith.constant dense<0.000000e+00> : vector<8xf32>
    %675 = vector.multi_reduction <add>, %674, %cst_248 [1] : vector<8x8xf32> to vector<8xf32>
    %676 = vector.shape_cast %675 : vector<8xf32> to vector<8x1xf32>
    %677 = vector.broadcast %676 : vector<8x1xf32> to vector<8x8xf32>
    %678 = arith.divf %674, %677 : vector<8x8xf32>
    %cst_249 = arith.constant dense<0.000000e+00> : vector<8x8xf32>
    %679 = tpu.matmul %678, %664, %cst_249 {dimension_numbers = #tpu.dot_dimension_numbers<[1], [0], [0], [1], [0, 0, 1, 1], [], []>} : vector<8x8xf32>, vector<8x8xf32>, vector<8x8xf32> -> vector<8x8xf32>
    %680 = vector.extract_strided_slice %526 {offsets = [8, 0], sizes = [8, 32], strides = [1, 1]} : vector<32x32xf32> to vector<8x32xf32>
    %cst_250 = arith.constant dense<0.000000e+00> : vector<8x32xf32>
    %681 = tpu.matmul %679, %680, %cst_250 {dimension_numbers = #tpu.dot_dimension_numbers<[1], [0], [0], [1], [0, 0, 1, 1], [], []>} : vector<8x8xf32>, vector<8x32xf32>, vector<8x32xf32> -> vector<8x32xf32>
    %682 = arith.addf %661, %681 : vector<8x32xf32>
    %683 = vector.extract_strided_slice %533 {offsets = [8, 16], sizes = [8, 8], strides = [1, 1]} : vector<16x32xf32> to vector<8x8xf32>
    %684 = vector.extract_strided_slice %538 {offsets = [8, 16], sizes = [8, 8], strides = [1, 1]} : vector<16x32xf32> to vector<8x8xf32>
    %685 = vector.extract_strided_slice %543 {offsets = [8, 16], sizes = [8, 8], strides = [1, 1]} : vector<16x32xf32> to vector<8x8xf32>
    %686 = tpu.transpose %684, [1, 0] : vector<8x8xf32> -> vector<8x8xf32>
    %cst_251 = arith.constant dense<0.000000e+00> : vector<8x8xf32>
    %687 = tpu.matmul %683, %686, %cst_251 {dimension_numbers = #tpu.dot_dimension_numbers<[1], [0], [0], [1], [0, 0, 1, 1], [], []>} : vector<8x8xf32>, vector<8x8xf32>, vector<8x8xf32> -> vector<8x8xf32>
    %cst_252 = arith.constant 0.353553385 : f32
    %688 = vector.broadcast %cst_252 : f32 to vector<8x8xf32>
    %689 = arith.mulf %687, %688 : vector<8x8xf32>
    %690 = arith.addf %689, %639 : vector<8x8xf32>
    %cst_253 = arith.constant dense<0xFF800000> : vector<8xf32>
    %691 = vector.multi_reduction <maximumf>, %690, %cst_253 [1] : vector<8x8xf32> to vector<8xf32>
    %692 = vector.shape_cast %691 : vector<8xf32> to vector<8x1xf32>
    %693 = vector.broadcast %692 : vector<8x1xf32> to vector<8x8xf32>
    %694 = arith.subf %690, %693 : vector<8x8xf32>
    %695 = math.exp %694 : vector<8x8xf32>
    %cst_254 = arith.constant dense<0.000000e+00> : vector<8xf32>
    %696 = vector.multi_reduction <add>, %695, %cst_254 [1] : vector<8x8xf32> to vector<8xf32>
    %697 = vector.shape_cast %696 : vector<8xf32> to vector<8x1xf32>
    %698 = vector.broadcast %697 : vector<8x1xf32> to vector<8x8xf32>
    %699 = arith.divf %695, %698 : vector<8x8xf32>
    %cst_255 = arith.constant dense<0.000000e+00> : vector<8x8xf32>
    %700 = tpu.matmul %699, %685, %cst_255 {dimension_numbers = #tpu.dot_dimension_numbers<[1], [0], [0], [1], [0, 0, 1, 1], [], []>} : vector<8x8xf32>, vector<8x8xf32>, vector<8x8xf32> -> vector<8x8xf32>
    %701 = vector.extract_strided_slice %526 {offsets = [16, 0], sizes = [8, 32], strides = [1, 1]} : vector<32x32xf32> to vector<8x32xf32>
    %cst_256 = arith.constant dense<0.000000e+00> : vector<8x32xf32>
    %702 = tpu.matmul %700, %701, %cst_256 {dimension_numbers = #tpu.dot_dimension_numbers<[1], [0], [0], [1], [0, 0, 1, 1], [], []>} : vector<8x8xf32>, vector<8x32xf32>, vector<8x32xf32> -> vector<8x32xf32>
    %703 = arith.addf %682, %702 : vector<8x32xf32>
    %704 = vector.extract_strided_slice %533 {offsets = [8, 24], sizes = [8, 8], strides = [1, 1]} : vector<16x32xf32> to vector<8x8xf32>
    %705 = vector.extract_strided_slice %538 {offsets = [8, 24], sizes = [8, 8], strides = [1, 1]} : vector<16x32xf32> to vector<8x8xf32>
    %706 = vector.extract_strided_slice %543 {offsets = [8, 24], sizes = [8, 8], strides = [1, 1]} : vector<16x32xf32> to vector<8x8xf32>
    %707 = tpu.transpose %705, [1, 0] : vector<8x8xf32> -> vector<8x8xf32>
    %cst_257 = arith.constant dense<0.000000e+00> : vector<8x8xf32>
    %708 = tpu.matmul %704, %707, %cst_257 {dimension_numbers = #tpu.dot_dimension_numbers<[1], [0], [0], [1], [0, 0, 1, 1], [], []>} : vector<8x8xf32>, vector<8x8xf32>, vector<8x8xf32> -> vector<8x8xf32>
    %cst_258 = arith.constant 0.353553385 : f32
    %709 = vector.broadcast %cst_258 : f32 to vector<8x8xf32>
    %710 = arith.mulf %708, %709 : vector<8x8xf32>
    %711 = arith.addf %710, %639 : vector<8x8xf32>
    %cst_259 = arith.constant dense<0xFF800000> : vector<8xf32>
    %712 = vector.multi_reduction <maximumf>, %711, %cst_259 [1] : vector<8x8xf32> to vector<8xf32>
    %713 = vector.shape_cast %712 : vector<8xf32> to vector<8x1xf32>
    %714 = vector.broadcast %713 : vector<8x1xf32> to vector<8x8xf32>
    %715 = arith.subf %711, %714 : vector<8x8xf32>
    %716 = math.exp %715 : vector<8x8xf32>
    %cst_260 = arith.constant dense<0.000000e+00> : vector<8xf32>
    %717 = vector.multi_reduction <add>, %716, %cst_260 [1] : vector<8x8xf32> to vector<8xf32>
    %718 = vector.shape_cast %717 : vector<8xf32> to vector<8x1xf32>
    %719 = vector.broadcast %718 : vector<8x1xf32> to vector<8x8xf32>
    %720 = arith.divf %716, %719 : vector<8x8xf32>
    %cst_261 = arith.constant dense<0.000000e+00> : vector<8x8xf32>
    %721 = tpu.matmul %720, %706, %cst_261 {dimension_numbers = #tpu.dot_dimension_numbers<[1], [0], [0], [1], [0, 0, 1, 1], [], []>} : vector<8x8xf32>, vector<8x8xf32>, vector<8x8xf32> -> vector<8x8xf32>
    %722 = vector.extract_strided_slice %526 {offsets = [24, 0], sizes = [8, 32], strides = [1, 1]} : vector<32x32xf32> to vector<8x32xf32>
    %cst_262 = arith.constant dense<0.000000e+00> : vector<8x32xf32>
    %723 = tpu.matmul %721, %722, %cst_262 {dimension_numbers = #tpu.dot_dimension_numbers<[1], [0], [0], [1], [0, 0, 1, 1], [], []>} : vector<8x8xf32>, vector<8x32xf32>, vector<8x32xf32> -> vector<8x32xf32>
    %724 = arith.addf %703, %723 : vector<8x32xf32>
    %725 = vector.broadcast %528 : vector<1x32xf32> to vector<8x32xf32>
    %726 = arith.addf %724, %725 : vector<8x32xf32>
    %c8_263 = arith.constant 8 : index
    %c0_264 = arith.constant 0 : index
    %727 = vector.load %arg26[%c8_263, %c0_264] : memref<16x32xf32, #tpu.memory_space<vmem>>, vector<8x32xf32>
    tpu.vector_store %arg26[%c8_263, %c0_264], %726 {strides = array<i32>} : memref<16x32xf32, #tpu.memory_space<vmem>>, vector<8x32xf32>,
    %c0_265 = arith.constant 0 : index
    %c0_266 = arith.constant 0 : index
    %728 = vector.load %arg26[%c0_265, %c0_266] : memref<16x32xf32, #tpu.memory_space<vmem>>, vector<16x32xf32>
    %729 = arith.addf %520, %728 : vector<16x32xf32>
    %c1_267 = arith.constant 1 : index
    %c0_268 = arith.constant 0 : index
    %c0_269 = arith.constant 0 : index
    %730 = vector.load %arg12[%c1_267, %c0_268, %c0_269] : memref<2x1x32xf32, #tpu.memory_space<vmem>>, vector<1x1x32xf32>
    %731 = vector.shape_cast %730 : vector<1x1x32xf32> to vector<1x32xf32>
    %c1_270 = arith.constant 1 : index
    %c0_271 = arith.constant 0 : index
    %c0_272 = arith.constant 0 : index
    %732 = vector.load %arg13[%c1_270, %c0_271, %c0_272] : memref<2x1x32xf32, #tpu.memory_space<vmem>>, vector<1x1x32xf32>
    %733 = vector.shape_cast %732 : vector<1x1x32xf32> to vector<1x32xf32>
    %cst_273 = arith.constant dense<0.000000e+00> : vector<16xf32>
    %734 = vector.multi_reduction <add>, %729, %cst_273 [1] : vector<16x32xf32> to vector<16xf32>
    %735 = vector.shape_cast %734 : vector<16xf32> to vector<16x1xf32>
    %cst_274 = arith.constant 3.200000e+01 : f32
    %736 = vector.broadcast %cst_274 : f32 to vector<16x1xf32>
    %737 = arith.divf %735, %736 : vector<16x1xf32>
    %738 = vector.broadcast %737 : vector<16x1xf32> to vector<16x32xf32>
    %739 = arith.subf %729, %738 : vector<16x32xf32>
    %740 = arith.mulf %739, %739 : vector<16x32xf32>
    %cst_275 = arith.constant dense<0.000000e+00> : vector<16xf32>
    %741 = vector.multi_reduction <add>, %740, %cst_275 [1] : vector<16x32xf32> to vector<16xf32>
    %742 = vector.shape_cast %741 : vector<16xf32> to vector<16x1xf32>
    %cst_276 = arith.constant 3.200000e+01 : f32
    %743 = vector.broadcast %cst_276 : f32 to vector<16x1xf32>
    %744 = arith.divf %742, %743 : vector<16x1xf32>
    %745 = vector.broadcast %737 : vector<16x1xf32> to vector<16x32xf32>
    %746 = arith.subf %729, %745 : vector<16x32xf32>
    %cst_277 = arith.constant 9.99999974E-6 : f32
    %747 = vector.broadcast %cst_277 : f32 to vector<16x1xf32>
    %748 = arith.addf %744, %747 : vector<16x1xf32>
    %749 = math.rsqrt %748 : vector<16x1xf32>
    %750 = vector.broadcast %749 : vector<16x1xf32> to vector<16x32xf32>
    %751 = arith.mulf %746, %750 : vector<16x32xf32>
    %752 = vector.broadcast %731 : vector<1x32xf32> to vector<16x32xf32>
    %753 = arith.mulf %751, %752 : vector<16x32xf32>
    %754 = vector.broadcast %733 : vector<1x32xf32> to vector<16x32xf32>
    %755 = arith.addf %753, %754 : vector<16x32xf32>
    %c1_278 = arith.constant 1 : index
    %c0_279 = arith.constant 0 : index
    %c0_280 = arith.constant 0 : index
    %756 = vector.load %arg8[%c1_278, %c0_279, %c0_280] : memref<2x32x96xf32, #tpu.memory_space<vmem>>, vector<1x32x96xf32>
    %757 = vector.shape_cast %756 : vector<1x32x96xf32> to vector<32x96xf32>
    %c1_281 = arith.constant 1 : index
    %c0_282 = arith.constant 0 : index
    %c0_283 = arith.constant 0 : index
    %758 = vector.load %arg9[%c1_281, %c0_282, %c0_283] : memref<2x1x96xf32, #tpu.memory_space<vmem>>, vector<1x1x96xf32>
    %759 = vector.shape_cast %758 : vector<1x1x96xf32> to vector<1x96xf32>
    %c1_284 = arith.constant 1 : index
    %c0_285 = arith.constant 0 : index
    %c0_286 = arith.constant 0 : index
    %760 = vector.load %arg10[%c1_284, %c0_285, %c0_286] : memref<2x32x32xf32, #tpu.memory_space<vmem>>, vector<1x32x32xf32>
    %761 = vector.shape_cast %760 : vector<1x32x32xf32> to vector<32x32xf32>
    %c1_287 = arith.constant 1 : index
    %c0_288 = arith.constant 0 : index
    %c0_289 = arith.constant 0 : index
    %762 = vector.load %arg11[%c1_287, %c0_288, %c0_289] : memref<2x1x32xf32, #tpu.memory_space<vmem>>, vector<1x1x32xf32>
    %763 = vector.shape_cast %762 : vector<1x1x32xf32> to vector<1x32xf32>
    %764 = vector.extract_strided_slice %757 {offsets = [0, 0], sizes = [32, 32], strides = [1, 1]} : vector<32x96xf32> to vector<32x32xf32>
    %cst_290 = arith.constant dense<0.000000e+00> : vector<16x32xf32>
    %765 = tpu.matmul %755, %764, %cst_290 {dimension_numbers = #tpu.dot_dimension_numbers<[1], [0], [0], [1], [0, 0, 1, 1], [], []>} : vector<16x32xf32>, vector<32x32xf32>, vector<16x32xf32> -> vector<16x32xf32>
    %766 = vector.extract_strided_slice %759 {offsets = [0, 0], sizes = [1, 32], strides = [1, 1]} : vector<1x96xf32> to vector<1x32xf32>
    %767 = vector.broadcast %766 : vector<1x32xf32> to vector<16x32xf32>
    %768 = arith.addf %765, %767 : vector<16x32xf32>
    %769 = vector.extract_strided_slice %757 {offsets = [0, 32], sizes = [32, 32], strides = [1, 1]} : vector<32x96xf32> to vector<32x32xf32>
    %cst_291 = arith.constant dense<0.000000e+00> : vector<16x32xf32>
    %770 = tpu.matmul %1, %769, %cst_291 {dimension_numbers = #tpu.dot_dimension_numbers<[1], [0], [0], [1], [0, 0, 1, 1], [], []>} : vector<16x32xf32>, vector<32x32xf32>, vector<16x32xf32> -> vector<16x32xf32>
    %771 = vector.extract_strided_slice %759 {offsets = [0, 32], sizes = [1, 32], strides = [1, 1]} : vector<1x96xf32> to vector<1x32xf32>
    %772 = vector.broadcast %771 : vector<1x32xf32> to vector<16x32xf32>
    %773 = arith.addf %770, %772 : vector<16x32xf32>
    %774 = vector.extract_strided_slice %757 {offsets = [0, 64], sizes = [32, 32], strides = [1, 1]} : vector<32x96xf32> to vector<32x32xf32>
    %cst_292 = arith.constant dense<0.000000e+00> : vector<16x32xf32>
    %775 = tpu.matmul %1, %774, %cst_292 {dimension_numbers = #tpu.dot_dimension_numbers<[1], [0], [0], [1], [0, 0, 1, 1], [], []>} : vector<16x32xf32>, vector<32x32xf32>, vector<16x32xf32> -> vector<16x32xf32>
    %776 = vector.extract_strided_slice %759 {offsets = [0, 64], sizes = [1, 32], strides = [1, 1]} : vector<1x96xf32> to vector<1x32xf32>
    %777 = vector.broadcast %776 : vector<1x32xf32> to vector<16x32xf32>
    %778 = arith.addf %775, %777 : vector<16x32xf32>
    %779 = vector.extract_strided_slice %3 {offsets = [0, 0], sizes = [1, 8], strides = [1, 1]} : vector<2x8xf32> to vector<1x8xf32>
    %780 = vector.shape_cast %779 : vector<1x8xf32> to vector<1x8xf32>
    %781 = vector.broadcast %780 : vector<1x8xf32> to vector<8x8xf32>
    %cst_293 = arith.constant 0.000000e+00 : f32
    %782 = vector.broadcast %cst_293 : f32 to vector<8x32xf32>
    %783 = vector.extract_strided_slice %768 {offsets = [0, 0], sizes = [8, 8], strides = [1, 1]} : vector<16x32xf32> to vector<8x8xf32>
    %784 = vector.extract_strided_slice %773 {offsets = [0, 0], sizes = [8, 8], strides = [1, 1]} : vector<16x32xf32> to vector<8x8xf32>
    %785 = vector.extract_strided_slice %778 {offsets = [0, 0], sizes = [8, 8], strides = [1, 1]} : vector<16x32xf32> to vector<8x8xf32>
    %786 = tpu.transpose %784, [1, 0] : vector<8x8xf32> -> vector<8x8xf32>
    %cst_294 = arith.constant dense<0.000000e+00> : vector<8x8xf32>
    %787 = tpu.matmul %783, %786, %cst_294 {dimension_numbers = #tpu.dot_dimension_numbers<[1], [0], [0], [1], [0, 0, 1, 1], [], []>} : vector<8x8xf32>, vector<8x8xf32>, vector<8x8xf32> -> vector<8x8xf32>
    %cst_295 = arith.constant 0.353553385 : f32
    %788 = vector.broadcast %cst_295 : f32 to vector<8x8xf32>
    %789 = arith.mulf %787, %788 : vector<8x8xf32>
    %790 = arith.addf %789, %781 : vector<8x8xf32>
    %cst_296 = arith.constant dense<0xFF800000> : vector<8xf32>
    %791 = vector.multi_reduction <maximumf>, %790, %cst_296 [1] : vector<8x8xf32> to vector<8xf32>
    %792 = vector.shape_cast %791 : vector<8xf32> to vector<8x1xf32>
    %793 = vector.broadcast %792 : vector<8x1xf32> to vector<8x8xf32>
    %794 = arith.subf %790, %793 : vector<8x8xf32>
    %795 = math.exp %794 : vector<8x8xf32>
    %cst_297 = arith.constant dense<0.000000e+00> : vector<8xf32>
    %796 = vector.multi_reduction <add>, %795, %cst_297 [1] : vector<8x8xf32> to vector<8xf32>
    %797 = vector.shape_cast %796 : vector<8xf32> to vector<8x1xf32>
    %798 = vector.broadcast %797 : vector<8x1xf32> to vector<8x8xf32>
    %799 = arith.divf %795, %798 : vector<8x8xf32>
    %c0_298 = arith.constant 0 : index
    %c0_299 = arith.constant 0 : index
    %c0_300 = arith.constant 0 : index
    %800 = vector.load %arg25[%c0_298, %c0_299, %c0_300] : memref<8x8x8xf32, #tpu.memory_space<vmem>>, vector<1x8x8xf32>
    %801 = vector.shape_cast %800 : vector<1x8x8xf32> to vector<8x8xf32>
    %802 = vector.shape_cast %799 : vector<8x8xf32> to vector<1x8x8xf32>
    tpu.vector_store %arg25[%c0_298, %c0_299, %c0_300], %802 {strides = array<i32>} : memref<8x8x8xf32, #tpu.memory_space<vmem>>, vector<1x8x8xf32>,
    %cst_301 = arith.constant dense<0.000000e+00> : vector<8x8xf32>
    %803 = tpu.matmul %799, %785, %cst_301 {dimension_numbers = #tpu.dot_dimension_numbers<[1], [0], [0], [1], [0, 0, 1, 1], [], []>} : vector<8x8xf32>, vector<8x8xf32>, vector<8x8xf32> -> vector<8x8xf32>
    %804 = vector.extract_strided_slice %761 {offsets = [0, 0], sizes = [8, 32], strides = [1, 1]} : vector<32x32xf32> to vector<8x32xf32>
    %cst_302 = arith.constant dense<0.000000e+00> : vector<8x32xf32>
    %805 = tpu.matmul %803, %804, %cst_302 {dimension_numbers = #tpu.dot_dimension_numbers<[1], [0], [0], [1], [0, 0, 1, 1], [], []>} : vector<8x8xf32>, vector<8x32xf32>, vector<8x32xf32> -> vector<8x32xf32>
    %806 = arith.addf %782, %805 : vector<8x32xf32>
    %807 = vector.extract_strided_slice %768 {offsets = [0, 8], sizes = [8, 8], strides = [1, 1]} : vector<16x32xf32> to vector<8x8xf32>
    %808 = vector.extract_strided_slice %773 {offsets = [0, 8], sizes = [8, 8], strides = [1, 1]} : vector<16x32xf32> to vector<8x8xf32>
    %809 = vector.extract_strided_slice %778 {offsets = [0, 8], sizes = [8, 8], strides = [1, 1]} : vector<16x32xf32> to vector<8x8xf32>
    %810 = tpu.transpose %808, [1, 0] : vector<8x8xf32> -> vector<8x8xf32>
    %cst_303 = arith.constant dense<0.000000e+00> : vector<8x8xf32>
    %811 = tpu.matmul %807, %810, %cst_303 {dimension_numbers = #tpu.dot_dimension_numbers<[1], [0], [0], [1], [0, 0, 1, 1], [], []>} : vector<8x8xf32>, vector<8x8xf32>, vector<8x8xf32> -> vector<8x8xf32>
    %cst_304 = arith.constant 0.353553385 : f32
    %812 = vector.broadcast %cst_304 : f32 to vector<8x8xf32>
    %813 = arith.mulf %811, %812 : vector<8x8xf32>
    %814 = arith.addf %813, %781 : vector<8x8xf32>
    %cst_305 = arith.constant dense<0xFF800000> : vector<8xf32>
    %815 = vector.multi_reduction <maximumf>, %814, %cst_305 [1] : vector<8x8xf32> to vector<8xf32>
    %816 = vector.shape_cast %815 : vector<8xf32> to vector<8x1xf32>
    %817 = vector.broadcast %816 : vector<8x1xf32> to vector<8x8xf32>
    %818 = arith.subf %814, %817 : vector<8x8xf32>
    %819 = math.exp %818 : vector<8x8xf32>
    %cst_306 = arith.constant dense<0.000000e+00> : vector<8xf32>
    %820 = vector.multi_reduction <add>, %819, %cst_306 [1] : vector<8x8xf32> to vector<8xf32>
    %821 = vector.shape_cast %820 : vector<8xf32> to vector<8x1xf32>
    %822 = vector.broadcast %821 : vector<8x1xf32> to vector<8x8xf32>
    %823 = arith.divf %819, %822 : vector<8x8xf32>
    %c1_307 = arith.constant 1 : index
    %c0_308 = arith.constant 0 : index
    %c0_309 = arith.constant 0 : index
    %824 = vector.load %arg25[%c1_307, %c0_308, %c0_309] : memref<8x8x8xf32, #tpu.memory_space<vmem>>, vector<1x8x8xf32>
    %825 = vector.shape_cast %824 : vector<1x8x8xf32> to vector<8x8xf32>
    %826 = vector.shape_cast %823 : vector<8x8xf32> to vector<1x8x8xf32>
    tpu.vector_store %arg25[%c1_307, %c0_308, %c0_309], %826 {strides = array<i32>} : memref<8x8x8xf32, #tpu.memory_space<vmem>>, vector<1x8x8xf32>,
    %cst_310 = arith.constant dense<0.000000e+00> : vector<8x8xf32>
    %827 = tpu.matmul %823, %809, %cst_310 {dimension_numbers = #tpu.dot_dimension_numbers<[1], [0], [0], [1], [0, 0, 1, 1], [], []>} : vector<8x8xf32>, vector<8x8xf32>, vector<8x8xf32> -> vector<8x8xf32>
    %828 = vector.extract_strided_slice %761 {offsets = [8, 0], sizes = [8, 32], strides = [1, 1]} : vector<32x32xf32> to vector<8x32xf32>
    %cst_311 = arith.constant dense<0.000000e+00> : vector<8x32xf32>
    %829 = tpu.matmul %827, %828, %cst_311 {dimension_numbers = #tpu.dot_dimension_numbers<[1], [0], [0], [1], [0, 0, 1, 1], [], []>} : vector<8x8xf32>, vector<8x32xf32>, vector<8x32xf32> -> vector<8x32xf32>
    %830 = arith.addf %806, %829 : vector<8x32xf32>
    %831 = vector.extract_strided_slice %768 {offsets = [0, 16], sizes = [8, 8], strides = [1, 1]} : vector<16x32xf32> to vector<8x8xf32>
    %832 = vector.extract_strided_slice %773 {offsets = [0, 16], sizes = [8, 8], strides = [1, 1]} : vector<16x32xf32> to vector<8x8xf32>
    %833 = vector.extract_strided_slice %778 {offsets = [0, 16], sizes = [8, 8], strides = [1, 1]} : vector<16x32xf32> to vector<8x8xf32>
    %834 = tpu.transpose %832, [1, 0] : vector<8x8xf32> -> vector<8x8xf32>
    %cst_312 = arith.constant dense<0.000000e+00> : vector<8x8xf32>
    %835 = tpu.matmul %831, %834, %cst_312 {dimension_numbers = #tpu.dot_dimension_numbers<[1], [0], [0], [1], [0, 0, 1, 1], [], []>} : vector<8x8xf32>, vector<8x8xf32>, vector<8x8xf32> -> vector<8x8xf32>
    %cst_313 = arith.constant 0.353553385 : f32
    %836 = vector.broadcast %cst_313 : f32 to vector<8x8xf32>
    %837 = arith.mulf %835, %836 : vector<8x8xf32>
    %838 = arith.addf %837, %781 : vector<8x8xf32>
    %cst_314 = arith.constant dense<0xFF800000> : vector<8xf32>
    %839 = vector.multi_reduction <maximumf>, %838, %cst_314 [1] : vector<8x8xf32> to vector<8xf32>
    %840 = vector.shape_cast %839 : vector<8xf32> to vector<8x1xf32>
    %841 = vector.broadcast %840 : vector<8x1xf32> to vector<8x8xf32>
    %842 = arith.subf %838, %841 : vector<8x8xf32>
    %843 = math.exp %842 : vector<8x8xf32>
    %cst_315 = arith.constant dense<0.000000e+00> : vector<8xf32>
    %844 = vector.multi_reduction <add>, %843, %cst_315 [1] : vector<8x8xf32> to vector<8xf32>
    %845 = vector.shape_cast %844 : vector<8xf32> to vector<8x1xf32>
    %846 = vector.broadcast %845 : vector<8x1xf32> to vector<8x8xf32>
    %847 = arith.divf %843, %846 : vector<8x8xf32>
    %c2 = arith.constant 2 : index
    %c0_316 = arith.constant 0 : index
    %c0_317 = arith.constant 0 : index
    %848 = vector.load %arg25[%c2, %c0_316, %c0_317] : memref<8x8x8xf32, #tpu.memory_space<vmem>>, vector<1x8x8xf32>
    %849 = vector.shape_cast %848 : vector<1x8x8xf32> to vector<8x8xf32>
    %850 = vector.shape_cast %847 : vector<8x8xf32> to vector<1x8x8xf32>
    tpu.vector_store %arg25[%c2, %c0_316, %c0_317], %850 {strides = array<i32>} : memref<8x8x8xf32, #tpu.memory_space<vmem>>, vector<1x8x8xf32>,
    %cst_318 = arith.constant dense<0.000000e+00> : vector<8x8xf32>
    %851 = tpu.matmul %847, %833, %cst_318 {dimension_numbers = #tpu.dot_dimension_numbers<[1], [0], [0], [1], [0, 0, 1, 1], [], []>} : vector<8x8xf32>, vector<8x8xf32>, vector<8x8xf32> -> vector<8x8xf32>
    %852 = vector.extract_strided_slice %761 {offsets = [16, 0], sizes = [8, 32], strides = [1, 1]} : vector<32x32xf32> to vector<8x32xf32>
    %cst_319 = arith.constant dense<0.000000e+00> : vector<8x32xf32>
    %853 = tpu.matmul %851, %852, %cst_319 {dimension_numbers = #tpu.dot_dimension_numbers<[1], [0], [0], [1], [0, 0, 1, 1], [], []>} : vector<8x8xf32>, vector<8x32xf32>, vector<8x32xf32> -> vector<8x32xf32>
    %854 = arith.addf %830, %853 : vector<8x32xf32>
    %855 = vector.extract_strided_slice %768 {offsets = [0, 24], sizes = [8, 8], strides = [1, 1]} : vector<16x32xf32> to vector<8x8xf32>
    %856 = vector.extract_strided_slice %773 {offsets = [0, 24], sizes = [8, 8], strides = [1, 1]} : vector<16x32xf32> to vector<8x8xf32>
    %857 = vector.extract_strided_slice %778 {offsets = [0, 24], sizes = [8, 8], strides = [1, 1]} : vector<16x32xf32> to vector<8x8xf32>
    %858 = tpu.transpose %856, [1, 0] : vector<8x8xf32> -> vector<8x8xf32>
    %cst_320 = arith.constant dense<0.000000e+00> : vector<8x8xf32>
    %859 = tpu.matmul %855, %858, %cst_320 {dimension_numbers = #tpu.dot_dimension_numbers<[1], [0], [0], [1], [0, 0, 1, 1], [], []>} : vector<8x8xf32>, vector<8x8xf32>, vector<8x8xf32> -> vector<8x8xf32>
    %cst_321 = arith.constant 0.353553385 : f32
    %860 = vector.broadcast %cst_321 : f32 to vector<8x8xf32>
    %861 = arith.mulf %859, %860 : vector<8x8xf32>
    %862 = arith.addf %861, %781 : vector<8x8xf32>
    %cst_322 = arith.constant dense<0xFF800000> : vector<8xf32>
    %863 = vector.multi_reduction <maximumf>, %862, %cst_322 [1] : vector<8x8xf32> to vector<8xf32>
    %864 = vector.shape_cast %863 : vector<8xf32> to vector<8x1xf32>
    %865 = vector.broadcast %864 : vector<8x1xf32> to vector<8x8xf32>
    %866 = arith.subf %862, %865 : vector<8x8xf32>
    %867 = math.exp %866 : vector<8x8xf32>
    %cst_323 = arith.constant dense<0.000000e+00> : vector<8xf32>
    %868 = vector.multi_reduction <add>, %867, %cst_323 [1] : vector<8x8xf32> to vector<8xf32>
    %869 = vector.shape_cast %868 : vector<8xf32> to vector<8x1xf32>
    %870 = vector.broadcast %869 : vector<8x1xf32> to vector<8x8xf32>
    %871 = arith.divf %867, %870 : vector<8x8xf32>
    %c3 = arith.constant 3 : index
    %c0_324 = arith.constant 0 : index
    %c0_325 = arith.constant 0 : index
    %872 = vector.load %arg25[%c3, %c0_324, %c0_325] : memref<8x8x8xf32, #tpu.memory_space<vmem>>, vector<1x8x8xf32>
    %873 = vector.shape_cast %872 : vector<1x8x8xf32> to vector<8x8xf32>
    %874 = vector.shape_cast %871 : vector<8x8xf32> to vector<1x8x8xf32>
    tpu.vector_store %arg25[%c3, %c0_324, %c0_325], %874 {strides = array<i32>} : memref<8x8x8xf32, #tpu.memory_space<vmem>>, vector<1x8x8xf32>,
    %cst_326 = arith.constant dense<0.000000e+00> : vector<8x8xf32>
    %875 = tpu.matmul %871, %857, %cst_326 {dimension_numbers = #tpu.dot_dimension_numbers<[1], [0], [0], [1], [0, 0, 1, 1], [], []>} : vector<8x8xf32>, vector<8x8xf32>, vector<8x8xf32> -> vector<8x8xf32>
    %876 = vector.extract_strided_slice %761 {offsets = [24, 0], sizes = [8, 32], strides = [1, 1]} : vector<32x32xf32> to vector<8x32xf32>
    %cst_327 = arith.constant dense<0.000000e+00> : vector<8x32xf32>
    %877 = tpu.matmul %875, %876, %cst_327 {dimension_numbers = #tpu.dot_dimension_numbers<[1], [0], [0], [1], [0, 0, 1, 1], [], []>} : vector<8x8xf32>, vector<8x32xf32>, vector<8x32xf32> -> vector<8x32xf32>
    %878 = arith.addf %854, %877 : vector<8x32xf32>
    %879 = vector.broadcast %763 : vector<1x32xf32> to vector<8x32xf32>
    %880 = arith.addf %878, %879 : vector<8x32xf32>
    %c0_328 = arith.constant 0 : index
    %c0_329 = arith.constant 0 : index
    %881 = vector.load %arg26[%c0_328, %c0_329] : memref<16x32xf32, #tpu.memory_space<vmem>>, vector<8x32xf32>
    tpu.vector_store %arg26[%c0_328, %c0_329], %880 {strides = array<i32>} : memref<16x32xf32, #tpu.memory_space<vmem>>, vector<8x32xf32>,
    %882 = vector.extract_strided_slice %3 {offsets = [1, 0], sizes = [1, 8], strides = [1, 1]} : vector<2x8xf32> to vector<1x8xf32>
    %883 = vector.shape_cast %882 : vector<1x8xf32> to vector<1x8xf32>
    %884 = vector.broadcast %883 : vector<1x8xf32> to vector<8x8xf32>
    %cst_330 = arith.constant 0.000000e+00 : f32
    %885 = vector.broadcast %cst_330 : f32 to vector<8x32xf32>
    %886 = vector.extract_strided_slice %768 {offsets = [8, 0], sizes = [8, 8], strides = [1, 1]} : vector<16x32xf32> to vector<8x8xf32>
    %887 = vector.extract_strided_slice %773 {offsets = [8, 0], sizes = [8, 8], strides = [1, 1]} : vector<16x32xf32> to vector<8x8xf32>
    %888 = vector.extract_strided_slice %778 {offsets = [8, 0], sizes = [8, 8], strides = [1, 1]} : vector<16x32xf32> to vector<8x8xf32>
    %889 = tpu.transpose %887, [1, 0] : vector<8x8xf32> -> vector<8x8xf32>
    %cst_331 = arith.constant dense<0.000000e+00> : vector<8x8xf32>
    %890 = tpu.matmul %886, %889, %cst_331 {dimension_numbers = #tpu.dot_dimension_numbers<[1], [0], [0], [1], [0, 0, 1, 1], [], []>} : vector<8x8xf32>, vector<8x8xf32>, vector<8x8xf32> -> vector<8x8xf32>
    %cst_332 = arith.constant 0.353553385 : f32
    %891 = vector.broadcast %cst_332 : f32 to vector<8x8xf32>
    %892 = arith.mulf %890, %891 : vector<8x8xf32>
    %893 = arith.addf %892, %884 : vector<8x8xf32>
    %cst_333 = arith.constant dense<0xFF800000> : vector<8xf32>
    %894 = vector.multi_reduction <maximumf>, %893, %cst_333 [1] : vector<8x8xf32> to vector<8xf32>
    %895 = vector.shape_cast %894 : vector<8xf32> to vector<8x1xf32>
    %896 = vector.broadcast %895 : vector<8x1xf32> to vector<8x8xf32>
    %897 = arith.subf %893, %896 : vector<8x8xf32>
    %898 = math.exp %897 : vector<8x8xf32>
    %cst_334 = arith.constant dense<0.000000e+00> : vector<8xf32>
    %899 = vector.multi_reduction <add>, %898, %cst_334 [1] : vector<8x8xf32> to vector<8xf32>
    %900 = vector.shape_cast %899 : vector<8xf32> to vector<8x1xf32>
    %901 = vector.broadcast %900 : vector<8x1xf32> to vector<8x8xf32>
    %902 = arith.divf %898, %901 : vector<8x8xf32>
    %c4 = arith.constant 4 : index
    %c0_335 = arith.constant 0 : index
    %c0_336 = arith.constant 0 : index
    %903 = vector.load %arg25[%c4, %c0_335, %c0_336] : memref<8x8x8xf32, #tpu.memory_space<vmem>>, vector<1x8x8xf32>
    %904 = vector.shape_cast %903 : vector<1x8x8xf32> to vector<8x8xf32>
    %905 = vector.shape_cast %902 : vector<8x8xf32> to vector<1x8x8xf32>
    tpu.vector_store %arg25[%c4, %c0_335, %c0_336], %905 {strides = array<i32>} : memref<8x8x8xf32, #tpu.memory_space<vmem>>, vector<1x8x8xf32>,
    %cst_337 = arith.constant dense<0.000000e+00> : vector<8x8xf32>
    %906 = tpu.matmul %902, %888, %cst_337 {dimension_numbers = #tpu.dot_dimension_numbers<[1], [0], [0], [1], [0, 0, 1, 1], [], []>} : vector<8x8xf32>, vector<8x8xf32>, vector<8x8xf32> -> vector<8x8xf32>
    %907 = vector.extract_strided_slice %761 {offsets = [0, 0], sizes = [8, 32], strides = [1, 1]} : vector<32x32xf32> to vector<8x32xf32>
    %cst_338 = arith.constant dense<0.000000e+00> : vector<8x32xf32>
    %908 = tpu.matmul %906, %907, %cst_338 {dimension_numbers = #tpu.dot_dimension_numbers<[1], [0], [0], [1], [0, 0, 1, 1], [], []>} : vector<8x8xf32>, vector<8x32xf32>, vector<8x32xf32> -> vector<8x32xf32>
    %909 = arith.addf %885, %908 : vector<8x32xf32>
    %910 = vector.extract_strided_slice %768 {offsets = [8, 8], sizes = [8, 8], strides = [1, 1]} : vector<16x32xf32> to vector<8x8xf32>
    %911 = vector.extract_strided_slice %773 {offsets = [8, 8], sizes = [8, 8], strides = [1, 1]} : vector<16x32xf32> to vector<8x8xf32>
    %912 = vector.extract_strided_slice %778 {offsets = [8, 8], sizes = [8, 8], strides = [1, 1]} : vector<16x32xf32> to vector<8x8xf32>
    %913 = tpu.transpose %911, [1, 0] : vector<8x8xf32> -> vector<8x8xf32>
    %cst_339 = arith.constant dense<0.000000e+00> : vector<8x8xf32>
    %914 = tpu.matmul %910, %913, %cst_339 {dimension_numbers = #tpu.dot_dimension_numbers<[1], [0], [0], [1], [0, 0, 1, 1], [], []>} : vector<8x8xf32>, vector<8x8xf32>, vector<8x8xf32> -> vector<8x8xf32>
    %cst_340 = arith.constant 0.353553385 : f32
    %915 = vector.broadcast %cst_340 : f32 to vector<8x8xf32>
    %916 = arith.mulf %914, %915 : vector<8x8xf32>
    %917 = arith.addf %916, %884 : vector<8x8xf32>
    %cst_341 = arith.constant dense<0xFF800000> : vector<8xf32>
    %918 = vector.multi_reduction <maximumf>, %917, %cst_341 [1] : vector<8x8xf32> to vector<8xf32>
    %919 = vector.shape_cast %918 : vector<8xf32> to vector<8x1xf32>
    %920 = vector.broadcast %919 : vector<8x1xf32> to vector<8x8xf32>
    %921 = arith.subf %917, %920 : vector<8x8xf32>
    %922 = math.exp %921 : vector<8x8xf32>
    %cst_342 = arith.constant dense<0.000000e+00> : vector<8xf32>
    %923 = vector.multi_reduction <add>, %922, %cst_342 [1] : vector<8x8xf32> to vector<8xf32>
    %924 = vector.shape_cast %923 : vector<8xf32> to vector<8x1xf32>
    %925 = vector.broadcast %924 : vector<8x1xf32> to vector<8x8xf32>
    %926 = arith.divf %922, %925 : vector<8x8xf32>
    %c5 = arith.constant 5 : index
    %c0_343 = arith.constant 0 : index
    %c0_344 = arith.constant 0 : index
    %927 = vector.load %arg25[%c5, %c0_343, %c0_344] : memref<8x8x8xf32, #tpu.memory_space<vmem>>, vector<1x8x8xf32>
    %928 = vector.shape_cast %927 : vector<1x8x8xf32> to vector<8x8xf32>
    %929 = vector.shape_cast %926 : vector<8x8xf32> to vector<1x8x8xf32>
    tpu.vector_store %arg25[%c5, %c0_343, %c0_344], %929 {strides = array<i32>} : memref<8x8x8xf32, #tpu.memory_space<vmem>>, vector<1x8x8xf32>,
    %cst_345 = arith.constant dense<0.000000e+00> : vector<8x8xf32>
    %930 = tpu.matmul %926, %912, %cst_345 {dimension_numbers = #tpu.dot_dimension_numbers<[1], [0], [0], [1], [0, 0, 1, 1], [], []>} : vector<8x8xf32>, vector<8x8xf32>, vector<8x8xf32> -> vector<8x8xf32>
    %931 = vector.extract_strided_slice %761 {offsets = [8, 0], sizes = [8, 32], strides = [1, 1]} : vector<32x32xf32> to vector<8x32xf32>
    %cst_346 = arith.constant dense<0.000000e+00> : vector<8x32xf32>
    %932 = tpu.matmul %930, %931, %cst_346 {dimension_numbers = #tpu.dot_dimension_numbers<[1], [0], [0], [1], [0, 0, 1, 1], [], []>} : vector<8x8xf32>, vector<8x32xf32>, vector<8x32xf32> -> vector<8x32xf32>
    %933 = arith.addf %909, %932 : vector<8x32xf32>
    %934 = vector.extract_strided_slice %768 {offsets = [8, 16], sizes = [8, 8], strides = [1, 1]} : vector<16x32xf32> to vector<8x8xf32>
    %935 = vector.extract_strided_slice %773 {offsets = [8, 16], sizes = [8, 8], strides = [1, 1]} : vector<16x32xf32> to vector<8x8xf32>
    %936 = vector.extract_strided_slice %778 {offsets = [8, 16], sizes = [8, 8], strides = [1, 1]} : vector<16x32xf32> to vector<8x8xf32>
    %937 = tpu.transpose %935, [1, 0] : vector<8x8xf32> -> vector<8x8xf32>
    %cst_347 = arith.constant dense<0.000000e+00> : vector<8x8xf32>
    %938 = tpu.matmul %934, %937, %cst_347 {dimension_numbers = #tpu.dot_dimension_numbers<[1], [0], [0], [1], [0, 0, 1, 1], [], []>} : vector<8x8xf32>, vector<8x8xf32>, vector<8x8xf32> -> vector<8x8xf32>
    %cst_348 = arith.constant 0.353553385 : f32
    %939 = vector.broadcast %cst_348 : f32 to vector<8x8xf32>
    %940 = arith.mulf %938, %939 : vector<8x8xf32>
    %941 = arith.addf %940, %884 : vector<8x8xf32>
    %cst_349 = arith.constant dense<0xFF800000> : vector<8xf32>
    %942 = vector.multi_reduction <maximumf>, %941, %cst_349 [1] : vector<8x8xf32> to vector<8xf32>
    %943 = vector.shape_cast %942 : vector<8xf32> to vector<8x1xf32>
    %944 = vector.broadcast %943 : vector<8x1xf32> to vector<8x8xf32>
    %945 = arith.subf %941, %944 : vector<8x8xf32>
    %946 = math.exp %945 : vector<8x8xf32>
    %cst_350 = arith.constant dense<0.000000e+00> : vector<8xf32>
    %947 = vector.multi_reduction <add>, %946, %cst_350 [1] : vector<8x8xf32> to vector<8xf32>
    %948 = vector.shape_cast %947 : vector<8xf32> to vector<8x1xf32>
    %949 = vector.broadcast %948 : vector<8x1xf32> to vector<8x8xf32>
    %950 = arith.divf %946, %949 : vector<8x8xf32>
    %c6 = arith.constant 6 : index
    %c0_351 = arith.constant 0 : index
    %c0_352 = arith.constant 0 : index
    %951 = vector.load %arg25[%c6, %c0_351, %c0_352] : memref<8x8x8xf32, #tpu.memory_space<vmem>>, vector<1x8x8xf32>
    %952 = vector.shape_cast %951 : vector<1x8x8xf32> to vector<8x8xf32>
    %953 = vector.shape_cast %950 : vector<8x8xf32> to vector<1x8x8xf32>
    tpu.vector_store %arg25[%c6, %c0_351, %c0_352], %953 {strides = array<i32>} : memref<8x8x8xf32, #tpu.memory_space<vmem>>, vector<1x8x8xf32>,
    %cst_353 = arith.constant dense<0.000000e+00> : vector<8x8xf32>
    %954 = tpu.matmul %950, %936, %cst_353 {dimension_numbers = #tpu.dot_dimension_numbers<[1], [0], [0], [1], [0, 0, 1, 1], [], []>} : vector<8x8xf32>, vector<8x8xf32>, vector<8x8xf32> -> vector<8x8xf32>
    %955 = vector.extract_strided_slice %761 {offsets = [16, 0], sizes = [8, 32], strides = [1, 1]} : vector<32x32xf32> to vector<8x32xf32>
    %cst_354 = arith.constant dense<0.000000e+00> : vector<8x32xf32>
    %956 = tpu.matmul %954, %955, %cst_354 {dimension_numbers = #tpu.dot_dimension_numbers<[1], [0], [0], [1], [0, 0, 1, 1], [], []>} : vector<8x8xf32>, vector<8x32xf32>, vector<8x32xf32> -> vector<8x32xf32>
    %957 = arith.addf %933, %956 : vector<8x32xf32>
    %958 = vector.extract_strided_slice %768 {offsets = [8, 24], sizes = [8, 8], strides = [1, 1]} : vector<16x32xf32> to vector<8x8xf32>
    %959 = vector.extract_strided_slice %773 {offsets = [8, 24], sizes = [8, 8], strides = [1, 1]} : vector<16x32xf32> to vector<8x8xf32>
    %960 = vector.extract_strided_slice %778 {offsets = [8, 24], sizes = [8, 8], strides = [1, 1]} : vector<16x32xf32> to vector<8x8xf32>
    %961 = tpu.transpose %959, [1, 0] : vector<8x8xf32> -> vector<8x8xf32>
    %cst_355 = arith.constant dense<0.000000e+00> : vector<8x8xf32>
    %962 = tpu.matmul %958, %961, %cst_355 {dimension_numbers = #tpu.dot_dimension_numbers<[1], [0], [0], [1], [0, 0, 1, 1], [], []>} : vector<8x8xf32>, vector<8x8xf32>, vector<8x8xf32> -> vector<8x8xf32>
    %cst_356 = arith.constant 0.353553385 : f32
    %963 = vector.broadcast %cst_356 : f32 to vector<8x8xf32>
    %964 = arith.mulf %962, %963 : vector<8x8xf32>
    %965 = arith.addf %964, %884 : vector<8x8xf32>
    %cst_357 = arith.constant dense<0xFF800000> : vector<8xf32>
    %966 = vector.multi_reduction <maximumf>, %965, %cst_357 [1] : vector<8x8xf32> to vector<8xf32>
    %967 = vector.shape_cast %966 : vector<8xf32> to vector<8x1xf32>
    %968 = vector.broadcast %967 : vector<8x1xf32> to vector<8x8xf32>
    %969 = arith.subf %965, %968 : vector<8x8xf32>
    %970 = math.exp %969 : vector<8x8xf32>
    %cst_358 = arith.constant dense<0.000000e+00> : vector<8xf32>
    %971 = vector.multi_reduction <add>, %970, %cst_358 [1] : vector<8x8xf32> to vector<8xf32>
    %972 = vector.shape_cast %971 : vector<8xf32> to vector<8x1xf32>
    %973 = vector.broadcast %972 : vector<8x1xf32> to vector<8x8xf32>
    %974 = arith.divf %970, %973 : vector<8x8xf32>
    %c7 = arith.constant 7 : index
    %c0_359 = arith.constant 0 : index
    %c0_360 = arith.constant 0 : index
    %975 = vector.load %arg25[%c7, %c0_359, %c0_360] : memref<8x8x8xf32, #tpu.memory_space<vmem>>, vector<1x8x8xf32>
    %976 = vector.shape_cast %975 : vector<1x8x8xf32> to vector<8x8xf32>
    %977 = vector.shape_cast %974 : vector<8x8xf32> to vector<1x8x8xf32>
    tpu.vector_store %arg25[%c7, %c0_359, %c0_360], %977 {strides = array<i32>} : memref<8x8x8xf32, #tpu.memory_space<vmem>>, vector<1x8x8xf32>,
    %cst_361 = arith.constant dense<0.000000e+00> : vector<8x8xf32>
    %978 = tpu.matmul %974, %960, %cst_361 {dimension_numbers = #tpu.dot_dimension_numbers<[1], [0], [0], [1], [0, 0, 1, 1], [], []>} : vector<8x8xf32>, vector<8x8xf32>, vector<8x8xf32> -> vector<8x8xf32>
    %979 = vector.extract_strided_slice %761 {offsets = [24, 0], sizes = [8, 32], strides = [1, 1]} : vector<32x32xf32> to vector<8x32xf32>
    %cst_362 = arith.constant dense<0.000000e+00> : vector<8x32xf32>
    %980 = tpu.matmul %978, %979, %cst_362 {dimension_numbers = #tpu.dot_dimension_numbers<[1], [0], [0], [1], [0, 0, 1, 1], [], []>} : vector<8x8xf32>, vector<8x32xf32>, vector<8x32xf32> -> vector<8x32xf32>
    %981 = arith.addf %957, %980 : vector<8x32xf32>
    %982 = vector.broadcast %763 : vector<1x32xf32> to vector<8x32xf32>
    %983 = arith.addf %981, %982 : vector<8x32xf32>
    %c8_363 = arith.constant 8 : index
    %c0_364 = arith.constant 0 : index
    %984 = vector.load %arg26[%c8_363, %c0_364] : memref<16x32xf32, #tpu.memory_space<vmem>>, vector<8x32xf32>
    tpu.vector_store %arg26[%c8_363, %c0_364], %983 {strides = array<i32>} : memref<16x32xf32, #tpu.memory_space<vmem>>, vector<8x32xf32>,
    %c0_365 = arith.constant 0 : index
    %c0_366 = arith.constant 0 : index
    %985 = vector.load %arg26[%c0_365, %c0_366] : memref<16x32xf32, #tpu.memory_space<vmem>>, vector<16x32xf32>
    %986 = arith.addf %755, %985 : vector<16x32xf32>
    %c1_367 = arith.constant 1 : index
    %c0_368 = arith.constant 0 : index
    %c0_369 = arith.constant 0 : index
    %987 = vector.load %arg14[%c1_367, %c0_368, %c0_369] : memref<2x1x32xf32, #tpu.memory_space<vmem>>, vector<1x1x32xf32>
    %988 = vector.shape_cast %987 : vector<1x1x32xf32> to vector<1x32xf32>
    %c1_370 = arith.constant 1 : index
    %c0_371 = arith.constant 0 : index
    %c0_372 = arith.constant 0 : index
    %989 = vector.load %arg15[%c1_370, %c0_371, %c0_372] : memref<2x1x32xf32, #tpu.memory_space<vmem>>, vector<1x1x32xf32>
    %990 = vector.shape_cast %989 : vector<1x1x32xf32> to vector<1x32xf32>
    %cst_373 = arith.constant dense<0.000000e+00> : vector<16xf32>
    %991 = vector.multi_reduction <add>, %986, %cst_373 [1] : vector<16x32xf32> to vector<16xf32>
    %992 = vector.shape_cast %991 : vector<16xf32> to vector<16x1xf32>
    %cst_374 = arith.constant 3.200000e+01 : f32
    %993 = vector.broadcast %cst_374 : f32 to vector<16x1xf32>
    %994 = arith.divf %992, %993 : vector<16x1xf32>
    %995 = vector.broadcast %994 : vector<16x1xf32> to vector<16x32xf32>
    %996 = arith.subf %986, %995 : vector<16x32xf32>
    %997 = arith.mulf %996, %996 : vector<16x32xf32>
    %cst_375 = arith.constant dense<0.000000e+00> : vector<16xf32>
    %998 = vector.multi_reduction <add>, %997, %cst_375 [1] : vector<16x32xf32> to vector<16xf32>
    %999 = vector.shape_cast %998 : vector<16xf32> to vector<16x1xf32>
    %cst_376 = arith.constant 3.200000e+01 : f32
    %1000 = vector.broadcast %cst_376 : f32 to vector<16x1xf32>
    %1001 = arith.divf %999, %1000 : vector<16x1xf32>
    %1002 = vector.broadcast %994 : vector<16x1xf32> to vector<16x32xf32>
    %1003 = arith.subf %986, %1002 : vector<16x32xf32>
    %cst_377 = arith.constant 9.99999974E-6 : f32
    %1004 = vector.broadcast %cst_377 : f32 to vector<16x1xf32>
    %1005 = arith.addf %1001, %1004 : vector<16x1xf32>
    %1006 = math.rsqrt %1005 : vector<16x1xf32>
    %1007 = vector.broadcast %1006 : vector<16x1xf32> to vector<16x32xf32>
    %1008 = arith.mulf %1003, %1007 : vector<16x32xf32>
    %1009 = vector.broadcast %988 : vector<1x32xf32> to vector<16x32xf32>
    %1010 = arith.mulf %1008, %1009 : vector<16x32xf32>
    %1011 = vector.broadcast %990 : vector<1x32xf32> to vector<16x32xf32>
    %1012 = arith.addf %1010, %1011 : vector<16x32xf32>
    %c1_378 = arith.constant 1 : index
    %c0_379 = arith.constant 0 : index
    %c0_380 = arith.constant 0 : index
    %1013 = vector.load %arg18[%c1_378, %c0_379, %c0_380] : memref<2x32x64xf32, #tpu.memory_space<vmem>>, vector<1x32x64xf32>
    %1014 = vector.shape_cast %1013 : vector<1x32x64xf32> to vector<32x64xf32>
    %c1_381 = arith.constant 1 : index
    %c0_382 = arith.constant 0 : index
    %c0_383 = arith.constant 0 : index
    %1015 = vector.load %arg19[%c1_381, %c0_382, %c0_383] : memref<2x1x64xf32, #tpu.memory_space<vmem>>, vector<1x1x64xf32>
    %1016 = vector.shape_cast %1015 : vector<1x1x64xf32> to vector<1x64xf32>
    %c1_384 = arith.constant 1 : index
    %c0_385 = arith.constant 0 : index
    %c0_386 = arith.constant 0 : index
    %1017 = vector.load %arg20[%c1_384, %c0_385, %c0_386] : memref<2x64x32xf32, #tpu.memory_space<vmem>>, vector<1x64x32xf32>
    %1018 = vector.shape_cast %1017 : vector<1x64x32xf32> to vector<64x32xf32>
    %c1_387 = arith.constant 1 : index
    %c0_388 = arith.constant 0 : index
    %c0_389 = arith.constant 0 : index
    %1019 = vector.load %arg21[%c1_387, %c0_388, %c0_389] : memref<2x1x32xf32, #tpu.memory_space<vmem>>, vector<1x1x32xf32>
    %1020 = vector.shape_cast %1019 : vector<1x1x32xf32> to vector<1x32xf32>
    %cst_390 = arith.constant dense<0.000000e+00> : vector<16x64xf32>
    %1021 = tpu.matmul %1012, %1014, %cst_390 {dimension_numbers = #tpu.dot_dimension_numbers<[1], [0], [0], [1], [0, 0, 1, 1], [], []>} : vector<16x32xf32>, vector<32x64xf32>, vector<16x64xf32> -> vector<16x64xf32>
    %1022 = vector.broadcast %1016 : vector<1x64xf32> to vector<16x64xf32>
    %1023 = arith.addf %1021, %1022 : vector<16x64xf32>
    %cst_391 = arith.constant 0.000000e+00 : f32
    %1024 = vector.broadcast %cst_391 : f32 to vector<16x64xf32>
    %1025 = arith.maximumf %1023, %1024 : vector<16x64xf32>
    %cst_392 = arith.constant dense<0.000000e+00> : vector<16x32xf32>
    %1026 = tpu.matmul %1025, %1018, %cst_392 {dimension_numbers = #tpu.dot_dimension_numbers<[1], [0], [0], [1], [0, 0, 1, 1], [], []>} : vector<16x64xf32>, vector<64x32xf32>, vector<16x32xf32> -> vector<16x32xf32>
    %1027 = vector.broadcast %1020 : vector<1x32xf32> to vector<16x32xf32>
    %1028 = arith.addf %1026, %1027 : vector<16x32xf32>
    %1029 = arith.addf %1012, %1028 : vector<16x32xf32>
    %c1_393 = arith.constant 1 : index
    %c0_394 = arith.constant 0 : index
    %c0_395 = arith.constant 0 : index
    %1030 = vector.load %arg16[%c1_393, %c0_394, %c0_395] : memref<2x1x32xf32, #tpu.memory_space<vmem>>, vector<1x1x32xf32>
    %1031 = vector.shape_cast %1030 : vector<1x1x32xf32> to vector<1x32xf32>
    %c1_396 = arith.constant 1 : index
    %c0_397 = arith.constant 0 : index
    %c0_398 = arith.constant 0 : index
    %1032 = vector.load %arg17[%c1_396, %c0_397, %c0_398] : memref<2x1x32xf32, #tpu.memory_space<vmem>>, vector<1x1x32xf32>
    %1033 = vector.shape_cast %1032 : vector<1x1x32xf32> to vector<1x32xf32>
    %cst_399 = arith.constant dense<0.000000e+00> : vector<16xf32>
    %1034 = vector.multi_reduction <add>, %1029, %cst_399 [1] : vector<16x32xf32> to vector<16xf32>
    %1035 = vector.shape_cast %1034 : vector<16xf32> to vector<16x1xf32>
    %cst_400 = arith.constant 3.200000e+01 : f32
    %1036 = vector.broadcast %cst_400 : f32 to vector<16x1xf32>
    %1037 = arith.divf %1035, %1036 : vector<16x1xf32>
    %1038 = vector.broadcast %1037 : vector<16x1xf32> to vector<16x32xf32>
    %1039 = arith.subf %1029, %1038 : vector<16x32xf32>
    %1040 = arith.mulf %1039, %1039 : vector<16x32xf32>
    %cst_401 = arith.constant dense<0.000000e+00> : vector<16xf32>
    %1041 = vector.multi_reduction <add>, %1040, %cst_401 [1] : vector<16x32xf32> to vector<16xf32>
    %1042 = vector.shape_cast %1041 : vector<16xf32> to vector<16x1xf32>
    %cst_402 = arith.constant 3.200000e+01 : f32
    %1043 = vector.broadcast %cst_402 : f32 to vector<16x1xf32>
    %1044 = arith.divf %1042, %1043 : vector<16x1xf32>
    %1045 = vector.broadcast %1037 : vector<16x1xf32> to vector<16x32xf32>
    %1046 = arith.subf %1029, %1045 : vector<16x32xf32>
    %cst_403 = arith.constant 9.99999974E-6 : f32
    %1047 = vector.broadcast %cst_403 : f32 to vector<16x1xf32>
    %1048 = arith.addf %1044, %1047 : vector<16x1xf32>
    %1049 = math.rsqrt %1048 : vector<16x1xf32>
    %1050 = vector.broadcast %1049 : vector<16x1xf32> to vector<16x32xf32>
    %1051 = arith.mulf %1046, %1050 : vector<16x32xf32>
    %1052 = vector.broadcast %1031 : vector<1x32xf32> to vector<16x32xf32>
    %1053 = arith.mulf %1051, %1052 : vector<16x32xf32>
    %1054 = vector.broadcast %1033 : vector<1x32xf32> to vector<16x32xf32>
    %1055 = arith.addf %1053, %1054 : vector<16x32xf32>
    %c0_404 = arith.constant 0 : index
    %c0_405 = arith.constant 0 : index
    %1056 = vector.load %arg22[%c0_404, %c0_405] : memref<32x128xf32, #tpu.memory_space<vmem>>, vector<32x128xf32>
    %cst_406 = arith.constant dense<0.000000e+00> : vector<16x128xf32>
    %1057 = tpu.matmul %1055, %1056, %cst_406 {dimension_numbers = #tpu.dot_dimension_numbers<[1], [0], [0], [1], [0, 0, 1, 1], [], []>} : vector<16x32xf32>, vector<32x128xf32>, vector<16x128xf32> -> vector<16x128xf32>
    %c0_407 = arith.constant 0 : index
    %c0_408 = arith.constant 0 : index
    %1058 = vector.load %arg23[%c0_407, %c0_408] : memref<1x128xf32, #tpu.memory_space<vmem>>, vector<1x128xf32>
    %1059 = vector.broadcast %1058 : vector<1x128xf32> to vector<16x128xf32>
    %1060 = arith.addf %1057, %1059 : vector<16x128xf32>
    %c0_409 = arith.constant 0 : index
    %c0_410 = arith.constant 0 : index
    %1061 = vector.load %arg24[%c0_409, %c0_410] : memref<16x128xf32, #tpu.memory_space<vmem>>, vector<16x128xf32>
    tpu.vector_store %arg24[%c0_409, %c0_410], %1060 {strides = array<i32>} : memref<16x128xf32, #tpu.memory_space<vmem>>, vector<16x128xf32>,
    return
  }
}

</mosaic_0001>

<bundles_post_ra>
// kernel: transformer_fwd.2
= control target key start
LH: loop header
LB: loop body
LE: loop exit
PB: predicated region body
PF: predicated region fallthrough
CT: control target
= control target key end

     0   :  { %vm66_vm0 = vcmask 261120   ;;  %s5943_s23 = smov 96   ;;  %s5944_s26 = smov 64   ;;  %v5945_v28 = vmov 0.0   ;;  %vm5946_vm1 = vmmov 0   ;;  %vm336_vm2 = vcmask 64512   ;;  %s6737_s2 = inlined_call_operand.vmem [shape: f32[2,32,96], index: 2, kind: input, shape index: {}]   ;;  %s6738_s0 = inlined_call_operand.vmem [shape: f32[16,32], index: 0, kind: input, shape index: {}]   ;;  %s6739_s3 = inlined_call_operand.vmem [shape: f32[2,1,96], index: 3, kind: input, shape index: {}]   ;;  %s6740_s1 = inlined_call_operand.vmem [shape: f32[2,8], index: 1, kind: input, shape index: {}]   ;;  %s6741_s4 = inlined_call_operand.vmem [shape: f32[2,32,32], index: 4, kind: input, shape index: {}]   ;;  %s6742_s5 = inlined_call_operand.vmem [shape: f32[2,1,32], index: 5, kind: input, shape index: {}]   ;;  %s6743_s6 = inlined_call_operand.vmem [shape: f32[2,1,32], index: 6, kind: input, shape index: {}]   ;;  %s6744_s7 = inlined_call_operand.vmem [shape: f32[2,1,32], index: 7, kind: input, shape index: {}]   ;;  %s6745_s8 = inlined_call_operand.vmem [shape: f32[2,32,64], index: 8, kind: input, shape index: {}]   ;;  %s6746_s10 = inlined_call_operand.vmem [shape: f32[2,64,32], index: 10, kind: input, shape index: {}]   ;;  %s6747_s9 = inlined_call_operand.vmem [shape: f32[2,1,64], index: 9, kind: input, shape index: {}]   ;;  %s6748_s11 = inlined_call_operand.vmem [shape: f32[2,1,32], index: 11, kind: input, shape index: {}]   ;;  %s6749_s12 = inlined_call_operand.vmem [shape: f32[2,1,32], index: 12, kind: input, shape index: {}]   ;;  %s6750_s13 = inlined_call_operand.vmem [shape: f32[2,1,32], index: 13, kind: input, shape index: {}]   ;;  %s6751_s14 = inlined_call_operand.vmem [shape: f32[16,32], index: 14, kind: output, shape index: {}]  }
   0x1   :  { %v50_v0 = vld [vmem:[%s6737_s2] sm:$0xff]  ;;  %v51_v1 = vld [vmem:[%s6737_s2 + $0x8] sm:$0xff]  ;;  %v52_v2 = vld [vmem:[%s6737_s2 + $0x10] sm:$0xff]  ;;  %v332_v39 = vlaneseq  ;;  %s5949_s19 = smov 104   ;;  %vm2425_vm3 = vcmask 523264  }
   0x2   :  { %v5823_v3 = vpack.i.bf16 %v51_v1, %v50_v0  ;;  %v53_v4 = vld [vmem:[%s6737_s2 + $0x18] sm:$0xff]  ;;  %v5720_v5 = vpack.c.bf16 %v51_v1, %v50_v0  ;;  %v6040_v6 = vld [vmem:[%s6738_s0] sm:$0xff]  ;;  %v6059_v10 = vld [vmem:[%s6738_s0 + $0x8] sm:$0xff]  ;;  %s5947_s0 = smov 120  }
   0x3   :  { %v5724_v7 = vpack.c.bf16 %v53_v4, %v52_v2  ;;  %5373 = vmatprep.mubr.msk.f32.mxu1 %vm66_vm0, %v6040_v6  ;;  %5362 = vmatprep.mubr.msk.f32.mxu0 %vm66_vm0, %v6040_v6  ;;  %v5828_v8 = vpack.i.bf16 %v53_v4, %v52_v2  ;;  %v6050_v9 = vld [vmem:[%s6739_s3] ss:$0 sm:$0xff]  ;;  %v6104_v40 = vshrl.u32 %v332_v39, 7 }
   0x4   :  { %5824 = vrot.lane.b32.xlu0 %v5823_v3, %s5943_s23  ;;  %5721 = vmatprep.subr.bf16.mxu0 %v5720_v5  ;;  %v6110_v42 = vld [vmem:[%s6740_s1] sm:$0x3]  ;;  %s5948_s1 = smov 112  }
   0x5   :  { %5723 = vmatpush3.bf16.msra.mxu0 %v5720_v5  ;;  %164 = vrot.lane.b32.xlu1 %v6050_v9, %s5943_s23  ;;  %v334_v41 = vsub.s32 0, %v6104_v40 }
   0x6   :  { %5725 = vmatprep.subr.bf16.mxu0 %v5724_v7 }
   0x7   :  { %v6113_v43 = vrot.slane %v6110_v42, %v334_v41 }
   0x8   :  { %5829 = vrot.lane.b32.xlu0 %v5828_v8, %s5943_s23 }
   0x9   :  { %5727 = vmatpush3.bf16.msra.mxu0 %v5724_v7  ;;  %5834 = vrot.lane.b32.xlu1 %v5823_v3, %s5944_s26  ;;  %v6141_v7 = vld [vmem:[%s6741_s4 + $0x8] sm:$0xff] }
   0xc   :  { %5363 = vmatmul.mubr.msk.f32.vlgmr.msra.gmra.mrb[0].mxu0 %vm66_vm0, %v6059_v10  ;;  %5839 = vrot.lane.b32.xlu0 %v5828_v8, %s5944_s26 }
   0xd   :  { %5384 = vmatprep.mubr.msk.f32.mxu0 %vm66_vm0, %v6040_v6 }
  0x76   :  { %v5825_v11 = vpop.permute.xlu0 %5824 }
  0x77   :  { %v5827_v12 = vunpack.i.h.bf16 %v5825_v11  ;;  %v5826_v13 = vunpack.i.l.bf16 %v5825_v11  ;;  %v6066_v14 = vpop.permute.xlu1 %164 }
  0x79   :  { %v5728_v15 = vpack.c.bf16 %v5827_v12, %v5826_v13 }
  0x7a   :  { %v5830_v16 = vpop.permute.xlu0 %5829 }
  0x7b   :  { %v5832_v17 = vunpack.i.h.bf16 %v5830_v16  ;;  %v5831_v18 = vunpack.i.l.bf16 %v5830_v16  ;;  %5729 = vmatprep.subr.bf16.mxu1 %v5728_v15  ;;  %v5835_v19 = vpop.permute.xlu1 %5834 }
  0x7c   :  { %5731 = vmatpush3.bf16.msra.mxu1 %v5728_v15  ;;  %v5837_v20 = vunpack.i.h.bf16 %v5835_v19  ;;  %v5836_v21 = vunpack.i.l.bf16 %v5835_v19  ;;  %v6149_v15 = vld [vmem:[%s6741_s4] sm:$0xff] }
  0x7d   :  { %v5732_v22 = vpack.c.bf16 %v5832_v17, %v5831_v18 }
  0x7e   :  { %v5840_v23 = vpop.permute.xlu0 %5839  ;;  %v5736_v24 = vpack.c.bf16 %v5837_v20, %v5836_v21 }
  0x7f   :  { %5733 = vmatprep.subr.bf16.mxu1 %v5732_v22  ;;  %v5842_v25 = vunpack.i.h.bf16 %v5840_v23  ;;  %v5841_v26 = vunpack.i.l.bf16 %v5840_v23 }
  0x80   :  { %5735 = vmatpush3.bf16.msra.mxu1 %v5732_v22  ;;  %5737 = vmatprep.subr.bf16.mxu0 %v5736_v24 }
  0x81   :  { %v5740_v27 = vpack.c.bf16 %v5842_v25, %v5841_v26  ;;  %5739 = vmatpush3.bf16.msra.mxu0 %v5736_v24  ;;  %5392 = vmatprep.subr.mxu1 %v5945_v28 }
  0x83   :  { %5374 = vmatmul.mubr.msk.f32.vlgmr.msra.gmra.mrb[0].mxu1 %vm66_vm0, %v6059_v10  ;;  %5741 = vmatprep.subr.bf16.mxu0 %v5740_v27 }
  0x84   :  { %5394 = vmatprep.mubr.msk.f32.mxu1 %vm5946_vm1, %v5945_v28 }
  0x85   :  { %5743 = vmatpush3.bf16.msra.mxu0 %v5740_v27 }
  0x86   :  { %5387 = vmatprep.subr.mxu0 %v5945_v28 }
  0x88   :  { %5385 = vmatmul.mubr.msk.f32.vlgmr.msra.gmra.mrb[2].mxu0 %vm66_vm0, %v6059_v10 }
  0x89   :  { %5389 = vmatprep.mubr.msk.f32.mxu0 %vm5946_vm1, %v5945_v28 }
  0xdf   :  { %v6078_v29 = vpop.f32.mrb[0].mxu0 }
  0xe0   :  { %v139_v30 = vpop.f32.mrb[1].mxu0 }
  0xe1   :  { %v6081_v31 = vadd.f32 %v6050_v9, %v139_v30 }
  0xe3   :  { %499 = vrot.lane.b32.xlu0 %v6081_v31, %s5947_s0 }
 0x155   :  { %v500_v38 = vpop.permute.xlu0 %499 }
 0x156   :  { %v6085_v32 = vpop.f32.mrb[0].mxu1 }
 0x157   :  { %v233_v33 = vpop.f32.mrb[1].mxu1 }
 0x158   :  { %v6088_v34 = vadd.f32 %v233_v33, %v6066_v14 }
 0x15a   :  { %501 = vrot.lane.b32.xlu1 %v6088_v34, %s5947_s0  ;;  %5388 = vmatpush3.xpose.msk.msra.mxu0 %vm336_vm2, %v6088_v34 }
 0x15b   :  { %5397 = vmatprep.subr.mxu0 %v5945_v28  ;;  %v5386_v35 = vpop.f32.mrb[2].mxu0 }
 0x15c   :  { %v323_v36 = vpop.f32.mrb[3].mxu0 }
 0x15d   :  { %5390 = vmatmul.mubr.msk.f32.vlgmr.msra.gmra.mrb[4].mxu0 %vm336_vm2, %v6081_v31 }
 0x15e   :  { %5399 = vmatprep.mubr.msk.f32.mxu0 %vm5946_vm1, %v5945_v28 }
 0x1cc   :  { %v502_v37 = vpop.permute.xlu1 %501 }
 0x1cd   :  { %5398 = vmatpush3.xpose.msk.msra.mxu0 %vm336_vm2, %v502_v37 }
 0x1ce   :  { %5407 = vmatprep.subr.mxu0 %v5945_v28 }
 0x1d0   :  { %5400 = vmatmul.mubr.msk.f32.vlgmr.msra.gmra.mrb[6].mxu0 %vm336_vm2, %v500_v38 }
 0x1d1   :  { %5409 = vmatprep.mubr.msk.f32.mxu0 %vm5946_vm1, %v5945_v28  ;;  %5408 = vmatpush3.msra.mxu0 %v6141_v7 }
 0x1d2   :  { %5417 = vmatprep.subr.mxu0 %v5945_v28 }
 0x230   :  { %v409_v44 = vpop.f32.mrb[4].mxu0 }
 0x231   :  { %v413_v45 = vmul.f32 0.35355338, %v409_v44  ;;  %v5391_v46 = vpop.f32.mrb[5].mxu0 }
 0x233   :  { %v414_v47 = vadd.f32 %v413_v45, %v6113_v43 }
 0x235   :  { %v415_v48 = vsel %vm336_vm2, %v414_v47, -inf }
 0x236   :  { %416 = vmax.xlane.f32.xlu1 %v415_v48 }
 0x2a3   :  { %v573_v49 = vpop.f32.mrb[6].mxu0 }
 0x2a4   :  { %v577_v50 = vmul.f32 0.35355338, %v573_v49  ;;  %v5401_v51 = vpop.f32.mrb[7].mxu0  ;;  %v6190_v49 = vld [vmem:[%s6741_s4 + $0x10] sm:$0xff] }
 0x2a6   :  { %v578_v52 = vadd.f32 %v577_v50, %v6113_v43 }
 0x2a8   :  { %v579_v53 = vsel %vm336_vm2, %v578_v52, -inf }
 0x2a9   :  { %580 = vmax.xlane.f32.xlu0 %v579_v53 }
 0x2bf   :  { %254 = vrot.lane.b32.xlu0 %v6050_v9, %s5944_s26 }
 0x2c3   :  { %v417_v54 = vpop.xlane.xlu1 %416  ;;  %815 = vrot.lane.b32.xlu0 %v6088_v34, %s5948_s1 }
 0x2c4   :  { %v418_v55 = vsub.f32 %v414_v47, %v417_v54 }
 0x2c6   :  { %v419_v56 = vmul.f32 1.442695, %v418_v55 }
 0x2c7   :  { %813 = vrot.lane.b32.xlu0 %v6081_v31, %s5948_s1 }
 0x2c8   :  { %5863 = vpow2.f32 %v419_v56 }
 0x2d2   :  { %v5864_v57 = vpop.eup %5863 }
 0x2d3   :  { %v421_v58 = vsel %vm336_vm2, %v5864_v57, 0.0 }
 0x2d4   :  { %422 = vadd.xlane.f32.xlu1 %v421_v58 }
 0x336   :  { %v581_v59 = vpop.xlane.xlu0 %580 }
 0x337   :  { %v582_v60 = vsub.f32 %v578_v52, %v581_v59 }
 0x339   :  { %v583_v61 = vmul.f32 1.442695, %v582_v60 }
 0x33a   :  { %v255_v62 = vpop.permute.xlu0 %254 }
 0x33b   :  { %5865 = vpow2.f32 %v583_v61  ;;  %v6126_v63 = vadd.f32 %v323_v36, %v255_v62  ;;  %v6128_v0 = vadd.f32 %v5386_v35, %v255_v62 }
 0x33d   :  { %5393 = vmatpush3.msra.mxu1 %v6126_v63 }
 0x33e   :  { %5402 = vmatprep.subr.mxu1 %v5945_v28  ;;  %v816_v18 = vpop.permute.xlu0 %815 }
 0x342   :  { %v814_v21 = vpop.permute.xlu0 %813 }
 0x345   :  { %v5866_v1 = vpop.eup %5865 }
 0x346   :  { %v585_v2 = vsel %vm336_vm2, %v5866_v1, 0.0 }
 0x347   :  { %586 = vadd.xlane.f32.xlu1 %v585_v2 }
 0x358   :  { %591 = vrot.lane.b32.xlu1 %v6126_v63, %s5947_s0 }
 0x361   :  { %v423_v3 = vpop.xlane.xlu1 %422 }
 0x362   :  { %5867 = vrcp.f32 %v423_v3 }
 0x36c   :  { %v5868_v4 = vpop.eup %5867 }
 0x36d   :  { %v425_v5 = vmul.f32 %v5868_v4, %v5864_v57  ;;  %v6203_v57 = vadd.f32 %v6078_v29, %v6050_v9  ;;  %v6218_v9 = vld [vmem:[%s6741_s4 + $0x18] sm:$0xff] }
 0x36f   :  { %5395 = vmatmul.mubr.msk.f32.vlgmr.msra.gmra.mrb[2].mxu1 %vm336_vm2, %v425_v5 }
 0x370   :  { %5404 = vmatprep.mubr.msk.f32.mxu1 %vm5946_vm1, %v5945_v28 }
 0x3d4   :  { %v587_v8 = vpop.xlane.xlu1 %586 }
 0x3d5   :  { %5869 = vrcp.f32 %v587_v8 }
 0x3d8   :  { %v592_v11 = vpop.permute.xlu1 %591 }
 0x3d9   :  { %5403 = vmatpush3.msra.mxu1 %v592_v11  ;;  %v1305_v11 = vsub.s32 1, %v6104_v40 }
 0x3da   :  { %5412 = vmatprep.subr.mxu1 %v5945_v28 }
 0x3df   :  { %v5870_v12 = vpop.eup %5869 }
 0x3e0   :  { %v589_v13 = vmul.f32 %v5870_v12, %v5866_v1 }
 0x3e2   :  { %5405 = vmatmul.mubr.msk.f32.vlgmr.msra.gmra.mrb[4].mxu1 %vm336_vm2, %v589_v13 }
 0x3e3   :  { %5413 = vmatpush3.msra.mxu1 %v6149_v15  ;;  %5414 = vmatprep.mubr.msk.f32.mxu1 %vm5946_vm1, %v5945_v28 }
 0x3e4   :  { %5422 = vmatprep.subr.mxu1 %v5945_v28 }
 0x442   :  { %v495_v16 = vpop.f32.mrb[2].mxu1 }
 0x443   :  { %v5396_v17 = vpop.f32.mrb[3].mxu1  ;;  %5415 = vmatmul.mubr.msk.f32.vlgmr.msra.gmra.mrb[6].mxu1 %vm336_vm2, %v495_v16  ;;  %v6246_v16 = vrot.slane %v6110_v42, %v1305_v11 }
 0x444   :  { %5424 = vmatprep.mubr.msk.f32.mxu1 %vm5946_vm1, %v5945_v28 }
 0x4b5   :  { %v663_v19 = vpop.f32.mrb[4].mxu1 }
 0x4b6   :  { %v5406_v20 = vpop.f32.mrb[5].mxu1  ;;  %5410 = vmatmul.mubr.msk.f32.vlgmr.msra.gmra.mrb[8].mxu0 %vm336_vm2, %v663_v19 }
 0x4b7   :  { %5418 = vmatpush3.xpose.msk.msra.mxu0 %vm336_vm2, %v816_v18  ;;  %5419 = vmatprep.mubr.msk.f32.mxu0 %vm5946_vm1, %v5945_v28 }
 0x4b8   :  { %5427 = vmatprep.subr.mxu0 %v5945_v28 }
 0x4ba   :  { %5420 = vmatmul.mubr.msk.f32.vlgmr.msra.gmra.mrb[10].mxu0 %vm336_vm2, %v814_v21 }
 0x4bb   :  { %5429 = vmatprep.mubr.msk.f32.mxu0 %vm5946_vm1, %v5945_v28  ;;  %5428 = vmatpush3.msra.mxu0 %v6190_v49 }
 0x4bc   :  { %5437 = vmatprep.subr.mxu0 %v5945_v28 }
 0x516   :  { %v809_v22 = vpop.f32.mrb[6].mxu1 }
 0x517   :  { %v5416_v23 = vpop.f32.mrb[7].mxu1 }
 0x589   :  { %v736_v24 = vpop.f32.mrb[8].mxu0 }
 0x58a   :  { %v6167_v25 = vadd.f32 %v809_v22, %v736_v24  ;;  %v5411_v26 = vpop.f32.mrb[9].mxu0 }
 0x58d   :  { %v887_v27 = vpop.f32.mrb[10].mxu0 }
 0x58e   :  { %v891_v30 = vmul.f32 0.35355338, %v887_v27  ;;  %v5421_v33 = vpop.f32.mrb[11].mxu0 }
 0x590   :  { %v892_v35 = vadd.f32 %v891_v30, %v6113_v43 }
 0x592   :  { %v893_v36 = vsel %vm336_vm2, %v892_v35, -inf }
 0x593   :  { %894 = vmax.xlane.f32.xlu1 %v893_v36 }
 0x5a4   :  { %1056 = vrot.lane.b32.xlu1 %v6088_v34, %s5949_s19 }
 0x5a8   :  { %1054 = vrot.lane.b32.xlu1 %v6081_v31, %s5949_s19 }
 0x620   :  { %v895_v37 = vpop.xlane.xlu1 %894 }
 0x621   :  { %v896_v38 = vsub.f32 %v892_v35, %v895_v37 }
 0x623   :  { %v897_v39 = vmul.f32 1.442695, %v896_v38 }
 0x624   :  { %v1057_v47 = vpop.permute.xlu1 %1056 }
 0x625   :  { %5871 = vpow2.f32 %v897_v39  ;;  %v6264_v39 = vld [vmem:[%s6742_s5] ss:$0 sm:$0xff] }
 0x628   :  { %v1055_v48 = vpop.permute.xlu1 %1054 }
 0x62f   :  { %v5872_v41 = vpop.eup %5871 }
 0x630   :  { %v899_v44 = vsel %vm336_vm2, %v5872_v41, 0.0 }
 0x631   :  { %900 = vadd.xlane.f32.xlu0 %v899_v44 }
 0x647   :  { %904 = vrot.lane.b32.xlu0 %v6126_v63, %s5948_s1 }
 0x6be   :  { %v901_v45 = vpop.xlane.xlu0 %900 }
 0x6bf   :  { %5873 = vrcp.f32 %v901_v45 }
 0x6c2   :  { %v905_v46 = vpop.permute.xlu0 %904 }
 0x6c3   :  { %5423 = vmatpush3.msra.mxu1 %v905_v46 }
 0x6c4   :  { %5432 = vmatprep.subr.mxu1 %v5945_v28 }
 0x6c9   :  { %v5874_v34 = vpop.eup %5873 }
 0x6ca   :  { %v903_v31 = vmul.f32 %v5874_v34, %v5872_v41 }
 0x6cc   :  { %5425 = vmatmul.mubr.msk.f32.vlgmr.msra.gmra.mrb[8].mxu1 %vm336_vm2, %v903_v31 }
 0x6cd   :  { %5433 = vmatpush3.xpose.msk.msra.mxu1 %vm336_vm2, %v1057_v47  ;;  %5434 = vmatprep.mubr.msk.f32.mxu1 %vm5946_vm1, %v5945_v28 }
 0x6ce   :  { %5442 = vmatprep.subr.mxu1 %v5945_v28 }
 0x6d0   :  { %5435 = vmatmul.mubr.msk.f32.vlgmr.msra.gmra.mrb[10].mxu1 %vm336_vm2, %v1055_v48 }
 0x6d1   :  { %5444 = vmatprep.mubr.msk.f32.mxu1 %vm5946_vm1, %v5945_v28  ;;  %5443 = vmatpush3.msra.mxu1 %v6218_v9 }
 0x6d2   :  { %5452 = vmatprep.subr.mxu1 %v5945_v28 }
 0x79f   :  { %v976_v50 = vpop.f32.mrb[8].mxu1 }
 0x7a0   :  { %v5426_v51 = vpop.f32.mrb[9].mxu1  ;;  %5430 = vmatmul.mubr.msk.f32.vlgmr.msra.gmra.mrb[12].mxu0 %vm336_vm2, %v976_v50 }
 0x7a1   :  { %5439 = vmatprep.mubr.msk.f32.mxu0 %vm5946_vm1, %v5945_v28 }
 0x7a3   :  { %v1128_v52 = vpop.f32.mrb[10].mxu1 }
 0x7a4   :  { %v1132_v53 = vmul.f32 0.35355338, %v1128_v52  ;;  %v5436_v54 = vpop.f32.mrb[11].mxu1 }
 0x7a6   :  { %v1133_v55 = vadd.f32 %v1132_v53, %v6113_v43 }
 0x7a8   :  { %v1134_v56 = vsel %vm336_vm2, %v1133_v55, -inf }
 0x7a9   :  { %1135 = vmax.xlane.f32.xlu0 %v1134_v56 }
 0x7bf   :  { %1145 = vrot.lane.b32.xlu0 %v6126_v63, %s5949_s19  ;;  %v6211_v63 = vadd.f32 %v6085_v32, %v6066_v14 }
 0x7c3   :  { %1469 = vrot.lane.b32.xlu0 %v6203_v57, %s5947_s0 }
 0x836   :  { %v1136_v58 = vpop.xlane.xlu0 %1135 }
 0x837   :  { %v1137_v59 = vsub.f32 %v1133_v55, %v1136_v58 }
 0x839   :  { %v1138_v60 = vmul.f32 1.442695, %v1137_v59 }
 0x83a   :  { %v1146_v61 = vpop.permute.xlu0 %1145 }
 0x83b   :  { %5875 = vpow2.f32 %v1138_v60  ;;  %5438 = vmatpush3.msra.mxu0 %v1146_v61 }
 0x83c   :  { %5447 = vmatprep.subr.mxu0 %v5945_v28 }
 0x83e   :  { %v1470_v8 = vpop.permute.xlu0 %1469 }
 0x845   :  { %v5876_v62 = vpop.eup %5875 }
 0x846   :  { %v1140_v1 = vsel %vm336_vm2, %v5876_v62, 0.0 }
 0x847   :  { %1141 = vadd.xlane.f32.xlu1 %v1140_v1 }
 0x858   :  { %1471 = vrot.lane.b32.xlu1 %v6211_v63, %s5947_s0 }
 0x873   :  { %v1049_v29 = vpop.f32.mrb[12].mxu0 }
 0x874   :  { %v1053_v2 = vadd.f32 %v1049_v29, %v6167_v25  ;;  %v5431_v3 = vpop.f32.mrb[13].mxu0 }
 0x8d4   :  { %v1142_v4 = vpop.xlane.xlu1 %1141 }
 0x8d5   :  { %5877 = vrcp.f32 %v1142_v4 }
 0x8d8   :  { %v1472_v5 = vpop.permute.xlu1 %1471 }
 0x8df   :  { %v5878_v14 = vpop.eup %5877 }
 0x8e0   :  { %v1144_v32 = vmul.f32 %v5878_v14, %v5876_v62 }
 0x8e2   :  { %5440 = vmatmul.mubr.msk.f32.vlgmr.msra.gmra.mrb[14].mxu0 %vm336_vm2, %v1144_v32 }
 0x8e3   :  { %5448 = vmatpush3.xpose.msk.msra.mxu0 %vm336_vm2, %v6211_v63  ;;  %5449 = vmatprep.mubr.msk.f32.mxu0 %vm5946_vm1, %v5945_v28 }
 0x8e4   :  { %5457 = vmatprep.subr.mxu0 %v5945_v28 }
 0x8e6   :  { %5450 = vmatmul.mubr.msk.f32.vlgmr.msra.gmra.mrb[16].mxu0 %vm336_vm2, %v6203_v57 }
 0x8e7   :  { %5458 = vmatpush3.xpose.msk.msra.mxu0 %vm336_vm2, %v1472_v5  ;;  %5459 = vmatprep.mubr.msk.f32.mxu0 %vm5946_vm1, %v5945_v28 }
 0x8e8   :  { %5467 = vmatprep.subr.mxu0 %v5945_v28 }
 0x8ea   :  { %5460 = vmatmul.mubr.msk.f32.vlgmr.msra.gmra.mrb[18].mxu0 %vm336_vm2, %v1470_v8 }
 0x8eb   :  { %5468 = vmatpush3.msra.mxu0 %v6141_v7  ;;  %5469 = vmatprep.mubr.msk.f32.mxu0 %vm5946_vm1, %v5945_v28 }
 0x8ec   :  { %5477 = vmatprep.subr.mxu0 %v5945_v28 }
 0x9b5   :  { %v1217_v12 = vpop.f32.mrb[14].mxu0 }
 0x9b6   :  { %v5441_v13 = vpop.f32.mrb[15].mxu0  ;;  %5445 = vmatmul.mubr.msk.f32.vlgmr.msra.gmra.mrb[12].mxu1 %vm336_vm2, %v1217_v12 }
 0x9b7   :  { %5453 = vmatpush3.msra.mxu1 %v6128_v0  ;;  %5454 = vmatprep.mubr.msk.f32.mxu1 %vm5946_vm1, %v5945_v28 }
 0x9b8   :  { %5462 = vmatprep.subr.mxu1 %v5945_v28 }
 0x9b9   :  { %v1379_v7 = vpop.f32.mrb[16].mxu0 }
 0x9ba   :  { %v1383_v17 = vmul.f32 0.35355338, %v1379_v7  ;;  %v5451_v18 = vpop.f32.mrb[17].mxu0 }
 0x9bc   :  { %v1384_v19 = vadd.f32 %v1383_v17, %v6246_v16 }
 0x9bd   :  { %v1543_v40 = vpop.f32.mrb[18].mxu0 }
 0x9be   :  { %v1547_v20 = vmul.f32 0.35355338, %v1543_v40  ;;  %v5461_v21 = vpop.f32.mrb[19].mxu0  ;;  %v1385_v22 = vsel %vm336_vm2, %v1384_v19, -inf }
 0x9bf   :  { %1386 = vmax.xlane.f32.xlu1 %v1385_v22 }
 0x9c0   :  { %v1548_v23 = vadd.f32 %v1547_v20, %v6246_v16 }
 0x9c2   :  { %v1549_v24 = vsel %vm336_vm2, %v1548_v23, -inf }
 0x9c3   :  { %1550 = vmax.xlane.f32.xlu0 %v1549_v24 }
 0xa4c   :  { %v1387_v42 = vpop.xlane.xlu1 %1386 }
 0xa4d   :  { %v1388_v25 = vsub.f32 %v1384_v19, %v1387_v42 }
 0xa4f   :  { %v1389_v26 = vmul.f32 1.442695, %v1388_v25 }
 0xa50   :  { %v1551_v27 = vpop.xlane.xlu0 %1550 }
 0xa51   :  { %5879 = vpow2.f32 %v1389_v26  ;;  %v1552_v30 = vsub.f32 %v1548_v23, %v1551_v27 }
 0xa53   :  { %v1553_v33 = vmul.f32 1.442695, %v1552_v30 }
 0xa55   :  { %5881 = vpow2.f32 %v1553_v33 }
 0xa5b   :  { %v5880_v35 = vpop.eup %5879 }
 0xa5c   :  { %v1391_v36 = vsel %vm336_vm2, %v5880_v35, 0.0 }
 0xa5d   :  { %1392 = vadd.xlane.f32.xlu0 %v1391_v36 }
 0xa5f   :  { %v5882_v37 = vpop.eup %5881 }
 0xa60   :  { %v1555_v38 = vsel %vm336_vm2, %v5882_v37, 0.0 }
 0xa61   :  { %1556 = vadd.xlane.f32.xlu1 %v1555_v38 }
 0xa72   :  { %1785 = vrot.lane.b32.xlu1 %v6211_v63, %s5948_s1 }
 0xa73   :  { %1561 = vrot.lane.b32.xlu0 %v6128_v0, %s5947_s0 }
 0xa76   :  { %1783 = vrot.lane.b32.xlu1 %v6203_v57, %s5948_s1 }
 0xa89   :  { %v1290_v41 = vpop.f32.mrb[12].mxu1 }
 0xa8a   :  { %v1294_v44 = vadd.f32 %v1290_v41, %v1053_v2  ;;  %v5446_v45 = vpop.f32.mrb[13].mxu1 }
 0xa8c   :  { %v1301_v46 = vadd.f32 %v6264_v39, %v1294_v44 }
 0xa8e   :  { %1302 = vst.msk [vmem:[#allocation2] sm:$0xff] %vm66_vm0, %v1301_v46 }
 0xa95   :  { %v2267_v22 = vld [vmem:[#allocation2] sm:$0xff] }
 0xaea   :  { %v1393_v34 = vpop.xlane.xlu0 %1392 }
 0xaeb   :  { %5883 = vrcp.f32 %v1393_v34 }
 0xaee   :  { %v1557_v47 = vpop.xlane.xlu1 %1556  ;;  %v1562_v50 = vpop.permute.xlu0 %1561 }
 0xaef   :  { %5885 = vrcp.f32 %v1557_v47 }
 0xaf2   :  { %v1786_v55 = vpop.permute.xlu1 %1785 }
 0xaf5   :  { %v5884_v31 = vpop.eup %5883 }
 0xaf6   :  { %v1395_v48 = vmul.f32 %v5884_v31, %v5880_v35 }
 0xaf8   :  { %5455 = vmatmul.mubr.msk.f32.vlgmr.msra.gmra.mrb[14].mxu1 %vm336_vm2, %v1395_v48 }
 0xaf9   :  { %v5886_v51 = vpop.eup %5885  ;;  %5463 = vmatpush3.msra.mxu1 %v1562_v50  ;;  %5464 = vmatprep.mubr.msk.f32.mxu1 %vm5946_vm1, %v5945_v28 }
 0xafa   :  { %v1559_v52 = vmul.f32 %v5886_v51, %v5882_v37  ;;  %5472 = vmatprep.subr.mxu1 %v5945_v28 }
 0xafc   :  { %5465 = vmatmul.mubr.msk.f32.vlgmr.msra.gmra.mrb[16].mxu1 %vm336_vm2, %v1559_v52 }
 0xafd   :  { %5473 = vmatpush3.msra.mxu1 %v6149_v15  ;;  %5474 = vmatprep.mubr.msk.f32.mxu1 %vm5946_vm1, %v5945_v28  ;;  %v1784_v15 = vpop.permute.xlu1 %1783 }
 0xafe   :  { %5482 = vmatprep.subr.mxu1 %v5945_v28 }
 0xbcb   :  { %v1465_v53 = vpop.f32.mrb[14].mxu1 }
 0xbcc   :  { %v5456_v54 = vpop.f32.mrb[15].mxu1  ;;  %5475 = vmatmul.mubr.msk.f32.vlgmr.msra.gmra.mrb[18].mxu1 %vm336_vm2, %v1465_v53 }
 0xbcd   :  { %5484 = vmatprep.mubr.msk.f32.mxu1 %vm5946_vm1, %v5945_v28 }
 0xbcf   :  { %v1633_v56 = vpop.f32.mrb[16].mxu1 }
 0xbd0   :  { %v5466_v58 = vpop.f32.mrb[17].mxu1  ;;  %5470 = vmatmul.mubr.msk.f32.vlgmr.msra.gmra.mrb[20].mxu0 %vm336_vm2, %v1633_v56 }
 0xbd1   :  { %5478 = vmatpush3.xpose.msk.msra.mxu0 %vm336_vm2, %v1786_v55  ;;  %5479 = vmatprep.mubr.msk.f32.mxu0 %vm5946_vm1, %v5945_v28 }
 0xbd2   :  { %5487 = vmatprep.subr.mxu0 %v5945_v28 }
 0xbd4   :  { %5480 = vmatmul.mubr.msk.f32.vlgmr.msra.gmra.mrb[22].mxu0 %vm336_vm2, %v1784_v15 }
 0xbd5   :  { %5488 = vmatpush3.msra.mxu0 %v6190_v49  ;;  %5489 = vmatprep.mubr.msk.f32.mxu0 %vm5946_vm1, %v5945_v28 }
 0xbd6   :  { %5497 = vmatprep.subr.mxu0 %v5945_v28 }
 0xc9f   :  { %v1779_v59 = vpop.f32.mrb[18].mxu1 }
 0xca0   :  { %v5476_v60 = vpop.f32.mrb[19].mxu1 }
 0xca3   :  { %v1706_v61 = vpop.f32.mrb[20].mxu0 }
 0xca4   :  { %v1780_v62 = vadd.f32 %v1779_v59, %v1706_v61  ;;  %v5471_v1 = vpop.f32.mrb[21].mxu0 }
 0xca7   :  { %v1857_v29 = vpop.f32.mrb[22].mxu0 }
 0xca8   :  { %v1861_v2 = vmul.f32 0.35355338, %v1857_v29  ;;  %v5481_v3 = vpop.f32.mrb[23].mxu0 }
 0xca9   :  { %v5103_v3 = vld [vmem:[%s6744_s7] ss:$0 sm:$0xff] }
 0xcaa   :  { %v1862_v4 = vadd.f32 %v1861_v2, %v6246_v16 }
 0xcac   :  { %v1863_v14 = vsel %vm336_vm2, %v1862_v4, -inf }
 0xcad   :  { %1864 = vmax.xlane.f32.xlu0 %v1863_v14 }
 0xcc3   :  { %1874 = vrot.lane.b32.xlu0 %v6128_v0, %s5948_s1 }
 0xcc7   :  { %2024 = vrot.lane.b32.xlu0 %v6203_v57, %s5949_s19 }
 0xd3a   :  { %v1865_v49 = vpop.xlane.xlu0 %1864 }
 0xd3b   :  { %v1866_v32 = vsub.f32 %v1862_v4, %v1865_v49  ;;  %v2316_v49 = vld [vmem:[%s6745_s8] sm:$0xff] }
 0xd3d   :  { %v1867_v5 = vmul.f32 1.442695, %v1866_v32  ;;  %v2317_v32 = vld [vmem:[%s6745_s8 + $0x8] sm:$0xff] }
 0xd3e   :  { %v1875_v8 = vpop.permute.xlu0 %1874 }
 0xd3f   :  { %5887 = vpow2.f32 %v1867_v5  ;;  %5483 = vmatpush3.msra.mxu1 %v1875_v8  ;;  %v5744_v5 = vpack.c.bf16 %v2317_v32, %v2316_v49  ;;  %v2318_v8 = vld [vmem:[%s6745_s8 + $0x10] sm:$0xff] }
 0xd40   :  { %5492 = vmatprep.subr.mxu1 %v5945_v28 }
 0xd42   :  { %v2025_v18 = vpop.permute.xlu0 %2024 }
 0xd49   :  { %v5888_v11 = vpop.eup %5887 }
 0xd4a   :  { %v1869_v12 = vsel %vm336_vm2, %v5888_v11, 0.0 }
 0xd4b   :  { %1870 = vadd.xlane.f32.xlu1 %v1869_v12 }
 0xd5c   :  { %2026 = vrot.lane.b32.xlu1 %v6211_v63, %s5949_s19 }
 0xdd8   :  { %v1871_v13 = vpop.xlane.xlu1 %1870 }
 0xdd9   :  { %5889 = vrcp.f32 %v1871_v13  ;;  %v2321_v13 = vld [vmem:[%s6746_s10] sm:$0xff] }
 0xddc   :  { %v2027_v57 = vpop.permute.xlu1 %2026 }
 0xde3   :  { %v5890_v7 = vpop.eup %5889 }
 0xde4   :  { %v1873_v17 = vmul.f32 %v5890_v7, %v5888_v11  ;;  %v2319_v11 = vld [vmem:[%s6745_s8 + $0x18] sm:$0xff]  ;;  %v2322_v7 = vld [vmem:[%s6746_s10 + $0x8] sm:$0xff] }
 0xde5   :  { %v5748_v12 = vpack.c.bf16 %v2319_v11, %v2318_v8 }
 0xde6   :  { %5485 = vmatmul.mubr.msk.f32.vlgmr.msra.gmra.mrb[20].mxu1 %vm336_vm2, %v1873_v17  ;;  %v2323_v17 = vld [vmem:[%s6746_s10 + $0x10] sm:$0xff] }
 0xde7   :  { %5493 = vmatpush3.xpose.msk.msra.mxu1 %vm336_vm2, %v2027_v57  ;;  %5494 = vmatprep.mubr.msk.f32.mxu1 %vm5946_vm1, %v5945_v28  ;;  %v5752_v57 = vpack.c.bf16 %v2322_v7, %v2321_v13 }
 0xde8   :  { %5502 = vmatprep.subr.mxu1 %v5945_v28 }
 0xdea   :  { %5495 = vmatmul.mubr.msk.f32.vlgmr.msra.gmra.mrb[22].mxu1 %vm336_vm2, %v2025_v18  ;;  %v2324_v18 = vld [vmem:[%s6746_s10 + $0x18] sm:$0xff] }
 0xdeb   :  { %5503 = vmatpush3.msra.mxu1 %v6218_v9  ;;  %5504 = vmatprep.mubr.msk.f32.mxu1 %vm5946_vm1, %v5945_v28  ;;  %v2269_v9 = vadd.f32 %v2267_v22, %v6040_v6 }
 0xdec   :  { %5753 = vmatprep.subr.bf16.mxu1 %v5752_v57 }
 0xded   :  { %v2273_v42 = vsel %vm66_vm0, %v2269_v9, 0.0 }
 0xeb9   :  { %v1946_v63 = vpop.f32.mrb[20].mxu1 }
 0xeba   :  { %v5486_v19 = vpop.f32.mrb[21].mxu1  ;;  %5490 = vmatmul.mubr.msk.f32.vlgmr.msra.gmra.mrb[24].mxu0 %vm336_vm2, %v1946_v63  ;;  %v5756_v63 = vpack.c.bf16 %v2324_v18, %v2323_v17  ;;  %v5110_v18 = vld [vmem:[%s6749_s12] ss:$0 sm:$0xff] }
 0xebb   :  { %5499 = vmatprep.mubr.msk.f32.mxu0 %vm5946_vm1, %v5945_v28  ;;  %v2325_v19 = vld [vmem:[%s6746_s10 + $0x20] sm:$0xff] }
 0xebd   :  { %v2098_v40 = vpop.f32.mrb[22].mxu1 }
 0xebe   :  { %v2102_v20 = vmul.f32 0.35355338, %v2098_v40  ;;  %v5496_v21 = vpop.f32.mrb[23].mxu1  ;;  %v2326_v40 = vld [vmem:[%s6746_s10 + $0x28] sm:$0xff] }
 0xec0   :  { %v2103_v23 = vadd.f32 %v2102_v20, %v6246_v16  ;;  %v5760_v20 = vpack.c.bf16 %v2326_v40, %v2325_v19  ;;  %v5111_v19 = vld [vmem:[%s6750_s13] ss:$0 sm:$0xff] }
 0xec2   :  { %v2104_v24 = vsel %vm336_vm2, %v2103_v23, -inf }
 0xec3   :  { %2105 = vmax.xlane.f32.xlu1 %v2104_v24 }
 0xec7   :  { %2274 = vadd.xlane.f32.xlu1 %v2273_v42 }
 0xf50   :  { %v2106_v25 = vpop.xlane.xlu1 %2105 }
 0xf51   :  { %v2107_v26 = vsub.f32 %v2103_v23, %v2106_v25 }
 0xf53   :  { %v2108_v27 = vmul.f32 1.442695, %v2107_v26  ;;  %v2327_v26 = vld [vmem:[%s6746_s10 + $0x30] sm:$0xff] }
 0xf54   :  { %v2275_v48 = vpop.xlane.xlu1 %2274 }
 0xf55   :  { %5891 = vpow2.f32 %v2108_v27  ;;  %v2280_v50 = vmul.f32 0.03125, %v2275_v48  ;;  %v2328_v27 = vld [vmem:[%s6746_s10 + $0x38] sm:$0xff] }
 0xf57   :  { %v2282_v51 = vsub.f32 %v2269_v9, %v2280_v50 }
 0xf59   :  { %v2284_v55 = vmul.f32 %v2282_v51, %v2282_v51 }
 0xf5b   :  { %v2286_v56 = vsel %vm66_vm0, %v2284_v55, 0.0 }
 0xf5f   :  { %v5892_v30 = vpop.eup %5891 }
 0xf60   :  { %v2110_v33 = vsel %vm336_vm2, %v5892_v30, 0.0 }
 0xf61   :  { %2111 = vadd.xlane.f32.xlu0 %v2110_v33  ;;  %v5104_v33 = vld [vmem:[%s6747_s9] ss:$0 sm:$0xff] }
 0xf77   :  { %2115 = vrot.lane.b32.xlu0 %v6128_v0, %s5949_s19 }
 0xf8d   :  { %v2019_v35 = vpop.f32.mrb[24].mxu0 }
 0xf8e   :  { %v2023_v36 = vadd.f32 %v2019_v35, %v1780_v62  ;;  %v5491_v37 = vpop.f32.mrb[25].mxu0 }
 0xfee   :  { %v2112_v38 = vpop.xlane.xlu0 %2111 }
 0xfef   :  { %5893 = vrcp.f32 %v2112_v38 }
 0xff2   :  { %v2116_v6 = vpop.permute.xlu0 %2115 }
 0xff3   :  { %5498 = vmatpush3.msra.mxu0 %v2116_v6 }
 0xff4   :  { %5745 = vmatprep.subr.bf16.mxu0 %v5744_v5 }
 0xff9   :  { %v5894_v41 = vpop.eup %5893 }
 0xffa   :  { %v2114_v44 = vmul.f32 %v5894_v41, %v5892_v30  ;;  %v5764_v30 = vpack.c.bf16 %v2328_v27, %v2327_v26 }
 0xffc   :  { %5500 = vmatmul.mubr.msk.f32.vlgmr.msra.gmra.mrb[26].mxu0 %vm336_vm2, %v2114_v44  ;;  %v5107_v44 = vld [vmem:[%s6748_s11] ss:$0 sm:$0xff] }
 0xffd   :  { %5747 = vmatpush3.bf16.msra.mxu0 %v5744_v5 }
 0xffe   :  { %5749 = vmatprep.subr.bf16.mxu0 %v5748_v12 }
0x1001   :  { %5751 = vmatpush3.bf16.msra.mxu0 %v5748_v12 }
0x10cf   :  { %v2187_v45 = vpop.f32.mrb[26].mxu0 }
0x10d0   :  { %v5501_v46 = vpop.f32.mrb[27].mxu0  ;;  %5505 = vmatmul.mubr.msk.f32.vlgmr.msra.gmra.mrb[24].mxu1 %vm336_vm2, %v2187_v45 }
0x10d1   :  { %5755 = vmatpush3.bf16.msra.mxu1 %v5752_v57 }
0x10d2   :  { %5757 = vmatprep.subr.bf16.mxu1 %v5756_v63 }
0x10d5   :  { %5759 = vmatpush3.bf16.msra.mxu1 %v5756_v63 }
0x10d6   :  { %5761 = vmatprep.subr.bf16.mxu1 %v5760_v20 }
0x10d9   :  { %5763 = vmatpush3.bf16.msra.mxu1 %v5760_v20 }
0x10da   :  { %5765 = vmatprep.subr.bf16.mxu1 %v5764_v30 }
0x10dd   :  { %5767 = vmatpush3.bf16.msra.mxu1 %v5764_v30 }
0x11a3   :  { %v2260_v34 = vpop.f32.mrb[24].mxu1 }
0x11a4   :  { %v2264_v47 = vadd.f32 %v2260_v34, %v2023_v36  ;;  %v5506_v31 = vpop.f32.mrb[25].mxu1 }
0x11a6   :  { %v2265_v0 = vadd.f32 %v6264_v39, %v2264_v47 }
0x11a8   :  { %2266 = vst.msk [vmem:[#allocation2 + $0x8] sm:$0xff] %vm66_vm0, %v2265_v0 }
0x11af   :  { %v2268_v52 = vld [vmem:[#allocation2 + $0x8] sm:$0xff] }
0x11b0   :  { %v2270_v53 = vadd.f32 %v2268_v52, %v6059_v10  ;;  %v5102_v10 = vld [vmem:[%s6743_s6] ss:$0 sm:$0xff] }
0x11b2   :  { %v2276_v54 = vsel %vm66_vm0, %v2270_v53, 0.0 }
0x11b3   :  { %2277 = vadd.xlane.f32.xlu1 %v2276_v54 }
0x11b7   :  { %2287 = vadd.xlane.f32.xlu1 %v2286_v56 }
0x1240   :  { %v2278_v58 = vpop.xlane.xlu1 %2277 }
0x1241   :  { %v2281_v15 = vmul.f32 0.03125, %v2278_v58 }
0x1243   :  { %v2283_v59 = vsub.f32 %v2270_v53, %v2281_v15 }
0x1244   :  { %v2288_v60 = vpop.xlane.xlu1 %2287 }
0x1245   :  { %v2292_v39 = vmul.f32 0.03125, %v2288_v60  ;;  %v2285_v61 = vmul.f32 %v2283_v59, %v2283_v59 }
0x1247   :  { %v2294_v62 = vadd.f32 1e-05, %v2292_v39  ;;  %v2289_v1 = vsel %vm66_vm0, %v2285_v61, 0.0  ;;  %v5112_v39 = vld [vmem:[%s6737_s2 + $0x20] sm:$0xff]  ;;  %v5113_v61 = vld [vmem:[%s6737_s2 + $0x28] sm:$0xff] }
0x1248   :  { %2290 = vadd.xlane.f32.xlu1 %v2289_v1  ;;  %v5114_v1 = vld [vmem:[%s6737_s2 + $0x30] sm:$0xff] }
0x1249   :  { %5895 = vrsqrt.f32 %v2294_v62  ;;  %v5843_v62 = vpack.i.bf16 %v5113_v61, %v5112_v39 }
0x1253   :  { %v5896_v29 = vpop.eup %5895 }
0x1254   :  { %v2298_v2 = vmul.f32 %v5896_v29, %v2282_v51  ;;  %v5115_v29 = vld [vmem:[%s6737_s2 + $0x38] sm:$0xff] }
0x1256   :  { %v2306_v4 = vmul.f32 %v5102_v10, %v2298_v2  ;;  %v5768_v2 = vpack.c.bf16 %v5113_v61, %v5112_v39 }
0x1258   :  { %v2314_v14 = vadd.f32 %v5103_v3, %v2306_v4  ;;  %5769 = vmatprep.subr.bf16.mxu0 %v5768_v2  ;;  %v6400_v4 = vld [vmem:[%s6739_s3 + $0x1] ss:$0 sm:$0xff] }
0x125a   :  { %5515 = vmatprep.mubr.msk.f32.mxu0 %vm66_vm0, %v2314_v14 }
0x12d5   :  { %v2291_v21 = vpop.xlane.xlu1 %2290 }
0x12d6   :  { %v2293_v22 = vmul.f32 0.03125, %v2291_v21 }
0x12d8   :  { %v2295_v23 = vadd.f32 1e-05, %v2293_v22 }
0x12da   :  { %5897 = vrsqrt.f32 %v2295_v23 }
0x12e4   :  { %v5898_v24 = vpop.eup %5897 }
0x12e5   :  { %v2299_v9 = vmul.f32 %v5898_v24, %v2283_v59 }
0x12e7   :  { %v2307_v42 = vmul.f32 %v5102_v10, %v2299_v9  ;;  %v5848_v10 = vpack.i.bf16 %v5115_v29, %v5114_v1 }
0x12e9   :  { %v2315_v25 = vadd.f32 %v5103_v3, %v2307_v42  ;;  %v5772_v3 = vpack.c.bf16 %v5115_v29, %v5114_v1 }
0x12eb   :  { %5516 = vmatmul.mubr.msk.f32.vlgmr.msra.gmra.mrb[28].mxu0 %vm66_vm0, %v2315_v25 }
0x12ec   :  { %5771 = vmatpush3.bf16.msra.mxu0 %v5768_v2 }
0x12ed   :  { %5773 = vmatprep.subr.bf16.mxu0 %v5772_v3 }
0x12f0   :  { %5775 = vmatpush3.bf16.msra.mxu0 %v5772_v3 }
0x13be   :  { %v5517_v35 = vpop.f32.mrb[28].mxu0 }
0x13bf   :  { %v2414_v36 = vadd.f32 %v5517_v35, %v5104_v33  ;;  %v2408_v37 = vpop.f32.mrb[29].mxu0 }
0x13c0   :  { %v2409_v38 = vadd.f32 %v5104_v33, %v2408_v37 }
0x13c1   :  { %v2418_v41 = vmax.f32 %v2414_v36, 0.0 }
0x13c2   :  { %v2417_v6 = vmax.f32 %v2409_v38, 0.0 }
0x13c4   :  { %5534 = vmatprep.mubr.msk.f32.mxu1 %vm2425_vm3, %v2417_v6 }
0x13c5   :  { %5535 = vmatmul.mubr.msk.f32.vlgmr.msra.gmra.mrb[26].mxu1 %vm2425_vm3, %v2418_v41 }
0x1498   :  { %v5536_v45 = vpop.f32.mrb[26].mxu1 }
0x1499   :  { %v2498_v46 = vpop.f32.mrb[27].mxu1  ;;  %v2504_v34 = vadd.f32 %v5536_v45, %v5107_v44 }
0x149a   :  { %v2499_v47 = vadd.f32 %v5107_v44, %v2498_v46 }
0x149b   :  { %v2508_v48 = vadd.f32 %v2504_v34, %v2315_v25 }
0x149c   :  { %v2507_v31 = vadd.f32 %v2499_v47, %v2314_v14 }
0x149d   :  { %v2514_v50 = vsel %vm66_vm0, %v2508_v48, 0.0 }
0x149e   :  { %v2511_v0 = vsel %vm66_vm0, %v2507_v31, 0.0 }
0x149f   :  { %2512 = vadd.xlane.f32.xlu1 %v2511_v0 }
0x14a3   :  { %2515 = vadd.xlane.f32.xlu1 %v2514_v50 }
0x152c   :  { %v2513_v51 = vpop.xlane.xlu1 %2512 }
0x152d   :  { %v2517_v52 = vmul.f32 0.03125, %v2513_v51 }
0x152f   :  { %v2519_v53 = vsub.f32 %v2507_v31, %v2517_v52 }
0x1530   :  { %v2516_v54 = vpop.xlane.xlu1 %2515 }
0x1531   :  { %v2518_v55 = vmul.f32 0.03125, %v2516_v54  ;;  %v2521_v56 = vmul.f32 %v2519_v53, %v2519_v53 }
0x1533   :  { %v2520_v58 = vsub.f32 %v2508_v48, %v2518_v55  ;;  %v2523_v15 = vsel %vm66_vm0, %v2521_v56, 0.0 }
0x1534   :  { %2524 = vadd.xlane.f32.xlu0 %v2523_v15 }
0x1535   :  { %v2522_v59 = vmul.f32 %v2520_v58, %v2520_v58 }
0x1537   :  { %v2526_v60 = vsel %vm66_vm0, %v2522_v59, 0.0 }
0x1538   :  { %2527 = vadd.xlane.f32.xlu1 %v2526_v60 }
0x1549   :  { %5844 = vrot.lane.b32.xlu1 %v5843_v62, %s5943_s23 }
0x154d   :  { %5849 = vrot.lane.b32.xlu1 %v5848_v10, %s5943_s23 }
0x1551   :  { %2670 = vrot.lane.b32.xlu1 %v6400_v4, %s5943_s23 }
0x15c1   :  { %v2525_v14 = vpop.xlane.xlu0 %2524 }
0x15c2   :  { %v2529_v49 = vmul.f32 0.03125, %v2525_v14 }
0x15c4   :  { %v2531_v32 = vadd.f32 1e-05, %v2529_v49 }
0x15c5   :  { %v2528_v5 = vpop.xlane.xlu1 %2527 }
0x15c6   :  { %5899 = vrsqrt.f32 %v2531_v32  ;;  %v2530_v8 = vmul.f32 0.03125, %v2528_v5 }
0x15c8   :  { %v2532_v11 = vadd.f32 1e-05, %v2530_v8 }
0x15c9   :  { %v5845_v12 = vpop.permute.xlu1 %5844 }
0x15ca   :  { %5901 = vrsqrt.f32 %v2532_v11  ;;  %v5847_v13 = vunpack.i.h.bf16 %v5845_v12  ;;  %v5846_v7 = vunpack.i.l.bf16 %v5845_v12 }
0x15cc   :  { %v5776_v17 = vpack.c.bf16 %v5847_v13, %v5846_v7 }
0x15cd   :  { %v5850_v40 = vpop.permute.xlu1 %5849 }
0x15ce   :  { %5777 = vmatprep.subr.bf16.mxu0 %v5776_v17  ;;  %v5852_v24 = vunpack.i.h.bf16 %v5850_v40  ;;  %v5851_v9 = vunpack.i.l.bf16 %v5850_v40  ;;  %v6496_v40 = vld [vmem:[%s6741_s4 + $0x20] sm:$0xff] }
0x15d0   :  { %v5900_v57 = vpop.eup %5899  ;;  %v5780_v26 = vpack.c.bf16 %v5852_v24, %v5851_v9 }
0x15d1   :  { %v2535_v63 = vmul.f32 %v5900_v57, %v2519_v53  ;;  %v6434_v35 = vpop.permute.xlu1 %2670 }
0x15d3   :  { %v2543_v20 = vmul.f32 %v5110_v18, %v2535_v63 }
0x15d4   :  { %v5902_v21 = vpop.eup %5901 }
0x15d5   :  { %v2536_v22 = vmul.f32 %v5902_v21, %v2520_v58  ;;  %v6410_v23 = vadd.f32 %v5111_v19, %v2543_v20 }
0x15d7   :  { %v2544_v42 = vmul.f32 %v5110_v18, %v2536_v22  ;;  %5545 = vmatprep.mubr.msk.f32.mxu0 %vm66_vm0, %v6410_v23  ;;  %5567 = vmatprep.mubr.msk.f32.mxu1 %vm66_vm0, %v6410_v23 }
0x15d9   :  { %v6416_v25 = vadd.f32 %v5111_v19, %v2544_v42 }
0x15db   :  { %5546 = vmatmul.mubr.msk.f32.vlgmr.msra.gmra.mrb[30].mxu0 %vm66_vm0, %v6416_v25 }
0x15dc   :  { %5779 = vmatpush3.bf16.msra.mxu0 %v5776_v17  ;;  %5556 = vmatprep.mubr.msk.f32.mxu0 %vm66_vm0, %v6410_v23  ;;  %v6488_v17 = vld [vmem:[%s6741_s4 + $0x28] sm:$0xff] }
0x15dd   :  { %5781 = vmatprep.subr.bf16.mxu0 %v5780_v26 }
0x15e0   :  { %5783 = vmatpush3.bf16.msra.mxu0 %v5780_v26 }
0x15e1   :  { %5570 = vmatprep.subr.mxu0 %v5945_v28 }
0x15e3   :  { %5557 = vmatmul.mubr.msk.f32.vlgmr.msra.gmra.mrb[32].mxu0 %vm66_vm0, %v6416_v25 }
0x15e4   :  { %5572 = vmatprep.mubr.msk.f32.mxu0 %vm5946_vm1, %v5945_v28 }
0x16ae   :  { %v6427_v27 = vpop.f32.mrb[30].mxu0 }
0x16af   :  { %v2645_v30 = vpop.f32.mrb[31].mxu0 }
0x16b0   :  { %v6430_v33 = vadd.f32 %v6400_v4, %v2645_v30 }
0x16b2   :  { %3000 = vrot.lane.b32.xlu1 %v6430_v33, %s5947_s0 }
0x16b6   :  { %v6436_v36 = vpop.f32.mrb[32].mxu0  ;;  %5854 = vrot.lane.b32.xlu1 %v5843_v62, %s5944_s26 }
0x16b7   :  { %v2739_v37 = vpop.f32.mrb[33].mxu0 }
0x16b8   :  { %v6440_v38 = vadd.f32 %v2739_v37, %v6434_v35 }
0x16ba   :  { %3002 = vrot.lane.b32.xlu0 %v6440_v38, %s5947_s0  ;;  %5571 = vmatpush3.xpose.msk.msra.mxu0 %vm336_vm2, %v6440_v38 }
0x16bb   :  { %5859 = vrot.lane.b32.xlu1 %v5848_v10, %s5944_s26  ;;  %5580 = vmatprep.subr.mxu0 %v5945_v28 }
0x16bd   :  { %5573 = vmatmul.mubr.msk.f32.vlgmr.msra.gmra.mrb[34].mxu0 %vm336_vm2, %v6430_v33 }
0x16be   :  { %5582 = vmatprep.mubr.msk.f32.mxu0 %vm5946_vm1, %v5945_v28 }
0x1724   :  { %v3001_v6 = vpop.permute.xlu1 %3000 }
0x1728   :  { %v5855_v41 = vpop.permute.xlu1 %5854 }
0x1729   :  { %v5857_v44 = vunpack.i.h.bf16 %v5855_v41  ;;  %v5856_v45 = vunpack.i.l.bf16 %v5855_v41 }
0x172b   :  { %v5784_v46 = vpack.c.bf16 %v5857_v44, %v5856_v45 }
0x172c   :  { %v3003_v34 = vpop.permute.xlu0 %3002 }
0x172d   :  { %v5860_v47 = vpop.permute.xlu1 %5859  ;;  %5581 = vmatpush3.xpose.msk.msra.mxu0 %vm336_vm2, %v3003_v34  ;;  %5785 = vmatprep.subr.bf16.mxu1 %v5784_v46 }
0x172e   :  { %v5862_v31 = vunpack.i.h.bf16 %v5860_v47  ;;  %v5861_v0 = vunpack.i.l.bf16 %v5860_v47  ;;  %5787 = vmatpush3.bf16.msra.mxu1 %v5784_v46  ;;  %5590 = vmatprep.subr.mxu0 %v5945_v28 }
0x1730   :  { %v5788_v48 = vpack.c.bf16 %v5862_v31, %v5861_v0  ;;  %5583 = vmatmul.mubr.msk.f32.vlgmr.msra.gmra.mrb[36].mxu0 %vm336_vm2, %v3001_v6 }
0x1731   :  { %5592 = vmatprep.mubr.msk.f32.mxu0 %vm5946_vm1, %v5945_v28  ;;  %5591 = vmatpush3.msra.mxu0 %v6488_v17 }
0x1732   :  { %5789 = vmatprep.subr.bf16.mxu1 %v5788_v48  ;;  %5600 = vmatprep.subr.mxu0 %v5945_v28 }
0x1733   :  { %5791 = vmatpush3.bf16.msra.mxu1 %v5788_v48 }
0x1734   :  { %5575 = vmatprep.subr.mxu1 %v5945_v28 }
0x1736   :  { %5568 = vmatmul.mubr.msk.f32.vlgmr.msra.gmra.mrb[28].mxu1 %vm66_vm0, %v6416_v25 }
0x1737   :  { %5577 = vmatprep.mubr.msk.f32.mxu1 %vm5946_vm1, %v5945_v28 }
0x1790   :  { %v2910_v50 = vpop.f32.mrb[34].mxu0 }
0x1791   :  { %v2914_v51 = vmul.f32 0.35355338, %v2910_v50  ;;  %v5574_v52 = vpop.f32.mrb[35].mxu0 }
0x1793   :  { %v2915_v53 = vadd.f32 %v2914_v51, %v6113_v43 }
0x1795   :  { %v2916_v54 = vsel %vm336_vm2, %v2915_v53, -inf }
0x1796   :  { %2917 = vmax.xlane.f32.xlu1 %v2916_v54 }
0x17a7   :  { %2760 = vrot.lane.b32.xlu1 %v6400_v4, %s5944_s26 }
0x17ab   :  { %3316 = vrot.lane.b32.xlu1 %v6440_v38, %s5948_s1 }
0x17af   :  { %3314 = vrot.lane.b32.xlu1 %v6430_v33, %s5948_s1 }
0x1803   :  { %v3074_v55 = vpop.f32.mrb[36].mxu0 }
0x1804   :  { %v3078_v56 = vmul.f32 0.35355338, %v3074_v55  ;;  %v5584_v58 = vpop.f32.mrb[37].mxu0 }
0x1806   :  { %v3079_v15 = vadd.f32 %v3078_v56, %v6113_v43 }
0x1808   :  { %v3080_v59 = vsel %vm336_vm2, %v3079_v15, -inf }
0x1809   :  { %v5569_v60 = vpop.f32.mrb[28].mxu1  ;;  %3081 = vmax.xlane.f32.xlu0 %v3080_v59 }
0x180a   :  { %v2829_v39 = vpop.f32.mrb[29].mxu1 }
0x1823   :  { %v2918_v61 = vpop.xlane.xlu1 %2917 }
0x1824   :  { %v2919_v62 = vsub.f32 %v2915_v53, %v2918_v61 }
0x1826   :  { %v2920_v1 = vmul.f32 1.442695, %v2919_v62 }
0x1827   :  { %v2761_v29 = vpop.permute.xlu1 %2760 }
0x1828   :  { %5903 = vpow2.f32 %v2920_v1  ;;  %v6472_v10 = vadd.f32 %v2829_v39, %v2761_v29  ;;  %v6474_v2 = vadd.f32 %v5569_v60, %v2761_v29  ;;  %v6546_v1 = vadd.f32 %v6436_v36, %v6434_v35  ;;  %v6562_v35 = vld [vmem:[%s6741_s4 + $0x38] sm:$0xff] }
0x1829   :  { %v6552_v29 = vadd.f32 %v6427_v27, %v6400_v4 }
0x182a   :  { %5576 = vmatpush3.msra.mxu1 %v6472_v10 }
0x182b   :  { %5585 = vmatprep.subr.mxu1 %v5945_v28  ;;  %v3317_v22 = vpop.permute.xlu1 %3316 }
0x182f   :  { %v3315_v42 = vpop.permute.xlu1 %3314 }
0x1832   :  { %v5904_v3 = vpop.eup %5903 }
0x1833   :  { %v2922_v14 = vsel %vm336_vm2, %v5904_v3, 0.0 }
0x1834   :  { %2923 = vadd.xlane.f32.xlu0 %v2922_v14 }
0x1896   :  { %v3082_v49 = vpop.xlane.xlu0 %3081 }
0x1897   :  { %v3083_v32 = vsub.f32 %v3079_v15, %v3082_v49 }
0x1899   :  { %v3084_v5 = vmul.f32 1.442695, %v3083_v32 }
0x189b   :  { %5905 = vpow2.f32 %v3084_v5 }
0x18a5   :  { %v5906_v8 = vpop.eup %5905 }
0x18a6   :  { %v3086_v11 = vsel %vm336_vm2, %v5906_v8, 0.0 }
0x18a7   :  { %3087 = vadd.xlane.f32.xlu0 %v3086_v11 }
0x18bd   :  { %3092 = vrot.lane.b32.xlu0 %v6472_v10, %s5947_s0 }
0x18c1   :  { %v2924_v12 = vpop.xlane.xlu0 %2923 }
0x18c2   :  { %5907 = vrcp.f32 %v2924_v12 }
0x18cc   :  { %v5908_v13 = vpop.eup %5907 }
0x18cd   :  { %v2926_v7 = vmul.f32 %v5908_v13, %v5904_v3 }
0x18cf   :  { %5578 = vmatmul.mubr.msk.f32.vlgmr.msra.gmra.mrb[30].mxu1 %vm336_vm2, %v2926_v7 }
0x18d0   :  { %5587 = vmatprep.mubr.msk.f32.mxu1 %vm5946_vm1, %v5945_v28 }
0x1934   :  { %v3088_v57 = vpop.xlane.xlu0 %3087 }
0x1935   :  { %5909 = vrcp.f32 %v3088_v57 }
0x1938   :  { %v3093_v18 = vpop.permute.xlu0 %3092 }
0x1939   :  { %5586 = vmatpush3.msra.mxu1 %v3093_v18 }
0x193a   :  { %5595 = vmatprep.subr.mxu1 %v5945_v28 }
0x193f   :  { %v5910_v63 = vpop.eup %5909 }
0x1940   :  { %v3090_v19 = vmul.f32 %v5910_v63, %v5906_v8 }
0x1942   :  { %5588 = vmatmul.mubr.msk.f32.vlgmr.msra.gmra.mrb[32].mxu1 %vm336_vm2, %v3090_v19 }
0x1943   :  { %5596 = vmatpush3.msra.mxu1 %v6496_v40  ;;  %5597 = vmatprep.mubr.msk.f32.mxu1 %vm5946_vm1, %v5945_v28 }
0x1944   :  { %5605 = vmatprep.subr.mxu1 %v5945_v28 }
0x19a2   :  { %v2996_v20 = vpop.f32.mrb[30].mxu1 }
0x19a3   :  { %v5579_v21 = vpop.f32.mrb[31].mxu1  ;;  %5598 = vmatmul.mubr.msk.f32.vlgmr.msra.gmra.mrb[34].mxu1 %vm336_vm2, %v2996_v20 }
0x19a4   :  { %5607 = vmatprep.mubr.msk.f32.mxu1 %vm5946_vm1, %v5945_v28 }
0x1a15   :  { %v3164_v24 = vpop.f32.mrb[32].mxu1 }
0x1a16   :  { %v5589_v9 = vpop.f32.mrb[33].mxu1  ;;  %5593 = vmatmul.mubr.msk.f32.vlgmr.msra.gmra.mrb[38].mxu0 %vm336_vm2, %v3164_v24 }
0x1a17   :  { %5601 = vmatpush3.xpose.msk.msra.mxu0 %vm336_vm2, %v3317_v22  ;;  %5602 = vmatprep.mubr.msk.f32.mxu0 %vm5946_vm1, %v5945_v28 }
0x1a18   :  { %5610 = vmatprep.subr.mxu0 %v5945_v28 }
0x1a1a   :  { %5603 = vmatmul.mubr.msk.f32.vlgmr.msra.gmra.mrb[40].mxu0 %vm336_vm2, %v3315_v42 }
0x1a1b   :  { %5612 = vmatprep.mubr.msk.f32.mxu0 %vm5946_vm1, %v5945_v28 }
0x1a76   :  { %v3310_v26 = vpop.f32.mrb[34].mxu1 }
0x1a77   :  { %v5599_v30 = vpop.f32.mrb[35].mxu1 }
0x1ae9   :  { %v3237_v37 = vpop.f32.mrb[38].mxu0 }
0x1aea   :  { %v3311_v6 = vadd.f32 %v3310_v26, %v3237_v37  ;;  %v5594_v41 = vpop.f32.mrb[39].mxu0 }
0x1aed   :  { %v3388_v44 = vpop.f32.mrb[40].mxu0 }
0x1aee   :  { %v3392_v45 = vmul.f32 0.35355338, %v3388_v44  ;;  %v5604_v46 = vpop.f32.mrb[41].mxu0 }
0x1af0   :  { %v3393_v34 = vadd.f32 %v3392_v45, %v6113_v43 }
0x1af2   :  { %v3394_v47 = vsel %vm336_vm2, %v3393_v34, -inf }
0x1af3   :  { %3395 = vmax.xlane.f32.xlu1 %v3394_v47 }
0x1b04   :  { %3405 = vrot.lane.b32.xlu1 %v6472_v10, %s5948_s1 }
0x1b08   :  { %3555 = vrot.lane.b32.xlu1 %v6430_v33, %s5949_s19 }
0x1b80   :  { %v3396_v31 = vpop.xlane.xlu1 %3395 }
0x1b81   :  { %v3397_v0 = vsub.f32 %v3393_v34, %v3396_v31  ;;  %v6604_v31 = vld [vmem:[%s6742_s5 + $0x1] ss:$0 sm:$0xff] }
0x1b83   :  { %v3398_v48 = vmul.f32 1.442695, %v3397_v0 }
0x1b84   :  { %v3406_v50 = vpop.permute.xlu1 %3405 }
0x1b85   :  { %5911 = vpow2.f32 %v3398_v48  ;;  %5606 = vmatpush3.msra.mxu1 %v3406_v50 }
0x1b86   :  { %5615 = vmatprep.subr.mxu1 %v5945_v28 }
0x1b88   :  { %v3556_v56 = vpop.permute.xlu1 %3555 }
0x1b8f   :  { %v5912_v51 = vpop.eup %5911 }
0x1b90   :  { %v3400_v52 = vsel %vm336_vm2, %v5912_v51, 0.0 }
0x1b91   :  { %3401 = vadd.xlane.f32.xlu0 %v3400_v52 }
0x1ba7   :  { %3557 = vrot.lane.b32.xlu0 %v6440_v38, %s5949_s19  ;;  %v6535_v38 = vld [vmem:[%s6741_s4 + $0x30] sm:$0xff] }
0x1ba8   :  { %5611 = vmatpush3.msra.mxu0 %v6535_v38 }
0x1ba9   :  { %5620 = vmatprep.subr.mxu0 %v5945_v28 }
0x1c1e   :  { %v3402_v53 = vpop.xlane.xlu0 %3401 }
0x1c1f   :  { %5913 = vrcp.f32 %v3402_v53 }
0x1c22   :  { %v3558_v33 = vpop.permute.xlu0 %3557 }
0x1c29   :  { %v5914_v54 = vpop.eup %5913 }
0x1c2a   :  { %v3404_v55 = vmul.f32 %v5914_v54, %v5912_v51 }
0x1c2c   :  { %5608 = vmatmul.mubr.msk.f32.vlgmr.msra.gmra.mrb[36].mxu1 %vm336_vm2, %v3404_v55 }
0x1c2d   :  { %5616 = vmatpush3.xpose.msk.msra.mxu1 %vm336_vm2, %v3558_v33  ;;  %5617 = vmatprep.mubr.msk.f32.mxu1 %vm5946_vm1, %v5945_v28 }
0x1c2e   :  { %5625 = vmatprep.subr.mxu1 %v5945_v28 }
0x1c30   :  { %5618 = vmatmul.mubr.msk.f32.vlgmr.msra.gmra.mrb[38].mxu1 %vm336_vm2, %v3556_v56 }
0x1c31   :  { %5627 = vmatprep.mubr.msk.f32.mxu1 %vm5946_vm1, %v5945_v28  ;;  %5626 = vmatpush3.msra.mxu1 %v6562_v35 }
0x1c32   :  { %5635 = vmatprep.subr.mxu1 %v5945_v28 }
0x1cff   :  { %v3477_v58 = vpop.f32.mrb[36].mxu1 }
0x1d00   :  { %v5609_v15 = vpop.f32.mrb[37].mxu1  ;;  %5613 = vmatmul.mubr.msk.f32.vlgmr.msra.gmra.mrb[42].mxu0 %vm336_vm2, %v3477_v58 }
0x1d01   :  { %5622 = vmatprep.mubr.msk.f32.mxu0 %vm5946_vm1, %v5945_v28 }
0x1d03   :  { %v3629_v59 = vpop.f32.mrb[38].mxu1 }
0x1d04   :  { %v3633_v60 = vmul.f32 0.35355338, %v3629_v59  ;;  %v5619_v39 = vpop.f32.mrb[39].mxu1 }
0x1d06   :  { %v3634_v61 = vadd.f32 %v3633_v60, %v6113_v43 }
0x1d08   :  { %v3635_v62 = vsel %vm336_vm2, %v3634_v61, -inf }
0x1d09   :  { %3636 = vmax.xlane.f32.xlu1 %v3635_v62 }
0x1d1a   :  { %3968 = vrot.lane.b32.xlu1 %v6546_v1, %s5947_s0 }
0x1d1e   :  { %3966 = vrot.lane.b32.xlu1 %v6552_v29, %s5947_s0 }
0x1d96   :  { %v3637_v3 = vpop.xlane.xlu1 %3636 }
0x1d97   :  { %v3638_v14 = vsub.f32 %v3634_v61, %v3637_v3 }
0x1d99   :  { %v3639_v43 = vmul.f32 1.442695, %v3638_v14 }
0x1d9a   :  { %v3969_v12 = vpop.permute.xlu1 %3968 }
0x1d9b   :  { %5915 = vpow2.f32 %v3639_v43 }
0x1d9e   :  { %v3967_v13 = vpop.permute.xlu1 %3966 }
0x1da5   :  { %v5916_v49 = vpop.eup %5915 }
0x1da6   :  { %v3641_v32 = vsel %vm336_vm2, %v5916_v49, 0.0 }
0x1da7   :  { %3642 = vadd.xlane.f32.xlu0 %v3641_v32 }
0x1dbd   :  { %3646 = vrot.lane.b32.xlu0 %v6472_v10, %s5949_s19 }
0x1dd3   :  { %v3550_v4 = vpop.f32.mrb[42].mxu0 }
0x1dd4   :  { %v3554_v27 = vadd.f32 %v3550_v4, %v3311_v6  ;;  %v5614_v36 = vpop.f32.mrb[43].mxu0 }
0x1e34   :  { %v3643_v5 = vpop.xlane.xlu0 %3642 }
0x1e35   :  { %5917 = vrcp.f32 %v3643_v5 }
0x1e38   :  { %v3647_v8 = vpop.permute.xlu0 %3646 }
0x1e39   :  { %5621 = vmatpush3.msra.mxu0 %v3647_v8 }
0x1e3a   :  { %5630 = vmatprep.subr.mxu0 %v5945_v28 }
0x1e3f   :  { %v5918_v11 = vpop.eup %5917 }
0x1e40   :  { %v3645_v10 = vmul.f32 %v5918_v11, %v5916_v49 }
0x1e42   :  { %5623 = vmatmul.mubr.msk.f32.vlgmr.msra.gmra.mrb[44].mxu0 %vm336_vm2, %v3645_v10 }
0x1e43   :  { %5631 = vmatpush3.xpose.msk.msra.mxu0 %vm336_vm2, %v6546_v1  ;;  %5632 = vmatprep.mubr.msk.f32.mxu0 %vm5946_vm1, %v5945_v28 }
0x1e44   :  { %5640 = vmatprep.subr.mxu0 %v5945_v28 }
0x1e46   :  { %5633 = vmatmul.mubr.msk.f32.vlgmr.msra.gmra.mrb[46].mxu0 %vm336_vm2, %v6552_v29 }
0x1e47   :  { %5641 = vmatpush3.xpose.msk.msra.mxu0 %vm336_vm2, %v3969_v12  ;;  %5642 = vmatprep.mubr.msk.f32.mxu0 %vm5946_vm1, %v5945_v28 }
0x1e48   :  { %5650 = vmatprep.subr.mxu0 %v5945_v28 }
0x1e4a   :  { %5643 = vmatmul.mubr.msk.f32.vlgmr.msra.gmra.mrb[48].mxu0 %vm336_vm2, %v3967_v13 }
0x1e4b   :  { %5651 = vmatpush3.msra.mxu0 %v6488_v17  ;;  %5652 = vmatprep.mubr.msk.f32.mxu0 %vm5946_vm1, %v5945_v28 }
0x1e4c   :  { %5660 = vmatprep.subr.mxu0 %v5945_v28 }
0x1f15   :  { %v3718_v7 = vpop.f32.mrb[44].mxu0 }
0x1f16   :  { %v5624_v57 = vpop.f32.mrb[45].mxu0  ;;  %5628 = vmatmul.mubr.msk.f32.vlgmr.msra.gmra.mrb[40].mxu1 %vm336_vm2, %v3718_v7 }
0x1f17   :  { %5636 = vmatpush3.msra.mxu1 %v6474_v2  ;;  %5637 = vmatprep.mubr.msk.f32.mxu1 %vm5946_vm1, %v5945_v28 }
0x1f18   :  { %5645 = vmatprep.subr.mxu1 %v5945_v28 }
0x1f19   :  { %v3876_v18 = vpop.f32.mrb[46].mxu0 }
0x1f1a   :  { %v3880_v63 = vmul.f32 0.35355338, %v3876_v18  ;;  %v5634_v19 = vpop.f32.mrb[47].mxu0 }
0x1f1c   :  { %v3881_v17 = vadd.f32 %v3880_v63, %v6246_v16 }
0x1f1d   :  { %v4040_v20 = vpop.f32.mrb[48].mxu0 }
0x1f1e   :  { %v4044_v21 = vmul.f32 0.35355338, %v4040_v20  ;;  %v5644_v22 = vpop.f32.mrb[49].mxu0  ;;  %v3882_v24 = vsel %vm336_vm2, %v3881_v17, -inf }
0x1f1f   :  { %3883 = vmax.xlane.f32.xlu1 %v3882_v24 }
0x1f20   :  { %v4045_v9 = vadd.f32 %v4044_v21, %v6246_v16 }
0x1f22   :  { %v4046_v42 = vsel %vm336_vm2, %v4045_v9, -inf }
0x1f23   :  { %4047 = vmax.xlane.f32.xlu0 %v4046_v42 }
0x1f30   :  { %4058 = vrot.lane.b32.xlu1 %v6474_v2, %s5947_s0 }
0x1f34   :  { %4280 = vrot.lane.b32.xlu1 %v6552_v29, %s5948_s1 }
0x1fac   :  { %v3884_v26 = vpop.xlane.xlu1 %3883 }
0x1fad   :  { %v3885_v30 = vsub.f32 %v3881_v17, %v3884_v26 }
0x1faf   :  { %v3886_v37 = vmul.f32 1.442695, %v3885_v30 }
0x1fb0   :  { %v4048_v6 = vpop.xlane.xlu0 %4047  ;;  %v4059_v33 = vpop.permute.xlu1 %4058 }
0x1fb1   :  { %5919 = vpow2.f32 %v3886_v37  ;;  %v4049_v41 = vsub.f32 %v4045_v9, %v4048_v6 }
0x1fb3   :  { %v4050_v44 = vmul.f32 1.442695, %v4049_v41 }
0x1fb5   :  { %5921 = vpow2.f32 %v4050_v44 }
0x1fbb   :  { %v5920_v45 = vpop.eup %5919 }
0x1fbc   :  { %v3888_v46 = vsel %vm336_vm2, %v5920_v45, 0.0 }
0x1fbd   :  { %3889 = vadd.xlane.f32.xlu0 %v3888_v46 }
0x1fbf   :  { %v5922_v34 = vpop.eup %5921 }
0x1fc0   :  { %v4052_v47 = vsel %vm336_vm2, %v5922_v34, 0.0 }
0x1fc1   :  { %4053 = vadd.xlane.f32.xlu0 %v4052_v47 }
0x1fd7   :  { %4282 = vrot.lane.b32.xlu0 %v6546_v1, %s5948_s1 }
0x1fe9   :  { %v3791_v0 = vpop.f32.mrb[40].mxu1 }
0x1fea   :  { %v3795_v48 = vadd.f32 %v3791_v0, %v3554_v27  ;;  %v5629_v50 = vpop.f32.mrb[41].mxu1 }
0x1fec   :  { %v3802_v51 = vadd.f32 %v6604_v31, %v3795_v48 }
0x1fee   :  { %3803 = vst.msk [vmem:[#allocation2] sm:$0xff] %vm66_vm0, %v3802_v51 }
0x1ff5   :  { %v4764_v22 = vld [vmem:[#allocation2] sm:$0xff] }
0x204a   :  { %v3890_v52 = vpop.xlane.xlu0 %3889 }
0x204b   :  { %5923 = vrcp.f32 %v3890_v52 }
0x204e   :  { %v4054_v53 = vpop.xlane.xlu0 %4053 }
0x204f   :  { %5925 = vrcp.f32 %v4054_v53 }
0x2052   :  { %v4283_v39 = vpop.permute.xlu0 %4282 }
0x2055   :  { %v5924_v54 = vpop.eup %5923 }
0x2056   :  { %v3892_v55 = vmul.f32 %v5924_v54, %v5920_v45 }
0x2058   :  { %5638 = vmatmul.mubr.msk.f32.vlgmr.msra.gmra.mrb[42].mxu1 %vm336_vm2, %v3892_v55 }
0x2059   :  { %v5926_v56 = vpop.eup %5925  ;;  %5646 = vmatpush3.msra.mxu1 %v4059_v33  ;;  %5647 = vmatprep.mubr.msk.f32.mxu1 %vm5946_vm1, %v5945_v28 }
0x205a   :  { %v4056_v58 = vmul.f32 %v5926_v56, %v5922_v34  ;;  %5655 = vmatprep.subr.mxu1 %v5945_v28 }
0x205c   :  { %5648 = vmatmul.mubr.msk.f32.vlgmr.msra.gmra.mrb[44].mxu1 %vm336_vm2, %v4056_v58 }
0x205d   :  { %5656 = vmatpush3.msra.mxu1 %v6496_v40  ;;  %5657 = vmatprep.mubr.msk.f32.mxu1 %vm5946_vm1, %v5945_v28  ;;  %v4281_v40 = vpop.permute.xlu1 %4280 }
0x205e   :  { %5665 = vmatprep.subr.mxu1 %v5945_v28 }
0x212b   :  { %v3962_v15 = vpop.f32.mrb[42].mxu1 }
0x212c   :  { %v5639_v59 = vpop.f32.mrb[43].mxu1  ;;  %5658 = vmatmul.mubr.msk.f32.vlgmr.msra.gmra.mrb[46].mxu1 %vm336_vm2, %v3962_v15 }
0x212d   :  { %5667 = vmatprep.mubr.msk.f32.mxu1 %vm5946_vm1, %v5945_v28 }
0x212f   :  { %v4130_v60 = vpop.f32.mrb[44].mxu1 }
0x2130   :  { %v5649_v61 = vpop.f32.mrb[45].mxu1  ;;  %5653 = vmatmul.mubr.msk.f32.vlgmr.msra.gmra.mrb[50].mxu0 %vm336_vm2, %v4130_v60 }
0x2131   :  { %5661 = vmatpush3.xpose.msk.msra.mxu0 %vm336_vm2, %v4283_v39  ;;  %5662 = vmatprep.mubr.msk.f32.mxu0 %vm5946_vm1, %v5945_v28 }
0x2132   :  { %5670 = vmatprep.subr.mxu0 %v5945_v28 }
0x2134   :  { %5663 = vmatmul.mubr.msk.f32.vlgmr.msra.gmra.mrb[52].mxu0 %vm336_vm2, %v4281_v40 }
0x2135   :  { %5671 = vmatpush3.msra.mxu0 %v6535_v38  ;;  %5672 = vmatprep.mubr.msk.f32.mxu0 %vm5946_vm1, %v5945_v28 }
0x2136   :  { %5680 = vmatprep.subr.mxu0 %v5945_v28 }
0x21ff   :  { %v4276_v62 = vpop.f32.mrb[46].mxu1 }
0x2200   :  { %v5659_v3 = vpop.f32.mrb[47].mxu1 }
0x2203   :  { %v4203_v14 = vpop.f32.mrb[50].mxu0 }
0x2204   :  { %v4277_v43 = vadd.f32 %v4276_v62, %v4203_v14  ;;  %v5654_v49 = vpop.f32.mrb[51].mxu0 }
0x2205   :  { %v5165_v49 = vld [vmem:[%s6744_s7 + $0x1] ss:$0 sm:$0xff] }
0x2207   :  { %v4354_v32 = vpop.f32.mrb[52].mxu0 }
0x2208   :  { %v4358_v4 = vmul.f32 0.35355338, %v4354_v32  ;;  %v5664_v27 = vpop.f32.mrb[53].mxu0 }
0x2209   :  { %v5166_v27 = vld [vmem:[%s6745_s8 + $0x20] sm:$0xff] }
0x220a   :  { %v4359_v36 = vadd.f32 %v4358_v4, %v6246_v16 }
0x220c   :  { %v4360_v5 = vsel %vm336_vm2, %v4359_v36, -inf }
0x220d   :  { %4361 = vmax.xlane.f32.xlu1 %v4360_v5 }
0x221e   :  { %4523 = vrot.lane.b32.xlu1 %v6546_v1, %s5949_s19 }
0x2222   :  { %4521 = vrot.lane.b32.xlu1 %v6552_v29, %s5949_s19 }
0x229a   :  { %v4362_v38 = vpop.xlane.xlu1 %4361 }
0x229b   :  { %v4363_v8 = vsub.f32 %v4359_v36, %v4362_v38  ;;  %v5167_v36 = vld [vmem:[%s6745_s8 + $0x28] sm:$0xff]  ;;  %v5168_v38 = vld [vmem:[%s6745_s8 + $0x30] sm:$0xff] }
0x229c   :  { %v5792_v5 = vpack.c.bf16 %v5167_v36, %v5166_v27 }
0x229d   :  { %v4364_v11 = vmul.f32 1.442695, %v4363_v8  ;;  %v5169_v8 = vld [vmem:[%s6745_s8 + $0x38] sm:$0xff] }
0x229e   :  { %v4524_v57 = vpop.permute.xlu1 %4523 }
0x229f   :  { %5927 = vpow2.f32 %v4364_v11  ;;  %v5796_v11 = vpack.c.bf16 %v5169_v8, %v5168_v38 }
0x22a2   :  { %v4522_v18 = vpop.permute.xlu1 %4521 }
0x22a9   :  { %v5928_v10 = vpop.eup %5927 }
0x22aa   :  { %v4366_v12 = vsel %vm336_vm2, %v5928_v10, 0.0 }
0x22ab   :  { %4367 = vadd.xlane.f32.xlu0 %v4366_v12  ;;  %v5172_v12 = vld [vmem:[%s6746_s10 + $0x48] sm:$0xff] }
0x22c1   :  { %4371 = vrot.lane.b32.xlu0 %v6474_v2, %s5948_s1 }
0x2338   :  { %v4368_v13 = vpop.xlane.xlu0 %4367 }
0x2339   :  { %5929 = vrcp.f32 %v4368_v13  ;;  %v5173_v13 = vld [vmem:[%s6746_s10 + $0x50] sm:$0xff] }
0x233c   :  { %v4372_v7 = vpop.permute.xlu0 %4371 }
0x233d   :  { %5666 = vmatpush3.msra.mxu1 %v4372_v7 }
0x233e   :  { %5675 = vmatprep.subr.mxu1 %v5945_v28 }
0x2343   :  { %v5930_v1 = vpop.eup %5929 }
0x2344   :  { %v4370_v29 = vmul.f32 %v5930_v1, %v5928_v10  ;;  %v5171_v10 = vld [vmem:[%s6746_s10 + $0x40] sm:$0xff]  ;;  %v5174_v1 = vld [vmem:[%s6746_s10 + $0x58] sm:$0xff] }
0x2345   :  { %v5800_v7 = vpack.c.bf16 %v5172_v12, %v5171_v10 }
0x2346   :  { %5668 = vmatmul.mubr.msk.f32.vlgmr.msra.gmra.mrb[48].mxu1 %vm336_vm2, %v4370_v29  ;;  %v5175_v29 = vld [vmem:[%s6746_s10 + $0x60] sm:$0xff] }
0x2347   :  { %5676 = vmatpush3.xpose.msk.msra.mxu1 %vm336_vm2, %v4524_v57  ;;  %5677 = vmatprep.mubr.msk.f32.mxu1 %vm5946_vm1, %v5945_v28  ;;  %v5804_v57 = vpack.c.bf16 %v5174_v1, %v5173_v13 }
0x2348   :  { %5685 = vmatprep.subr.mxu1 %v5945_v28 }
0x234a   :  { %5678 = vmatmul.mubr.msk.f32.vlgmr.msra.gmra.mrb[50].mxu1 %vm336_vm2, %v4522_v18  ;;  %v5176_v18 = vld [vmem:[%s6746_s10 + $0x68] sm:$0xff] }
0x234b   :  { %5686 = vmatpush3.msra.mxu1 %v6562_v35  ;;  %5687 = vmatprep.mubr.msk.f32.mxu1 %vm5946_vm1, %v5945_v28  ;;  %v4766_v35 = vadd.f32 %v4764_v22, %v6410_v23 }
0x234c   :  { %5801 = vmatprep.subr.bf16.mxu1 %v5800_v7 }
0x234d   :  { %v4772_v42 = vsel %vm66_vm0, %v4766_v35, 0.0 }
0x2419   :  { %v4443_v63 = vpop.f32.mrb[48].mxu1 }
0x241a   :  { %v5669_v19 = vpop.f32.mrb[49].mxu1  ;;  %5673 = vmatmul.mubr.msk.f32.vlgmr.msra.gmra.mrb[54].mxu0 %vm336_vm2, %v4443_v63  ;;  %v5808_v63 = vpack.c.bf16 %v5176_v18, %v5175_v29 }
0x241b   :  { %5682 = vmatprep.mubr.msk.f32.mxu0 %vm5946_vm1, %v5945_v28 }
0x241d   :  { %v4595_v17 = vpop.f32.mrb[50].mxu1 }
0x241e   :  { %v4599_v20 = vmul.f32 0.35355338, %v4595_v17  ;;  %v5679_v21 = vpop.f32.mrb[51].mxu1 }
0x2420   :  { %v4600_v24 = vadd.f32 %v4599_v20, %v6246_v16 }
0x2422   :  { %v4601_v9 = vsel %vm336_vm2, %v4600_v24, -inf }
0x2423   :  { %4602 = vmax.xlane.f32.xlu1 %v4601_v9 }
0x2427   :  { %4773 = vadd.xlane.f32.xlu1 %v4772_v42  ;;  %v5178_v42 = vld [vmem:[%s6746_s10 + $0x78] sm:$0xff] }
0x24b0   :  { %v4603_v26 = vpop.xlane.xlu1 %4602 }
0x24b1   :  { %v4604_v30 = vsub.f32 %v4600_v24, %v4603_v26 }
0x24b3   :  { %v4605_v37 = vmul.f32 1.442695, %v4604_v30  ;;  %v5180_v30 = vld [vmem:[%s6747_s9 + $0x1] ss:$0 sm:$0xff] }
0x24b4   :  { %v4774_v52 = vpop.xlane.xlu1 %4773 }
0x24b5   :  { %5931 = vpow2.f32 %v4605_v37  ;;  %v4778_v53 = vmul.f32 0.03125, %v4774_v52 }
0x24b7   :  { %v4780_v54 = vsub.f32 %v4766_v35, %v4778_v53  ;;  %v5177_v35 = vld [vmem:[%s6746_s10 + $0x70] sm:$0xff] }
0x24b8   :  { %v5812_v26 = vpack.c.bf16 %v5178_v42, %v5177_v35 }
0x24b9   :  { %v4782_v58 = vmul.f32 %v4780_v54, %v4780_v54 }
0x24bb   :  { %v4784_v15 = vsel %vm66_vm0, %v4782_v58, 0.0 }
0x24bf   :  { %v5932_v6 = vpop.eup %5931 }
0x24c0   :  { %v4607_v28 = vsel %vm336_vm2, %v5932_v6, 0.0 }
0x24c1   :  { %4608 = vadd.xlane.f32.xlu0 %v4607_v28 }
0x24d7   :  { %4612 = vrot.lane.b32.xlu0 %v6474_v2, %s5949_s19 }
0x24ed   :  { %v4516_v16 = vpop.f32.mrb[54].mxu0 }
0x24ee   :  { %v4520_v41 = vadd.f32 %v4516_v16, %v4277_v43  ;;  %v5674_v44 = vpop.f32.mrb[55].mxu0 }
0x254e   :  { %v4609_v45 = vpop.xlane.xlu0 %4608 }
0x254f   :  { %5933 = vrcp.f32 %v4609_v45  ;;  %v5183_v45 = vld [vmem:[%s6748_s11 + $0x1] ss:$0 sm:$0xff] }
0x2552   :  { %v4613_v23 = vpop.permute.xlu0 %4612 }
0x2553   :  { %5681 = vmatpush3.msra.mxu0 %v4613_v23 }
0x2554   :  { %5793 = vmatprep.subr.bf16.mxu0 %v5792_v5 }
0x2559   :  { %v5934_v46 = vpop.eup %5933 }
0x255a   :  { %v4611_v34 = vmul.f32 %v5934_v46, %v5932_v6 }
0x255c   :  { %5683 = vmatmul.mubr.msk.f32.vlgmr.msra.gmra.mrb[56].mxu0 %vm336_vm2, %v4611_v34 }
0x255d   :  { %5795 = vmatpush3.bf16.msra.mxu0 %v5792_v5 }
0x255e   :  { %5797 = vmatprep.subr.bf16.mxu0 %v5796_v11 }
0x2561   :  { %5799 = vmatpush3.bf16.msra.mxu0 %v5796_v11 }
0x262f   :  { %v4684_v47 = vpop.f32.mrb[56].mxu0 }
0x2630   :  { %v5684_v0 = vpop.f32.mrb[57].mxu0  ;;  %5688 = vmatmul.mubr.msk.f32.vlgmr.msra.gmra.mrb[52].mxu1 %vm336_vm2, %v4684_v47 }
0x2631   :  { %5803 = vmatpush3.bf16.msra.mxu1 %v5800_v7 }
0x2632   :  { %5805 = vmatprep.subr.bf16.mxu1 %v5804_v57 }
0x2635   :  { %5807 = vmatpush3.bf16.msra.mxu1 %v5804_v57 }
0x2636   :  { %5809 = vmatprep.subr.bf16.mxu1 %v5808_v63 }
0x2639   :  { %5811 = vmatpush3.bf16.msra.mxu1 %v5808_v63 }
0x263a   :  { %5813 = vmatprep.subr.bf16.mxu1 %v5812_v26 }
0x263d   :  { %5815 = vmatpush3.bf16.msra.mxu1 %v5812_v26 }
0x2703   :  { %v4757_v48 = vpop.f32.mrb[52].mxu1 }
0x2704   :  { %v4761_v50 = vadd.f32 %v4757_v48, %v4520_v41  ;;  %v5689_v51 = vpop.f32.mrb[53].mxu1 }
0x2706   :  { %v4762_v2 = vadd.f32 %v6604_v31, %v4761_v50 }
0x2708   :  { %4763 = vst.msk [vmem:[#allocation2 + $0x8] sm:$0xff] %vm66_vm0, %v4762_v2 }
0x270f   :  { %v4765_v55 = vld [vmem:[#allocation2 + $0x8] sm:$0xff] }
0x2710   :  { %v4767_v33 = vadd.f32 %v4765_v55, %v6416_v25  ;;  %v5164_v25 = vld [vmem:[%s6743_s6 + $0x1] ss:$0 sm:$0xff] }
0x2712   :  { %v4775_v56 = vsel %vm66_vm0, %v4767_v33, 0.0 }
0x2713   :  { %4776 = vadd.xlane.f32.xlu1 %v4775_v56 }
0x2717   :  { %4785 = vadd.xlane.f32.xlu1 %v4784_v15 }
0x27a0   :  { %v4777_v59 = vpop.xlane.xlu1 %4776 }
0x27a1   :  { %v4779_v60 = vmul.f32 0.03125, %v4777_v59 }
0x27a3   :  { %v4781_v39 = vsub.f32 %v4767_v33, %v4779_v60 }
0x27a4   :  { %v4786_v61 = vpop.xlane.xlu1 %4785 }
0x27a5   :  { %v4790_v31 = vmul.f32 0.03125, %v4786_v61  ;;  %v4783_v40 = vmul.f32 %v4781_v39, %v4781_v39 }
0x27a7   :  { %v4792_v62 = vadd.f32 1e-05, %v4790_v31  ;;  %v4787_v3 = vsel %vm66_vm0, %v4783_v40, 0.0 }
0x27a8   :  { %4788 = vadd.xlane.f32.xlu1 %v4787_v3 }
0x27a9   :  { %5935 = vrsqrt.f32 %v4792_v62 }
0x27b3   :  { %v5936_v14 = vpop.eup %5935 }
0x27b4   :  { %v4796_v43 = vmul.f32 %v5936_v14, %v4780_v54  ;;  %v5188_v14 = vld [vmem:[%s6749_s12 + $0x1] ss:$0 sm:$0xff] }
0x27b6   :  { %v4804_v32 = vmul.f32 %v5164_v25, %v4796_v43  ;;  %v5189_v43 = vld [vmem:[%s6750_s13 + $0x1] ss:$0 sm:$0xff] }
0x27b8   :  { %v4812_v4 = vadd.f32 %v5165_v49, %v4804_v32 }
0x27ba   :  { %5698 = vmatprep.mubr.msk.f32.mxu0 %vm66_vm0, %v4812_v4 }
0x2835   :  { %v4789_v19 = vpop.xlane.xlu1 %4788 }
0x2836   :  { %v4791_v17 = vmul.f32 0.03125, %v4789_v19 }
0x2838   :  { %v4793_v20 = vadd.f32 1e-05, %v4791_v17 }
0x283a   :  { %5937 = vrsqrt.f32 %v4793_v20 }
0x2844   :  { %v5938_v21 = vpop.eup %5937 }
0x2845   :  { %v4797_v22 = vmul.f32 %v5938_v21, %v4781_v39 }
0x2847   :  { %v4805_v24 = vmul.f32 %v5164_v25, %v4797_v22 }
0x2849   :  { %v4813_v9 = vadd.f32 %v5165_v49, %v4805_v24 }
0x284b   :  { %5699 = vmatmul.mubr.msk.f32.vlgmr.msra.gmra.mrb[58].mxu0 %vm66_vm0, %v4813_v9 }
0x291e   :  { %v5700_v37 = vpop.f32.mrb[58].mxu0 }
0x291f   :  { %v4916_v6 = vadd.f32 %v5700_v37, %v5180_v30  ;;  %v4910_v28 = vpop.f32.mrb[59].mxu0 }
0x2920   :  { %v4911_v16 = vadd.f32 %v5180_v30, %v4910_v28 }
0x2921   :  { %v4920_v44 = vmax.f32 %v4916_v6, 0.0 }
0x2922   :  { %v4919_v41 = vmax.f32 %v4911_v16, 0.0 }
0x2924   :  { %5717 = vmatprep.mubr.msk.f32.mxu1 %vm2425_vm3, %v4919_v41 }
0x2925   :  { %5718 = vmatmul.mubr.msk.f32.vlgmr.msra.gmra.mrb[54].mxu1 %vm2425_vm3, %v4920_v44 }
0x29f8   :  { %v5719_v23 = vpop.f32.mrb[54].mxu1 }
0x29f9   :  { %v5005_v46 = vadd.f32 %v5719_v23, %v5183_v45  ;;  %v4999_v34 = vpop.f32.mrb[55].mxu1 }
0x29fa   :  { %v5000_v47 = vadd.f32 %v5183_v45, %v4999_v34 }
0x29fb   :  { %v5009_v0 = vadd.f32 %v5005_v46, %v4813_v9 }
0x29fc   :  { %v5008_v48 = vadd.f32 %v5000_v47, %v4812_v4 }
0x29fd   :  { %v5017_v50 = vsel %vm66_vm0, %v5009_v0, 0.0 }
0x29fe   :  { %5018 = vadd.xlane.f32.xlu0 %v5017_v50  ;;  %v5014_v51 = vsel %vm66_vm0, %v5008_v48, 0.0 }
0x29ff   :  { %5015 = vadd.xlane.f32.xlu1 %v5014_v51 }
0x2a8b   :  { %v5019_v2 = vpop.xlane.xlu0 %5018 }
0x2a8c   :  { %v5021_v52 = vmul.f32 0.03125, %v5019_v2  ;;  %v5016_v53 = vpop.xlane.xlu1 %5015 }
0x2a8d   :  { %v5020_v54 = vmul.f32 0.03125, %v5016_v53 }
0x2a8e   :  { %v5023_v55 = vsub.f32 %v5009_v0, %v5021_v52 }
0x2a8f   :  { %v5022_v33 = vsub.f32 %v5008_v48, %v5020_v54 }
0x2a90   :  { %v5025_v15 = vmul.f32 %v5023_v55, %v5023_v55 }
0x2a91   :  { %v5024_v56 = vmul.f32 %v5022_v33, %v5022_v33 }
0x2a92   :  { %v5029_v59 = vsel %vm66_vm0, %v5025_v15, 0.0 }
0x2a93   :  { %v5026_v58 = vsel %vm66_vm0, %v5024_v56, 0.0 }
0x2a94   :  { %5027 = vadd.xlane.f32.xlu1 %v5026_v58 }
0x2a98   :  { %5030 = vadd.xlane.f32.xlu1 %v5029_v59 }
0x2b21   :  { %v5028_v60 = vpop.xlane.xlu1 %5027 }
0x2b22   :  { %v5032_v39 = vmul.f32 0.03125, %v5028_v60 }
0x2b24   :  { %v5034_v61 = vadd.f32 1e-05, %v5032_v39 }
0x2b25   :  { %v5031_v31 = vpop.xlane.xlu1 %5030 }
0x2b26   :  { %5939 = vrsqrt.f32 %v5034_v61  ;;  %v5033_v40 = vmul.f32 0.03125, %v5031_v31 }
0x2b28   :  { %v5035_v62 = vadd.f32 1e-05, %v5033_v40 }
0x2b2a   :  { %5941 = vrsqrt.f32 %v5035_v62 }
0x2b30   :  { %v5940_v3 = vpop.eup %5939 }
0x2b31   :  { %v5038_v25 = vmul.f32 %v5940_v3, %v5022_v33 }
0x2b33   :  { %v5046_v49 = vmul.f32 %v5188_v14, %v5038_v25 }
0x2b34   :  { %v5942_v32 = vpop.eup %5941 }
0x2b35   :  { %v5054_v4 = vadd.f32 %v5189_v43, %v5046_v49  ;;  %v5039_v27 = vmul.f32 %v5942_v32, %v5023_v55 }
0x2b37   :  { %5056 = vst.msk [vmem:[%s6751_s14] sm:$0xff] %vm66_vm0, %v5054_v4  ;;  %v5047_v36 = vmul.f32 %v5188_v14, %v5039_v27 }
0x2b39   :  { %v5055_v5 = vadd.f32 %v5189_v43, %v5047_v36 }
0x2b3b   :  { %5057 = vst.msk [vmem:[%s6751_s14 + $0x8] sm:$0xff] %vm66_vm0, %v5055_v5 }

// kernel: transformer_fwd.3
= control target key start
LH: loop header
LB: loop body
LE: loop exit
PB: predicated region body
PF: predicated region fallthrough
CT: control target
= control target key end

     0   :  { %s12900_s0 = inlined_call_operand.vmem [shape: f32[16,32], index: 0, kind: input, shape index: {}]   ;;  %s12901_s1 = inlined_call_operand.vmem [shape: f32[16,32], index: 1, kind: input, shape index: {}]   ;;  %s12902_s2 = inlined_call_operand.vmem [shape: f32[2,8], index: 2, kind: input, shape index: {}]   ;;  %s12903_s3 = inlined_call_operand.vmem [shape: f32[2,8], index: 3, kind: input, shape index: {}]   ;;  %s12904_s4 = inlined_call_operand.vmem [shape: f32[2,32,96], index: 4, kind: input, shape index: {}]   ;;  %s12905_s5 = inlined_call_operand.vmem [shape: f32[2,1,96], index: 5, kind: input, shape index: {}]   ;;  %s12906_s6 = inlined_call_operand.vmem [shape: f32[2,32,32], index: 6, kind: input, shape index: {}]   ;;  %s12907_s7 = inlined_call_operand.vmem [shape: f32[2,1,32], index: 7, kind: input, shape index: {}]   ;;  %s12908_s8 = inlined_call_operand.vmem [shape: f32[2,32,96], index: 8, kind: input, shape index: {}]   ;;  %s12909_s9 = inlined_call_operand.vmem [shape: f32[2,1,96], index: 9, kind: input, shape index: {}]   ;;  %s12910_s10 = inlined_call_operand.vmem [shape: f32[2,32,32], index: 10, kind: input, shape index: {}]   ;;  %s12911_s11 = inlined_call_operand.vmem [shape: f32[2,1,32], index: 11, kind: input, shape index: {}]   ;;  %s12912_s12 = inlined_call_operand.vmem [shape: f32[2,1,32], index: 12, kind: input, shape index: {}]   ;;  %s12913_s13 = inlined_call_operand.vmem [shape: f32[2,1,32], index: 13, kind: input, shape index: {}]   ;;  %s12914_s14 = inlined_call_operand.vmem [shape: f32[2,1,32], index: 14, kind: input, shape index: {}]   ;;  %s12915_s15 = inlined_call_operand.vmem [shape: f32[2,1,32], index: 15, kind: input, shape index: {}]   ;;  %s12916_s16 = inlined_call_operand.vmem [shape: f32[2,1,32], index: 16, kind: input, shape index: {}]   ;;  %s12917_s17 = inlined_call_operand.vmem [shape: f32[2,1,32], index: 17, kind: input, shape index: {}]   ;;  %s12918_s18 = inlined_call_operand.vmem [shape: f32[2,32,64], index: 18, kind: input, shape index: {}]   ;;  %s12919_s19 = inlined_call_operand.vmem [shape: f32[2,1,64], index: 19, kind: input, shape index: {}]   ;;  %s12920_s20 = inlined_call_operand.vmem [shape: f32[2,64,32], index: 20, kind: input, shape index: {}]   ;;  %s12921_s21 = inlined_call_operand.vmem [shape: f32[2,1,32], index: 21, kind: input, shape index: {}]   ;;  %s12922_s22 = inlined_call_operand.vmem [shape: f32[32,128], index: 22, kind: input, shape index: {}]   ;;  %s12923_s23 = inlined_call_operand.vmem [shape: f32[1,128], index: 23, kind: input, shape index: {}]   ;;  %s12924_s24 = inlined_call_operand.vmem [shape: f32[16,128], index: 24, kind: output, shape index: {0}]   ;;  %s12925_s25 = inlined_call_operand.hbm [shape: f32[8,8,8], index: 25, kind: output, shape index: {1}]  }
   0x1   :  { %12948 = sst [smem:[#allocation6_spill]] %s12900_s0 }
   0x2   :  { %12949 = sst [smem:[#allocation7_spill]] %s12901_s1 }
   0x3   :  { %12950 = sst [smem:[#allocation8_spill]] %s12902_s2 }
   0x4   :  { %12951 = sst [smem:[#allocation9_spill]] %s12903_s3 }
   0x5   :  { %12952 = sst [smem:[#allocation10_spill]] %s12904_s4 }
   0x6   :  { %12953 = sst [smem:[#allocation11_spill]] %s12905_s5 }
   0x7   :  { %12954 = sst [smem:[#allocation12_spill]] %s12906_s6 }
   0x8   :  { %12955 = sst [smem:[#allocation13_spill]] %s12907_s7 }
   0x9   :  { %12956 = sst [smem:[#allocation14_spill]] %s12908_s8 }
   0xa   :  { %12957 = sst [smem:[#allocation15_spill]] %s12909_s9 }
   0xb   :  { %12958 = sst [smem:[#allocation16_spill]] %s12915_s15 }
   0xc   :  { %12959 = sst [smem:[#allocation17_spill]] %s12922_s22 }
   0xd   :  { %12960 = sst [smem:[#allocation18_spill]] %s12923_s23 }
   0xe   :  { %12961 = sst [smem:[#allocation19_spill]] %s12924_s24 }
   0xf   :  { %12962 = sst [smem:[#allocation20_spill]] %s12925_s25 }
  0x10   :  { %s12963_s6 = sld [smem:[#allocation10_spill]]  ;;  %vm108_vm0 = vcmask 261120   ;;  %s12964_s28 = sld [smem:[#allocation6_spill]] }
  0x11   :  { %s12965_s0 = sld [smem:[#allocation11_spill]] }
  0x16   :  { %v92_v0 = vld [vmem:[%s12963_s6] sm:$0xff]  ;;  %v93_v1 = vld [vmem:[%s12963_s6 + $0x8] sm:$0xff]  ;;  %v94_v2 = vld [vmem:[%s12963_s6 + $0x10] sm:$0xff] }
  0x17   :  { %v11134_v3 = vpack.i.bf16 %v93_v1, %v92_v0  ;;  %v95_v4 = vld [vmem:[%s12963_s6 + $0x18] sm:$0xff]  ;;  %v10971_v5 = vpack.c.bf16 %v93_v1, %v92_v0  ;;  %v11548_v6 = vld [vmem:[%s12964_s28] sm:$0xff] }
  0x18   :  { %v10975_v7 = vpack.c.bf16 %v95_v4, %v94_v2  ;;  %10307 = vmatprep.mubr.msk.f32.mxu1 %vm108_vm0, %v11548_v6  ;;  %10296 = vmatprep.mubr.msk.f32.mxu0 %vm108_vm0, %v11548_v6  ;;  %v11557_v8 = vld [vmem:[%s12965_s0] ss:$0 sm:$0xff] }
  0x19   :  { %31 = vsyncpa [#allocation4], 0  ;;  %s12942_s29 = smov 96   ;;  %v11139_v9 = vpack.i.bf16 %v95_v4, %v94_v2  ;;  %10972 = vmatprep.subr.bf16.mxu0 %v10971_v5  ;;  %s12940_s2 = smov 64   ;;  %v11567_v10 = vld [vmem:[%s12964_s28 + $0x8] sm:$0xff]  ;;  %v11394_v20 = vmov 0.0   ;;  %v86_v39 = vlaneseq }
  0x1a   :  { %11135 = vrot.lane.b32.xlu0 %v11134_v3, %s12942_s29  ;;  %10974 = vmatpush3.bf16.msra.mxu0 %v10971_v5  ;;  %vm11395_vm1 = vmmov 0   ;;  %s12938_s3 = smov 120   ;;  %vm379_vm2 = vcmask 64512   ;;  %s12966_s8 = sld [smem:[#allocation8_spill]]  ;;  %v11397_v45 = vmov -1e+09  }
  0x1b   :  { %206 = vrot.lane.b32.xlu1 %v11557_v8, %s12942_s29  ;;  %10976 = vmatprep.subr.bf16.mxu0 %v10975_v7  ;;  %v11614_v40 = vshrl.u32 %v86_v39, 7  ;;  %v89_v41 = vand.u32 127, %v86_v39  ;;  %s12936_s27 = smov 112   ;;  %s12967_s9 = sld [smem:[#allocation12_spill]]  ;;  %vm4738_vm4 = vcmask 523264  }
  0x1c   :  { %s12934_s7 = smov 104   ;;  %s12968_s30 = sld [smem:[#allocation13_spill]] }
  0x1d   :  { %v376_v42 = vsub.s32 0, %v11614_v40  ;;  %vm90_vm3 = vcmp.le.s32.totalorder %v89_v41, %v11614_v40  ;;  %s12970_s26 = sld [smem:[#allocation7_spill]]  ;;  %s12972_s5 = smov 120  }
  0x1e   :  { %11140 = vrot.lane.b32.xlu0 %v11139_v9, %s12942_s29  ;;  %10978 = vmatpush3.bf16.msra.mxu0 %v10975_v7  ;;  %v11626_v46 = vsel %vm90_vm3, 0.0, %v11397_v45  ;;  %s12971_s1 = sld [smem:[#allocation15_spill]]  ;;  %s12974_s4 = smov 112  }
  0x1f   :  { %11145 = vrot.lane.b32.xlu1 %v11134_v3, %s12940_s2  ;;  %s12975_s28 = smov 104   ;;  %s12977_s22 = smov 64  }
  0x20   :  { %v11620_v43 = vld [vmem:[%s12966_s8] sm:$0x3]  ;;  %s12969_s8 = sld [smem:[#allocation14_spill]] }
  0x21   :  { %10297 = vmatmul.mubr.msk.f32.vlgmr.msra.gmra.mrb[0].mxu0 %vm108_vm0, %v11567_v10  ;;  %v377_v44 = vrot.slane %v11620_v43, %v376_v42 }
  0x22   :  { %11150 = vrot.lane.b32.xlu0 %v11139_v9, %s12940_s2  ;;  %10318 = vmatprep.mubr.msk.f32.mxu0 %vm108_vm0, %v11548_v6 }
  0x23   :  { %v11629_v47 = vadd.f32 %v377_v44, %v11626_v46 }
  0x8c   :  { %v11136_v11 = vpop.permute.xlu0 %11135 }
  0x8d   :  { %v11138_v12 = vunpack.i.h.bf16 %v11136_v11  ;;  %v11137_v13 = vunpack.i.l.bf16 %v11136_v11  ;;  %v11576_v19 = vpop.permute.xlu1 %206 }
  0x8f   :  { %v10979_v14 = vpack.c.bf16 %v11138_v12, %v11137_v13  ;;  %v11658_v12 = vld [vmem:[%s12967_s9 + $0x8] sm:$0xff] }
  0x90   :  { %v11141_v15 = vpop.permute.xlu0 %11140 }
  0x91   :  { %v11143_v16 = vunpack.i.h.bf16 %v11141_v15  ;;  %v11142_v17 = vunpack.i.l.bf16 %v11141_v15  ;;  %10980 = vmatprep.subr.bf16.mxu1 %v10979_v14  ;;  %v11146_v21 = vpop.permute.xlu1 %11145 }
  0x92   :  { %10982 = vmatpush3.bf16.msra.mxu1 %v10979_v14  ;;  %v11148_v23 = vunpack.i.h.bf16 %v11146_v21  ;;  %v11147_v24 = vunpack.i.l.bf16 %v11146_v21 }
  0x93   :  { %v10983_v18 = vpack.c.bf16 %v11143_v16, %v11142_v17  ;;  %v11666_v17 = vld [vmem:[%s12967_s9] sm:$0xff] }
  0x94   :  { %v11151_v22 = vpop.permute.xlu0 %11150  ;;  %v10987_v29 = vpack.c.bf16 %v11148_v23, %v11147_v24 }
  0x95   :  { %10984 = vmatprep.subr.bf16.mxu1 %v10983_v18  ;;  %v11153_v25 = vunpack.i.h.bf16 %v11151_v22  ;;  %v11152_v26 = vunpack.i.l.bf16 %v11151_v22 }
  0x96   :  { %10986 = vmatpush3.bf16.msra.mxu1 %v10983_v18  ;;  %10988 = vmatprep.subr.bf16.mxu0 %v10987_v29 }
  0x97   :  { %10321 = vmatprep.subr.mxu1 %v11394_v20  ;;  %v10991_v30 = vpack.c.bf16 %v11153_v25, %v11152_v26  ;;  %10990 = vmatpush3.bf16.msra.mxu0 %v10987_v29 }
  0x99   :  { %10308 = vmatmul.mubr.msk.f32.vlgmr.msra.gmra.mrb[0].mxu1 %vm108_vm0, %v11567_v10  ;;  %10992 = vmatprep.subr.bf16.mxu0 %v10991_v30 }
  0x9a   :  { %10323 = vmatprep.mubr.msk.f32.mxu1 %vm11395_vm1, %v11394_v20 }
  0x9b   :  { %10994 = vmatpush3.bf16.msra.mxu0 %v10991_v30 }
  0x9c   :  { %10331 = vmatprep.subr.mxu0 %v11394_v20 }
  0x9e   :  { %10319 = vmatmul.mubr.msk.f32.vlgmr.msra.gmra.mrb[2].mxu0 %vm108_vm0, %v11567_v10 }
  0x9f   :  { %10333 = vmatprep.mubr.msk.f32.mxu0 %vm11395_vm1, %v11394_v20 }
  0xf4   :  { %v11581_v27 = vpop.f32.mrb[0].mxu0 }
  0xf5   :  { %v181_v28 = vpop.f32.mrb[1].mxu0 }
  0xf6   :  { %v11584_v31 = vadd.f32 %v11557_v8, %v181_v28 }
  0xf8   :  { %542 = vrot.lane.b32.xlu0 %v11584_v31, %s12938_s3 }
 0x16a   :  { %v543_v38 = vpop.permute.xlu0 %542 }
 0x16c   :  { %v11593_v32 = vpop.f32.mrb[0].mxu1 }
 0x16d   :  { %v275_v33 = vpop.f32.mrb[1].mxu1 }
 0x16e   :  { %v11596_v34 = vadd.f32 %v275_v33, %v11576_v19 }
 0x170   :  { %544 = vrot.lane.b32.xlu1 %v11596_v34, %s12938_s3  ;;  %10322 = vmatpush3.xpose.msk.msra.mxu1 %vm379_vm2, %v11596_v34 }
 0x171   :  { %10326 = vmatprep.subr.mxu1 %v11394_v20  ;;  %v11607_v35 = vpop.f32.mrb[2].mxu0 }
 0x172   :  { %v365_v36 = vpop.f32.mrb[3].mxu0 }
 0x173   :  { %10324 = vmatmul.mubr.msk.f32.vlgmr.msra.gmra.mrb[2].mxu1 %vm379_vm2, %v11584_v31 }
 0x174   :  { %10328 = vmatprep.mubr.msk.f32.mxu1 %vm11395_vm1, %v11394_v20 }
 0x1e2   :  { %v545_v37 = vpop.permute.xlu1 %544 }
 0x1e3   :  { %10332 = vmatpush3.xpose.msk.msra.mxu0 %vm379_vm2, %v545_v37 }
 0x1e4   :  { %10341 = vmatprep.subr.mxu0 %v11394_v20 }
 0x1e6   :  { %10334 = vmatmul.mubr.msk.f32.vlgmr.msra.gmra.mrb[4].mxu0 %vm379_vm2, %v543_v38 }
 0x1e7   :  { %10343 = vmatprep.mubr.msk.f32.mxu0 %vm11395_vm1, %v11394_v20  ;;  %10342 = vmatpush3.msra.mxu0 %v11658_v12 }
 0x1e8   :  { %10351 = vmatprep.subr.mxu0 %v11394_v20 }
 0x246   :  { %v452_v48 = vpop.f32.mrb[2].mxu1 }
 0x247   :  { %v456_v49 = vmul.f32 0.35355338, %v452_v48  ;;  %v10325_v50 = vpop.f32.mrb[3].mxu1 }
 0x249   :  { %v457_v51 = vadd.f32 %v456_v49, %v11629_v47 }
 0x24b   :  { %v458_v52 = vsel %vm379_vm2, %v457_v51, -inf }
 0x24c   :  { %459 = vmax.xlane.f32.xlu1 %v458_v52 }
 0x2b9   :  { %v616_v53 = vpop.f32.mrb[4].mxu0 }
 0x2ba   :  { %v620_v54 = vmul.f32 0.35355338, %v616_v53  ;;  %v10335_v55 = vpop.f32.mrb[5].mxu0 }
 0x2bb   :  { %v11707_v55 = vld [vmem:[%s12967_s9 + $0x10] sm:$0xff] }
 0x2bc   :  { %v621_v56 = vadd.f32 %v620_v54, %v11629_v47 }
 0x2be   :  { %v622_v57 = vsel %vm379_vm2, %v621_v56, -inf }
 0x2bf   :  { %623 = vmax.xlane.f32.xlu0 %v622_v57 }
 0x2d5   :  { %296 = vrot.lane.b32.xlu0 %v11557_v8, %s12940_s2 }
 0x2d9   :  { %858 = vrot.lane.b32.xlu0 %v11596_v34, %s12936_s27  ;;  %v460_v58 = vpop.xlane.xlu1 %459 }
 0x2da   :  { %v461_v59 = vsub.f32 %v457_v51, %v460_v58 }
 0x2dc   :  { %v462_v60 = vmul.f32 1.442695, %v461_v59 }
 0x2dd   :  { %856 = vrot.lane.b32.xlu0 %v11584_v31, %s12936_s27 }
 0x2de   :  { %11214 = vpow2.f32 %v462_v60 }
 0x2e8   :  { %v11215_v61 = vpop.eup %11214 }
 0x2e9   :  { %v464_v62 = vsel %vm379_vm2, %v11215_v61, 0.0 }
 0x2ea   :  { %465 = vadd.xlane.f32.xlu1 %v464_v62 }
 0x34c   :  { %v624_v63 = vpop.xlane.xlu0 %623 }
 0x34d   :  { %v625_v0 = vsub.f32 %v621_v56, %v624_v63  ;;  %v11720_v63 = vadd.f32 %v11581_v27, %v11557_v8  ;;  %v11735_v8 = vld [vmem:[%s12967_s9 + $0x18] sm:$0xff] }
 0x34f   :  { %v626_v1 = vmul.f32 1.442695, %v625_v0 }
 0x350   :  { %v11642_v2 = vpop.permute.xlu0 %296 }
 0x351   :  { %11216 = vpow2.f32 %v626_v1  ;;  %v11645_v3 = vadd.f32 %v365_v36, %v11642_v2 }
 0x353   :  { %10327 = vmatpush3.msra.mxu1 %v11645_v3 }
 0x354   :  { %10336 = vmatprep.subr.mxu1 %v11394_v20  ;;  %v859_v22 = vpop.permute.xlu0 %858 }
 0x358   :  { %v857_v25 = vpop.permute.xlu0 %856 }
 0x35b   :  { %v11217_v4 = vpop.eup %11216 }
 0x35c   :  { %v628_v5 = vsel %vm379_vm2, %v11217_v4, 0.0 }
 0x35d   :  { %629 = vadd.xlane.f32.xlu1 %v628_v5 }
 0x36e   :  { %634 = vrot.lane.b32.xlu1 %v11645_v3, %s12938_s3 }
 0x377   :  { %v466_v7 = vpop.xlane.xlu1 %465 }
 0x378   :  { %11218 = vrcp.f32 %v466_v7 }
 0x382   :  { %v11219_v9 = vpop.eup %11218 }
 0x383   :  { %v468_v11 = vmul.f32 %v11219_v9, %v11215_v61 }
 0x385   :  { %10329 = vmatmul.mubr.msk.f32.vlgmr.msra.gmra.mrb[4].mxu1 %vm379_vm2, %v468_v11 }
 0x386   :  { %10338 = vmatprep.mubr.msk.f32.mxu1 %vm11395_vm1, %v11394_v20 }
 0x3ea   :  { %v630_v13 = vpop.xlane.xlu1 %629 }
 0x3eb   :  { %11220 = vrcp.f32 %v630_v13 }
 0x3ee   :  { %v635_v14 = vpop.permute.xlu1 %634 }
 0x3ef   :  { %10337 = vmatpush3.msra.mxu1 %v635_v14 }
 0x3f0   :  { %10346 = vmatprep.subr.mxu1 %v11394_v20 }
 0x3f5   :  { %v11221_v15 = vpop.eup %11220 }
 0x3f6   :  { %v632_v16 = vmul.f32 %v11221_v15, %v11217_v4 }
 0x3f8   :  { %10339 = vmatmul.mubr.msk.f32.vlgmr.msra.gmra.mrb[6].mxu1 %vm379_vm2, %v632_v16 }
 0x3f9   :  { %10347 = vmatpush3.msra.mxu1 %v11666_v17  ;;  %10348 = vmatprep.mubr.msk.f32.mxu1 %vm11395_vm1, %v11394_v20 }
 0x3fa   :  { %10356 = vmatprep.subr.mxu1 %v11394_v20 }
 0x458   :  { %v538_v18 = vpop.f32.mrb[4].mxu1 }
 0x459   :  { %v10330_v21 = vpop.f32.mrb[5].mxu1  ;;  %10349 = vmatmul.mubr.msk.f32.vlgmr.msra.gmra.mrb[8].mxu1 %vm379_vm2, %v538_v18  ;;  %v1348_v18 = vsub.s32 1, %v11614_v40 }
 0x45a   :  { %10358 = vmatprep.mubr.msk.f32.mxu1 %vm11395_vm1, %v11394_v20 }
 0x45b   :  { %v1349_v21 = vrot.slane %v11620_v43, %v1348_v18 }
 0x4cb   :  { %v706_v23 = vpop.f32.mrb[6].mxu1 }
 0x4cc   :  { %v10340_v24 = vpop.f32.mrb[7].mxu1  ;;  %10344 = vmatmul.mubr.msk.f32.vlgmr.msra.gmra.mrb[6].mxu0 %vm379_vm2, %v706_v23 }
 0x4cd   :  { %10352 = vmatpush3.xpose.msk.msra.mxu0 %vm379_vm2, %v859_v22  ;;  %10353 = vmatprep.mubr.msk.f32.mxu0 %vm11395_vm1, %v11394_v20  ;;  %v11763_v22 = vadd.f32 %v11607_v35, %v11642_v2 }
 0x4ce   :  { %10361 = vmatprep.subr.mxu0 %v11394_v20 }
 0x4d0   :  { %10354 = vmatmul.mubr.msk.f32.vlgmr.msra.gmra.mrb[8].mxu0 %vm379_vm2, %v857_v25 }
 0x4d1   :  { %10363 = vmatprep.mubr.msk.f32.mxu0 %vm11395_vm1, %v11394_v20  ;;  %10362 = vmatpush3.msra.mxu0 %v11707_v55 }
 0x4d2   :  { %10371 = vmatprep.subr.mxu0 %v11394_v20 }
 0x52c   :  { %v852_v26 = vpop.f32.mrb[8].mxu1 }
 0x52d   :  { %v10350_v28 = vpop.f32.mrb[9].mxu1 }
 0x59f   :  { %v779_v29 = vpop.f32.mrb[6].mxu0 }
 0x5a0   :  { %v11684_v30 = vadd.f32 %v852_v26, %v779_v29  ;;  %v10345_v33 = vpop.f32.mrb[7].mxu0 }
 0x5a3   :  { %v930_v36 = vpop.f32.mrb[8].mxu0 }
 0x5a4   :  { %v934_v37 = vmul.f32 0.35355338, %v930_v36  ;;  %v10355_v38 = vpop.f32.mrb[9].mxu0 }
 0x5a6   :  { %v935_v39 = vadd.f32 %v934_v37, %v11629_v47 }
 0x5a8   :  { %v936_v41 = vsel %vm379_vm2, %v935_v39, -inf }
 0x5a9   :  { %937 = vmax.xlane.f32.xlu1 %v936_v41 }
 0x5ba   :  { %1099 = vrot.lane.b32.xlu1 %v11596_v34, %s12934_s7 }
 0x5be   :  { %1097 = vrot.lane.b32.xlu1 %v11584_v31, %s12934_s7 }
 0x636   :  { %v938_v44 = vpop.xlane.xlu1 %937 }
 0x637   :  { %v939_v45 = vsub.f32 %v935_v39, %v938_v44 }
 0x639   :  { %v940_v48 = vmul.f32 1.442695, %v939_v45 }
 0x63a   :  { %v1100_v53 = vpop.permute.xlu1 %1099 }
 0x63b   :  { %11222 = vpow2.f32 %v940_v48 }
 0x63e   :  { %v1098_v54 = vpop.permute.xlu1 %1097 }
 0x645   :  { %v11223_v49 = vpop.eup %11222 }
 0x646   :  { %v942_v50 = vsel %vm379_vm2, %v11223_v49, 0.0 }
 0x647   :  { %943 = vadd.xlane.f32.xlu0 %v942_v50 }
 0x65d   :  { %947 = vrot.lane.b32.xlu0 %v11645_v3, %s12936_s27 }
 0x6d4   :  { %v944_v51 = vpop.xlane.xlu0 %943 }
 0x6d5   :  { %11224 = vrcp.f32 %v944_v51  ;;  %v11788_v51 = vld [vmem:[%s12968_s30] ss:$0 sm:$0xff] }
 0x6d8   :  { %v948_v52 = vpop.permute.xlu0 %947 }
 0x6d9   :  { %10357 = vmatpush3.msra.mxu1 %v948_v52 }
 0x6da   :  { %10366 = vmatprep.subr.mxu1 %v11394_v20 }
 0x6df   :  { %v11225_v34 = vpop.eup %11224 }
 0x6e0   :  { %v946_v31 = vmul.f32 %v11225_v34, %v11223_v49 }
 0x6e2   :  { %10359 = vmatmul.mubr.msk.f32.vlgmr.msra.gmra.mrb[10].mxu1 %vm379_vm2, %v946_v31 }
 0x6e3   :  { %10367 = vmatpush3.xpose.msk.msra.mxu1 %vm379_vm2, %v1100_v53  ;;  %10368 = vmatprep.mubr.msk.f32.mxu1 %vm11395_vm1, %v11394_v20 }
 0x6e4   :  { %10376 = vmatprep.subr.mxu1 %v11394_v20 }
 0x6e6   :  { %10369 = vmatmul.mubr.msk.f32.vlgmr.msra.gmra.mrb[12].mxu1 %vm379_vm2, %v1098_v54 }
 0x6e7   :  { %10378 = vmatprep.mubr.msk.f32.mxu1 %vm11395_vm1, %v11394_v20  ;;  %10377 = vmatpush3.msra.mxu1 %v11735_v8 }
 0x6e8   :  { %10386 = vmatprep.subr.mxu1 %v11394_v20 }
 0x7b5   :  { %v1019_v56 = vpop.f32.mrb[10].mxu1 }
 0x7b6   :  { %v10360_v57 = vpop.f32.mrb[11].mxu1  ;;  %10364 = vmatmul.mubr.msk.f32.vlgmr.msra.gmra.mrb[10].mxu0 %vm379_vm2, %v1019_v56 }
 0x7b7   :  { %10373 = vmatprep.mubr.msk.f32.mxu0 %vm11395_vm1, %v11394_v20 }
 0x7b9   :  { %v1171_v58 = vpop.f32.mrb[12].mxu1 }
 0x7ba   :  { %v1175_v59 = vmul.f32 0.35355338, %v1171_v58  ;;  %v10370_v60 = vpop.f32.mrb[13].mxu1 }
 0x7bc   :  { %v1176_v61 = vadd.f32 %v1175_v59, %v11629_v47 }
 0x7be   :  { %v1177_v62 = vsel %vm379_vm2, %v1176_v61, -inf }
 0x7bf   :  { %1178 = vmax.xlane.f32.xlu0 %v1177_v62 }
 0x7d5   :  { %1188 = vrot.lane.b32.xlu0 %v11645_v3, %s12934_s7  ;;  %v11728_v3 = vadd.f32 %v11593_v32, %v11576_v19 }
 0x7d9   :  { %1513 = vrot.lane.b32.xlu0 %v11720_v63, %s12938_s3 }
 0x84c   :  { %v1179_v0 = vpop.xlane.xlu0 %1178 }
 0x84d   :  { %v1180_v1 = vsub.f32 %v1176_v61, %v1179_v0 }
 0x84f   :  { %v1181_v4 = vmul.f32 1.442695, %v1180_v1 }
 0x850   :  { %v1189_v5 = vpop.permute.xlu0 %1188 }
 0x851   :  { %11226 = vpow2.f32 %v1181_v4  ;;  %10372 = vmatpush3.msra.mxu0 %v1189_v5 }
 0x852   :  { %10381 = vmatprep.subr.mxu0 %v11394_v20 }
 0x854   :  { %v1514_v16 = vpop.permute.xlu0 %1513 }
 0x85b   :  { %v11227_v7 = vpop.eup %11226 }
 0x85c   :  { %v1183_v9 = vsel %vm379_vm2, %v11227_v7, 0.0 }
 0x85d   :  { %1184 = vadd.xlane.f32.xlu1 %v1183_v9 }
 0x86e   :  { %1515 = vrot.lane.b32.xlu1 %v11728_v3, %s12938_s3 }
 0x889   :  { %v1092_v27 = vpop.f32.mrb[10].mxu0 }
 0x88a   :  { %v1096_v11 = vadd.f32 %v1092_v27, %v11684_v30  ;;  %v10365_v13 = vpop.f32.mrb[11].mxu0 }
 0x8ea   :  { %v1185_v14 = vpop.xlane.xlu1 %1184 }
 0x8eb   :  { %11228 = vrcp.f32 %v1185_v14 }
 0x8ee   :  { %v1516_v15 = vpop.permute.xlu1 %1515 }
 0x8f5   :  { %v11229_v19 = vpop.eup %11228 }
 0x8f6   :  { %v1187_v32 = vmul.f32 %v11229_v19, %v11227_v7 }
 0x8f8   :  { %10374 = vmatmul.mubr.msk.f32.vlgmr.msra.gmra.mrb[12].mxu0 %vm379_vm2, %v1187_v32 }
 0x8f9   :  { %10382 = vmatpush3.xpose.msk.msra.mxu0 %vm379_vm2, %v11728_v3  ;;  %10383 = vmatprep.mubr.msk.f32.mxu0 %vm11395_vm1, %v11394_v20 }
 0x8fa   :  { %10391 = vmatprep.subr.mxu0 %v11394_v20 }
 0x8fc   :  { %10384 = vmatmul.mubr.msk.f32.vlgmr.msra.gmra.mrb[14].mxu0 %vm379_vm2, %v11720_v63 }
 0x8fd   :  { %10392 = vmatpush3.xpose.msk.msra.mxu0 %vm379_vm2, %v1516_v15  ;;  %10393 = vmatprep.mubr.msk.f32.mxu0 %vm11395_vm1, %v11394_v20 }
 0x8fe   :  { %10401 = vmatprep.subr.mxu0 %v11394_v20 }
 0x900   :  { %10394 = vmatmul.mubr.msk.f32.vlgmr.msra.gmra.mrb[16].mxu0 %vm379_vm2, %v1514_v16 }
 0x901   :  { %10402 = vmatpush3.msra.mxu0 %v11658_v12  ;;  %10403 = vmatprep.mubr.msk.f32.mxu0 %vm11395_vm1, %v11394_v20  ;;  %v11770_v12 = vadd.f32 %v1349_v21, %v11626_v46 }
 0x902   :  { %10411 = vmatprep.subr.mxu0 %v11394_v20 }
 0x9cb   :  { %v1260_v23 = vpop.f32.mrb[12].mxu0 }
 0x9cc   :  { %v10375_v24 = vpop.f32.mrb[13].mxu0  ;;  %10379 = vmatmul.mubr.msk.f32.vlgmr.msra.gmra.mrb[14].mxu1 %vm379_vm2, %v1260_v23 }
 0x9cd   :  { %10387 = vmatpush3.msra.mxu1 %v11763_v22  ;;  %10388 = vmatprep.mubr.msk.f32.mxu1 %vm11395_vm1, %v11394_v20 }
 0x9ce   :  { %10396 = vmatprep.subr.mxu1 %v11394_v20 }
 0x9cf   :  { %v1423_v25 = vpop.f32.mrb[14].mxu0 }
 0x9d0   :  { %v1427_v43 = vmul.f32 0.35355338, %v1423_v25  ;;  %v10385_v26 = vpop.f32.mrb[15].mxu0 }
 0x9d2   :  { %v1428_v35 = vadd.f32 %v1427_v43, %v11770_v12 }
 0x9d3   :  { %v1587_v2 = vpop.f32.mrb[16].mxu0 }
 0x9d4   :  { %v1591_v28 = vmul.f32 0.35355338, %v1587_v2  ;;  %v10395_v29 = vpop.f32.mrb[17].mxu0  ;;  %v1429_v30 = vsel %vm379_vm2, %v1428_v35, -inf }
 0x9d5   :  { %1430 = vmax.xlane.f32.xlu1 %v1429_v30 }
 0x9d6   :  { %v1592_v33 = vadd.f32 %v1591_v28, %v11770_v12 }
 0x9d8   :  { %v1593_v36 = vsel %vm379_vm2, %v1592_v33, -inf }
 0x9d9   :  { %1594 = vmax.xlane.f32.xlu0 %v1593_v36 }
 0xa62   :  { %v1431_v46 = vpop.xlane.xlu1 %1430 }
 0xa63   :  { %v1432_v37 = vsub.f32 %v1428_v35, %v1431_v46 }
 0xa65   :  { %v1433_v38 = vmul.f32 1.442695, %v1432_v37 }
 0xa66   :  { %v1595_v39 = vpop.xlane.xlu0 %1594 }
 0xa67   :  { %11230 = vpow2.f32 %v1433_v38  ;;  %v1596_v41 = vsub.f32 %v1592_v33, %v1595_v39 }
 0xa69   :  { %v1597_v44 = vmul.f32 1.442695, %v1596_v41 }
 0xa6b   :  { %11232 = vpow2.f32 %v1597_v44 }
 0xa71   :  { %v11231_v45 = vpop.eup %11230 }
 0xa72   :  { %v1435_v48 = vsel %vm379_vm2, %v11231_v45, 0.0 }
 0xa73   :  { %1436 = vadd.xlane.f32.xlu0 %v1435_v48 }
 0xa75   :  { %v11233_v49 = vpop.eup %11232 }
 0xa76   :  { %v1599_v50 = vsel %vm379_vm2, %v11233_v49, 0.0 }
 0xa77   :  { %1600 = vadd.xlane.f32.xlu1 %v1599_v50 }
 0xa88   :  { %1829 = vrot.lane.b32.xlu1 %v11728_v3, %s12936_s27 }
 0xa89   :  { %1605 = vrot.lane.b32.xlu0 %v11763_v22, %s12938_s3 }
 0xa8c   :  { %1827 = vrot.lane.b32.xlu1 %v11720_v63, %s12936_s27 }
 0xa9f   :  { %v1333_v52 = vpop.f32.mrb[14].mxu1 }
 0xaa0   :  { %v1337_v34 = vadd.f32 %v1333_v52, %v1096_v11  ;;  %v10380_v53 = vpop.f32.mrb[15].mxu1 }
 0xaa2   :  { %v1344_v31 = vadd.f32 %v11788_v51, %v1337_v34 }
 0xaa4   :  { %1345 = vst.msk [vmem:[#allocation2] sm:$0xff] %vm108_vm0, %v1344_v31 }
 0xaab   :  { %v2311_v46 = vld [vmem:[#allocation2] sm:$0xff] }
 0xb00   :  { %v1437_v54 = vpop.xlane.xlu0 %1436 }
 0xb01   :  { %11234 = vrcp.f32 %v1437_v54 }
 0xb04   :  { %v1601_v56 = vpop.xlane.xlu1 %1600  ;;  %v1606_v59 = vpop.permute.xlu0 %1605 }
 0xb05   :  { %11236 = vrcp.f32 %v1601_v56 }
 0xb08   :  { %v1830_v1 = vpop.permute.xlu1 %1829 }
 0xb0b   :  { %v11235_v57 = vpop.eup %11234 }
 0xb0c   :  { %v1439_v58 = vmul.f32 %v11235_v57, %v11231_v45 }
 0xb0e   :  { %10389 = vmatmul.mubr.msk.f32.vlgmr.msra.gmra.mrb[16].mxu1 %vm379_vm2, %v1439_v58 }
 0xb0f   :  { %v11237_v60 = vpop.eup %11236  ;;  %10397 = vmatpush3.msra.mxu1 %v1606_v59  ;;  %10398 = vmatprep.mubr.msk.f32.mxu1 %vm11395_vm1, %v11394_v20 }
 0xb10   :  { %v1603_v61 = vmul.f32 %v11237_v60, %v11233_v49  ;;  %10406 = vmatprep.subr.mxu1 %v11394_v20 }
 0xb12   :  { %10399 = vmatmul.mubr.msk.f32.vlgmr.msra.gmra.mrb[18].mxu1 %vm379_vm2, %v1603_v61 }
 0xb13   :  { %10407 = vmatpush3.msra.mxu1 %v11666_v17  ;;  %10408 = vmatprep.mubr.msk.f32.mxu1 %vm11395_vm1, %v11394_v20  ;;  %v1828_v17 = vpop.permute.xlu1 %1827 }
 0xb14   :  { %10416 = vmatprep.subr.mxu1 %v11394_v20 }
 0xbe1   :  { %v1509_v62 = vpop.f32.mrb[16].mxu1 }
 0xbe2   :  { %v10390_v0 = vpop.f32.mrb[17].mxu1  ;;  %10409 = vmatmul.mubr.msk.f32.vlgmr.msra.gmra.mrb[20].mxu1 %vm379_vm2, %v1509_v62 }
 0xbe3   :  { %10418 = vmatprep.mubr.msk.f32.mxu1 %vm11395_vm1, %v11394_v20 }
 0xbe5   :  { %v1677_v4 = vpop.f32.mrb[18].mxu1 }
 0xbe6   :  { %v10400_v5 = vpop.f32.mrb[19].mxu1  ;;  %10404 = vmatmul.mubr.msk.f32.vlgmr.msra.gmra.mrb[18].mxu0 %vm379_vm2, %v1677_v4 }
 0xbe7   :  { %10412 = vmatpush3.xpose.msk.msra.mxu0 %vm379_vm2, %v1830_v1  ;;  %10413 = vmatprep.mubr.msk.f32.mxu0 %vm11395_vm1, %v11394_v20 }
 0xbe8   :  { %10421 = vmatprep.subr.mxu0 %v11394_v20 }
 0xbea   :  { %10414 = vmatmul.mubr.msk.f32.vlgmr.msra.gmra.mrb[20].mxu0 %vm379_vm2, %v1828_v17 }
 0xbeb   :  { %10422 = vmatpush3.msra.mxu0 %v11707_v55  ;;  %10423 = vmatprep.mubr.msk.f32.mxu0 %vm11395_vm1, %v11394_v20 }
 0xbec   :  { %10431 = vmatprep.subr.mxu0 %v11394_v20 }
 0xcb5   :  { %v1823_v7 = vpop.f32.mrb[20].mxu1 }
 0xcb6   :  { %v10410_v9 = vpop.f32.mrb[21].mxu1 }
 0xcb7   :  { %v2362_v9 = vld [vmem:[%s12969_s8 + $0x10] sm:$0xff] }
 0xcb9   :  { %v1750_v27 = vpop.f32.mrb[18].mxu0 }
 0xcba   :  { %v1824_v11 = vadd.f32 %v1823_v7, %v1750_v27  ;;  %v10405_v13 = vpop.f32.mrb[19].mxu0 }
 0xcbd   :  { %v1901_v14 = vpop.f32.mrb[20].mxu0 }
 0xcbe   :  { %v1905_v19 = vmul.f32 0.35355338, %v1901_v14  ;;  %v10415_v32 = vpop.f32.mrb[21].mxu0 }
 0xcc0   :  { %v1906_v15 = vadd.f32 %v1905_v19, %v11770_v12 }
 0xcc2   :  { %v1907_v16 = vsel %vm379_vm2, %v1906_v15, -inf }
 0xcc3   :  { %1908 = vmax.xlane.f32.xlu0 %v1907_v16 }
 0xcd9   :  { %1918 = vrot.lane.b32.xlu0 %v11763_v22, %s12936_s27  ;;  %s12973_s27 = sld [smem:[#allocation9_spill]] }
 0xcdd   :  { %2068 = vrot.lane.b32.xlu0 %v11720_v63, %s12934_s7 }
 0xd50   :  { %v1909_v55 = vpop.xlane.xlu0 %1908 }
 0xd51   :  { %v1910_v21 = vsub.f32 %v1906_v15, %v1909_v55  ;;  %v2360_v55 = vld [vmem:[%s12969_s8] sm:$0xff] }
 0xd53   :  { %v1911_v23 = vmul.f32 1.442695, %v1910_v21  ;;  %v2361_v21 = vld [vmem:[%s12969_s8 + $0x8] sm:$0xff] }
 0xd54   :  { %v1919_v24 = vpop.permute.xlu0 %1918 }
 0xd55   :  { %11238 = vpow2.f32 %v1911_v23  ;;  %10417 = vmatpush3.msra.mxu1 %v1919_v24  ;;  %v9799_v24 = vld [vmem:[%s12912_s12] ss:$0 sm:$0xff] }
 0xd56   :  { %10426 = vmatprep.subr.mxu1 %v11394_v20 }
 0xd58   :  { %v2069_v28 = vpop.permute.xlu0 %2068 }
 0xd5f   :  { %v11239_v25 = vpop.eup %11238 }
 0xd60   :  { %v1913_v43 = vsel %vm379_vm2, %v11239_v25, 0.0 }
 0xd61   :  { %1914 = vadd.xlane.f32.xlu1 %v1913_v43  ;;  %v9800_v43 = vld [vmem:[%s12913_s13] ss:$0 sm:$0xff] }
 0xd72   :  { %2070 = vrot.lane.b32.xlu1 %v11728_v3, %s12934_s7 }
 0xdee   :  { %v1915_v26 = vpop.xlane.xlu1 %1914 }
 0xdef   :  { %11240 = vrcp.f32 %v1915_v26  ;;  %v11154_v26 = vpack.i.bf16 %v2361_v21, %v2360_v55 }
 0xdf2   :  { %v2071_v63 = vpop.permute.xlu1 %2070 }
 0xdf9   :  { %v11241_v35 = vpop.eup %11240 }
 0xdfa   :  { %v1917_v2 = vmul.f32 %v11241_v35, %v11239_v25 }
 0xdfc   :  { %10419 = vmatmul.mubr.msk.f32.vlgmr.msra.gmra.mrb[22].mxu1 %vm379_vm2, %v1917_v2 }
 0xdfd   :  { %10427 = vmatpush3.xpose.msk.msra.mxu1 %vm379_vm2, %v2071_v63  ;;  %10428 = vmatprep.mubr.msk.f32.mxu1 %vm11395_vm1, %v11394_v20  ;;  %v10995_v63 = vpack.c.bf16 %v2361_v21, %v2360_v55 }
 0xdfe   :  { %10436 = vmatprep.subr.mxu1 %v11394_v20 }
 0xe00   :  { %10429 = vmatmul.mubr.msk.f32.vlgmr.msra.gmra.mrb[24].mxu1 %vm379_vm2, %v2069_v28  ;;  %v82_v28 = vld [vmem:[%s12970_s26] sm:$0xff] }
 0xe01   :  { %10437 = vmatpush3.msra.mxu1 %v11735_v8  ;;  %10438 = vmatprep.mubr.msk.f32.mxu1 %vm11395_vm1, %v11394_v20  ;;  %v2313_v8 = vadd.f32 %v2311_v46, %v11548_v6 }
 0xe03   :  { %v2317_v39 = vsel %vm108_vm0, %v2313_v8, 0.0 }
 0xecf   :  { %v1990_v3 = vpop.f32.mrb[22].mxu1 }
 0xed0   :  { %v10420_v29 = vpop.f32.mrb[23].mxu1  ;;  %10424 = vmatmul.mubr.msk.f32.vlgmr.msra.gmra.mrb[22].mxu0 %vm379_vm2, %v1990_v3 }
 0xed1   :  { %10433 = vmatprep.mubr.msk.f32.mxu0 %vm11395_vm1, %v11394_v20  ;;  %v11882_v29 = vld [vmem:[%s12971_s1] ss:$0 sm:$0xff] }
 0xed3   :  { %v2142_v30 = vpop.f32.mrb[24].mxu1 }
 0xed4   :  { %v2146_v33 = vmul.f32 0.35355338, %v2142_v30  ;;  %v10430_v36 = vpop.f32.mrb[25].mxu1 }
 0xed6   :  { %v2147_v37 = vadd.f32 %v2146_v33, %v11770_v12 }
 0xed8   :  { %v2148_v38 = vsel %vm379_vm2, %v2147_v37, -inf }
 0xed9   :  { %2149 = vmax.xlane.f32.xlu1 %v2148_v38 }
 0xedd   :  { %2318 = vadd.xlane.f32.xlu1 %v2317_v39 }
 0xf66   :  { %v2150_v41 = vpop.xlane.xlu1 %2149 }
 0xf67   :  { %v2151_v44 = vsub.f32 %v2147_v37, %v2150_v41 }
 0xf69   :  { %v2152_v45 = vmul.f32 1.442695, %v2151_v44 }
 0xf6a   :  { %v2319_v61 = vpop.xlane.xlu1 %2318 }
 0xf6b   :  { %11242 = vpow2.f32 %v2152_v45  ;;  %v2324_v62 = vmul.f32 0.03125, %v2319_v61 }
 0xf6d   :  { %v2326_v0 = vsub.f32 %v2313_v8, %v2324_v62 }
 0xf6f   :  { %v2328_v17 = vmul.f32 %v2326_v0, %v2326_v0 }
 0xf71   :  { %v2330_v7 = vsel %vm108_vm0, %v2328_v17, 0.0 }
 0xf75   :  { %v11243_v48 = vpop.eup %11242 }
 0xf76   :  { %v2154_v49 = vsel %vm379_vm2, %v11243_v48, 0.0 }
 0xf77   :  { %2155 = vadd.xlane.f32.xlu0 %v2154_v49 }
 0xf8d   :  { %2159 = vrot.lane.b32.xlu0 %v11763_v22, %s12934_s7 }
 0xfa3   :  { %v2063_v50 = vpop.f32.mrb[22].mxu0 }
 0xfa4   :  { %v2067_v52 = vadd.f32 %v2063_v50, %v1824_v11  ;;  %v10425_v34 = vpop.f32.mrb[23].mxu0 }
0x1004   :  { %v2156_v53 = vpop.xlane.xlu0 %2155 }
0x1005   :  { %11244 = vrcp.f32 %v2156_v53 }
0x1008   :  { %v2160_v6 = vpop.permute.xlu0 %2159 }
0x1009   :  { %10432 = vmatpush3.msra.mxu0 %v2160_v6 }
0x100a   :  { %10996 = vmatprep.subr.bf16.mxu0 %v10995_v63 }
0x100f   :  { %v11245_v31 = vpop.eup %11244 }
0x1010   :  { %v2158_v54 = vmul.f32 %v11245_v31, %v11243_v48  ;;  %v83_v48 = vld [vmem:[%s12970_s26 + $0x8] sm:$0xff] }
0x1012   :  { %10434 = vmatmul.mubr.msk.f32.vlgmr.msra.gmra.mrb[24].mxu0 %vm379_vm2, %v2158_v54 }
0x1013   :  { %10998 = vmatpush3.bf16.msra.mxu0 %v10995_v63 }
0x10e5   :  { %v2231_v56 = vpop.f32.mrb[24].mxu0 }
0x10e6   :  { %v10435_v57 = vpop.f32.mrb[25].mxu0  ;;  %10439 = vmatmul.mubr.msk.f32.vlgmr.msra.gmra.mrb[26].mxu1 %vm379_vm2, %v2231_v56 }
0x10e7   :  { %10460 = vmatprep.mubr.msk.f32.mxu1 %vm108_vm0, %v82_v28 }
0x11b9   :  { %v2304_v58 = vpop.f32.mrb[26].mxu1 }
0x11ba   :  { %v2308_v59 = vadd.f32 %v2304_v58, %v2067_v52  ;;  %v10440_v60 = vpop.f32.mrb[27].mxu1 }
0x11bc   :  { %v2309_v22 = vadd.f32 %v11788_v51, %v2308_v59  ;;  %v2363_v51 = vld [vmem:[%s12969_s8 + $0x18] sm:$0xff] }
0x11bd   :  { %v11159_v27 = vpack.i.bf16 %v2363_v51, %v2362_v9  ;;  %v10999_v3 = vpack.c.bf16 %v2363_v51, %v2362_v9  ;;  %v11937_v51 = vld [vmem:[%s12973_s27] sm:$0x3] }
0x11be   :  { %2310 = vst.msk [vmem:[#allocation2 + $0x8] sm:$0xff] %vm108_vm0, %v2309_v22 }
0x11bf   :  { %11160 = vrot.lane.b32.xlu0 %v11159_v27, %s12942_s29  ;;  %11000 = vmatprep.subr.bf16.mxu0 %v10999_v3 }
0x11c0   :  { %11002 = vmatpush3.bf16.msra.mxu0 %v10999_v3 }
0x11c3   :  { %2473 = vrot.lane.b32.xlu0 %v11882_v29, %s12942_s29 }
0x11c5   :  { %v2312_v1 = vld [vmem:[#allocation2 + $0x8] sm:$0xff] }
0x11c6   :  { %v2314_v4 = vadd.f32 %v2312_v1, %v11567_v10 }
0x11c7   :  { %11165 = vrot.lane.b32.xlu0 %v11154_v26, %s12940_s2 }
0x11c8   :  { %v2320_v5 = vsel %vm108_vm0, %v2314_v4, 0.0 }
0x11c9   :  { %2321 = vadd.xlane.f32.xlu1 %v2320_v5 }
0x11cb   :  { %11170 = vrot.lane.b32.xlu0 %v11159_v27, %s12940_s2  ;;  %v11942_v27 = vrot.slane %v11937_v51, %v376_v42 }
0x11cd   :  { %2331 = vadd.xlane.f32.xlu1 %v2330_v7 }
0x1231   :  { %v11161_v33 = vpop.permute.xlu0 %11160 }
0x1232   :  { %v11163_v37 = vunpack.i.h.bf16 %v11161_v33  ;;  %v11162_v38 = vunpack.i.l.bf16 %v11161_v33 }
0x1234   :  { %v11007_v45 = vpack.c.bf16 %v11163_v37, %v11162_v38  ;;  %v11971_v38 = vld [vmem:[%s12910_s10 + $0x8] sm:$0xff] }
0x1235   :  { %v11900_v53 = vpop.permute.xlu0 %2473 }
0x1239   :  { %v11166_v6 = vpop.permute.xlu0 %11165 }
0x123a   :  { %v11168_v31 = vunpack.i.h.bf16 %v11166_v6  ;;  %v11167_v54 = vunpack.i.l.bf16 %v11166_v6 }
0x123c   :  { %v11011_v56 = vpack.c.bf16 %v11168_v31, %v11167_v54 }
0x123d   :  { %v11171_v57 = vpop.permute.xlu0 %11170 }
0x123e   :  { %v11173_v58 = vunpack.i.h.bf16 %v11171_v57  ;;  %v11172_v59 = vunpack.i.l.bf16 %v11171_v57  ;;  %11012 = vmatprep.subr.bf16.mxu0 %v11011_v56 }
0x1240   :  { %v11015_v60 = vpack.c.bf16 %v11173_v58, %v11172_v59 }
0x1256   :  { %v2322_v11 = vpop.xlane.xlu1 %2321 }
0x1257   :  { %v2325_v10 = vmul.f32 0.03125, %v2322_v11 }
0x1259   :  { %v2327_v13 = vsub.f32 %v2314_v4, %v2325_v10 }
0x125a   :  { %v2332_v14 = vpop.xlane.xlu1 %2331 }
0x125b   :  { %v2336_v19 = vmul.f32 0.03125, %v2332_v14  ;;  %v2329_v32 = vmul.f32 %v2327_v13, %v2327_v13 }
0x125d   :  { %v2338_v15 = vadd.f32 1e-05, %v2336_v19  ;;  %v2333_v16 = vsel %vm108_vm0, %v2329_v32, 0.0 }
0x125e   :  { %2334 = vadd.xlane.f32.xlu1 %v2333_v16 }
0x125f   :  { %11246 = vrsqrt.f32 %v2338_v15 }
0x1269   :  { %v11247_v23 = vpop.eup %11246 }
0x126a   :  { %v2342_v25 = vmul.f32 %v11247_v23, %v2326_v0 }
0x126c   :  { %v2350_v35 = vmul.f32 %v9799_v24, %v2342_v25 }
0x126e   :  { %v11870_v2 = vadd.f32 %v9800_v43, %v2350_v35 }
0x126f   :  { %11155 = vrot.lane.b32.xlu1 %v11154_v26, %s12942_s29 }
0x1270   :  { %10449 = vmatprep.mubr.msk.f32.mxu0 %vm108_vm0, %v11870_v2 }
0x12eb   :  { %v2335_v30 = vpop.xlane.xlu1 %2334 }
0x12ec   :  { %v2337_v36 = vmul.f32 0.03125, %v2335_v30 }
0x12ee   :  { %v2339_v46 = vadd.f32 1e-05, %v2337_v36 }
0x12ef   :  { %v11156_v8 = vpop.permute.xlu1 %11155 }
0x12f0   :  { %11248 = vrsqrt.f32 %v2339_v46  ;;  %v11158_v39 = vunpack.i.h.bf16 %v11156_v8  ;;  %v11157_v41 = vunpack.i.l.bf16 %v11156_v8 }
0x12f2   :  { %v11003_v44 = vpack.c.bf16 %v11158_v39, %v11157_v41 }
0x12f4   :  { %11004 = vmatprep.subr.bf16.mxu1 %v11003_v44 }
0x12f5   :  { %11006 = vmatpush3.bf16.msra.mxu1 %v11003_v44 }
0x12f6   :  { %11008 = vmatprep.subr.bf16.mxu1 %v11007_v45 }
0x12f9   :  { %11010 = vmatpush3.bf16.msra.mxu1 %v11007_v45  ;;  %v11979_v45 = vld [vmem:[%s12910_s10] sm:$0xff] }
0x12fa   :  { %v11249_v49 = vpop.eup %11248  ;;  %10474 = vmatprep.subr.mxu1 %v11394_v20 }
0x12fb   :  { %v2343_v50 = vmul.f32 %v11249_v49, %v2327_v13 }
0x12fc   :  { %10461 = vmatmul.mubr.msk.f32.vlgmr.msra.gmra.mrb[28].mxu1 %vm108_vm0, %v83_v48 }
0x12fd   :  { %v2351_v52 = vmul.f32 %v9799_v24, %v2343_v50  ;;  %10476 = vmatprep.mubr.msk.f32.mxu1 %vm11395_vm1, %v11394_v20 }
0x12ff   :  { %v11895_v34 = vadd.f32 %v9800_v43, %v2351_v52 }
0x1301   :  { %10450 = vmatmul.mubr.msk.f32.vlgmr.msra.gmra.mrb[26].mxu0 %vm108_vm0, %v11895_v34 }
0x1302   :  { %10471 = vmatprep.mubr.msk.f32.mxu0 %vm108_vm0, %v82_v28  ;;  %11014 = vmatpush3.bf16.msra.mxu0 %v11011_v56 }
0x1303   :  { %11016 = vmatprep.subr.bf16.mxu0 %v11015_v60 }
0x1306   :  { %11018 = vmatpush3.bf16.msra.mxu0 %v11015_v60 }
0x1307   :  { %10484 = vmatprep.subr.mxu0 %v11394_v20 }
0x1309   :  { %10472 = vmatmul.mubr.msk.f32.vlgmr.msra.gmra.mrb[28].mxu0 %vm108_vm0, %v83_v48 }
0x130a   :  { %10486 = vmatprep.mubr.msk.f32.mxu0 %vm11395_vm1, %v11394_v20 }
0x13cf   :  { %v11906_v22 = vpop.f32.mrb[28].mxu1 }
0x13d0   :  { %v2548_v61 = vpop.f32.mrb[29].mxu1 }
0x13d1   :  { %v11909_v62 = vadd.f32 %v2548_v61, %v11900_v53 }
0x13d3   :  { %2815 = vrot.lane.b32.xlu1 %v11909_v62, %s12972_s5  ;;  %10475 = vmatpush3.xpose.msk.msra.mxu1 %vm379_vm2, %v11909_v62 }
0x13d4   :  { %v11915_v0 = vpop.f32.mrb[26].mxu0  ;;  %10479 = vmatprep.subr.mxu1 %v11394_v20 }
0x13d5   :  { %v2448_v1 = vpop.f32.mrb[27].mxu0 }
0x13d6   :  { %v11919_v4 = vadd.f32 %v11882_v29, %v2448_v1 }
0x13d8   :  { %2813 = vrot.lane.b32.xlu0 %v11919_v4, %s12972_s5  ;;  %10477 = vmatmul.mubr.msk.f32.vlgmr.msra.gmra.mrb[30].mxu1 %vm379_vm2, %v11919_v4 }
0x13d9   :  { %10481 = vmatprep.mubr.msk.f32.mxu1 %vm11395_vm1, %v11394_v20 }
0x13dc   :  { %v11927_v5 = vpop.f32.mrb[28].mxu0 }
0x13dd   :  { %v2638_v17 = vpop.f32.mrb[29].mxu0 }
0x1445   :  { %v2816_v7 = vpop.permute.xlu1 %2815 }
0x1446   :  { %10485 = vmatpush3.xpose.msk.msra.mxu0 %vm379_vm2, %v2816_v7 }
0x1447   :  { %10494 = vmatprep.subr.mxu0 %v11394_v20 }
0x144a   :  { %v2814_v9 = vpop.permute.xlu0 %2813 }
0x144b   :  { %10487 = vmatmul.mubr.msk.f32.vlgmr.msra.gmra.mrb[30].mxu0 %vm379_vm2, %v2814_v9 }
0x144c   :  { %10496 = vmatprep.mubr.msk.f32.mxu0 %vm11395_vm1, %v11394_v20  ;;  %10495 = vmatpush3.msra.mxu0 %v11971_v38 }
0x144d   :  { %10504 = vmatprep.subr.mxu0 %v11394_v20 }
0x14ab   :  { %v2723_v11 = vpop.f32.mrb[30].mxu1 }
0x14ac   :  { %v2727_v10 = vmul.f32 0.35355338, %v2723_v11  ;;  %v10478_v13 = vpop.f32.mrb[31].mxu1 }
0x14ae   :  { %v2728_v14 = vadd.f32 %v2727_v10, %v11942_v27 }
0x14b0   :  { %v2729_v19 = vsel %vm379_vm2, %v2728_v14, -inf }
0x14b1   :  { %2730 = vmax.xlane.f32.xlu1 %v2729_v19 }
0x151e   :  { %v2887_v32 = vpop.f32.mrb[30].mxu0 }
0x151f   :  { %v2891_v15 = vmul.f32 0.35355338, %v2887_v32  ;;  %v10488_v16 = vpop.f32.mrb[31].mxu0 }
0x1521   :  { %v2892_v55 = vadd.f32 %v2891_v15, %v11942_v27 }
0x1523   :  { %v2893_v21 = vsel %vm379_vm2, %v2892_v55, -inf }
0x1524   :  { %2894 = vmax.xlane.f32.xlu0 %v2893_v21 }
0x153a   :  { %2569 = vrot.lane.b32.xlu0 %v11882_v29, %s12940_s2  ;;  %s12976_s2 = smov 96  }
0x153e   :  { %3129 = vrot.lane.b32.xlu0 %v11909_v62, %s12974_s4  ;;  %v2731_v42 = vpop.xlane.xlu1 %2730 }
0x153f   :  { %v2732_v23 = vsub.f32 %v2728_v14, %v2731_v42 }
0x1541   :  { %v2733_v24 = vmul.f32 1.442695, %v2732_v23 }
0x1542   :  { %3127 = vrot.lane.b32.xlu0 %v11919_v4, %s12974_s4 }
0x1543   :  { %11250 = vpow2.f32 %v2733_v24 }
0x154d   :  { %v11251_v25 = vpop.eup %11250 }
0x154e   :  { %v2735_v43 = vsel %vm379_vm2, %v11251_v25, 0.0 }
0x154f   :  { %2736 = vadd.xlane.f32.xlu1 %v2735_v43 }
0x15b1   :  { %v2895_v26 = vpop.xlane.xlu0 %2894 }
0x15b2   :  { %v2896_v35 = vsub.f32 %v2892_v55, %v2895_v26  ;;  %v12020_v55 = vld [vmem:[%s12910_s10 + $0x10] sm:$0xff] }
0x15b4   :  { %v2897_v63 = vmul.f32 1.442695, %v2896_v35  ;;  %v12033_v35 = vadd.f32 %v11915_v0, %v11882_v29  ;;  %v12048_v29 = vld [vmem:[%s12910_s10 + $0x18] sm:$0xff] }
0x15b5   :  { %v11955_v28 = vpop.permute.xlu0 %2569 }
0x15b6   :  { %11252 = vpow2.f32 %v2897_v63  ;;  %v11958_v3 = vadd.f32 %v2638_v17, %v11955_v28 }
0x15b8   :  { %10480 = vmatpush3.msra.mxu1 %v11958_v3 }
0x15b9   :  { %10489 = vmatprep.subr.mxu1 %v11394_v20  ;;  %v3130_v50 = vpop.permute.xlu0 %3129 }
0x15bd   :  { %v3128_v31 = vpop.permute.xlu0 %3127 }
0x15c0   :  { %v11253_v30 = vpop.eup %11252 }
0x15c1   :  { %v2899_v33 = vsel %vm379_vm2, %v11253_v30, 0.0 }
0x15c2   :  { %2900 = vadd.xlane.f32.xlu1 %v2899_v33 }
0x15d3   :  { %2905 = vrot.lane.b32.xlu1 %v11958_v3, %s12972_s5 }
0x15dc   :  { %v2737_v36 = vpop.xlane.xlu1 %2736 }
0x15dd   :  { %11254 = vrcp.f32 %v2737_v36 }
0x15e7   :  { %v11255_v46 = vpop.eup %11254 }
0x15e8   :  { %v2739_v37 = vmul.f32 %v11255_v46, %v11251_v25 }
0x15ea   :  { %10482 = vmatmul.mubr.msk.f32.vlgmr.msra.gmra.mrb[32].mxu1 %vm379_vm2, %v2739_v37 }
0x15eb   :  { %10491 = vmatprep.mubr.msk.f32.mxu1 %vm11395_vm1, %v11394_v20 }
0x164f   :  { %v2901_v8 = vpop.xlane.xlu1 %2900 }
0x1650   :  { %11256 = vrcp.f32 %v2901_v8 }
0x1653   :  { %v2906_v39 = vpop.permute.xlu1 %2905 }
0x1654   :  { %10490 = vmatpush3.msra.mxu1 %v2906_v39 }
0x1655   :  { %10499 = vmatprep.subr.mxu1 %v11394_v20 }
0x165a   :  { %v11257_v41 = vpop.eup %11256 }
0x165b   :  { %v2903_v44 = vmul.f32 %v11257_v41, %v11253_v30 }
0x165d   :  { %10492 = vmatmul.mubr.msk.f32.vlgmr.msra.gmra.mrb[34].mxu1 %vm379_vm2, %v2903_v44 }
0x165e   :  { %10500 = vmatpush3.msra.mxu1 %v11979_v45  ;;  %10501 = vmatprep.mubr.msk.f32.mxu1 %vm11395_vm1, %v11394_v20 }
0x165f   :  { %10509 = vmatprep.subr.mxu1 %v11394_v20 }
0x16bd   :  { %v2809_v48 = vpop.f32.mrb[32].mxu1 }
0x16be   :  { %v10483_v49 = vpop.f32.mrb[33].mxu1  ;;  %10502 = vmatmul.mubr.msk.f32.vlgmr.msra.gmra.mrb[36].mxu1 %vm379_vm2, %v2809_v48 }
0x16bf   :  { %10511 = vmatprep.mubr.msk.f32.mxu1 %vm11395_vm1, %v11394_v20  ;;  %v12072_v49 = vadd.f32 %v11927_v5, %v11955_v28 }
0x1730   :  { %v2977_v52 = vpop.f32.mrb[34].mxu1 }
0x1731   :  { %v10493_v6 = vpop.f32.mrb[35].mxu1  ;;  %10497 = vmatmul.mubr.msk.f32.vlgmr.msra.gmra.mrb[32].mxu0 %vm379_vm2, %v2977_v52 }
0x1732   :  { %10505 = vmatpush3.xpose.msk.msra.mxu0 %vm379_vm2, %v3130_v50  ;;  %10506 = vmatprep.mubr.msk.f32.mxu0 %vm11395_vm1, %v11394_v20 }
0x1733   :  { %10514 = vmatprep.subr.mxu0 %v11394_v20 }
0x1735   :  { %10507 = vmatmul.mubr.msk.f32.vlgmr.msra.gmra.mrb[34].mxu0 %vm379_vm2, %v3128_v31 }
0x1736   :  { %10516 = vmatprep.mubr.msk.f32.mxu0 %vm11395_vm1, %v11394_v20  ;;  %10515 = vmatpush3.msra.mxu0 %v12020_v55 }
0x1737   :  { %10524 = vmatprep.subr.mxu0 %v11394_v20 }
0x1791   :  { %v3123_v54 = vpop.f32.mrb[36].mxu1 }
0x1792   :  { %v10503_v56 = vpop.f32.mrb[37].mxu1 }
0x1804   :  { %v3050_v57 = vpop.f32.mrb[32].mxu0 }
0x1805   :  { %v11997_v58 = vadd.f32 %v3123_v54, %v3050_v57  ;;  %v10498_v59 = vpop.f32.mrb[33].mxu0 }
0x1808   :  { %v3201_v60 = vpop.f32.mrb[34].mxu0 }
0x1809   :  { %v3205_v61 = vmul.f32 0.35355338, %v3201_v60  ;;  %v10508_v1 = vpop.f32.mrb[35].mxu0 }
0x180b   :  { %v3206_v17 = vadd.f32 %v3205_v61, %v11942_v27 }
0x180d   :  { %v3207_v7 = vsel %vm379_vm2, %v3206_v17, -inf }
0x180e   :  { %3208 = vmax.xlane.f32.xlu1 %v3207_v7 }
0x181f   :  { %3370 = vrot.lane.b32.xlu1 %v11909_v62, %s12975_s28 }
0x1823   :  { %3368 = vrot.lane.b32.xlu1 %v11919_v4, %s12975_s28 }
0x189b   :  { %v3209_v9 = vpop.xlane.xlu1 %3208 }
0x189c   :  { %v3210_v11 = vsub.f32 %v3206_v17, %v3209_v9 }
0x189e   :  { %v3211_v10 = vmul.f32 1.442695, %v3210_v11 }
0x189f   :  { %v3371_v15 = vpop.permute.xlu1 %3370 }
0x18a0   :  { %11258 = vpow2.f32 %v3211_v10 }
0x18a3   :  { %v3369_v16 = vpop.permute.xlu1 %3368 }
0x18aa   :  { %v11259_v13 = vpop.eup %11258 }
0x18ab   :  { %v3213_v14 = vsel %vm379_vm2, %v11259_v13, 0.0 }
0x18ac   :  { %3214 = vadd.xlane.f32.xlu0 %v3213_v14 }
0x18c2   :  { %3218 = vrot.lane.b32.xlu0 %v11958_v3, %s12974_s4 }
0x1939   :  { %v3215_v19 = vpop.xlane.xlu0 %3214 }
0x193a   :  { %11260 = vrcp.f32 %v3215_v19 }
0x193d   :  { %v3219_v32 = vpop.permute.xlu0 %3218 }
0x193e   :  { %10510 = vmatpush3.msra.mxu1 %v3219_v32 }
0x193f   :  { %10519 = vmatprep.subr.mxu1 %v11394_v20 }
0x1944   :  { %v11261_v62 = vpop.eup %11260 }
0x1945   :  { %v3217_v4 = vmul.f32 %v11261_v62, %v11259_v13  ;;  %v12099_v13 = vld [vmem:[%s12911_s11] ss:$0 sm:$0xff] }
0x1947   :  { %10512 = vmatmul.mubr.msk.f32.vlgmr.msra.gmra.mrb[38].mxu1 %vm379_vm2, %v3217_v4 }
0x1948   :  { %10520 = vmatpush3.xpose.msk.msra.mxu1 %vm379_vm2, %v3371_v15  ;;  %10521 = vmatprep.mubr.msk.f32.mxu1 %vm11395_vm1, %v11394_v20 }
0x1949   :  { %10529 = vmatprep.subr.mxu1 %v11394_v20 }
0x194b   :  { %10522 = vmatmul.mubr.msk.f32.vlgmr.msra.gmra.mrb[40].mxu1 %vm379_vm2, %v3369_v16 }
0x194c   :  { %10531 = vmatprep.mubr.msk.f32.mxu1 %vm11395_vm1, %v11394_v20  ;;  %10530 = vmatpush3.msra.mxu1 %v12048_v29 }
0x194d   :  { %10539 = vmatprep.subr.mxu1 %v11394_v20 }
0x1a1a   :  { %v3290_v21 = vpop.f32.mrb[38].mxu1 }
0x1a1b   :  { %v10513_v42 = vpop.f32.mrb[39].mxu1  ;;  %10517 = vmatmul.mubr.msk.f32.vlgmr.msra.gmra.mrb[36].mxu0 %vm379_vm2, %v3290_v21 }
0x1a1c   :  { %10526 = vmatprep.mubr.msk.f32.mxu0 %vm11395_vm1, %v11394_v20 }
0x1a1e   :  { %v3442_v23 = vpop.f32.mrb[40].mxu1 }
0x1a1f   :  { %v3446_v24 = vmul.f32 0.35355338, %v3442_v23  ;;  %v10523_v25 = vpop.f32.mrb[41].mxu1 }
0x1a21   :  { %v3447_v43 = vadd.f32 %v3446_v24, %v11942_v27 }
0x1a23   :  { %v3448_v26 = vsel %vm379_vm2, %v3447_v43, -inf }
0x1a24   :  { %3449 = vmax.xlane.f32.xlu0 %v3448_v26 }
0x1a3a   :  { %3459 = vrot.lane.b32.xlu0 %v11958_v3, %s12975_s28  ;;  %v12041_v3 = vadd.f32 %v11906_v22, %v11900_v53 }
0x1a3e   :  { %3783 = vrot.lane.b32.xlu0 %v12033_v35, %s12972_s5 }
0x1ab1   :  { %v3450_v63 = vpop.xlane.xlu0 %3449 }
0x1ab2   :  { %v3451_v30 = vsub.f32 %v3447_v43, %v3450_v63 }
0x1ab4   :  { %v3452_v33 = vmul.f32 1.442695, %v3451_v30 }
0x1ab5   :  { %v3460_v36 = vpop.permute.xlu0 %3459 }
0x1ab6   :  { %11262 = vpow2.f32 %v3452_v33  ;;  %10525 = vmatpush3.msra.mxu0 %v3460_v36 }
0x1ab7   :  { %10534 = vmatprep.subr.mxu0 %v11394_v20 }
0x1ab9   :  { %v3784_v48 = vpop.permute.xlu0 %3783 }
0x1ac0   :  { %v11263_v46 = vpop.eup %11262 }
0x1ac1   :  { %v3454_v37 = vsel %vm379_vm2, %v11263_v46, 0.0 }
0x1ac2   :  { %3455 = vadd.xlane.f32.xlu1 %v3454_v37 }
0x1ad3   :  { %3785 = vrot.lane.b32.xlu1 %v12041_v3, %s12972_s5 }
0x1aee   :  { %v3363_v0 = vpop.f32.mrb[36].mxu0 }
0x1aef   :  { %v3367_v8 = vadd.f32 %v3363_v0, %v11997_v58  ;;  %v10518_v39 = vpop.f32.mrb[37].mxu0 }
0x1b4f   :  { %v3456_v41 = vpop.xlane.xlu1 %3455 }
0x1b50   :  { %11264 = vrcp.f32 %v3456_v41 }
0x1b53   :  { %v3786_v44 = vpop.permute.xlu1 %3785 }
0x1b5a   :  { %v11265_v53 = vpop.eup %11264 }
0x1b5b   :  { %v3458_v22 = vmul.f32 %v11265_v53, %v11263_v46 }
0x1b5d   :  { %10527 = vmatmul.mubr.msk.f32.vlgmr.msra.gmra.mrb[38].mxu0 %vm379_vm2, %v3458_v22 }
0x1b5e   :  { %10535 = vmatpush3.xpose.msk.msra.mxu0 %vm379_vm2, %v12041_v3  ;;  %10536 = vmatprep.mubr.msk.f32.mxu0 %vm11395_vm1, %v11394_v20 }
0x1b5f   :  { %10544 = vmatprep.subr.mxu0 %v11394_v20 }
0x1b61   :  { %10537 = vmatmul.mubr.msk.f32.vlgmr.msra.gmra.mrb[40].mxu0 %vm379_vm2, %v12033_v35 }
0x1b62   :  { %10545 = vmatpush3.xpose.msk.msra.mxu0 %vm379_vm2, %v3786_v44  ;;  %10546 = vmatprep.mubr.msk.f32.mxu0 %vm11395_vm1, %v11394_v20 }
0x1b63   :  { %10554 = vmatprep.subr.mxu0 %v11394_v20 }
0x1b65   :  { %10547 = vmatmul.mubr.msk.f32.vlgmr.msra.gmra.mrb[42].mxu0 %vm379_vm2, %v3784_v48 }
0x1b66   :  { %10555 = vmatpush3.msra.mxu0 %v11971_v38  ;;  %10556 = vmatprep.mubr.msk.f32.mxu0 %vm11395_vm1, %v11394_v20  ;;  %v12081_v38 = vrot.slane %v11937_v51, %v1348_v18 }
0x1b67   :  { %10564 = vmatprep.subr.mxu0 %v11394_v20 }
0x1c30   :  { %v3531_v50 = vpop.f32.mrb[38].mxu0 }
0x1c31   :  { %v10528_v52 = vpop.f32.mrb[39].mxu0  ;;  %10532 = vmatmul.mubr.msk.f32.vlgmr.msra.gmra.mrb[42].mxu1 %vm379_vm2, %v3531_v50 }
0x1c32   :  { %10540 = vmatpush3.msra.mxu1 %v12072_v49  ;;  %10541 = vmatprep.mubr.msk.f32.mxu1 %vm11395_vm1, %v11394_v20 }
0x1c33   :  { %10549 = vmatprep.subr.mxu1 %v11394_v20 }
0x1c34   :  { %v3693_v6 = vpop.f32.mrb[40].mxu0 }
0x1c35   :  { %v3697_v31 = vmul.f32 0.35355338, %v3693_v6  ;;  %v10538_v5 = vpop.f32.mrb[41].mxu0 }
0x1c37   :  { %v3698_v28 = vadd.f32 %v3697_v31, %v12081_v38 }
0x1c38   :  { %v3857_v54 = vpop.f32.mrb[42].mxu0 }
0x1c39   :  { %v3861_v56 = vmul.f32 0.35355338, %v3857_v54  ;;  %v10548_v57 = vpop.f32.mrb[43].mxu0  ;;  %v3699_v58 = vsel %vm379_vm2, %v3698_v28, -inf }
0x1c3a   :  { %3700 = vmax.xlane.f32.xlu1 %v3699_v58 }
0x1c3b   :  { %v3862_v59 = vadd.f32 %v3861_v56, %v12081_v38 }
0x1c3d   :  { %v3863_v40 = vsel %vm379_vm2, %v3862_v59, -inf }
0x1c3e   :  { %3864 = vmax.xlane.f32.xlu0 %v3863_v40 }
0x1cc7   :  { %v3701_v18 = vpop.xlane.xlu1 %3700 }
0x1cc8   :  { %v3702_v51 = vsub.f32 %v3698_v28, %v3701_v18 }
0x1cca   :  { %v3703_v60 = vmul.f32 1.442695, %v3702_v51 }
0x1ccb   :  { %v3865_v61 = vpop.xlane.xlu0 %3864 }
0x1ccc   :  { %11266 = vpow2.f32 %v3703_v60  ;;  %v3866_v1 = vsub.f32 %v3862_v59, %v3865_v61 }
0x1cce   :  { %v3867_v17 = vmul.f32 1.442695, %v3866_v1 }
0x1cd0   :  { %11268 = vpow2.f32 %v3867_v17 }
0x1cd6   :  { %v11267_v7 = vpop.eup %11266 }
0x1cd7   :  { %v3705_v9 = vsel %vm379_vm2, %v11267_v7, 0.0 }
0x1cd8   :  { %3706 = vadd.xlane.f32.xlu0 %v3705_v9 }
0x1cda   :  { %v11269_v11 = vpop.eup %11268 }
0x1cdb   :  { %v3869_v10 = vsel %vm379_vm2, %v11269_v11, 0.0 }
0x1cdc   :  { %3870 = vadd.xlane.f32.xlu1 %v3869_v10 }
0x1ced   :  { %4099 = vrot.lane.b32.xlu1 %v12041_v3, %s12974_s4 }
0x1cee   :  { %3875 = vrot.lane.b32.xlu0 %v12072_v49, %s12972_s5 }
0x1cf1   :  { %4097 = vrot.lane.b32.xlu1 %v12033_v35, %s12974_s4 }
0x1d04   :  { %v3604_v14 = vpop.f32.mrb[42].mxu1 }
0x1d05   :  { %v3608_v19 = vadd.f32 %v3604_v14, %v3367_v8  ;;  %v10533_v32 = vpop.f32.mrb[43].mxu1 }
0x1d07   :  { %v3615_v62 = vadd.f32 %v12099_v13, %v3608_v19 }
0x1d09   :  { %3616 = vst.msk [vmem:[#allocation2] sm:$0xff] %vm108_vm0, %v3615_v62 }
0x1d10   :  { %v4581_v40 = vld [vmem:[#allocation2] sm:$0xff] }
0x1d65   :  { %v3707_v15 = vpop.xlane.xlu0 %3706 }
0x1d66   :  { %11270 = vrcp.f32 %v3707_v15 }
0x1d69   :  { %v3871_v4 = vpop.xlane.xlu1 %3870  ;;  %v3876_v42 = vpop.permute.xlu0 %3875 }
0x1d6a   :  { %11272 = vrcp.f32 %v3871_v4 }
0x1d6d   :  { %v4100_v26 = vpop.permute.xlu1 %4099 }
0x1d70   :  { %v11271_v16 = vpop.eup %11270 }
0x1d71   :  { %v3709_v21 = vmul.f32 %v11271_v16, %v11267_v7 }
0x1d73   :  { %10542 = vmatmul.mubr.msk.f32.vlgmr.msra.gmra.mrb[44].mxu1 %vm379_vm2, %v3709_v21 }
0x1d74   :  { %v11273_v23 = vpop.eup %11272  ;;  %10550 = vmatpush3.msra.mxu1 %v3876_v42  ;;  %10551 = vmatprep.mubr.msk.f32.mxu1 %vm11395_vm1, %v11394_v20 }
0x1d75   :  { %v3873_v24 = vmul.f32 %v11273_v23, %v11269_v11  ;;  %10559 = vmatprep.subr.mxu1 %v11394_v20 }
0x1d77   :  { %10552 = vmatmul.mubr.msk.f32.vlgmr.msra.gmra.mrb[46].mxu1 %vm379_vm2, %v3873_v24 }
0x1d78   :  { %10560 = vmatpush3.msra.mxu1 %v11979_v45  ;;  %10561 = vmatprep.mubr.msk.f32.mxu1 %vm11395_vm1, %v11394_v20  ;;  %v4098_v45 = vpop.permute.xlu1 %4097 }
0x1d79   :  { %10569 = vmatprep.subr.mxu1 %v11394_v20 }
0x1e46   :  { %v3779_v25 = vpop.f32.mrb[44].mxu1 }
0x1e47   :  { %v10543_v43 = vpop.f32.mrb[45].mxu1  ;;  %10562 = vmatmul.mubr.msk.f32.vlgmr.msra.gmra.mrb[48].mxu1 %vm379_vm2, %v3779_v25 }
0x1e48   :  { %10571 = vmatprep.mubr.msk.f32.mxu1 %vm11395_vm1, %v11394_v20 }
0x1e4a   :  { %v3947_v63 = vpop.f32.mrb[46].mxu1 }
0x1e4b   :  { %v10553_v30 = vpop.f32.mrb[47].mxu1  ;;  %10557 = vmatmul.mubr.msk.f32.vlgmr.msra.gmra.mrb[44].mxu0 %vm379_vm2, %v3947_v63 }
0x1e4c   :  { %10565 = vmatpush3.xpose.msk.msra.mxu0 %vm379_vm2, %v4100_v26  ;;  %10566 = vmatprep.mubr.msk.f32.mxu0 %vm11395_vm1, %v11394_v20 }
0x1e4d   :  { %10574 = vmatprep.subr.mxu0 %v11394_v20 }
0x1e4f   :  { %10567 = vmatmul.mubr.msk.f32.vlgmr.msra.gmra.mrb[46].mxu0 %vm379_vm2, %v4098_v45 }
0x1e50   :  { %10575 = vmatpush3.msra.mxu0 %v12020_v55  ;;  %10576 = vmatprep.mubr.msk.f32.mxu0 %vm11395_vm1, %v11394_v20 }
0x1e51   :  { %10584 = vmatprep.subr.mxu0 %v11394_v20 }
0x1f1a   :  { %v4093_v33 = vpop.f32.mrb[48].mxu1 }
0x1f1b   :  { %v10563_v36 = vpop.f32.mrb[49].mxu1 }
0x1f1e   :  { %v4020_v46 = vpop.f32.mrb[44].mxu0 }
0x1f1f   :  { %v4094_v37 = vadd.f32 %v4093_v33, %v4020_v46  ;;  %v10558_v0 = vpop.f32.mrb[45].mxu0 }
0x1f22   :  { %v4171_v8 = vpop.f32.mrb[46].mxu0 }
0x1f23   :  { %v4175_v39 = vmul.f32 0.35355338, %v4171_v8  ;;  %v10568_v41 = vpop.f32.mrb[47].mxu0 }
0x1f25   :  { %v4176_v53 = vadd.f32 %v4175_v39, %v12081_v38 }
0x1f27   :  { %v4177_v22 = vsel %vm379_vm2, %v4176_v53, -inf }
0x1f28   :  { %4178 = vmax.xlane.f32.xlu0 %v4177_v22  ;;  %v9842_v22 = vld [vmem:[%s12915_s15] ss:$0 sm:$0xff] }
0x1f3e   :  { %4188 = vrot.lane.b32.xlu0 %v12072_v49, %s12974_s4 }
0x1f42   :  { %4338 = vrot.lane.b32.xlu0 %v12033_v35, %s12975_s28 }
0x1fb5   :  { %v4179_v55 = vpop.xlane.xlu0 %4178 }
0x1fb6   :  { %v4180_v44 = vsub.f32 %v4176_v53, %v4179_v55 }
0x1fb8   :  { %v4181_v48 = vmul.f32 1.442695, %v4180_v44 }
0x1fb9   :  { %v4189_v50 = vpop.permute.xlu0 %4188 }
0x1fba   :  { %11274 = vpow2.f32 %v4181_v48  ;;  %10570 = vmatpush3.msra.mxu1 %v4189_v50  ;;  %v4629_v48 = vld [vmem:[%s12918_s18] sm:$0xff]  ;;  %v4630_v50 = vld [vmem:[%s12918_s18 + $0x8] sm:$0xff] }
0x1fbb   :  { %10579 = vmatprep.subr.mxu1 %v11394_v20 }
0x1fbd   :  { %v4339_v54 = vpop.permute.xlu0 %4338 }
0x1fc4   :  { %v11275_v52 = vpop.eup %11274 }
0x1fc5   :  { %v4183_v6 = vsel %vm379_vm2, %v11275_v52, 0.0 }
0x1fc6   :  { %4184 = vadd.xlane.f32.xlu1 %v4183_v6  ;;  %v4631_v6 = vld [vmem:[%s12918_s18 + $0x10] sm:$0xff] }
0x1fd7   :  { %4340 = vrot.lane.b32.xlu1 %v12041_v3, %s12975_s28 }
0x2053   :  { %v4185_v31 = vpop.xlane.xlu1 %4184 }
0x2054   :  { %11276 = vrcp.f32 %v4185_v31  ;;  %v4632_v31 = vld [vmem:[%s12918_s18 + $0x18] sm:$0xff] }
0x2057   :  { %v4341_v35 = vpop.permute.xlu1 %4340 }
0x205e   :  { %v11277_v5 = vpop.eup %11276 }
0x205f   :  { %v4187_v28 = vmul.f32 %v11277_v5, %v11275_v52  ;;  %v11019_v52 = vpack.c.bf16 %v4630_v50, %v4629_v48  ;;  %v11023_v5 = vpack.c.bf16 %v4632_v31, %v4631_v6  ;;  %v12235_v48 = vld [vmem:[%s12965_s0 + $0x1] ss:$0 sm:$0xff] }
0x2061   :  { %10572 = vmatmul.mubr.msk.f32.vlgmr.msra.gmra.mrb[50].mxu1 %vm379_vm2, %v4187_v28  ;;  %v4634_v28 = vld [vmem:[%s12920_s20] sm:$0xff] }
0x2062   :  { %10580 = vmatpush3.xpose.msk.msra.mxu1 %vm379_vm2, %v4341_v35  ;;  %10581 = vmatprep.mubr.msk.f32.mxu1 %vm11395_vm1, %v11394_v20  ;;  %v4635_v35 = vld [vmem:[%s12920_s20 + $0x8] sm:$0xff] }
0x2063   :  { %10589 = vmatprep.subr.mxu1 %v11394_v20 }
0x2065   :  { %10582 = vmatmul.mubr.msk.f32.vlgmr.msra.gmra.mrb[52].mxu1 %vm379_vm2, %v4339_v54  ;;  %v4636_v54 = vld [vmem:[%s12920_s20 + $0x10] sm:$0xff] }
0x2066   :  { %10590 = vmatpush3.msra.mxu1 %v12048_v29  ;;  %10591 = vmatprep.mubr.msk.f32.mxu1 %vm11395_vm1, %v11394_v20  ;;  %v4583_v29 = vadd.f32 %v4581_v40, %v11870_v2 }
0x2068   :  { %v4587_v60 = vsel %vm108_vm0, %v4583_v29, 0.0 }
0x2134   :  { %v4260_v3 = vpop.f32.mrb[50].mxu1 }
0x2135   :  { %v10573_v56 = vpop.f32.mrb[51].mxu1  ;;  %10577 = vmatmul.mubr.msk.f32.vlgmr.msra.gmra.mrb[48].mxu0 %vm379_vm2, %v4260_v3  ;;  %v11027_v3 = vpack.c.bf16 %v4635_v35, %v4634_v28 }
0x2136   :  { %10586 = vmatprep.mubr.msk.f32.mxu0 %vm11395_vm1, %v11394_v20  ;;  %v4637_v56 = vld [vmem:[%s12920_s20 + $0x18] sm:$0xff] }
0x2137   :  { %11028 = vmatprep.subr.bf16.mxu1 %v11027_v3 }
0x2138   :  { %v4412_v57 = vpop.f32.mrb[52].mxu1 }
0x2139   :  { %v4416_v58 = vmul.f32 0.35355338, %v4412_v57  ;;  %v10583_v59 = vpop.f32.mrb[53].mxu1  ;;  %v11031_v57 = vpack.c.bf16 %v4637_v56, %v4636_v54 }
0x213a   :  { %v4639_v59 = vld [vmem:[%s12920_s20 + $0x28] sm:$0xff] }
0x213b   :  { %v4417_v18 = vadd.f32 %v4416_v58, %v12081_v38  ;;  %v4638_v58 = vld [vmem:[%s12920_s20 + $0x20] sm:$0xff] }
0x213c   :  { %v11035_v40 = vpack.c.bf16 %v4639_v59, %v4638_v58  ;;  %v9849_v58 = vld [vmem:[%s12916_s16] ss:$0 sm:$0xff] }
0x213d   :  { %v4418_v51 = vsel %vm379_vm2, %v4417_v18, -inf }
0x213e   :  { %4419 = vmax.xlane.f32.xlu1 %v4418_v51 }
0x2142   :  { %4588 = vadd.xlane.f32.xlu1 %v4587_v60 }
0x21cb   :  { %v4420_v61 = vpop.xlane.xlu1 %4419 }
0x21cc   :  { %v4421_v1 = vsub.f32 %v4417_v18, %v4420_v61 }
0x21ce   :  { %v4422_v17 = vmul.f32 1.442695, %v4421_v1 }
0x21cf   :  { %v4589_v23 = vpop.xlane.xlu1 %4588 }
0x21d0   :  { %11278 = vpow2.f32 %v4422_v17  ;;  %v4593_v24 = vmul.f32 0.03125, %v4589_v23 }
0x21d2   :  { %v4595_v25 = vsub.f32 %v4583_v29, %v4593_v24 }
0x21d4   :  { %v4597_v30 = vmul.f32 %v4595_v25, %v4595_v25 }
0x21d6   :  { %v4599_v45 = vsel %vm108_vm0, %v4597_v30, 0.0 }
0x21da   :  { %v11279_v7 = vpop.eup %11278 }
0x21db   :  { %v4424_v9 = vsel %vm379_vm2, %v11279_v7, 0.0 }
0x21dc   :  { %4425 = vadd.xlane.f32.xlu0 %v4424_v9  ;;  %v4641_v9 = vld [vmem:[%s12920_s20 + $0x38] sm:$0xff] }
0x21f2   :  { %4429 = vrot.lane.b32.xlu0 %v12072_v49, %s12975_s28 }
0x2208   :  { %v4333_v11 = vpop.f32.mrb[48].mxu0 }
0x2209   :  { %v4337_v10 = vadd.f32 %v4333_v11, %v4094_v37  ;;  %v10578_v14 = vpop.f32.mrb[49].mxu0 }
0x2269   :  { %v4426_v19 = vpop.xlane.xlu0 %4425 }
0x226a   :  { %11280 = vrcp.f32 %v4426_v19 }
0x226d   :  { %v4430_v2 = vpop.permute.xlu0 %4429 }
0x226e   :  { %10585 = vmatpush3.msra.mxu0 %v4430_v2 }
0x226f   :  { %11020 = vmatprep.subr.bf16.mxu0 %v11019_v52 }
0x2274   :  { %v11281_v32 = vpop.eup %11280 }
0x2275   :  { %v4428_v62 = vmul.f32 %v11281_v32, %v11279_v7  ;;  %v4640_v7 = vld [vmem:[%s12920_s20 + $0x30] sm:$0xff] }
0x2276   :  { %v11039_v11 = vpack.c.bf16 %v4641_v9, %v4640_v7 }
0x2277   :  { %10587 = vmatmul.mubr.msk.f32.vlgmr.msra.gmra.mrb[50].mxu0 %vm379_vm2, %v4428_v62 }
0x2278   :  { %11022 = vmatpush3.bf16.msra.mxu0 %v11019_v52 }
0x2279   :  { %11024 = vmatprep.subr.bf16.mxu0 %v11023_v5 }
0x227c   :  { %11026 = vmatpush3.bf16.msra.mxu0 %v11023_v5 }
0x234a   :  { %v4501_v15 = vpop.f32.mrb[50].mxu0 }
0x234b   :  { %v10588_v4 = vpop.f32.mrb[51].mxu0  ;;  %10592 = vmatmul.mubr.msk.f32.vlgmr.msra.gmra.mrb[54].mxu1 %vm379_vm2, %v4501_v15 }
0x234c   :  { %11030 = vmatpush3.bf16.msra.mxu1 %v11027_v3  ;;  %v9846_v4 = vld [vmem:[%s12921_s21] ss:$0 sm:$0xff] }
0x234d   :  { %11032 = vmatprep.subr.bf16.mxu1 %v11031_v57 }
0x2350   :  { %11034 = vmatpush3.bf16.msra.mxu1 %v11031_v57 }
0x2351   :  { %11036 = vmatprep.subr.bf16.mxu1 %v11035_v40 }
0x2354   :  { %11038 = vmatpush3.bf16.msra.mxu1 %v11035_v40  ;;  %v9850_v40 = vld [vmem:[%s12917_s17] ss:$0 sm:$0xff] }
0x2355   :  { %11040 = vmatprep.subr.bf16.mxu1 %v11039_v11 }
0x2358   :  { %11042 = vmatpush3.bf16.msra.mxu1 %v11039_v11 }
0x241e   :  { %v4574_v16 = vpop.f32.mrb[54].mxu1 }
0x241f   :  { %v4578_v21 = vadd.f32 %v4574_v16, %v4337_v10  ;;  %v10593_v42 = vpop.f32.mrb[55].mxu1  ;;  %v9843_v10 = vld [vmem:[%s12919_s19] ss:$0 sm:$0xff] }
0x2421   :  { %v4579_v49 = vadd.f32 %v12099_v13, %v4578_v21 }
0x2423   :  { %4580 = vst.msk [vmem:[#allocation2 + $0x8] sm:$0xff] %vm108_vm0, %v4579_v49 }
0x242a   :  { %v4582_v43 = vld [vmem:[#allocation2 + $0x8] sm:$0xff] }
0x242b   :  { %v4584_v26 = vadd.f32 %v4582_v43, %v11895_v34  ;;  %v9841_v34 = vld [vmem:[%s12914_s14] ss:$0 sm:$0xff] }
0x242d   :  { %v4590_v63 = vsel %vm108_vm0, %v4584_v26, 0.0 }
0x242e   :  { %4591 = vadd.xlane.f32.xlu1 %v4590_v63 }
0x2432   :  { %4600 = vadd.xlane.f32.xlu1 %v4599_v45 }
0x24bb   :  { %v4592_v33 = vpop.xlane.xlu1 %4591 }
0x24bc   :  { %v4594_v36 = vmul.f32 0.03125, %v4592_v33 }
0x24be   :  { %v4596_v46 = vsub.f32 %v4584_v26, %v4594_v36 }
0x24bf   :  { %v4601_v37 = vpop.xlane.xlu1 %4600 }
0x24c0   :  { %v4605_v13 = vmul.f32 0.03125, %v4601_v37  ;;  %v4598_v0 = vmul.f32 %v4596_v46, %v4596_v46 }
0x24c2   :  { %v4607_v8 = vadd.f32 1e-05, %v4605_v13  ;;  %v4602_v39 = vsel %vm108_vm0, %v4598_v0, 0.0 }
0x24c3   :  { %4603 = vadd.xlane.f32.xlu1 %v4602_v39  ;;  %v9852_v39 = vld [vmem:[%s12963_s6 + $0x28] sm:$0xff] }
0x24c4   :  { %11282 = vrsqrt.f32 %v4607_v8  ;;  %v9851_v8 = vld [vmem:[%s12963_s6 + $0x20] sm:$0xff] }
0x24ce   :  { %v11283_v41 = vpop.eup %11282 }
0x24cf   :  { %v4611_v53 = vmul.f32 %v11283_v41, %v4595_v25  ;;  %v11174_v41 = vpack.i.bf16 %v9852_v39, %v9851_v8 }
0x24d1   :  { %v4619_v55 = vmul.f32 %v9841_v34, %v4611_v53  ;;  %v9854_v53 = vld [vmem:[%s12963_s6 + $0x38] sm:$0xff] }
0x24d3   :  { %v4627_v44 = vadd.f32 %v9842_v22, %v4619_v55  ;;  %v11043_v55 = vpack.c.bf16 %v9852_v39, %v9851_v8 }
0x24d5   :  { %10602 = vmatprep.mubr.msk.f32.mxu0 %vm108_vm0, %v4627_v44  ;;  %11044 = vmatprep.subr.bf16.mxu0 %v11043_v55 }
0x2550   :  { %v4604_v18 = vpop.xlane.xlu1 %4603 }
0x2551   :  { %v4606_v51 = vmul.f32 0.03125, %v4604_v18 }
0x2553   :  { %v4608_v29 = vadd.f32 1e-05, %v4606_v51 }
0x2555   :  { %11284 = vrsqrt.f32 %v4608_v29 }
0x255f   :  { %v11285_v60 = vpop.eup %11284 }
0x2560   :  { %v4612_v61 = vmul.f32 %v11285_v60, %v4596_v46 }
0x2562   :  { %v4620_v1 = vmul.f32 %v9841_v34, %v4612_v61  ;;  %v9853_v34 = vld [vmem:[%s12963_s6 + $0x30] sm:$0xff]  ;;  %s12978_s6 = sld [smem:[#allocation16_spill]] }
0x2564   :  { %v4628_v17 = vadd.f32 %v9842_v22, %v4620_v1  ;;  %v11179_v22 = vpack.i.bf16 %v9854_v53, %v9853_v34 }
0x2566   :  { %10603 = vmatmul.mubr.msk.f32.vlgmr.msra.gmra.mrb[52].mxu0 %vm108_vm0, %v4628_v17 }
0x2567   :  { %11046 = vmatpush3.bf16.msra.mxu0 %v11043_v55 }
0x2639   :  { %v10604_v14 = vpop.f32.mrb[52].mxu0 }
0x263a   :  { %v4727_v19 = vadd.f32 %v10604_v14, %v9843_v10  ;;  %v4721_v2 = vpop.f32.mrb[53].mxu0 }
0x263b   :  { %v4722_v32 = vadd.f32 %v9843_v10, %v4721_v2 }
0x263c   :  { %v4731_v15 = vmax.f32 %v4727_v19, 0.0 }
0x263d   :  { %v4730_v62 = vmax.f32 %v4722_v32, 0.0 }
0x263f   :  { %10621 = vmatprep.mubr.msk.f32.mxu1 %vm4738_vm4, %v4730_v62 }
0x2640   :  { %10622 = vmatmul.mubr.msk.f32.vlgmr.msra.gmra.mrb[56].mxu1 %vm4738_vm4, %v4731_v15 }
0x2713   :  { %v10623_v16 = vpop.f32.mrb[56].mxu1 }
0x2714   :  { %v4811_v21 = vpop.f32.mrb[57].mxu1  ;;  %v4817_v42 = vadd.f32 %v10623_v16, %v9846_v4 }
0x2715   :  { %v4812_v49 = vadd.f32 %v9846_v4, %v4811_v21 }
0x2716   :  { %v4821_v25 = vadd.f32 %v4817_v42, %v4628_v17 }
0x2717   :  { %v4820_v23 = vadd.f32 %v4812_v49, %v4627_v44  ;;  %v11047_v44 = vpack.c.bf16 %v9854_v53, %v9853_v34 }
0x2718   :  { %v4827_v43 = vsel %vm108_vm0, %v4821_v25, 0.0 }
0x2719   :  { %v4824_v24 = vsel %vm108_vm0, %v4820_v23, 0.0  ;;  %11048 = vmatprep.subr.bf16.mxu0 %v11047_v44 }
0x271a   :  { %4825 = vadd.xlane.f32.xlu1 %v4824_v24  ;;  %11050 = vmatpush3.bf16.msra.mxu0 %v11047_v44 }
0x271e   :  { %4828 = vadd.xlane.f32.xlu1 %v4827_v43 }
0x27a7   :  { %v4826_v26 = vpop.xlane.xlu1 %4825 }
0x27a8   :  { %v4830_v63 = vmul.f32 0.03125, %v4826_v26 }
0x27aa   :  { %v4832_v30 = vsub.f32 %v4820_v23, %v4830_v63 }
0x27ab   :  { %v4829_v45 = vpop.xlane.xlu1 %4828 }
0x27ac   :  { %v4831_v33 = vmul.f32 0.03125, %v4829_v45  ;;  %v4834_v36 = vmul.f32 %v4832_v30, %v4832_v30 }
0x27ae   :  { %v4833_v46 = vsub.f32 %v4821_v25, %v4831_v33  ;;  %v4836_v37 = vsel %vm108_vm0, %v4834_v36, 0.0 }
0x27af   :  { %4837 = vadd.xlane.f32.xlu0 %v4836_v37 }
0x27b0   :  { %v4835_v13 = vmul.f32 %v4833_v46, %v4833_v46 }
0x27b2   :  { %v4839_v0 = vsel %vm108_vm0, %v4835_v13, 0.0 }
0x27b3   :  { %4840 = vadd.xlane.f32.xlu1 %v4839_v0 }
0x27c4   :  { %11175 = vrot.lane.b32.xlu1 %v11174_v41, %s12976_s2 }
0x27c8   :  { %11180 = vrot.lane.b32.xlu1 %v11179_v22, %s12976_s2 }
0x27cc   :  { %4983 = vrot.lane.b32.xlu1 %v12235_v48, %s12976_s2 }
0x283c   :  { %v4838_v50 = vpop.xlane.xlu0 %4837 }
0x283d   :  { %v4842_v52 = vmul.f32 0.03125, %v4838_v50 }
0x283f   :  { %v4844_v6 = vadd.f32 1e-05, %v4842_v52 }
0x2840   :  { %v4841_v31 = vpop.xlane.xlu1 %4840 }
0x2841   :  { %11286 = vrsqrt.f32 %v4844_v6  ;;  %v4843_v5 = vmul.f32 0.03125, %v4841_v31 }
0x2843   :  { %v4845_v28 = vadd.f32 1e-05, %v4843_v5 }
0x2844   :  { %v11176_v35 = vpop.permute.xlu1 %11175 }
0x2845   :  { %11288 = vrsqrt.f32 %v4845_v28  ;;  %v11178_v54 = vunpack.i.h.bf16 %v11176_v35  ;;  %v11177_v3 = vunpack.i.l.bf16 %v11176_v35 }
0x2847   :  { %v11051_v56 = vpack.c.bf16 %v11178_v54, %v11177_v3 }
0x2848   :  { %v11181_v18 = vpop.permute.xlu1 %11180 }
0x2849   :  { %11052 = vmatprep.subr.bf16.mxu0 %v11051_v56  ;;  %v11183_v1 = vunpack.i.h.bf16 %v11181_v18  ;;  %v11182_v17 = vunpack.i.l.bf16 %v11181_v18 }
0x284b   :  { %v11287_v57 = vpop.eup %11286  ;;  %v11055_v11 = vpack.c.bf16 %v11183_v1, %v11182_v17 }
0x284c   :  { %v4848_v59 = vmul.f32 %v11287_v57, %v4832_v30  ;;  %v12269_v2 = vpop.permute.xlu1 %4983 }
0x284e   :  { %v4856_v51 = vmul.f32 %v9849_v58, %v4848_v59 }
0x284f   :  { %v11289_v29 = vpop.eup %11288 }
0x2850   :  { %v4849_v60 = vmul.f32 %v11289_v29, %v4833_v46  ;;  %v12245_v61 = vadd.f32 %v9850_v40, %v4856_v51  ;;  %v12331_v29 = vld [vmem:[%s12967_s9 + $0x20] sm:$0xff] }
0x2852   :  { %v4857_v7 = vmul.f32 %v9849_v58, %v4849_v60  ;;  %10632 = vmatprep.mubr.msk.f32.mxu0 %vm108_vm0, %v12245_v61  ;;  %10654 = vmatprep.mubr.msk.f32.mxu1 %vm108_vm0, %v12245_v61  ;;  %v12323_v58 = vld [vmem:[%s12967_s9 + $0x28] sm:$0xff] }
0x2854   :  { %v12251_v9 = vadd.f32 %v9850_v40, %v4857_v7 }
0x2856   :  { %10633 = vmatmul.mubr.msk.f32.vlgmr.msra.gmra.mrb[54].mxu0 %vm108_vm0, %v12251_v9 }
0x2857   :  { %11054 = vmatpush3.bf16.msra.mxu0 %v11051_v56  ;;  %10643 = vmatprep.mubr.msk.f32.mxu0 %vm108_vm0, %v12245_v61 }
0x2858   :  { %11056 = vmatprep.subr.bf16.mxu0 %v11055_v11 }
0x285b   :  { %11058 = vmatpush3.bf16.msra.mxu0 %v11055_v11 }
0x285c   :  { %10657 = vmatprep.subr.mxu0 %v11394_v20 }
0x285e   :  { %10644 = vmatmul.mubr.msk.f32.vlgmr.msra.gmra.mrb[56].mxu0 %vm108_vm0, %v12251_v9 }
0x285f   :  { %10659 = vmatprep.mubr.msk.f32.mxu0 %vm11395_vm1, %v11394_v20 }
0x2929   :  { %v12262_v10 = vpop.f32.mrb[54].mxu0 }
0x292a   :  { %v4958_v14 = vpop.f32.mrb[55].mxu0 }
0x292b   :  { %v12265_v19 = vadd.f32 %v12235_v48, %v4958_v14 }
0x292d   :  { %5313 = vrot.lane.b32.xlu1 %v12265_v19, %s12972_s5 }
0x2931   :  { %v12271_v32 = vpop.f32.mrb[56].mxu0  ;;  %11185 = vrot.lane.b32.xlu1 %v11174_v41, %s12977_s22 }
0x2932   :  { %v5052_v62 = vpop.f32.mrb[57].mxu0 }
0x2933   :  { %v12275_v15 = vadd.f32 %v5052_v62, %v12269_v2 }
0x2935   :  { %5315 = vrot.lane.b32.xlu0 %v12275_v15, %s12972_s5  ;;  %10658 = vmatpush3.xpose.msk.msra.mxu0 %vm379_vm2, %v12275_v15 }
0x2936   :  { %11190 = vrot.lane.b32.xlu1 %v11179_v22, %s12977_s22  ;;  %10667 = vmatprep.subr.mxu0 %v11394_v20 }
0x2938   :  { %10660 = vmatmul.mubr.msk.f32.vlgmr.msra.gmra.mrb[58].mxu0 %vm379_vm2, %v12265_v19 }
0x2939   :  { %10669 = vmatprep.mubr.msk.f32.mxu0 %vm11395_vm1, %v11394_v20 }
0x299f   :  { %v5314_v4 = vpop.permute.xlu1 %5313 }
0x29a3   :  { %v11186_v16 = vpop.permute.xlu1 %11185 }
0x29a4   :  { %v11188_v21 = vunpack.i.h.bf16 %v11186_v16  ;;  %v11187_v42 = vunpack.i.l.bf16 %v11186_v16 }
0x29a6   :  { %v11059_v49 = vpack.c.bf16 %v11188_v21, %v11187_v42 }
0x29a7   :  { %v5316_v23 = vpop.permute.xlu0 %5315 }
0x29a8   :  { %v11191_v24 = vpop.permute.xlu1 %11190  ;;  %10668 = vmatpush3.xpose.msk.msra.mxu0 %vm379_vm2, %v5316_v23  ;;  %11060 = vmatprep.subr.bf16.mxu1 %v11059_v49 }
0x29a9   :  { %v11193_v25 = vunpack.i.h.bf16 %v11191_v24  ;;  %v11192_v43 = vunpack.i.l.bf16 %v11191_v24  ;;  %11062 = vmatpush3.bf16.msra.mxu1 %v11059_v49  ;;  %10677 = vmatprep.subr.mxu0 %v11394_v20 }
0x29ab   :  { %v11063_v26 = vpack.c.bf16 %v11193_v25, %v11192_v43  ;;  %10670 = vmatmul.mubr.msk.f32.vlgmr.msra.gmra.mrb[60].mxu0 %vm379_vm2, %v5314_v4 }
0x29ac   :  { %10679 = vmatprep.mubr.msk.f32.mxu0 %vm11395_vm1, %v11394_v20  ;;  %10678 = vmatpush3.msra.mxu0 %v12323_v58 }
0x29ad   :  { %11064 = vmatprep.subr.bf16.mxu1 %v11063_v26  ;;  %10687 = vmatprep.subr.mxu0 %v11394_v20 }
0x29ae   :  { %11066 = vmatpush3.bf16.msra.mxu1 %v11063_v26 }
0x29af   :  { %10662 = vmatprep.subr.mxu1 %v11394_v20 }
0x29b1   :  { %10655 = vmatmul.mubr.msk.f32.vlgmr.msra.gmra.mrb[58].mxu1 %vm108_vm0, %v12251_v9 }
0x29b2   :  { %10664 = vmatprep.mubr.msk.f32.mxu1 %vm11395_vm1, %v11394_v20 }
0x2a0b   :  { %v5223_v63 = vpop.f32.mrb[58].mxu0 }
0x2a0c   :  { %v5227_v30 = vmul.f32 0.35355338, %v5223_v63  ;;  %v10661_v45 = vpop.f32.mrb[59].mxu0 }
0x2a0e   :  { %v5228_v33 = vadd.f32 %v5227_v30, %v11629_v47 }
0x2a10   :  { %v5229_v36 = vsel %vm379_vm2, %v5228_v33, -inf }
0x2a11   :  { %5230 = vmax.xlane.f32.xlu1 %v5229_v36 }
0x2a22   :  { %5073 = vrot.lane.b32.xlu1 %v12235_v48, %s12977_s22 }
0x2a26   :  { %5629 = vrot.lane.b32.xlu1 %v12275_v15, %s12974_s4 }
0x2a2a   :  { %5627 = vrot.lane.b32.xlu1 %v12265_v19, %s12974_s4 }
0x2a7e   :  { %v5387_v46 = vpop.f32.mrb[60].mxu0 }
0x2a7f   :  { %v5391_v37 = vmul.f32 0.35355338, %v5387_v46  ;;  %v10671_v13 = vpop.f32.mrb[61].mxu0 }
0x2a81   :  { %v5392_v0 = vadd.f32 %v5391_v37, %v11629_v47 }
0x2a83   :  { %v5393_v8 = vsel %vm379_vm2, %v5392_v0, -inf }
0x2a84   :  { %v10656_v39 = vpop.f32.mrb[58].mxu1  ;;  %5394 = vmax.xlane.f32.xlu0 %v5393_v8 }
0x2a85   :  { %v5142_v41 = vpop.f32.mrb[59].mxu1 }
0x2a9e   :  { %v5231_v34 = vpop.xlane.xlu1 %5230 }
0x2a9f   :  { %v5232_v53 = vsub.f32 %v5228_v33, %v5231_v34 }
0x2aa1   :  { %v5233_v22 = vmul.f32 1.442695, %v5232_v53 }
0x2aa2   :  { %v5074_v55 = vpop.permute.xlu1 %5073 }
0x2aa3   :  { %11290 = vpow2.f32 %v5233_v22  ;;  %v12307_v44 = vadd.f32 %v5142_v41, %v5074_v55  ;;  %v12309_v50 = vadd.f32 %v10656_v39, %v5074_v55 }
0x2aa5   :  { %10663 = vmatpush3.msra.mxu1 %v12307_v44 }
0x2aa6   :  { %10672 = vmatprep.subr.mxu1 %v11394_v20  ;;  %v5630_v17 = vpop.permute.xlu1 %5629 }
0x2aaa   :  { %v5628_v14 = vpop.permute.xlu1 %5627 }
0x2aad   :  { %v11291_v52 = vpop.eup %11290 }
0x2aae   :  { %v5235_v6 = vsel %vm379_vm2, %v11291_v52, 0.0 }
0x2aaf   :  { %5236 = vadd.xlane.f32.xlu0 %v5235_v6  ;;  %v12387_v6 = vadd.f32 %v12262_v10, %v12235_v48 }
0x2b11   :  { %v5395_v31 = vpop.xlane.xlu0 %5394 }
0x2b12   :  { %v5396_v5 = vsub.f32 %v5392_v0, %v5395_v31 }
0x2b14   :  { %v5397_v28 = vmul.f32 1.442695, %v5396_v5 }
0x2b16   :  { %11292 = vpow2.f32 %v5397_v28 }
0x2b20   :  { %v11293_v35 = vpop.eup %11292 }
0x2b21   :  { %v5399_v54 = vsel %vm379_vm2, %v11293_v35, 0.0 }
0x2b22   :  { %5400 = vadd.xlane.f32.xlu0 %v5399_v54 }
0x2b38   :  { %5405 = vrot.lane.b32.xlu0 %v12307_v44, %s12972_s5 }
0x2b3c   :  { %v5237_v3 = vpop.xlane.xlu0 %5236 }
0x2b3d   :  { %11294 = vrcp.f32 %v5237_v3 }
0x2b47   :  { %v11295_v56 = vpop.eup %11294 }
0x2b48   :  { %v5239_v57 = vmul.f32 %v11295_v56, %v11291_v52  ;;  %v12381_v52 = vadd.f32 %v12271_v32, %v12269_v2  ;;  %v12397_v2 = vld [vmem:[%s12967_s9 + $0x38] sm:$0xff] }
0x2b4a   :  { %10665 = vmatmul.mubr.msk.f32.vlgmr.msra.gmra.mrb[60].mxu1 %vm379_vm2, %v5239_v57 }
0x2b4b   :  { %10674 = vmatprep.mubr.msk.f32.mxu1 %vm11395_vm1, %v11394_v20 }
0x2baf   :  { %v5401_v59 = vpop.xlane.xlu0 %5400 }
0x2bb0   :  { %11296 = vrcp.f32 %v5401_v59 }
0x2bb3   :  { %v5406_v40 = vpop.permute.xlu0 %5405 }
0x2bb4   :  { %10673 = vmatpush3.msra.mxu1 %v5406_v40 }
0x2bb5   :  { %10682 = vmatprep.subr.mxu1 %v11394_v20 }
0x2bba   :  { %v11297_v18 = vpop.eup %11296 }
0x2bbb   :  { %v5403_v51 = vmul.f32 %v11297_v18, %v11293_v35 }
0x2bbd   :  { %10675 = vmatmul.mubr.msk.f32.vlgmr.msra.gmra.mrb[62].mxu1 %vm379_vm2, %v5403_v51 }
0x2bbe   :  { %10683 = vmatpush3.msra.mxu1 %v12331_v29  ;;  %10684 = vmatprep.mubr.msk.f32.mxu1 %vm11395_vm1, %v11394_v20 }
0x2bbf   :  { %10692 = vmatprep.subr.mxu1 %v11394_v20 }
0x2c1d   :  { %v5309_v60 = vpop.f32.mrb[60].mxu1 }
0x2c1e   :  { %v10666_v1 = vpop.f32.mrb[61].mxu1  ;;  %10685 = vmatmul.mubr.msk.f32.vlgmr.msra.gmra.mrb[64].mxu1 %vm379_vm2, %v5309_v60 }
0x2c1f   :  { %10694 = vmatprep.mubr.msk.f32.mxu1 %vm11395_vm1, %v11394_v20 }
0x2c90   :  { %v5477_v7 = vpop.f32.mrb[62].mxu1 }
0x2c91   :  { %v10676_v11 = vpop.f32.mrb[63].mxu1  ;;  %10680 = vmatmul.mubr.msk.f32.vlgmr.msra.gmra.mrb[62].mxu0 %vm379_vm2, %v5477_v7 }
0x2c92   :  { %10688 = vmatpush3.xpose.msk.msra.mxu0 %vm379_vm2, %v5630_v17  ;;  %10689 = vmatprep.mubr.msk.f32.mxu0 %vm11395_vm1, %v11394_v20 }
0x2c93   :  { %10697 = vmatprep.subr.mxu0 %v11394_v20 }
0x2c95   :  { %10690 = vmatmul.mubr.msk.f32.vlgmr.msra.gmra.mrb[64].mxu0 %vm379_vm2, %v5628_v14 }
0x2c96   :  { %10699 = vmatprep.mubr.msk.f32.mxu0 %vm11395_vm1, %v11394_v20 }
0x2cf1   :  { %v5623_v62 = vpop.f32.mrb[64].mxu1 }
0x2cf2   :  { %v10686_v4 = vpop.f32.mrb[65].mxu1 }
0x2d64   :  { %v5550_v16 = vpop.f32.mrb[62].mxu0 }
0x2d65   :  { %v5624_v21 = vadd.f32 %v5623_v62, %v5550_v16  ;;  %v10681_v42 = vpop.f32.mrb[63].mxu0 }
0x2d68   :  { %v5701_v49 = vpop.f32.mrb[64].mxu0 }
0x2d69   :  { %v5705_v23 = vmul.f32 0.35355338, %v5701_v49  ;;  %v10691_v24 = vpop.f32.mrb[65].mxu0 }
0x2d6b   :  { %v5706_v25 = vadd.f32 %v5705_v23, %v11629_v47 }
0x2d6d   :  { %v5707_v43 = vsel %vm379_vm2, %v5706_v25, -inf }
0x2d6e   :  { %5708 = vmax.xlane.f32.xlu1 %v5707_v43 }
0x2d7f   :  { %5718 = vrot.lane.b32.xlu1 %v12307_v44, %s12974_s4 }
0x2d83   :  { %5868 = vrot.lane.b32.xlu1 %v12265_v19, %s12975_s28 }
0x2dfb   :  { %v5709_v26 = vpop.xlane.xlu1 %5708 }
0x2dfc   :  { %v5710_v63 = vsub.f32 %v5706_v25, %v5709_v26 }
0x2dfe   :  { %v5711_v30 = vmul.f32 1.442695, %v5710_v63 }
0x2dff   :  { %v5719_v45 = vpop.permute.xlu1 %5718 }
0x2e00   :  { %11298 = vpow2.f32 %v5711_v30  ;;  %10693 = vmatpush3.msra.mxu1 %v5719_v45  ;;  %v12439_v30 = vld [vmem:[%s12968_s30 + $0x1] ss:$0 sm:$0xff] }
0x2e01   :  { %10702 = vmatprep.subr.mxu1 %v11394_v20 }
0x2e03   :  { %v5869_v0 = vpop.permute.xlu1 %5868 }
0x2e0a   :  { %v11299_v33 = vpop.eup %11298 }
0x2e0b   :  { %v5713_v36 = vsel %vm379_vm2, %v11299_v33, 0.0 }
0x2e0c   :  { %5714 = vadd.xlane.f32.xlu0 %v5713_v36 }
0x2e22   :  { %5870 = vrot.lane.b32.xlu0 %v12275_v15, %s12975_s28  ;;  %v12370_v15 = vld [vmem:[%s12967_s9 + $0x30] sm:$0xff] }
0x2e23   :  { %10698 = vmatpush3.msra.mxu0 %v12370_v15 }
0x2e24   :  { %10707 = vmatprep.subr.mxu0 %v11394_v20 }
0x2e99   :  { %v5715_v46 = vpop.xlane.xlu0 %5714 }
0x2e9a   :  { %11300 = vrcp.f32 %v5715_v46 }
0x2e9d   :  { %v5871_v19 = vpop.permute.xlu0 %5870 }
0x2ea4   :  { %v11301_v37 = vpop.eup %11300 }
0x2ea5   :  { %v5717_v13 = vmul.f32 %v11301_v37, %v11299_v33 }
0x2ea7   :  { %10695 = vmatmul.mubr.msk.f32.vlgmr.msra.gmra.mrb[66].mxu1 %vm379_vm2, %v5717_v13 }
0x2ea8   :  { %10703 = vmatpush3.xpose.msk.msra.mxu1 %vm379_vm2, %v5871_v19  ;;  %10704 = vmatprep.mubr.msk.f32.mxu1 %vm11395_vm1, %v11394_v20 }
0x2ea9   :  { %10712 = vmatprep.subr.mxu1 %v11394_v20 }
0x2eab   :  { %10705 = vmatmul.mubr.msk.f32.vlgmr.msra.gmra.mrb[68].mxu1 %vm379_vm2, %v5869_v0 }
0x2eac   :  { %10714 = vmatprep.mubr.msk.f32.mxu1 %vm11395_vm1, %v11394_v20  ;;  %10713 = vmatpush3.msra.mxu1 %v12397_v2 }
0x2ead   :  { %10722 = vmatprep.subr.mxu1 %v11394_v20 }
0x2f7a   :  { %v5790_v8 = vpop.f32.mrb[66].mxu1 }
0x2f7b   :  { %v10696_v39 = vpop.f32.mrb[67].mxu1  ;;  %10700 = vmatmul.mubr.msk.f32.vlgmr.msra.gmra.mrb[66].mxu0 %vm379_vm2, %v5790_v8 }
0x2f7c   :  { %10709 = vmatprep.mubr.msk.f32.mxu0 %vm11395_vm1, %v11394_v20 }
0x2f7e   :  { %v5942_v41 = vpop.f32.mrb[68].mxu1 }
0x2f7f   :  { %v5946_v34 = vmul.f32 0.35355338, %v5942_v41  ;;  %v10706_v53 = vpop.f32.mrb[69].mxu1 }
0x2f81   :  { %v5947_v22 = vadd.f32 %v5946_v34, %v11629_v47 }
0x2f83   :  { %v5948_v55 = vsel %vm379_vm2, %v5947_v22, -inf }
0x2f84   :  { %5949 = vmax.xlane.f32.xlu1 %v5948_v55 }
0x2f95   :  { %6281 = vrot.lane.b32.xlu1 %v12381_v52, %s12972_s5 }
0x2f99   :  { %6279 = vrot.lane.b32.xlu1 %v12387_v6, %s12972_s5 }
0x3011   :  { %v5950_v31 = vpop.xlane.xlu1 %5949 }
0x3012   :  { %v5951_v5 = vsub.f32 %v5947_v22, %v5950_v31 }
0x3014   :  { %v5952_v47 = vmul.f32 1.442695, %v5951_v5 }
0x3015   :  { %v6282_v57 = vpop.permute.xlu1 %6281 }
0x3016   :  { %11302 = vpow2.f32 %v5952_v47 }
0x3019   :  { %v6280_v59 = vpop.permute.xlu1 %6279 }
0x3020   :  { %v11303_v28 = vpop.eup %11302 }
0x3021   :  { %v5954_v35 = vsel %vm379_vm2, %v11303_v28, 0.0 }
0x3022   :  { %5955 = vadd.xlane.f32.xlu0 %v5954_v35 }
0x3038   :  { %5959 = vrot.lane.b32.xlu0 %v12307_v44, %s12975_s28 }
0x304e   :  { %v5863_v48 = vpop.f32.mrb[66].mxu0 }
0x304f   :  { %v5867_v10 = vadd.f32 %v5863_v48, %v5624_v21  ;;  %v10701_v32 = vpop.f32.mrb[67].mxu0 }
0x30af   :  { %v5956_v54 = vpop.xlane.xlu0 %5955 }
0x30b0   :  { %11304 = vrcp.f32 %v5956_v54 }
0x30b3   :  { %v5960_v3 = vpop.permute.xlu0 %5959 }
0x30b4   :  { %10708 = vmatpush3.msra.mxu0 %v5960_v3 }
0x30b5   :  { %10717 = vmatprep.subr.mxu0 %v11394_v20 }
0x30ba   :  { %v11305_v56 = vpop.eup %11304 }
0x30bb   :  { %v5958_v44 = vmul.f32 %v11305_v56, %v11303_v28 }
0x30bd   :  { %10710 = vmatmul.mubr.msk.f32.vlgmr.msra.gmra.mrb[68].mxu0 %vm379_vm2, %v5958_v44 }
0x30be   :  { %10718 = vmatpush3.xpose.msk.msra.mxu0 %vm379_vm2, %v12381_v52  ;;  %10719 = vmatprep.mubr.msk.f32.mxu0 %vm11395_vm1, %v11394_v20 }
0x30bf   :  { %10727 = vmatprep.subr.mxu0 %v11394_v20 }
0x30c1   :  { %10720 = vmatmul.mubr.msk.f32.vlgmr.msra.gmra.mrb[70].mxu0 %vm379_vm2, %v12387_v6 }
0x30c2   :  { %10728 = vmatpush3.xpose.msk.msra.mxu0 %vm379_vm2, %v6282_v57  ;;  %10729 = vmatprep.mubr.msk.f32.mxu0 %vm11395_vm1, %v11394_v20 }
0x30c3   :  { %10737 = vmatprep.subr.mxu0 %v11394_v20 }
0x30c5   :  { %10730 = vmatmul.mubr.msk.f32.vlgmr.msra.gmra.mrb[72].mxu0 %vm379_vm2, %v6280_v59 }
0x30c6   :  { %10738 = vmatpush3.msra.mxu0 %v12323_v58  ;;  %10739 = vmatprep.mubr.msk.f32.mxu0 %vm11395_vm1, %v11394_v20 }
0x30c7   :  { %10747 = vmatprep.subr.mxu0 %v11394_v20 }
0x3190   :  { %v6031_v40 = vpop.f32.mrb[68].mxu0 }
0x3191   :  { %v10711_v18 = vpop.f32.mrb[69].mxu0  ;;  %10715 = vmatmul.mubr.msk.f32.vlgmr.msra.gmra.mrb[70].mxu1 %vm379_vm2, %v6031_v40 }
0x3192   :  { %10723 = vmatpush3.msra.mxu1 %v12309_v50  ;;  %10724 = vmatprep.mubr.msk.f32.mxu1 %vm11395_vm1, %v11394_v20 }
0x3193   :  { %10732 = vmatprep.subr.mxu1 %v11394_v20 }
0x3194   :  { %v6189_v51 = vpop.f32.mrb[70].mxu0 }
0x3195   :  { %v6193_v60 = vmul.f32 0.35355338, %v6189_v51  ;;  %v10721_v1 = vpop.f32.mrb[71].mxu0 }
0x3197   :  { %v6194_v58 = vadd.f32 %v6193_v60, %v11770_v12 }
0x3198   :  { %v6353_v17 = vpop.f32.mrb[72].mxu0 }
0x3199   :  { %v6357_v7 = vmul.f32 0.35355338, %v6353_v17  ;;  %v10731_v11 = vpop.f32.mrb[73].mxu0  ;;  %v6195_v14 = vsel %vm379_vm2, %v6194_v58, -inf }
0x319a   :  { %6196 = vmax.xlane.f32.xlu1 %v6195_v14 }
0x319b   :  { %v6358_v62 = vadd.f32 %v6357_v7, %v11770_v12 }
0x319d   :  { %v6359_v4 = vsel %vm379_vm2, %v6358_v62, -inf }
0x319e   :  { %6360 = vmax.xlane.f32.xlu0 %v6359_v4 }
0x31ab   :  { %6371 = vrot.lane.b32.xlu1 %v12309_v50, %s12972_s5 }
0x31af   :  { %6593 = vrot.lane.b32.xlu1 %v12387_v6, %s12974_s4 }
0x3227   :  { %v6197_v16 = vpop.xlane.xlu1 %6196 }
0x3228   :  { %v6198_v21 = vsub.f32 %v6194_v58, %v6197_v16 }
0x322a   :  { %v6199_v42 = vmul.f32 1.442695, %v6198_v21 }
0x322b   :  { %v6361_v49 = vpop.xlane.xlu0 %6360  ;;  %v6372_v8 = vpop.permute.xlu1 %6371 }
0x322c   :  { %11306 = vpow2.f32 %v6199_v42  ;;  %v6362_v23 = vsub.f32 %v6358_v62, %v6361_v49 }
0x322e   :  { %v6363_v24 = vmul.f32 1.442695, %v6362_v23 }
0x3230   :  { %11308 = vpow2.f32 %v6363_v24 }
0x3236   :  { %v11307_v25 = vpop.eup %11306 }
0x3237   :  { %v6201_v43 = vsel %vm379_vm2, %v11307_v25, 0.0 }
0x3238   :  { %6202 = vadd.xlane.f32.xlu0 %v6201_v43 }
0x323a   :  { %v11309_v26 = vpop.eup %11308 }
0x323b   :  { %v6365_v63 = vsel %vm379_vm2, %v11309_v26, 0.0 }
0x323c   :  { %6366 = vadd.xlane.f32.xlu0 %v6365_v63 }
0x3252   :  { %6595 = vrot.lane.b32.xlu0 %v12381_v52, %s12974_s4 }
0x3264   :  { %v6104_v45 = vpop.f32.mrb[70].mxu1 }
0x3265   :  { %v6108_v33 = vadd.f32 %v6104_v45, %v5867_v10  ;;  %v10716_v36 = vpop.f32.mrb[71].mxu1 }
0x3267   :  { %v6115_v46 = vadd.f32 %v12439_v30, %v6108_v33 }
0x3269   :  { %6116 = vst.msk [vmem:[#allocation2] sm:$0xff] %vm108_vm0, %v6115_v46 }
0x3270   :  { %v7077_v62 = vld [vmem:[#allocation2] sm:$0xff] }
0x32c5   :  { %v6203_v37 = vpop.xlane.xlu0 %6202 }
0x32c6   :  { %11310 = vrcp.f32 %v6203_v37  ;;  %v12499_v37 = vld [vmem:[%s12970_s26] sm:$0xff] }
0x32c9   :  { %v6367_v13 = vpop.xlane.xlu0 %6366 }
0x32ca   :  { %11312 = vrcp.f32 %v6367_v13 }
0x32cd   :  { %v6596_v55 = vpop.permute.xlu0 %6595 }
0x32d0   :  { %v11311_v19 = vpop.eup %11310 }
0x32d1   :  { %v6205_v0 = vmul.f32 %v11311_v19, %v11307_v25 }
0x32d3   :  { %10725 = vmatmul.mubr.msk.f32.vlgmr.msra.gmra.mrb[72].mxu1 %vm379_vm2, %v6205_v0 }
0x32d4   :  { %v11313_v39 = vpop.eup %11312  ;;  %10733 = vmatpush3.msra.mxu1 %v6372_v8  ;;  %10734 = vmatprep.mubr.msk.f32.mxu1 %vm11395_vm1, %v11394_v20 }
0x32d5   :  { %v6369_v41 = vmul.f32 %v11313_v39, %v11309_v26  ;;  %10742 = vmatprep.subr.mxu1 %v11394_v20 }
0x32d7   :  { %10735 = vmatmul.mubr.msk.f32.vlgmr.msra.gmra.mrb[74].mxu1 %vm379_vm2, %v6369_v41 }
0x32d8   :  { %10743 = vmatpush3.msra.mxu1 %v12331_v29  ;;  %10744 = vmatprep.mubr.msk.f32.mxu1 %vm11395_vm1, %v11394_v20  ;;  %v6594_v29 = vpop.permute.xlu1 %6593 }
0x32d9   :  { %10752 = vmatprep.subr.mxu1 %v11394_v20 }
0x33a6   :  { %v6275_v34 = vpop.f32.mrb[72].mxu1 }
0x33a7   :  { %v10726_v53 = vpop.f32.mrb[73].mxu1  ;;  %10745 = vmatmul.mubr.msk.f32.vlgmr.msra.gmra.mrb[76].mxu1 %vm379_vm2, %v6275_v34 }
0x33a8   :  { %10754 = vmatprep.mubr.msk.f32.mxu1 %vm11395_vm1, %v11394_v20 }
0x33aa   :  { %v6443_v22 = vpop.f32.mrb[74].mxu1 }
0x33ab   :  { %v10736_v31 = vpop.f32.mrb[75].mxu1  ;;  %10740 = vmatmul.mubr.msk.f32.vlgmr.msra.gmra.mrb[74].mxu0 %vm379_vm2, %v6443_v22 }
0x33ac   :  { %10748 = vmatpush3.xpose.msk.msra.mxu0 %vm379_vm2, %v6596_v55  ;;  %10749 = vmatprep.mubr.msk.f32.mxu0 %vm11395_vm1, %v11394_v20 }
0x33ad   :  { %10757 = vmatprep.subr.mxu0 %v11394_v20 }
0x33af   :  { %10750 = vmatmul.mubr.msk.f32.vlgmr.msra.gmra.mrb[76].mxu0 %vm379_vm2, %v6594_v29  ;;  %v9907_v29 = vld [vmem:[%s12969_s8 + $0x30] sm:$0xff] }
0x33b0   :  { %10758 = vmatpush3.msra.mxu0 %v12370_v15  ;;  %10759 = vmatprep.mubr.msk.f32.mxu0 %vm11395_vm1, %v11394_v20 }
0x33b1   :  { %10767 = vmatprep.subr.mxu0 %v11394_v20 }
0x347a   :  { %v6589_v5 = vpop.f32.mrb[76].mxu1 }
0x347b   :  { %v10746_v47 = vpop.f32.mrb[77].mxu1 }
0x347e   :  { %v6516_v28 = vpop.f32.mrb[74].mxu0 }
0x347f   :  { %v6590_v35 = vadd.f32 %v6589_v5, %v6516_v28  ;;  %v10741_v48 = vpop.f32.mrb[75].mxu0 }
0x3482   :  { %v6667_v10 = vpop.f32.mrb[76].mxu0 }
0x3483   :  { %v6671_v32 = vmul.f32 0.35355338, %v6667_v10  ;;  %v10751_v54 = vpop.f32.mrb[77].mxu0 }
0x3485   :  { %v6672_v3 = vadd.f32 %v6671_v32, %v11770_v12 }
0x3487   :  { %v6673_v56 = vsel %vm379_vm2, %v6672_v3, -inf }
0x3488   :  { %6674 = vmax.xlane.f32.xlu1 %v6673_v56  ;;  %v9906_v56 = vld [vmem:[%s12969_s8 + $0x28] sm:$0xff] }
0x3499   :  { %6836 = vrot.lane.b32.xlu1 %v12381_v52, %s12975_s28 }
0x349d   :  { %6834 = vrot.lane.b32.xlu1 %v12387_v6, %s12975_s28 }
0x3515   :  { %v6675_v15 = vpop.xlane.xlu1 %6674 }
0x3516   :  { %v6676_v44 = vsub.f32 %v6672_v3, %v6675_v15  ;;  %v9905_v3 = vld [vmem:[%s12969_s8 + $0x20] sm:$0xff] }
0x3518   :  { %v6677_v57 = vmul.f32 1.442695, %v6676_v44  ;;  %v9903_v44 = vld [vmem:[%s12912_s12 + $0x1] ss:$0 sm:$0xff] }
0x3519   :  { %v6837_v60 = vpop.permute.xlu1 %6836 }
0x351a   :  { %11314 = vpow2.f32 %v6677_v57 }
0x351d   :  { %v6835_v1 = vpop.permute.xlu1 %6834 }
0x3524   :  { %v11315_v59 = vpop.eup %11314 }
0x3525   :  { %v6679_v40 = vsel %vm379_vm2, %v11315_v59, 0.0 }
0x3526   :  { %6680 = vadd.xlane.f32.xlu0 %v6679_v40  ;;  %v11194_v40 = vpack.i.bf16 %v9906_v56, %v9905_v3 }
0x353c   :  { %6684 = vrot.lane.b32.xlu0 %v12309_v50, %s12974_s4 }
0x35b3   :  { %v6681_v18 = vpop.xlane.xlu0 %6680 }
0x35b4   :  { %11316 = vrcp.f32 %v6681_v18 }
0x35b7   :  { %v6685_v51 = vpop.permute.xlu0 %6684 }
0x35b8   :  { %10753 = vmatpush3.msra.mxu1 %v6685_v51 }
0x35b9   :  { %10762 = vmatprep.subr.mxu1 %v11394_v20 }
0x35be   :  { %v11317_v52 = vpop.eup %11316 }
0x35bf   :  { %v6683_v6 = vmul.f32 %v11317_v52, %v11315_v59  ;;  %v9904_v59 = vld [vmem:[%s12913_s13 + $0x1] ss:$0 sm:$0xff]  ;;  %v11067_v52 = vpack.c.bf16 %v9906_v56, %v9905_v3 }
0x35c1   :  { %10755 = vmatmul.mubr.msk.f32.vlgmr.msra.gmra.mrb[78].mxu1 %vm379_vm2, %v6683_v6  ;;  %v12536_v6 = vld [vmem:[%s12971_s1 + $0x1] ss:$0 sm:$0xff] }
0x35c2   :  { %10763 = vmatpush3.xpose.msk.msra.mxu1 %vm379_vm2, %v6837_v60  ;;  %10764 = vmatprep.mubr.msk.f32.mxu1 %vm11395_vm1, %v11394_v20 }
0x35c3   :  { %10772 = vmatprep.subr.mxu1 %v11394_v20 }
0x35c5   :  { %10765 = vmatmul.mubr.msk.f32.vlgmr.msra.gmra.mrb[80].mxu1 %vm379_vm2, %v6835_v1 }
0x35c6   :  { %10773 = vmatpush3.msra.mxu1 %v12397_v2  ;;  %10774 = vmatprep.mubr.msk.f32.mxu1 %vm11395_vm1, %v11394_v20  ;;  %v7079_v2 = vadd.f32 %v7077_v62, %v12245_v61 }
0x35c8   :  { %v7085_v21 = vsel %vm108_vm0, %v7079_v2, 0.0 }
0x3694   :  { %v6756_v58 = vpop.f32.mrb[78].mxu1 }
0x3695   :  { %v10756_v17 = vpop.f32.mrb[79].mxu1  ;;  %10760 = vmatmul.mubr.msk.f32.vlgmr.msra.gmra.mrb[78].mxu0 %vm379_vm2, %v6756_v58 }
0x3696   :  { %10769 = vmatprep.mubr.msk.f32.mxu0 %vm11395_vm1, %v11394_v20 }
0x3698   :  { %v6908_v7 = vpop.f32.mrb[80].mxu1 }
0x3699   :  { %v6912_v11 = vmul.f32 0.35355338, %v6908_v7  ;;  %v10766_v14 = vpop.f32.mrb[81].mxu1 }
0x369b   :  { %v6913_v4 = vadd.f32 %v6912_v11, %v11770_v12 }
0x369d   :  { %v6914_v16 = vsel %vm379_vm2, %v6913_v4, -inf }
0x369e   :  { %6915 = vmax.xlane.f32.xlu1 %v6914_v16 }
0x36a2   :  { %7086 = vadd.xlane.f32.xlu1 %v7085_v21 }
0x372b   :  { %v6916_v42 = vpop.xlane.xlu1 %6915 }
0x372c   :  { %v6917_v49 = vsub.f32 %v6913_v4, %v6916_v42 }
0x372e   :  { %v6918_v23 = vmul.f32 1.442695, %v6917_v49 }
0x372f   :  { %v7087_v8 = vpop.xlane.xlu1 %7086 }
0x3730   :  { %11318 = vpow2.f32 %v6918_v23  ;;  %v7091_v39 = vmul.f32 0.03125, %v7087_v8  ;;  %v11367_v23 = vld [vmem:[%s12970_s26 + $0x8] sm:$0xff] }
0x3732   :  { %v7093_v41 = vsub.f32 %v7079_v2, %v7091_v39 }
0x3734   :  { %v7095_v55 = vmul.f32 %v7093_v41, %v7093_v41 }
0x3736   :  { %v7097_v31 = vsel %vm108_vm0, %v7095_v55, 0.0 }
0x373a   :  { %v11319_v24 = vpop.eup %11318 }
0x373b   :  { %v6920_v25 = vsel %vm379_vm2, %v11319_v24, 0.0 }
0x373c   :  { %6921 = vadd.xlane.f32.xlu0 %v6920_v25 }
0x3752   :  { %6925 = vrot.lane.b32.xlu0 %v12309_v50, %s12975_s28 }
0x3768   :  { %v6829_v12 = vpop.f32.mrb[78].mxu0 }
0x3769   :  { %v6833_v43 = vadd.f32 %v6829_v12, %v6590_v35  ;;  %v10761_v26 = vpop.f32.mrb[79].mxu0 }
0x37c9   :  { %v6922_v63 = vpop.xlane.xlu0 %6921 }
0x37ca   :  { %11320 = vrcp.f32 %v6922_v63 }
0x37cd   :  { %v6926_v61 = vpop.permute.xlu0 %6925 }
0x37ce   :  { %10768 = vmatpush3.msra.mxu0 %v6926_v61 }
0x37cf   :  { %11068 = vmatprep.subr.bf16.mxu0 %v11067_v52 }
0x37d4   :  { %v11321_v45 = vpop.eup %11320 }
0x37d5   :  { %v6924_v33 = vmul.f32 %v11321_v45, %v11319_v24 }
0x37d7   :  { %10770 = vmatmul.mubr.msk.f32.vlgmr.msra.gmra.mrb[80].mxu0 %vm379_vm2, %v6924_v33 }
0x37d8   :  { %11070 = vmatpush3.bf16.msra.mxu0 %v11067_v52 }
0x38aa   :  { %v6997_v36 = vpop.f32.mrb[80].mxu0 }
0x38ab   :  { %v10771_v46 = vpop.f32.mrb[81].mxu0  ;;  %10775 = vmatmul.mubr.msk.f32.vlgmr.msra.gmra.mrb[82].mxu1 %vm379_vm2, %v6997_v36 }
0x38ac   :  { %10796 = vmatprep.mubr.msk.f32.mxu1 %vm108_vm0, %v12499_v37 }
0x397e   :  { %v7070_v50 = vpop.f32.mrb[82].mxu1 }
0x397f   :  { %v7074_v13 = vadd.f32 %v7070_v50, %v6833_v43  ;;  %v10776_v19 = vpop.f32.mrb[83].mxu1 }
0x3981   :  { %v7075_v0 = vadd.f32 %v12439_v30, %v7074_v13  ;;  %v9908_v30 = vld [vmem:[%s12969_s8 + $0x38] sm:$0xff] }
0x3982   :  { %v11199_v5 = vpack.i.bf16 %v9908_v30, %v9907_v29  ;;  %v11071_v60 = vpack.c.bf16 %v9908_v30, %v9907_v29 }
0x3983   :  { %7076 = vst.msk [vmem:[#allocation2 + $0x8] sm:$0xff] %vm108_vm0, %v7075_v0 }
0x3984   :  { %11200 = vrot.lane.b32.xlu0 %v11199_v5, %s12976_s2  ;;  %11072 = vmatprep.subr.bf16.mxu0 %v11071_v60 }
0x3985   :  { %11074 = vmatpush3.bf16.msra.mxu0 %v11071_v60 }
0x3988   :  { %7244 = vrot.lane.b32.xlu0 %v12536_v6, %s12976_s2 }
0x398a   :  { %v7078_v34 = vld [vmem:[#allocation2 + $0x8] sm:$0xff] }
0x398b   :  { %v7080_v53 = vadd.f32 %v7078_v34, %v12251_v9 }
0x398c   :  { %11205 = vrot.lane.b32.xlu0 %v11194_v40, %s12977_s22 }
0x398d   :  { %v7088_v22 = vsel %vm108_vm0, %v7080_v53, 0.0 }
0x398e   :  { %7089 = vadd.xlane.f32.xlu1 %v7088_v22 }
0x3990   :  { %11210 = vrot.lane.b32.xlu0 %v11199_v5, %s12977_s22 }
0x3992   :  { %7098 = vadd.xlane.f32.xlu1 %v7097_v31 }
0x39f6   :  { %v11201_v58 = vpop.permute.xlu0 %11200 }
0x39f7   :  { %v11203_v11 = vunpack.i.h.bf16 %v11201_v58  ;;  %v11202_v14 = vunpack.i.l.bf16 %v11201_v58 }
0x39f9   :  { %v11079_v21 = vpack.c.bf16 %v11203_v11, %v11202_v14 }
0x39fa   :  { %v12555_v12 = vpop.permute.xlu0 %7244 }
0x39fe   :  { %v11206_v43 = vpop.permute.xlu0 %11205 }
0x39ff   :  { %v11208_v26 = vunpack.i.h.bf16 %v11206_v43  ;;  %v11207_v63 = vunpack.i.l.bf16 %v11206_v43 }
0x3a01   :  { %v11083_v61 = vpack.c.bf16 %v11208_v26, %v11207_v63 }
0x3a02   :  { %v11211_v45 = vpop.permute.xlu0 %11210 }
0x3a03   :  { %v11213_v33 = vunpack.i.h.bf16 %v11211_v45  ;;  %v11212_v36 = vunpack.i.l.bf16 %v11211_v45  ;;  %11084 = vmatprep.subr.bf16.mxu0 %v11083_v61 }
0x3a05   :  { %v11087_v46 = vpack.c.bf16 %v11213_v33, %v11212_v36 }
0x3a1b   :  { %v7090_v47 = vpop.xlane.xlu1 %7089 }
0x3a1c   :  { %v7092_v9 = vmul.f32 0.03125, %v7090_v47 }
0x3a1e   :  { %v7094_v28 = vsub.f32 %v7080_v53, %v7092_v9 }
0x3a1f   :  { %v7099_v35 = vpop.xlane.xlu1 %7098 }
0x3a20   :  { %v7103_v48 = vmul.f32 0.03125, %v7099_v35  ;;  %v7096_v10 = vmul.f32 %v7094_v28, %v7094_v28 }
0x3a22   :  { %v7105_v32 = vadd.f32 1e-05, %v7103_v48  ;;  %v7100_v54 = vsel %vm108_vm0, %v7096_v10, 0.0 }
0x3a23   :  { %7101 = vadd.xlane.f32.xlu1 %v7100_v54 }
0x3a24   :  { %11322 = vrsqrt.f32 %v7105_v32 }
0x3a2e   :  { %v11323_v15 = vpop.eup %11322 }
0x3a2f   :  { %v7109_v57 = vmul.f32 %v11323_v15, %v7093_v41 }
0x3a31   :  { %v7117_v18 = vmul.f32 %v9903_v44, %v7109_v57 }
0x3a33   :  { %v12528_v51 = vadd.f32 %v9904_v59, %v7117_v18 }
0x3a34   :  { %11195 = vrot.lane.b32.xlu1 %v11194_v40, %s12976_s2 }
0x3a35   :  { %10785 = vmatprep.mubr.msk.f32.mxu0 %vm108_vm0, %v12528_v51 }
0x3ab0   :  { %v7102_v1 = vpop.xlane.xlu1 %7101 }
0x3ab1   :  { %v7104_v17 = vmul.f32 0.03125, %v7102_v1 }
0x3ab3   :  { %v7106_v7 = vadd.f32 1e-05, %v7104_v17  ;;  %v12614_v17 = vld [vmem:[%s12910_s10 + $0x28] sm:$0xff] }
0x3ab4   :  { %v11196_v62 = vpop.permute.xlu1 %11195 }
0x3ab5   :  { %11324 = vrsqrt.f32 %v7106_v7  ;;  %v11198_v4 = vunpack.i.h.bf16 %v11196_v62  ;;  %v11197_v16 = vunpack.i.l.bf16 %v11196_v62 }
0x3ab7   :  { %v11075_v2 = vpack.c.bf16 %v11198_v4, %v11197_v16  ;;  %v12622_v4 = vld [vmem:[%s12910_s10 + $0x20] sm:$0xff] }
0x3ab9   :  { %11076 = vmatprep.subr.bf16.mxu1 %v11075_v2 }
0x3aba   :  { %11078 = vmatpush3.bf16.msra.mxu1 %v11075_v2 }
0x3abb   :  { %11080 = vmatprep.subr.bf16.mxu1 %v11079_v21 }
0x3abe   :  { %11082 = vmatpush3.bf16.msra.mxu1 %v11079_v21 }
0x3abf   :  { %v11325_v42 = vpop.eup %11324  ;;  %10810 = vmatprep.subr.mxu1 %v11394_v20 }
0x3ac0   :  { %v7110_v49 = vmul.f32 %v11325_v42, %v7094_v28 }
0x3ac1   :  { %10797 = vmatmul.mubr.msk.f32.vlgmr.msra.gmra.mrb[84].mxu1 %vm108_vm0, %v11367_v23 }
0x3ac2   :  { %v7118_v24 = vmul.f32 %v9903_v44, %v7110_v49  ;;  %10812 = vmatprep.mubr.msk.f32.mxu1 %vm11395_vm1, %v11394_v20 }
0x3ac4   :  { %v12549_v25 = vadd.f32 %v9904_v59, %v7118_v24 }
0x3ac6   :  { %10786 = vmatmul.mubr.msk.f32.vlgmr.msra.gmra.mrb[82].mxu0 %vm108_vm0, %v12549_v25 }
0x3ac7   :  { %10807 = vmatprep.mubr.msk.f32.mxu0 %vm108_vm0, %v12499_v37  ;;  %11086 = vmatpush3.bf16.msra.mxu0 %v11083_v61 }
0x3ac8   :  { %11088 = vmatprep.subr.bf16.mxu0 %v11087_v46 }
0x3acb   :  { %11090 = vmatpush3.bf16.msra.mxu0 %v11087_v46 }
0x3acc   :  { %10820 = vmatprep.subr.mxu0 %v11394_v20 }
0x3ace   :  { %10808 = vmatmul.mubr.msk.f32.vlgmr.msra.gmra.mrb[84].mxu0 %vm108_vm0, %v11367_v23 }
0x3acf   :  { %10822 = vmatprep.mubr.msk.f32.mxu0 %vm11395_vm1, %v11394_v20 }
0x3b94   :  { %v12561_v37 = vpop.f32.mrb[84].mxu1 }
0x3b95   :  { %v7313_v50 = vpop.f32.mrb[85].mxu1 }
0x3b96   :  { %v12564_v13 = vadd.f32 %v7313_v50, %v12555_v12 }
0x3b98   :  { %7577 = vrot.lane.b32.xlu1 %v12564_v13, %s12972_s5  ;;  %10811 = vmatpush3.xpose.msk.msra.mxu1 %vm379_vm2, %v12564_v13 }
0x3b99   :  { %v12570_v19 = vpop.f32.mrb[82].mxu0  ;;  %10815 = vmatprep.subr.mxu1 %v11394_v20 }
0x3b9a   :  { %v7219_v0 = vpop.f32.mrb[83].mxu0 }
0x3b9b   :  { %v12574_v8 = vadd.f32 %v12536_v6, %v7219_v0 }
0x3b9d   :  { %7575 = vrot.lane.b32.xlu0 %v12574_v8, %s12972_s5  ;;  %10813 = vmatmul.mubr.msk.f32.vlgmr.msra.gmra.mrb[86].mxu1 %vm379_vm2, %v12574_v8 }
0x3b9e   :  { %10817 = vmatprep.mubr.msk.f32.mxu1 %vm11395_vm1, %v11394_v20 }
0x3ba1   :  { %v10809_v39 = vpop.f32.mrb[84].mxu0 }
0x3ba2   :  { %v7403_v41 = vpop.f32.mrb[85].mxu0 }
0x3c0a   :  { %v7578_v34 = vpop.permute.xlu1 %7577 }
0x3c0b   :  { %10821 = vmatpush3.xpose.msk.msra.mxu0 %vm379_vm2, %v7578_v34 }
0x3c0c   :  { %10830 = vmatprep.subr.mxu0 %v11394_v20 }
0x3c0f   :  { %v7576_v53 = vpop.permute.xlu0 %7575 }
0x3c10   :  { %10823 = vmatmul.mubr.msk.f32.vlgmr.msra.gmra.mrb[86].mxu0 %vm379_vm2, %v7576_v53 }
0x3c11   :  { %10832 = vmatprep.mubr.msk.f32.mxu0 %vm11395_vm1, %v11394_v20  ;;  %10831 = vmatpush3.msra.mxu0 %v12614_v17 }
0x3c12   :  { %10840 = vmatprep.subr.mxu0 %v11394_v20 }
0x3c70   :  { %v7484_v22 = vpop.f32.mrb[86].mxu1 }
0x3c71   :  { %v7488_v55 = vmul.f32 0.35355338, %v7484_v22  ;;  %v10814_v31 = vpop.f32.mrb[87].mxu1 }
0x3c73   :  { %v7489_v29 = vadd.f32 %v7488_v55, %v11942_v27 }
0x3c75   :  { %v7490_v30 = vsel %vm379_vm2, %v7489_v29, -inf }
0x3c76   :  { %7491 = vmax.xlane.f32.xlu1 %v7490_v30  ;;  %v12665_v30 = vld [vmem:[%s12910_s10 + $0x30] sm:$0xff] }
0x3ce3   :  { %v7649_v5 = vpop.f32.mrb[86].mxu0 }
0x3ce4   :  { %v7653_v47 = vmul.f32 0.35355338, %v7649_v5  ;;  %v10824_v9 = vpop.f32.mrb[87].mxu0 }
0x3ce6   :  { %v7654_v28 = vadd.f32 %v7653_v47, %v11942_v27 }
0x3ce8   :  { %v7655_v35 = vsel %vm379_vm2, %v7654_v28, -inf }
0x3ce9   :  { %7656 = vmax.xlane.f32.xlu0 %v7655_v35 }
0x3cff   :  { %7334 = vrot.lane.b32.xlu0 %v12536_v6, %s12977_s22  ;;  %s11400_s22 = smov [#allocation3]  }
0x3d00   :  { %s9746_s23 = sshll.u32 %s11400_s22, 4  ;;  %s9747_s23 = int_to_ptr.vmem [resolvable:$true] %s9746_s23 }
0x3d01   :  { %s11368_s25 = scalar_lea.vmem %s9747_s23, 1024  ;;  %p11373_p1 = scmp.lt.s32.totalorder %s9747_s23, %s9747_s23 }
0x3d02   :  { %p11369_p0 = scmp.ne.s32.totalorder %s9747_s23, %s11368_s25  ;;  %p11374_p2 = scmp.lt.s32.totalorder %s11368_s25, %s11368_s25 }
0x3d03   :  { %7893 = vrot.lane.b32.xlu0 %v12564_v13, %s12974_s4  ;;  %v7492_v48 = vpop.xlane.xlu1 %7491 }
0x3d04   :  { %v7493_v10 = vsub.f32 %v7489_v29, %v7492_v48  ;;  %p11375_p3 = por %p11374_p2, %p11373_p1 }
0x3d06   :  { %v7494_v32 = vmul.f32 1.442695, %v7493_v10  ;;  %p11376_p4 = pnand %p11375_p3, %p11369_p0 }
0x3d07   :  { %7891 = vrot.lane.b32.xlu0 %v12574_v8, %s12974_s4 }
0x3d08   :  { %11326 = vpow2.f32 %v7494_v32  ;;  %v12678_v32 = vadd.f32 %v12570_v19, %v12536_v6  ;;  %v12693_v6 = vld [vmem:[%s12910_s10 + $0x38] sm:$0xff] }
0x3d12   :  { %v11327_v54 = vpop.eup %11326 }
0x3d13   :  { %v7496_v3 = vsel %vm379_vm2, %v11327_v54, 0.0 }
0x3d14   :  { %7497 = vadd.xlane.f32.xlu1 %v7496_v3 }
0x3d76   :  { %v7657_v56 = vpop.xlane.xlu0 %7656 }
0x3d77   :  { %v7658_v15 = vsub.f32 %v7654_v28, %v7657_v56 }
0x3d79   :  { %v7659_v44 = vmul.f32 1.442695, %v7658_v15 }
0x3d7a   :  { %v7335_v57 = vpop.permute.xlu0 %7334 }
0x3d7b   :  { %11328 = vpow2.f32 %v7659_v44  ;;  %v12598_v59 = vadd.f32 %v7403_v41, %v7335_v57  ;;  %v12600_v40 = vadd.f32 %v10809_v39, %v7335_v57  ;;  %v12686_v57 = vadd.f32 %v12561_v37, %v12555_v12 }
0x3d7d   :  { %10816 = vmatpush3.msra.mxu1 %v12598_v59 }
0x3d7e   :  { %10825 = vmatprep.subr.mxu1 %v11394_v20  ;;  %v7894_v21 = vpop.permute.xlu0 %7893 }
0x3d82   :  { %v7892_v23 = vpop.permute.xlu0 %7891 }
0x3d85   :  { %v11329_v18 = vpop.eup %11328 }
0x3d86   :  { %v7661_v52 = vsel %vm379_vm2, %v11329_v18, 0.0 }
0x3d87   :  { %7662 = vadd.xlane.f32.xlu1 %v7661_v52 }
0x3d98   :  { %7669 = vrot.lane.b32.xlu1 %v12598_v59, %s12972_s5 }
0x3da1   :  { %v7498_v60 = vpop.xlane.xlu1 %7497 }
0x3da2   :  { %11330 = vrcp.f32 %v7498_v60 }
0x3dac   :  { %v11331_v1 = vpop.eup %11330 }
0x3dad   :  { %v7500_v58 = vmul.f32 %v11331_v1, %v11327_v54 }
0x3daf   :  { %7501 = vst.msk [vmem:[#allocation3] sm:$0xff] %vm379_vm2, %v7500_v58  ;;  %10818 = vmatmul.mubr.msk.f32.vlgmr.msra.gmra.mrb[88].mxu1 %vm379_vm2, %v7500_v58 }
0x3db0   :  { %10827 = vmatprep.mubr.msk.f32.mxu1 %vm11395_vm1, %v11394_v20 }
0x3e14   :  { %v7663_v7 = vpop.xlane.xlu1 %7662 }
0x3e15   :  { %11332 = vrcp.f32 %v7663_v7 }
0x3e18   :  { %v7670_v11 = vpop.permute.xlu1 %7669 }
0x3e19   :  { %10826 = vmatpush3.msra.mxu1 %v7670_v11 }
0x3e1a   :  { %10835 = vmatprep.subr.mxu1 %v11394_v20 }
0x3e1f   :  { %v11333_v14 = vpop.eup %11332 }
0x3e20   :  { %v7665_v62 = vmul.f32 %v11333_v14, %v11329_v18 }
0x3e22   :  { %7667 = vst.msk [vmem:[#allocation3 + $0x8] sm:$0xff] %vm379_vm2, %v7665_v62  ;;  %10828 = vmatmul.mubr.msk.f32.vlgmr.msra.gmra.mrb[90].mxu1 %vm379_vm2, %v7665_v62 }
0x3e23   :  { %10836 = vmatpush3.msra.mxu1 %v12622_v4  ;;  %10837 = vmatprep.mubr.msk.f32.mxu1 %vm11395_vm1, %v11394_v20 }
0x3e24   :  { %10845 = vmatprep.subr.mxu1 %v11394_v20 }
0x3e82   :  { %v7571_v16 = vpop.f32.mrb[88].mxu1 }
0x3e83   :  { %v10819_v2 = vpop.f32.mrb[89].mxu1  ;;  %10838 = vmatmul.mubr.msk.f32.vlgmr.msra.gmra.mrb[92].mxu1 %vm379_vm2, %v7571_v16 }
0x3e84   :  { %10847 = vmatprep.mubr.msk.f32.mxu1 %vm11395_vm1, %v11394_v20 }
0x3ef5   :  { %v7741_v42 = vpop.f32.mrb[90].mxu1 }
0x3ef6   :  { %v10829_v49 = vpop.f32.mrb[91].mxu1  ;;  %10833 = vmatmul.mubr.msk.f32.vlgmr.msra.gmra.mrb[88].mxu0 %vm379_vm2, %v7741_v42 }
0x3ef7   :  { %10841 = vmatpush3.xpose.msk.msra.mxu0 %vm379_vm2, %v7894_v21  ;;  %10842 = vmatprep.mubr.msk.f32.mxu0 %vm11395_vm1, %v11394_v20 }
0x3ef8   :  { %10850 = vmatprep.subr.mxu0 %v11394_v20 }
0x3efa   :  { %10843 = vmatmul.mubr.msk.f32.vlgmr.msra.gmra.mrb[90].mxu0 %vm379_vm2, %v7892_v23 }
0x3efb   :  { %10852 = vmatprep.mubr.msk.f32.mxu0 %vm11395_vm1, %v11394_v20  ;;  %10851 = vmatpush3.msra.mxu0 %v12665_v30 }
0x3efc   :  { %10860 = vmatprep.subr.mxu0 %v11394_v20 }
0x3f56   :  { %v7887_v24 = vpop.f32.mrb[92].mxu1 }
0x3f57   :  { %v10839_v43 = vpop.f32.mrb[93].mxu1 }
0x3fc9   :  { %v7814_v26 = vpop.f32.mrb[88].mxu0 }
0x3fca   :  { %v12641_v63 = vadd.f32 %v7887_v24, %v7814_v26  ;;  %v10834_v61 = vpop.f32.mrb[89].mxu0 }
0x3fcd   :  { %v7965_v45 = vpop.f32.mrb[90].mxu0 }
0x3fce   :  { %v7969_v33 = vmul.f32 0.35355338, %v7965_v45  ;;  %v10844_v36 = vpop.f32.mrb[91].mxu0 }
0x3fd0   :  { %v7970_v46 = vadd.f32 %v7969_v33, %v11942_v27 }
0x3fd2   :  { %v7971_v50 = vsel %vm379_vm2, %v7970_v46, -inf }
0x3fd3   :  { %7972 = vmax.xlane.f32.xlu1 %v7971_v50 }
0x3fe4   :  { %8136 = vrot.lane.b32.xlu1 %v12564_v13, %s12975_s28 }
0x3fe8   :  { %8134 = vrot.lane.b32.xlu1 %v12574_v8, %s12975_s28 }
0x4060   :  { %v7973_v0 = vpop.xlane.xlu1 %7972 }
0x4061   :  { %v7974_v39 = vsub.f32 %v7970_v46, %v7973_v0  ;;  %v12736_v0 = vld [vmem:[%s12911_s11 + $0x1] ss:$0 sm:$0xff] }
0x4063   :  { %v7975_v41 = vmul.f32 1.442695, %v7974_v39 }
0x4064   :  { %v8137_v31 = vpop.permute.xlu1 %8136 }
0x4065   :  { %11334 = vpow2.f32 %v7975_v41 }
0x4068   :  { %v8135_v29 = vpop.permute.xlu1 %8134 }
0x406f   :  { %v11335_v34 = vpop.eup %11334 }
0x4070   :  { %v7977_v53 = vsel %vm379_vm2, %v11335_v34, 0.0 }
0x4071   :  { %7978 = vadd.xlane.f32.xlu0 %v7977_v53 }
0x4087   :  { %7984 = vrot.lane.b32.xlu0 %v12598_v59, %s12974_s4 }
0x40fe   :  { %v7979_v22 = vpop.xlane.xlu0 %7978 }
0x40ff   :  { %11336 = vrcp.f32 %v7979_v22 }
0x4102   :  { %v7985_v55 = vpop.permute.xlu0 %7984 }
0x4103   :  { %10846 = vmatpush3.msra.mxu1 %v7985_v55 }
0x4104   :  { %10855 = vmatprep.subr.mxu1 %v11394_v20 }
0x4109   :  { %v11337_v13 = vpop.eup %11336 }
0x410a   :  { %v7981_v8 = vmul.f32 %v11337_v13, %v11335_v34 }
0x410c   :  { %7983 = vst.msk [vmem:[#allocation3 + $0x10] sm:$0xff] %vm379_vm2, %v7981_v8  ;;  %10848 = vmatmul.mubr.msk.f32.vlgmr.msra.gmra.mrb[94].mxu1 %vm379_vm2, %v7981_v8 }
0x410d   :  { %10856 = vmatpush3.xpose.msk.msra.mxu1 %vm379_vm2, %v8137_v31  ;;  %10857 = vmatprep.mubr.msk.f32.mxu1 %vm11395_vm1, %v11394_v20 }
0x410e   :  { %10865 = vmatprep.subr.mxu1 %v11394_v20 }
0x4110   :  { %10858 = vmatmul.mubr.msk.f32.vlgmr.msra.gmra.mrb[96].mxu1 %vm379_vm2, %v8135_v29 }
0x4111   :  { %10867 = vmatprep.mubr.msk.f32.mxu1 %vm11395_vm1, %v11394_v20  ;;  %10866 = vmatpush3.msra.mxu1 %v12693_v6 }
0x4112   :  { %10875 = vmatprep.subr.mxu1 %v11394_v20 }
0x41df   :  { %v8056_v5 = vpop.f32.mrb[94].mxu1 }
0x41e0   :  { %v10849_v47 = vpop.f32.mrb[95].mxu1  ;;  %10853 = vmatmul.mubr.msk.f32.vlgmr.msra.gmra.mrb[92].mxu0 %vm379_vm2, %v8056_v5 }
0x41e1   :  { %10862 = vmatprep.mubr.msk.f32.mxu0 %vm11395_vm1, %v11394_v20 }
0x41e3   :  { %v8208_v9 = vpop.f32.mrb[96].mxu1 }
0x41e4   :  { %v8212_v28 = vmul.f32 0.35355338, %v8208_v9  ;;  %v10859_v35 = vpop.f32.mrb[97].mxu1 }
0x41e6   :  { %v8213_v48 = vadd.f32 %v8212_v28, %v11942_v27 }
0x41e8   :  { %v8214_v10 = vsel %vm379_vm2, %v8213_v48, -inf }
0x41e9   :  { %8215 = vmax.xlane.f32.xlu0 %v8214_v10 }
0x41ff   :  { %8227 = vrot.lane.b32.xlu0 %v12598_v59, %s12975_s28 }
0x4203   :  { %8549 = vrot.lane.b32.xlu0 %v12678_v32, %s12972_s5 }
0x4276   :  { %v8216_v54 = vpop.xlane.xlu0 %8215 }
0x4277   :  { %v8217_v3 = vsub.f32 %v8213_v48, %v8216_v54 }
0x4279   :  { %v8218_v56 = vmul.f32 1.442695, %v8217_v3 }
0x427a   :  { %v8228_v15 = vpop.permute.xlu0 %8227 }
0x427b   :  { %11338 = vpow2.f32 %v8218_v56  ;;  %10861 = vmatpush3.msra.mxu0 %v8228_v15 }
0x427c   :  { %10870 = vmatprep.subr.mxu0 %v11394_v20 }
0x427e   :  { %v8550_v1 = vpop.permute.xlu0 %8549 }
0x4285   :  { %v11339_v27 = vpop.eup %11338 }
0x4286   :  { %v8220_v44 = vsel %vm379_vm2, %v11339_v27, 0.0 }
0x4287   :  { %8221 = vadd.xlane.f32.xlu1 %v8220_v44 }
0x4298   :  { %8551 = vrot.lane.b32.xlu1 %v12686_v57, %s12972_s5 }
0x42b3   :  { %v8129_v19 = vpop.f32.mrb[92].mxu0 }
0x42b4   :  { %v8133_v59 = vadd.f32 %v8129_v19, %v12641_v63  ;;  %v10854_v18 = vpop.f32.mrb[93].mxu0 }
0x4314   :  { %v8222_v52 = vpop.xlane.xlu1 %8221 }
0x4315   :  { %11340 = vrcp.f32 %v8222_v52 }
0x4318   :  { %v8552_v60 = vpop.permute.xlu1 %8551 }
0x431f   :  { %v11341_v12 = vpop.eup %11340 }
0x4320   :  { %v8224_v37 = vmul.f32 %v11341_v12, %v11339_v27 }
0x4322   :  { %8226 = vst.msk [vmem:[#allocation3 + $0x18] sm:$0xff] %vm379_vm2, %v8224_v37  ;;  %10863 = vmatmul.mubr.msk.f32.vlgmr.msra.gmra.mrb[94].mxu0 %vm379_vm2, %v8224_v37 }
0x4323   :  { %10871 = vmatpush3.xpose.msk.msra.mxu0 %vm379_vm2, %v12686_v57  ;;  %10872 = vmatprep.mubr.msk.f32.mxu0 %vm11395_vm1, %v11394_v20 }
0x4324   :  { %10880 = vmatprep.subr.mxu0 %v11394_v20 }
0x4326   :  { %10873 = vmatmul.mubr.msk.f32.vlgmr.msra.gmra.mrb[96].mxu0 %vm379_vm2, %v12678_v32 }
0x4327   :  { %10881 = vmatpush3.xpose.msk.msra.mxu0 %vm379_vm2, %v8552_v60  ;;  %10882 = vmatprep.mubr.msk.f32.mxu0 %vm11395_vm1, %v11394_v20 }
0x4328   :  { %10890 = vmatprep.subr.mxu0 %v11394_v20 }
0x432a   :  { %10883 = vmatmul.mubr.msk.f32.vlgmr.msra.gmra.mrb[98].mxu0 %vm379_vm2, %v8550_v1 }
0x432b   :  { %10891 = vmatpush3.msra.mxu0 %v12614_v17  ;;  %10892 = vmatprep.mubr.msk.f32.mxu0 %vm11395_vm1, %v11394_v20 }
0x432c   :  { %10900 = vmatprep.subr.mxu0 %v11394_v20 }
0x43f5   :  { %v8299_v58 = vpop.f32.mrb[94].mxu0 }
0x43f6   :  { %v10864_v7 = vpop.f32.mrb[95].mxu0  ;;  %10868 = vmatmul.mubr.msk.f32.vlgmr.msra.gmra.mrb[98].mxu1 %vm379_vm2, %v8299_v58 }
0x43f7   :  { %10876 = vmatpush3.msra.mxu1 %v12600_v40  ;;  %10877 = vmatprep.mubr.msk.f32.mxu1 %vm11395_vm1, %v11394_v20 }
0x43f8   :  { %10885 = vmatprep.subr.mxu1 %v11394_v20 }
0x43f9   :  { %v8457_v11 = vpop.f32.mrb[96].mxu0 }
0x43fa   :  { %v8461_v14 = vmul.f32 0.35355338, %v8457_v11  ;;  %v10874_v62 = vpop.f32.mrb[97].mxu0 }
0x43fc   :  { %v8462_v17 = vadd.f32 %v8461_v14, %v12081_v38 }
0x43fd   :  { %v8623_v16 = vpop.f32.mrb[98].mxu0 }
0x43fe   :  { %v8627_v2 = vmul.f32 0.35355338, %v8623_v16  ;;  %v10884_v21 = vpop.f32.mrb[99].mxu0  ;;  %v8463_v42 = vsel %vm379_vm2, %v8462_v17, -inf }
0x43ff   :  { %8464 = vmax.xlane.f32.xlu1 %v8463_v42 }
0x4400   :  { %v8628_v49 = vadd.f32 %v8627_v2, %v12081_v38 }
0x4402   :  { %v8629_v23 = vsel %vm379_vm2, %v8628_v49, -inf }
0x4403   :  { %8630 = vmax.xlane.f32.xlu0 %v8629_v23 }
0x4410   :  { %8643 = vrot.lane.b32.xlu1 %v12600_v40, %s12972_s5 }
0x4414   :  { %8865 = vrot.lane.b32.xlu1 %v12678_v32, %s12974_s4 }
0x448c   :  { %v8465_v24 = vpop.xlane.xlu1 %8464 }
0x448d   :  { %v8466_v43 = vsub.f32 %v8462_v17, %v8465_v24 }
0x448f   :  { %v8467_v26 = vmul.f32 1.442695, %v8466_v43 }
0x4490   :  { %v8631_v63 = vpop.xlane.xlu0 %8630  ;;  %v8644_v8 = vpop.permute.xlu1 %8643 }
0x4491   :  { %11342 = vpow2.f32 %v8467_v26  ;;  %v8632_v61 = vsub.f32 %v8628_v49, %v8631_v63 }
0x4493   :  { %v8633_v45 = vmul.f32 1.442695, %v8632_v61 }
0x4495   :  { %11344 = vpow2.f32 %v8633_v45 }
0x449b   :  { %v11343_v33 = vpop.eup %11342 }
0x449c   :  { %v8469_v36 = vsel %vm379_vm2, %v11343_v33, 0.0 }
0x449d   :  { %8470 = vadd.xlane.f32.xlu0 %v8469_v36 }
0x449f   :  { %v11345_v46 = vpop.eup %11344 }
0x44a0   :  { %v8635_v50 = vsel %vm379_vm2, %v11345_v46, 0.0 }
0x44a1   :  { %8636 = vadd.xlane.f32.xlu0 %v8635_v50 }
0x44b7   :  { %8867 = vrot.lane.b32.xlu0 %v12686_v57, %s12974_s4 }
0x44c9   :  { %v8372_v39 = vpop.f32.mrb[98].mxu1 }
0x44ca   :  { %v8376_v41 = vadd.f32 %v8372_v39, %v8133_v59  ;;  %v10869_v34 = vpop.f32.mrb[99].mxu1 }
0x44cc   :  { %v8383_v53 = vadd.f32 %v12736_v0, %v8376_v41 }
0x44ce   :  { %8384 = vst.msk [vmem:[#allocation2] sm:$0xff] %vm108_vm0, %v8383_v53 }
0x44d5   :  { %v9353_v21 = vld [vmem:[#allocation2] sm:$0xff] }
0x452a   :  { %v8471_v22 = vpop.xlane.xlu0 %8470 }
0x452b   :  { %11346 = vrcp.f32 %v8471_v22 }
0x452e   :  { %v8637_v55 = vpop.xlane.xlu0 %8636 }
0x452f   :  { %11348 = vrcp.f32 %v8637_v55 }
0x4532   :  { %v8868_v35 = vpop.permute.xlu0 %8867 }
0x4535   :  { %v11347_v13 = vpop.eup %11346 }
0x4536   :  { %v8473_v31 = vmul.f32 %v11347_v13, %v11343_v33 }
0x4538   :  { %8475 = vst.msk [vmem:[#allocation3 + $0x20] sm:$0xff] %vm379_vm2, %v8473_v31  ;;  %10878 = vmatmul.mubr.msk.f32.vlgmr.msra.gmra.mrb[100].mxu1 %vm379_vm2, %v8473_v31 }
0x4539   :  { %v11349_v29 = vpop.eup %11348  ;;  %10886 = vmatpush3.msra.mxu1 %v8644_v8  ;;  %10887 = vmatprep.mubr.msk.f32.mxu1 %vm11395_vm1, %v11394_v20 }
0x453a   :  { %v8639_v5 = vmul.f32 %v11349_v29, %v11345_v46  ;;  %10895 = vmatprep.subr.mxu1 %v11394_v20 }
0x453c   :  { %8641 = vst.msk [vmem:[#allocation3 + $0x28] sm:$0xff] %vm379_vm2, %v8639_v5  ;;  %10888 = vmatmul.mubr.msk.f32.vlgmr.msra.gmra.mrb[102].mxu1 %vm379_vm2, %v8639_v5 }
0x453d   :  { %10896 = vmatpush3.msra.mxu1 %v12622_v4  ;;  %10897 = vmatprep.mubr.msk.f32.mxu1 %vm11395_vm1, %v11394_v20  ;;  %v8866_v4 = vpop.permute.xlu1 %8865 }
0x453e   :  { %10905 = vmatprep.subr.mxu1 %v11394_v20 }
0x460b   :  { %v8545_v47 = vpop.f32.mrb[100].mxu1 }
0x460c   :  { %v10879_v9 = vpop.f32.mrb[101].mxu1  ;;  %10898 = vmatmul.mubr.msk.f32.vlgmr.msra.gmra.mrb[104].mxu1 %vm379_vm2, %v8545_v47 }
0x460d   :  { %10907 = vmatprep.mubr.msk.f32.mxu1 %vm11395_vm1, %v11394_v20 }
0x460f   :  { %v8715_v28 = vpop.f32.mrb[102].mxu1 }
0x4610   :  { %v10889_v48 = vpop.f32.mrb[103].mxu1  ;;  %10893 = vmatmul.mubr.msk.f32.vlgmr.msra.gmra.mrb[100].mxu0 %vm379_vm2, %v8715_v28 }
0x4611   :  { %10901 = vmatpush3.xpose.msk.msra.mxu0 %vm379_vm2, %v8868_v35  ;;  %10902 = vmatprep.mubr.msk.f32.mxu0 %vm11395_vm1, %v11394_v20 }
0x4612   :  { %10910 = vmatprep.subr.mxu0 %v11394_v20 }
0x4614   :  { %10903 = vmatmul.mubr.msk.f32.vlgmr.msra.gmra.mrb[102].mxu0 %vm379_vm2, %v8866_v4 }
0x4615   :  { %10911 = vmatpush3.msra.mxu0 %v12665_v30  ;;  %10912 = vmatprep.mubr.msk.f32.mxu0 %vm11395_vm1, %v11394_v20 }
0x4616   :  { %10920 = vmatprep.subr.mxu0 %v11394_v20 }
0x46df   :  { %v8861_v10 = vpop.f32.mrb[104].mxu1 }
0x46e0   :  { %v10899_v54 = vpop.f32.mrb[105].mxu1 }
0x46e3   :  { %v8788_v3 = vpop.f32.mrb[100].mxu0 }
0x46e4   :  { %v8862_v56 = vadd.f32 %v8861_v10, %v8788_v3  ;;  %v10894_v15 = vpop.f32.mrb[101].mxu0 }
0x46e5   :  { %v9958_v15 = vld [vmem:[%s12978_s6 + $0x1] ss:$0 sm:$0xff] }
0x46e7   :  { %v8939_v27 = vpop.f32.mrb[102].mxu0 }
0x46e8   :  { %v8943_v44 = vmul.f32 0.35355338, %v8939_v27  ;;  %v10904_v19 = vpop.f32.mrb[103].mxu0 }
0x46e9   :  { %v9959_v19 = vld [vmem:[%s12918_s18 + $0x20] sm:$0xff] }
0x46ea   :  { %v8944_v59 = vadd.f32 %v8943_v44, %v12081_v38 }
0x46ec   :  { %v8945_v18 = vsel %vm379_vm2, %v8944_v59, -inf }
0x46ed   :  { %8946 = vmax.xlane.f32.xlu1 %v8945_v18 }
0x46fe   :  { %9110 = vrot.lane.b32.xlu1 %v12686_v57, %s12975_s28 }
0x4702   :  { %9108 = vrot.lane.b32.xlu1 %v12678_v32, %s12975_s28 }
0x477a   :  { %v8947_v30 = vpop.xlane.xlu1 %8946 }
0x477b   :  { %v8948_v52 = vsub.f32 %v8944_v59, %v8947_v30  ;;  %v9960_v59 = vld [vmem:[%s12918_s18 + $0x28] sm:$0xff]  ;;  %v9961_v30 = vld [vmem:[%s12918_s18 + $0x30] sm:$0xff] }
0x477c   :  { %v11091_v18 = vpack.c.bf16 %v9960_v59, %v9959_v19  ;;  %v9981_v19 = vld [vmem:[%s12916_s16 + $0x1] ss:$0 sm:$0xff] }
0x477d   :  { %v8949_v12 = vmul.f32 1.442695, %v8948_v52  ;;  %v9962_v52 = vld [vmem:[%s12918_s18 + $0x38] sm:$0xff] }
0x477e   :  { %v9111_v7 = vpop.permute.xlu1 %9110 }
0x477f   :  { %11350 = vpow2.f32 %v8949_v12  ;;  %v11095_v12 = vpack.c.bf16 %v9962_v52, %v9961_v30 }
0x4782   :  { %v9109_v11 = vpop.permute.xlu1 %9108 }
0x4789   :  { %v11351_v37 = vpop.eup %11350 }
0x478a   :  { %v8951_v60 = vsel %vm379_vm2, %v11351_v37, 0.0 }
0x478b   :  { %8952 = vadd.xlane.f32.xlu0 %v8951_v60  ;;  %v9965_v60 = vld [vmem:[%s12920_s20 + $0x48] sm:$0xff] }
0x47a1   :  { %8958 = vrot.lane.b32.xlu0 %v12600_v40, %s12974_s4 }
0x4818   :  { %v8953_v1 = vpop.xlane.xlu0 %8952 }
0x4819   :  { %11352 = vrcp.f32 %v8953_v1  ;;  %v9966_v1 = vld [vmem:[%s12920_s20 + $0x50] sm:$0xff] }
0x481c   :  { %v8959_v58 = vpop.permute.xlu0 %8958 }
0x481d   :  { %10906 = vmatpush3.msra.mxu1 %v8959_v58 }
0x481e   :  { %10915 = vmatprep.subr.mxu1 %v11394_v20 }
0x4823   :  { %v11353_v57 = vpop.eup %11352 }
0x4824   :  { %v8955_v32 = vmul.f32 %v11353_v57, %v11351_v37  ;;  %v9964_v37 = vld [vmem:[%s12920_s20 + $0x40] sm:$0xff]  ;;  %v9967_v57 = vld [vmem:[%s12920_s20 + $0x58] sm:$0xff] }
0x4825   :  { %v11099_v58 = vpack.c.bf16 %v9965_v60, %v9964_v37 }
0x4826   :  { %8957 = vst.msk [vmem:[#allocation3 + $0x30] sm:$0xff] %vm379_vm2, %v8955_v32  ;;  %10908 = vmatmul.mubr.msk.f32.vlgmr.msra.gmra.mrb[106].mxu1 %vm379_vm2, %v8955_v32  ;;  %v9968_v32 = vld [vmem:[%s12920_s20 + $0x60] sm:$0xff] }
0x4827   :  { %10916 = vmatpush3.xpose.msk.msra.mxu1 %vm379_vm2, %v9111_v7  ;;  %10917 = vmatprep.mubr.msk.f32.mxu1 %vm11395_vm1, %v11394_v20  ;;  %v11103_v7 = vpack.c.bf16 %v9967_v57, %v9966_v1 }
0x4828   :  { %10925 = vmatprep.subr.mxu1 %v11394_v20 }
0x482a   :  { %10918 = vmatmul.mubr.msk.f32.vlgmr.msra.gmra.mrb[108].mxu1 %vm379_vm2, %v9109_v11  ;;  %v9969_v11 = vld [vmem:[%s12920_s20 + $0x68] sm:$0xff] }
0x482b   :  { %10926 = vmatpush3.msra.mxu1 %v12693_v6  ;;  %10927 = vmatprep.mubr.msk.f32.mxu1 %vm11395_vm1, %v11394_v20  ;;  %v9355_v6 = vadd.f32 %v9353_v21, %v12528_v51 }
0x482c   :  { %11100 = vmatprep.subr.bf16.mxu1 %v11099_v58 }
0x482d   :  { %v9361_v23 = vsel %vm108_vm0, %v9355_v6, 0.0 }
0x48f9   :  { %v9030_v14 = vpop.f32.mrb[106].mxu1 }
0x48fa   :  { %v10909_v62 = vpop.f32.mrb[107].mxu1  ;;  %10913 = vmatmul.mubr.msk.f32.vlgmr.msra.gmra.mrb[104].mxu0 %vm379_vm2, %v9030_v14  ;;  %v11107_v14 = vpack.c.bf16 %v9969_v11, %v9968_v32 }
0x48fb   :  { %10922 = vmatprep.mubr.msk.f32.mxu0 %vm11395_vm1, %v11394_v20 }
0x48fd   :  { %v9182_v17 = vpop.f32.mrb[108].mxu1 }
0x48fe   :  { %v9186_v16 = vmul.f32 0.35355338, %v9182_v17  ;;  %v10919_v2 = vpop.f32.mrb[109].mxu1 }
0x4900   :  { %v9187_v42 = vadd.f32 %v9186_v16, %v12081_v38 }
0x4902   :  { %v9188_v49 = vsel %vm379_vm2, %v9187_v42, -inf }
0x4903   :  { %9189 = vmax.xlane.f32.xlu1 %v9188_v49 }
0x4907   :  { %9362 = vadd.xlane.f32.xlu1 %v9361_v23  ;;  %v9971_v23 = vld [vmem:[%s12920_s20 + $0x78] sm:$0xff] }
0x4990   :  { %v9190_v24 = vpop.xlane.xlu1 %9189 }
0x4991   :  { %v9191_v43 = vsub.f32 %v9187_v42, %v9190_v24 }
0x4993   :  { %v9192_v26 = vmul.f32 1.442695, %v9191_v43  ;;  %v9973_v43 = vld [vmem:[%s12919_s19 + $0x1] ss:$0 sm:$0xff] }
0x4994   :  { %v9363_v22 = vpop.xlane.xlu1 %9362 }
0x4995   :  { %11354 = vpow2.f32 %v9192_v26  ;;  %v9367_v55 = vmul.f32 0.03125, %v9363_v22 }
0x4997   :  { %v9369_v13 = vsub.f32 %v9355_v6, %v9367_v55  ;;  %v9970_v6 = vld [vmem:[%s12920_s20 + $0x70] sm:$0xff] }
0x4998   :  { %v11111_v24 = vpack.c.bf16 %v9971_v23, %v9970_v6 }
0x4999   :  { %v9371_v5 = vmul.f32 %v9369_v13, %v9369_v13 }
0x499b   :  { %v9373_v47 = vsel %vm108_vm0, %v9371_v5, 0.0 }
0x499f   :  { %v11355_v63 = vpop.eup %11354 }
0x49a0   :  { %v9194_v20 = vsel %vm379_vm2, %v11355_v63, 0.0 }
0x49a1   :  { %9195 = vadd.xlane.f32.xlu0 %v9194_v20 }
0x49b7   :  { %9201 = vrot.lane.b32.xlu0 %v12600_v40, %s12975_s28 }
0x49cd   :  { %v9103_v38 = vpop.f32.mrb[104].mxu0 }
0x49ce   :  { %v9107_v61 = vadd.f32 %v9103_v38, %v8862_v56  ;;  %v10914_v45 = vpop.f32.mrb[105].mxu0 }
0x4a2e   :  { %v9196_v33 = vpop.xlane.xlu0 %9195 }
0x4a2f   :  { %11356 = vrcp.f32 %v9196_v33  ;;  %v9976_v33 = vld [vmem:[%s12921_s21 + $0x1] ss:$0 sm:$0xff]  ;;  %s12979_s21 = sld [smem:[#allocation17_spill]] }
0x4a32   :  { %v9202_v51 = vpop.permute.xlu0 %9201 }
0x4a33   :  { %10921 = vmatpush3.msra.mxu0 %v9202_v51 }
0x4a34   :  { %11092 = vmatprep.subr.bf16.mxu0 %v11091_v18 }
0x4a39   :  { %v11357_v36 = vpop.eup %11356 }
0x4a3a   :  { %v9198_v46 = vmul.f32 %v11357_v36, %v11355_v63 }
0x4a3c   :  { %9200 = vst.msk [vmem:[#allocation3 + $0x38] sm:$0xff] %vm379_vm2, %v9198_v46  ;;  %10923 = vmatmul.mubr.msk.f32.vlgmr.msra.gmra.mrb[106].mxu0 %vm379_vm2, %v9198_v46 }
0x4a3d   :  { %11094 = vmatpush3.bf16.msra.mxu0 %v11091_v18  ;;  %v9982_v18 = vld [vmem:[%s12917_s17 + $0x1] ss:$0 sm:$0xff] }
0x4a3e   :  { %11096 = vmatprep.subr.bf16.mxu0 %v11095_v12 }
0x4a41   :  { %11098 = vmatpush3.bf16.msra.mxu0 %v11095_v12 }
0x4b0f   :  { %v9273_v50 = vpop.f32.mrb[106].mxu0 }
0x4b10   :  { %v10924_v39 = vpop.f32.mrb[107].mxu0  ;;  %10928 = vmatmul.mubr.msk.f32.vlgmr.msra.gmra.mrb[110].mxu1 %vm379_vm2, %v9273_v50 }
0x4b11   :  { %11102 = vmatpush3.bf16.msra.mxu1 %v11099_v58 }
0x4b12   :  { %11104 = vmatprep.subr.bf16.mxu1 %v11103_v7 }
0x4b15   :  { %11106 = vmatpush3.bf16.msra.mxu1 %v11103_v7 }
0x4b16   :  { %11108 = vmatprep.subr.bf16.mxu1 %v11107_v14 }
0x4b19   :  { %11110 = vmatpush3.bf16.msra.mxu1 %v11107_v14 }
0x4b1a   :  { %11112 = vmatprep.subr.bf16.mxu1 %v11111_v24 }
0x4b1d   :  { %11114 = vmatpush3.bf16.msra.mxu1 %v11111_v24 }
0x4be3   :  { %v9346_v41 = vpop.f32.mrb[110].mxu1 }
0x4be4   :  { %v9350_v34 = vadd.f32 %v9346_v41, %v9107_v61  ;;  %v10929_v40 = vpop.f32.mrb[111].mxu1 }
0x4be6   :  { %v9351_v53 = vadd.f32 %v12736_v0, %v9350_v34 }
0x4be8   :  { %9352 = vst.msk [vmem:[#allocation2 + $0x8] sm:$0xff] %vm108_vm0, %v9351_v53 }
0x4bef   :  { %v9354_v31 = vld [vmem:[#allocation2 + $0x8] sm:$0xff] }
0x4bf0   :  { %v9356_v8 = vadd.f32 %v9354_v31, %v12549_v25  ;;  %v9957_v25 = vld [vmem:[%s12914_s14 + $0x1] ss:$0 sm:$0xff] }
0x4bf2   :  { %v9364_v29 = vsel %vm108_vm0, %v9356_v8, 0.0 }
0x4bf3   :  { %9365 = vadd.xlane.f32.xlu1 %v9364_v29 }
0x4bf7   :  { %9374 = vadd.xlane.f32.xlu1 %v9373_v47 }
0x4c80   :  { %v9366_v9 = vpop.xlane.xlu1 %9365 }
0x4c81   :  { %v9368_v28 = vmul.f32 0.03125, %v9366_v9 }
0x4c83   :  { %v9370_v35 = vsub.f32 %v9356_v8, %v9368_v28  ;;  %v9645_v28 = vld [vmem:[%s12979_s21] sm:$0xff] }
0x4c84   :  { %v9375_v48 = vpop.xlane.xlu1 %9374 }
0x4c85   :  { %v9379_v0 = vmul.f32 0.03125, %v9375_v48  ;;  %v9372_v4 = vmul.f32 %v9370_v35, %v9370_v35 }
0x4c87   :  { %v9381_v10 = vadd.f32 1e-05, %v9379_v0  ;;  %v9376_v54 = vsel %vm108_vm0, %v9372_v4, 0.0  ;;  %v9647_v0 = vld [vmem:[%s12979_s21 + $0x10] sm:$0xff]  ;;  %v9648_v4 = vld [vmem:[%s12979_s21 + $0x18] sm:$0xff] }
0x4c88   :  { %9377 = vadd.xlane.f32.xlu1 %v9376_v54 }
0x4c89   :  { %11358 = vrsqrt.f32 %v9381_v10  ;;  %v11119_v10 = vpack.c.bf16 %v9648_v4, %v9647_v0 }
0x4c93   :  { %v11359_v3 = vpop.eup %11358 }
0x4c94   :  { %v9385_v56 = vmul.f32 %v11359_v3, %v9369_v13 }
0x4c96   :  { %v9393_v27 = vmul.f32 %v9957_v25, %v9385_v56 }
0x4c98   :  { %v9401_v44 = vadd.f32 %v9958_v15, %v9393_v27 }
0x4c9a   :  { %10938 = vmatprep.mubr.msk.f32.mxu0 %vm108_vm0, %v9401_v44 }
0x4d15   :  { %v9378_v62 = vpop.xlane.xlu1 %9377 }
0x4d16   :  { %v9380_v17 = vmul.f32 0.03125, %v9378_v62 }
0x4d18   :  { %v9382_v16 = vadd.f32 1e-05, %v9380_v17 }
0x4d1a   :  { %11360 = vrsqrt.f32 %v9382_v16 }
0x4d24   :  { %v11361_v2 = vpop.eup %11360 }
0x4d25   :  { %v9386_v21 = vmul.f32 %v11361_v2, %v9370_v35  ;;  %v9646_v35 = vld [vmem:[%s12979_s21 + $0x8] sm:$0xff] }
0x4d26   :  { %v11115_v48 = vpack.c.bf16 %v9646_v35, %v9645_v28 }
0x4d27   :  { %v9394_v42 = vmul.f32 %v9957_v25, %v9386_v21 }
0x4d28   :  { %11116 = vmatprep.subr.bf16.mxu0 %v11115_v48 }
0x4d29   :  { %v9402_v49 = vadd.f32 %v9958_v15, %v9394_v42 }
0x4d2b   :  { %10939 = vmatmul.mubr.msk.f32.vlgmr.msra.gmra.mrb[108].mxu0 %vm108_vm0, %v9402_v49 }
0x4d2c   :  { %11118 = vmatpush3.bf16.msra.mxu0 %v11115_v48 }
0x4d2d   :  { %11120 = vmatprep.subr.bf16.mxu0 %v11119_v10 }
0x4d30   :  { %11122 = vmatpush3.bf16.msra.mxu0 %v11119_v10 }
0x4dfe   :  { %v10940_v26 = vpop.f32.mrb[108].mxu0 }
0x4dff   :  { %v9505_v63 = vadd.f32 %v10940_v26, %v9973_v43  ;;  %v9499_v20 = vpop.f32.mrb[109].mxu0 }
0x4e00   :  { %v9500_v38 = vadd.f32 %v9973_v43, %v9499_v20 }
0x4e01   :  { %v9509_v45 = vmax.f32 %v9505_v63, 0.0 }
0x4e02   :  { %v9508_v61 = vmax.f32 %v9500_v38, 0.0 }
0x4e04   :  { %10957 = vmatprep.mubr.msk.f32.mxu1 %vm4738_vm4, %v9508_v61 }
0x4e05   :  { %10958 = vmatmul.mubr.msk.f32.vlgmr.msra.gmra.mrb[112].mxu1 %vm4738_vm4, %v9509_v45 }
0x4ed8   :  { %v10959_v51 = vpop.f32.mrb[112].mxu1 }
0x4ed9   :  { %v9594_v36 = vadd.f32 %v10959_v51, %v9976_v33  ;;  %v9588_v46 = vpop.f32.mrb[113].mxu1 }
0x4eda   :  { %v9589_v50 = vadd.f32 %v9976_v33, %v9588_v46 }
0x4edb   :  { %v9598_v39 = vadd.f32 %v9594_v36, %v9402_v49 }
0x4edc   :  { %v9597_v41 = vadd.f32 %v9589_v50, %v9401_v44 }
0x4edd   :  { %v9606_v34 = vsel %vm108_vm0, %v9598_v39, 0.0 }
0x4ede   :  { %9607 = vadd.xlane.f32.xlu0 %v9606_v34  ;;  %v9603_v40 = vsel %vm108_vm0, %v9597_v41, 0.0 }
0x4edf   :  { %9604 = vadd.xlane.f32.xlu1 %v9603_v40 }
0x4f6b   :  { %v9608_v53 = vpop.xlane.xlu0 %9607 }
0x4f6c   :  { %v9610_v22 = vmul.f32 0.03125, %v9608_v53  ;;  %v9605_v55 = vpop.xlane.xlu1 %9604 }
0x4f6d   :  { %v9609_v13 = vmul.f32 0.03125, %v9605_v55 }
0x4f6e   :  { %v9612_v31 = vsub.f32 %v9598_v39, %v9610_v22 }
0x4f6f   :  { %v9611_v8 = vsub.f32 %v9597_v41, %v9609_v13 }
0x4f70   :  { %v9614_v47 = vmul.f32 %v9612_v31, %v9612_v31 }
0x4f71   :  { %v9613_v29 = vmul.f32 %v9611_v8, %v9611_v8 }
0x4f72   :  { %v9618_v9 = vsel %vm108_vm0, %v9614_v47, 0.0 }
0x4f73   :  { %v9615_v5 = vsel %vm108_vm0, %v9613_v29, 0.0 }
0x4f74   :  { %9616 = vadd.xlane.f32.xlu1 %v9615_v5 }
0x4f78   :  { %9619 = vadd.xlane.f32.xlu1 %v9618_v9 }
0x5001   :  { %v9617_v54 = vpop.xlane.xlu1 %9616 }
0x5002   :  { %v9621_v3 = vmul.f32 0.03125, %v9617_v54 }
0x5004   :  { %v9623_v25 = vadd.f32 1e-05, %v9621_v3 }
0x5005   :  { %v9620_v56 = vpop.xlane.xlu1 %9619 }
0x5006   :  { %11362 = vrsqrt.f32 %v9623_v25  ;;  %v9622_v15 = vmul.f32 0.03125, %v9620_v56 }
0x5008   :  { %v9624_v27 = vadd.f32 1e-05, %v9622_v15 }
0x500a   :  { %11364 = vrsqrt.f32 %v9624_v27 }
0x5010   :  { %v11363_v44 = vpop.eup %11362 }
0x5011   :  { %v9627_v59 = vmul.f32 %v11363_v44, %v9611_v8 }
0x5013   :  { %v9635_v30 = vmul.f32 %v9981_v19, %v9627_v59 }
0x5014   :  { %v11365_v52 = vpop.eup %11364 }
0x5015   :  { %v9628_v12 = vmul.f32 %v11365_v52, %v9612_v31  ;;  %v9643_v37 = vadd.f32 %v9982_v18, %v9635_v30 }
0x5017   :  { %v9636_v60 = vmul.f32 %v9981_v19, %v9628_v12  ;;  %10968 = vmatprep.mubr.msk.f32.mxu0 %vm108_vm0, %v9643_v37 }
0x5019   :  { %v9644_v1 = vadd.f32 %v9982_v18, %v9636_v60 }
0x501b   :  { %10969 = vmatmul.mubr.msk.f32.vlgmr.msra.gmra.mrb[110].mxu0 %vm108_vm0, %v9644_v1 }
0x501c   :  { %11379 = shalt.err (!%p11376_p4)
}
0x501d   :  { %s12980_s7 = sld [smem:[#allocation20_spill]] }
0x5023   :  { %s11380_s18 = scalar_lea.hbm %s12980_s7, 1024 }
0x5024   :  { %p11381_p5 = scmp.ne.s32.totalorder %s12980_s7, %s11380_s18  ;;  %p11384_p6 = scmp.lt.u32.totalorder %s11380_s18, %s12980_s7 }
0x5026   :  { %p11386_p7 = pnand %p11384_p6, %p11381_p5 }
0x5028   :  { %11389 = shalt.err (!%p11386_p7)
}
0x5029   :  { %s11401_s11 = smov 128   ;;  %s11402_s4 = smov 8  }
0x502a   :  { %9752 = dma.vmem_to_hbm [thread:$0]  %s9747_s23, 1024, %s12980_s7, [#allocation4], %s11401_s11, %s11401_s11, %s11402_s4  }
0x502b   :  { %s12981_s9 = sld [smem:[#allocation18_spill]]  ;;  %s12982_s21 = sld [smem:[#allocation19_spill]] }
0x5031   :  { %v9983_v58 = vld [vmem:[%s12981_s9] ss:$0 sm:$0xff] }
0x50ee   :  { %v10970_v57 = vpop.f32.mrb[110].mxu0 }
0x50ef   :  { %v9734_v7 = vadd.f32 %v10970_v57, %v9983_v58  ;;  %v9728_v32 = vpop.f32.mrb[111].mxu0 }
0x50f0   :  { %v9729_v11 = vadd.f32 %v9983_v58, %v9728_v32 }
0x50f1   :  { %9738 = vst [vmem:[%s12982_s21 + $0x8] sm:$0xff] %v9734_v7 }
0x50f2   :  { %9737 = vst [vmem:[%s12982_s21] sm:$0xff] %v9729_v11 }
0x50f3   :  { %11390 = dma.done.wait [#allocation4], 1024  }
0x50f4   :  { %11391 = vsyncadd [#allocation4], 4294966272 }
0x50f5   :  { %9758 = vsyncpa [#allocation4], 1 }

</bundles_post_ra>
